<compile_context>
chip_gen: v7x
topology: tpu7x:2x2x1
jax: 0.10.0
libtpu: 0.0.40
codegen_flags: <defaults>
</compile_context>

<pallas_src>
import functools
import math

import jax
import jax.numpy as jnp
from jax.experimental import pallas as pl
from jax.experimental.pallas import tpu as pltpu


# ---------------------------------------------------------------------------
# Pallas kernel 1: fused matmul + bias (+ optional residual add)
# Every conv = im2col + this kernel.
# ---------------------------------------------------------------------------
def _matmul_bias_kernel(a_ref, b_ref, bias_ref, o_ref):
    acc = jnp.dot(a_ref[...], b_ref[...], preferred_element_type=jnp.float32)
    o_ref[...] = (acc + bias_ref[...]).astype(o_ref.dtype)


def _matmul_bias_res_kernel(a_ref, b_ref, bias_ref, r_ref, o_ref):
    acc = jnp.dot(a_ref[...], b_ref[...], preferred_element_type=jnp.float32)
    acc = acc + bias_ref[...] + r_ref[...].astype(jnp.float32)
    o_ref[...] = acc.astype(o_ref.dtype)


def _pick_row_tile(m):
    for tm in (512, 256, 128, 64, 32, 16, 8):
        if m % tm == 0:
            return tm
    return m  # single full-M block (still legal: full-dim block)


def matmul_bias(a, b, bias, residual=None):
    """(M, K) @ (K, N) + bias [+ residual], K and N whole & resident in VMEM."""
    m, k = a.shape
    k2, n = b.shape
    assert k == k2, (a.shape, b.shape)
    tm = _pick_row_tile(m)
    grid = (m // tm,)
    row_spec = pl.BlockSpec((tm, k), lambda i: (i, 0))     # big row tile
    w_spec = pl.BlockSpec((k, n), lambda i: (0, 0))        # weights: resident
    bias_spec = pl.BlockSpec((1, n), lambda i: (0, 0))     # bias: resident
    out_spec = pl.BlockSpec((tm, n), lambda i: (i, 0))
    cparams = pltpu.CompilerParams(dimension_semantics=("parallel",))

    if residual is None:
        return pl.pallas_call(
            _matmul_bias_kernel,
            out_shape=jax.ShapeDtypeStruct((m, n), a.dtype),
            grid=grid,
            in_specs=[row_spec, w_spec, bias_spec],
            out_specs=out_spec,
            compiler_params=cparams,
        )(a, b, bias.reshape(1, n))
    else:
        res_spec = pl.BlockSpec((tm, n), lambda i: (i, 0))
        return pl.pallas_call(
            _matmul_bias_res_kernel,
            out_shape=jax.ShapeDtypeStruct((m, n), a.dtype),
            grid=grid,
            in_specs=[row_spec, w_spec, bias_spec, res_spec],
            out_specs=out_spec,
            compiler_params=cparams,
        )(a, b, bias.reshape(1, n), residual.reshape(m, n))


# ---------------------------------------------------------------------------
# Pallas kernel 2: fused GroupNorm (+ optional swish)
# ---------------------------------------------------------------------------
def _group_norm_swish_kernel(x_ref, gamma_ref, beta_ref, pool_ref, o_ref, *,
                             eps, apply_swish):
    x = x_ref[0]                                         # (HW, C) f32
    s = jnp.sum(x, axis=0, keepdims=True)                # (1, C) per-channel sum
    ss = jnp.sum(x * x, axis=0, keepdims=True)           # (1, C) per-channel sumsq
    # pool[j, i] = 1/(HW*cpg) if channels i, j are in the same group.
    mean = jnp.dot(s, pool_ref[...], preferred_element_type=jnp.float32)
    ex2 = jnp.dot(ss, pool_ref[...], preferred_element_type=jnp.float32)
    var = ex2 - mean * mean
    scale = jax.lax.rsqrt(var + eps) * gamma_ref[...]
    y = (x - mean) * scale + beta_ref[...]
    if apply_swish:
        y = y * (1.0 / (1.0 + jnp.exp(-y)))               # x * sigmoid(x)
    o_ref[0] = y.astype(o_ref.dtype)


def group_norm_swish(x, gamma, beta, *, num_groups=32, eps=1e-6, swish=True):
    b, h, w, c = x.shape
    hw = h * w
    cpg = c // num_groups
    g = jnp.arange(c) // cpg
    pool = (g[:, None] == g[None, :]).astype(jnp.float32) / float(hw * cpg)
    x3 = x.reshape(b, hw, c)
    kernel = functools.partial(_group_norm_swish_kernel, eps=eps,
                               apply_swish=swish)
    out = pl.pallas_call(
        kernel,
        out_shape=jax.ShapeDtypeStruct((b, hw, c), x.dtype),
        grid=(b,),
        in_specs=[
            pl.BlockSpec((1, hw, c), lambda i: (i, 0, 0)),
            pl.BlockSpec((1, c), lambda i: (0, 0)),       # gamma: resident
            pl.BlockSpec((1, c), lambda i: (0, 0)),       # beta: resident
            pl.BlockSpec((c, c), lambda i: (0, 0)),       # group pool matrix
        ],
        out_specs=pl.BlockSpec((1, hw, c), lambda i: (i, 0, 0)),
        compiler_params=pltpu.CompilerParams(
            dimension_semantics=("parallel",)),
    )(x3, gamma.reshape(1, c), beta.reshape(1, c), pool)
    return out.reshape(b, h, w, c)


# ---------------------------------------------------------------------------
# Convolution = im2col (JAX staging) + Pallas matmul+bias kernel
# ---------------------------------------------------------------------------
def _im2col(x, kh, kw, stride, pad_h, pad_w):
    b, h, w, c = x.shape
    xp = jnp.pad(x, ((0, 0), pad_h, pad_w, (0, 0)))
    hp = h + pad_h[0] + pad_h[1]
    wp = w + pad_w[0] + pad_w[1]
    ho = (hp - kh) // stride + 1
    wo = (wp - kw) // stride + 1
    cols = []
    for dy in range(kh):
        for dx in range(kw):
            cols.append(xp[:, dy:dy + stride * ho:stride,
                           dx:dx + stride * wo:stride, :])
    patches = jnp.concatenate(cols, axis=-1)              # (B, Ho, Wo, kh*kw*C)
    return patches, ho, wo


def conv2d(x, w_hwio, bias, *, stride=1, pad_h=(0, 0), pad_w=(0, 0),
           residual=None):
    kh, kw, cin, cout = w_hwio.shape
    patches, ho, wo = _im2col(x, kh, kw, stride, pad_h, pad_w)
    b = x.shape[0]
    m = b * ho * wo
    k = kh * kw * cin
    out = matmul_bias(patches.reshape(m, k), w_hwio.reshape(k, cout), bias,
                      residual=residual)
    return out.reshape(b, ho, wo, cout)


# ---------------------------------------------------------------------------
# Encoder forward (shared skeleton, parameterized by conv / norm impls)
# ---------------------------------------------------------------------------
def _resnet_block(x, p, conv_fn, gn_fn):
    h = gn_fn(x, p["norm1"]["gamma"], p["norm1"]["beta"], swish=True)
    h = conv_fn(h, p["conv1"]["w"], p["conv1"]["b"],
                stride=1, pad_h=(1, 1), pad_w=(1, 1))
    h = gn_fn(h, p["norm2"]["gamma"], p["norm2"]["beta"], swish=True)
    # Dropout(p=0.0) is the identity at inference; temb is None (temb_ch=0).
    if p["in_ch"] != p["out_ch"]:
        x = conv_fn(x, p["nin_shortcut"]["w"], p["nin_shortcut"]["b"],
                    stride=1, pad_h=(0, 0), pad_w=(0, 0))
    # Residual add fused into the second conv's matmul epilogue.
    h = conv_fn(h, p["conv2"]["w"], p["conv2"]["b"],
                stride=1, pad_h=(1, 1), pad_w=(1, 1), residual=x)
    return h


def _encoder_forward_impl(x_nchw, params, cfg, conv_fn, gn_fn):
    num_resolutions = len(cfg["ch_mult"])
    x = jnp.transpose(x_nchw, (0, 2, 3, 1))                # NCHW -> NHWC
    h = conv_fn(x, params["conv_in"]["w"], params["conv_in"]["b"],
                stride=1, pad_h=(1, 1), pad_w=(1, 1))
    for i_level in range(num_resolutions):
        level = params["down"][i_level]
        for i_block in range(cfg["num_res_blocks"]):
            h = _resnet_block(h, level["blocks"][i_block], conv_fn, gn_fn)
            # TODO(synk): AttnBlock path (use_attn=True) not implemented;
            # default config uses use_attn=False so it is never exercised.
        if i_level != num_resolutions - 1:
            # torch: F.pad(x, (0,1,0,1)) then 3x3 stride-2 conv, padding=0.
            h = conv_fn(h, level["downsample"]["w"], level["downsample"]["b"],
                        stride=2, pad_h=(0, 1), pad_w=(0, 1))
    h = _resnet_block(h, params["mid_block_1"], conv_fn, gn_fn)
    h = _resnet_block(h, params["mid_block_2"], conv_fn, gn_fn)
    h = gn_fn(h, params["norm_out"]["gamma"], params["norm_out"]["beta"],
              swish=True)
    h = conv_fn(h, params["conv_out"]["w"], params["conv_out"]["b"],
                stride=1, pad_h=(1, 1), pad_w=(1, 1))
    return jnp.transpose(h, (0, 3, 1, 2))                  # NHWC -> NCHW


def encoder_forward(x, params, cfg):
    return _encoder_forward_impl(x, params, cfg, conv2d, group_norm_swish)


# ---------------------------------------------------------------------------
# Pure-JAX reference (lax.conv + standard GroupNorm) for correctness check
# ---------------------------------------------------------------------------
def _ref_conv2d(x, w_hwio, bias, *, stride=1, pad_h=(0, 0), pad_w=(0, 0),
                residual=None):
    out = jax.lax.conv_general_dilated(
        x, w_hwio, window_strides=(stride, stride),
        padding=(tuple(pad_h), tuple(pad_w)),
        dimension_numbers=("NHWC", "HWIO", "NHWC"),
        precision=jax.lax.Precision.HIGHEST)
    out = out + bias.reshape(1, 1, 1, -1)
    if residual is not None:
        out = out + residual
    return out


def _ref_group_norm_swish(x, gamma, beta, *, num_groups=32, eps=1e-6,
                          swish=True):
    b, h, w, c = x.shape
    cpg = c // num_groups
    xr = x.reshape(b, h * w, num_groups, cpg)
    mean = jnp.mean(xr, axis=(1, 3), keepdims=True)
    var = jnp.mean(xr * xr, axis=(1, 3), keepdims=True) - mean * mean
    y = (xr - mean) * jax.lax.rsqrt(var + eps)
    y = y.reshape(b, h, w, c) * gamma.reshape(1, 1, 1, c) \
        + beta.reshape(1, 1, 1, c)
    if swish:
        y = y * (1.0 / (1.0 + jnp.exp(-y)))
    return y


def encoder_forward_ref(x, params, cfg):
    return _encoder_forward_impl(x, params, cfg, _ref_conv2d,
                                 _ref_group_norm_swish)


# ---------------------------------------------------------------------------
# Parameter construction (deterministic)
# ---------------------------------------------------------------------------
def _conv_params(key, kh, kw, cin, cout):
    kw_, kb_ = jax.random.split(key)
    scale = 1.0 / math.sqrt(kh * kw * cin)
    return {
        "w": jax.random.normal(kw_, (kh, kw, cin, cout), jnp.float32) * scale,
        "b": jax.random.normal(kb_, (cout,), jnp.float32) * 0.01,
    }


def _norm_params(c):
    return {"gamma": jnp.ones((c,), jnp.float32),
            "beta": jnp.zeros((c,), jnp.float32)}


def _resblock_params(key, cin, cout):
    k1, k2, k3 = jax.random.split(key, 3)
    p = {
        "in_ch": cin, "out_ch": cout,
        "norm1": _norm_params(cin),
        "conv1": _conv_params(k1, 3, 3, cin, cout),
        "norm2": _norm_params(cout),
        "conv2": _conv_params(k2, 3, 3, cout, cout),
    }
    if cin != cout:
        p["nin_shortcut"] = _conv_params(k3, 1, 1, cin, cout)
    return p


def init_encoder_params(key, cfg):
    hidden_dim = cfg["hidden_dim"]
    in_channels = cfg["in_channels"]
    ch_mult = cfg["ch_mult"]
    num_res_blocks = cfg["num_res_blocks"]
    z_channels = cfg["z_channels"]
    num_resolutions = len(ch_mult)
    keys = iter(jax.random.split(key, 64))

    params = {"conv_in": _conv_params(next(keys), 3, 3, in_channels, hidden_dim)}
    in_ch_mult = (1,) + tuple(ch_mult)
    down = []
    block_in = hidden_dim
    for i_level in range(num_resolutions):
        block_in = hidden_dim * in_ch_mult[i_level]
        block_out = hidden_dim * ch_mult[i_level]
        blocks = []
        for _ in range(num_res_blocks):
            blocks.append(_resblock_params(next(keys), block_in, block_out))
            block_in = block_out
        level = {"blocks": blocks}
        if i_level != num_resolutions - 1:
            level["downsample"] = _conv_params(next(keys), 3, 3, block_in,
                                               block_in)
        down.append(level)
    params["down"] = down
    params["mid_block_1"] = _resblock_params(next(keys), block_in, block_in)
    params["mid_block_2"] = _resblock_params(next(keys), block_in, block_in)
    params["norm_out"] = _norm_params(block_in)
    out_ch = 2 * z_channels if cfg["double_z"] else z_channels
    params["conv_out"] = _conv_params(next(keys), 3, 3, block_in, out_ch)
    return params


# ---------------------------------------------------------------------------
if __name__ == "__main__":
    cfg = dict(
        hidden_dim=32, in_channels=3, ch_mult=(1, 2), num_res_blocks=1,
        attn_resolutions=(), dropout=0.0, resamp_with_conv=True,
        resolution=16, z_channels=8, double_z=True, use_attn=False,
    )
    key = jax.random.PRNGKey(0)
    k_params, k_x = jax.random.split(key)
    params = init_encoder_params(k_params, cfg)
    x = jax.random.normal(
        k_x, (2, cfg["in_channels"], cfg["resolution"], cfg["resolution"]),
        jnp.float32)

    fwd = jax.jit(lambda inp: encoder_forward(inp, params, cfg))
    out = jax.block_until_ready(fwd(x))

    out_ch = 2 * cfg["z_channels"] if cfg["double_z"] else cfg["z_channels"]
    out_res = cfg["resolution"] // (2 ** (len(cfg["ch_mult"]) - 1))
    assert out.shape == (2, out_ch, out_res, out_res), out.shape

    ref_fwd = jax.jit(lambda inp: encoder_forward_ref(inp, params, cfg))
    ref = jax.block_until_ready(ref_fwd(x))
    rel_err = float(jnp.max(jnp.abs(out - ref)) /
                    (jnp.max(jnp.abs(ref)) + 1e-6))
    # Loose threshold: tolerates MXU f32 pass-count differences between the
    # Mosaic and XLA defaults; structural bugs would give O(1) errors.
    assert rel_err < 0.1, f"mismatch vs reference: rel_err={rel_err}"

    print("KERNEL_OK")
</pallas_src>

<mosaic_0001>
module attributes {stable_mosaic.version = 11 : i64} {
  func.func @_matmul_bias_kernel(%arg0: i32, %arg1: memref<512x27xf32, #tpu.memory_space<vmem>>, %arg2: memref<27x32xf32, #tpu.memory_space<vmem>>, %arg3: memref<1x32xf32, #tpu.memory_space<vmem>>, %arg4: memref<512x32xf32, #tpu.memory_space<vmem>>) attributes {dimension_semantics = [#tpu.dimension_semantics<parallel>], iteration_bounds = array<i64: 1>, scalar_prefetch = 0 : i64, scratch_operands = 0 : i64, tpu.core_type = #tpu.core_type<tc>, window_params = [{transform_indices = @transform_0, window_bounds = array<i64: 512, 27>}, {pipeline_mode = #tpu.pipeline_mode<synchronous>, transform_indices = @transform_1, window_bounds = array<i64: 27, 32>}, {pipeline_mode = #tpu.pipeline_mode<synchronous>, transform_indices = @transform_2, window_bounds = array<i64: 1, 32>}, {transform_indices = @transform_3, window_bounds = array<i64: 512, 32>}]} {
    %c0 = arith.constant 0 : index
    %c0_0 = arith.constant 0 : index
    %0 = vector.load %arg1[%c0, %c0_0] : memref<512x27xf32, #tpu.memory_space<vmem>>, vector<512x27xf32>
    %c0_1 = arith.constant 0 : index
    %c0_2 = arith.constant 0 : index
    %1 = vector.load %arg2[%c0_1, %c0_2] : memref<27x32xf32, #tpu.memory_space<vmem>>, vector<27x32xf32>
    %cst = arith.constant dense<0.000000e+00> : vector<512x32xf32>
    %2 = tpu.matmul %0, %1, %cst {dimension_numbers = #tpu.dot_dimension_numbers<[1], [0], [0], [1], [0, 0, 1, 1], [], []>} : vector<512x27xf32>, vector<27x32xf32>, vector<512x32xf32> -> vector<512x32xf32>
    %c0_3 = arith.constant 0 : index
    %c0_4 = arith.constant 0 : index
    %3 = vector.load %arg3[%c0_3, %c0_4] : memref<1x32xf32, #tpu.memory_space<vmem>>, vector<1x32xf32>
    %4 = vector.broadcast %3 : vector<1x32xf32> to vector<512x32xf32>
    %5 = arith.addf %2, %4 : vector<512x32xf32>
    %c0_5 = arith.constant 0 : index
    %c0_6 = arith.constant 0 : index
    %6 = vector.load %arg4[%c0_5, %c0_6] : memref<512x32xf32, #tpu.memory_space<vmem>>, vector<512x32xf32>
    tpu.vector_store %arg4[%c0_5, %c0_6], %5 {strides = array<i32>} : memref<512x32xf32, #tpu.memory_space<vmem>>, vector<512x32xf32>,
    return
  }
  func.func @transform_0(%arg0: i32) -> (i32, i32) {
    %c0_i32 = arith.constant 0 : i32
    %c0_i32_0 = arith.constant 0 : i32
    return %arg0, %c0_i32 : i32, i32
  }
  func.func @transform_1(%arg0: i32) -> (i32, i32) {
    %c0_i32 = arith.constant 0 : i32
    %c0_i32_0 = arith.constant 0 : i32
    %c0_i32_1 = arith.constant 0 : i32
    return %c0_i32, %c0_i32_0 : i32, i32
  }
  func.func @transform_2(%arg0: i32) -> (i32, i32) {
    %c0_i32 = arith.constant 0 : i32
    %c0_i32_0 = arith.constant 0 : i32
    %c0_i32_1 = arith.constant 0 : i32
    return %c0_i32, %c0_i32_0 : i32, i32
  }
  func.func @transform_3(%arg0: i32) -> (i32, i32) {
    %c0_i32 = arith.constant 0 : i32
    %c0_i32_0 = arith.constant 0 : i32
    return %arg0, %c0_i32 : i32, i32
  }
}

module attributes {stable_mosaic.version = 11 : i64} {
  func.func @_group_norm_swish_kernel(%arg0: i32, %arg1: memref<1x256x32xf32, #tpu.memory_space<vmem>>, %arg2: memref<1x32xf32, #tpu.memory_space<vmem>>, %arg3: memref<1x32xf32, #tpu.memory_space<vmem>>, %arg4: memref<32x32xf32, #tpu.memory_space<vmem>>, %arg5: memref<1x256x32xf32, #tpu.memory_space<vmem>>) attributes {dimension_semantics = [#tpu.dimension_semantics<parallel>], iteration_bounds = array<i64: 2>, scalar_prefetch = 0 : i64, scratch_operands = 0 : i64, tpu.core_type = #tpu.core_type<tc>, window_params = [{transform_indices = @transform_0, window_bounds = array<i64: 1, 256, 32>}, {pipeline_mode = #tpu.pipeline_mode<synchronous>, transform_indices = @transform_1, window_bounds = array<i64: 1, 32>}, {pipeline_mode = #tpu.pipeline_mode<synchronous>, transform_indices = @transform_2, window_bounds = array<i64: 1, 32>}, {pipeline_mode = #tpu.pipeline_mode<synchronous>, transform_indices = @transform_3, window_bounds = array<i64: 32, 32>}, {transform_indices = @transform_4, window_bounds = array<i64: 1, 256, 32>}]} {
    %c0 = arith.constant 0 : index
    %c0_0 = arith.constant 0 : index
    %c0_1 = arith.constant 0 : index
    %0 = vector.load %arg1[%c0, %c0_0, %c0_1] : memref<1x256x32xf32, #tpu.memory_space<vmem>>, vector<1x256x32xf32>
    %1 = vector.shape_cast %0 : vector<1x256x32xf32> to vector<256x32xf32>
    %cst = arith.constant dense<0.000000e+00> : vector<32xf32>
    %2 = vector.multi_reduction <add>, %1, %cst [0] : vector<256x32xf32> to vector<32xf32>
    %3 = vector.shape_cast %2 : vector<32xf32> to vector<1x32xf32>
    %4 = arith.mulf %1, %1 : vector<256x32xf32>
    %cst_2 = arith.constant dense<0.000000e+00> : vector<32xf32>
    %5 = vector.multi_reduction <add>, %4, %cst_2 [0] : vector<256x32xf32> to vector<32xf32>
    %6 = vector.shape_cast %5 : vector<32xf32> to vector<1x32xf32>
    %c0_3 = arith.constant 0 : index
    %c0_4 = arith.constant 0 : index
    %7 = vector.load %arg4[%c0_3, %c0_4] : memref<32x32xf32, #tpu.memory_space<vmem>>, vector<32x32xf32>
    %cst_5 = arith.constant dense<0.000000e+00> : vector<1x32xf32>
    %8 = tpu.matmul %3, %7, %cst_5 {dimension_numbers = #tpu.dot_dimension_numbers<[1], [0], [0], [1], [0, 0, 1, 1], [], []>} : vector<1x32xf32>, vector<32x32xf32>, vector<1x32xf32> -> vector<1x32xf32>
    %c0_6 = arith.constant 0 : index
    %c0_7 = arith.constant 0 : index
    %9 = vector.load %arg4[%c0_6, %c0_7] : memref<32x32xf32, #tpu.memory_space<vmem>>, vector<32x32xf32>
    %cst_8 = arith.constant dense<0.000000e+00> : vector<1x32xf32>
    %10 = tpu.matmul %6, %9, %cst_8 {dimension_numbers = #tpu.dot_dimension_numbers<[1], [0], [0], [1], [0, 0, 1, 1], [], []>} : vector<1x32xf32>, vector<32x32xf32>, vector<1x32xf32> -> vector<1x32xf32>
    %11 = arith.mulf %8, %8 : vector<1x32xf32>
    %12 = arith.subf %10, %11 : vector<1x32xf32>
    %cst_9 = arith.constant 9.99999997E-7 : f32
    %13 = vector.broadcast %cst_9 : f32 to vector<1x32xf32>
    %14 = arith.addf %12, %13 : vector<1x32xf32>
    %15 = math.rsqrt %14 : vector<1x32xf32>
    %c0_10 = arith.constant 0 : index
    %c0_11 = arith.constant 0 : index
    %16 = vector.load %arg2[%c0_10, %c0_11] : memref<1x32xf32, #tpu.memory_space<vmem>>, vector<1x32xf32>
    %17 = arith.mulf %15, %16 : vector<1x32xf32>
    %18 = vector.broadcast %8 : vector<1x32xf32> to vector<256x32xf32>
    %19 = arith.subf %1, %18 : vector<256x32xf32>
    %20 = vector.broadcast %17 : vector<1x32xf32> to vector<256x32xf32>
    %21 = arith.mulf %19, %20 : vector<256x32xf32>
    %c0_12 = arith.constant 0 : index
    %c0_13 = arith.constant 0 : index
    %22 = vector.load %arg3[%c0_12, %c0_13] : memref<1x32xf32, #tpu.memory_space<vmem>>, vector<1x32xf32>
    %23 = vector.broadcast %22 : vector<1x32xf32> to vector<256x32xf32>
    %24 = arith.addf %21, %23 : vector<256x32xf32>
    %cst_14 = arith.constant 0.000000e+00 : f32
    %25 = vector.broadcast %cst_14 : f32 to vector<256x32xf32>
    %26 = arith.subf %25, %24 : vector<256x32xf32>
    %27 = math.exp %26 : vector<256x32xf32>
    %cst_15 = arith.constant 1.000000e+00 : f32
    %28 = vector.broadcast %cst_15 : f32 to vector<256x32xf32>
    %29 = arith.addf %28, %27 : vector<256x32xf32>
    %cst_16 = arith.constant 1.000000e+00 : f32
    %30 = vector.broadcast %cst_16 : f32 to vector<256x32xf32>
    %31 = arith.divf %30, %29 : vector<256x32xf32>
    %32 = arith.mulf %24, %31 : vector<256x32xf32>
    %c0_17 = arith.constant 0 : index
    %c0_18 = arith.constant 0 : index
    %c0_19 = arith.constant 0 : index
    %33 = vector.load %arg5[%c0_17, %c0_18, %c0_19] : memref<1x256x32xf32, #tpu.memory_space<vmem>>, vector<1x256x32xf32>
    %34 = vector.shape_cast %33 : vector<1x256x32xf32> to vector<256x32xf32>
    %35 = vector.shape_cast %32 : vector<256x32xf32> to vector<1x256x32xf32>
    tpu.vector_store %arg5[%c0_17, %c0_18, %c0_19], %35 {strides = array<i32>} : memref<1x256x32xf32, #tpu.memory_space<vmem>>, vector<1x256x32xf32>,
    return
  }
  func.func @transform_0(%arg0: i32) -> (i32, i32, i32) {
    %c0_i32 = arith.constant 0 : i32
    %c0_i32_0 = arith.constant 0 : i32
    %c0_i32_1 = arith.constant 0 : i32
    return %arg0, %c0_i32, %c0_i32_0 : i32, i32, i32
  }
  func.func @transform_1(%arg0: i32) -> (i32, i32) {
    %c0_i32 = arith.constant 0 : i32
    %c0_i32_0 = arith.constant 0 : i32
    %c0_i32_1 = arith.constant 0 : i32
    return %c0_i32, %c0_i32_0 : i32, i32
  }
  func.func @transform_2(%arg0: i32) -> (i32, i32) {
    %c0_i32 = arith.constant 0 : i32
    %c0_i32_0 = arith.constant 0 : i32
    %c0_i32_1 = arith.constant 0 : i32
    return %c0_i32, %c0_i32_0 : i32, i32
  }
  func.func @transform_3(%arg0: i32) -> (i32, i32) {
    %c0_i32 = arith.constant 0 : i32
    %c0_i32_0 = arith.constant 0 : i32
    %c0_i32_1 = arith.constant 0 : i32
    return %c0_i32, %c0_i32_0 : i32, i32
  }
  func.func @transform_4(%arg0: i32) -> (i32, i32, i32) {
    %c0_i32 = arith.constant 0 : i32
    %c0_i32_0 = arith.constant 0 : i32
    %c0_i32_1 = arith.constant 0 : i32
    return %arg0, %c0_i32, %c0_i32_0 : i32, i32, i32
  }
}

module attributes {stable_mosaic.version = 11 : i64} {
  func.func @_matmul_bias_kernel(%arg0: i32, %arg1: memref<512x288xf32, #tpu.memory_space<vmem>>, %arg2: memref<288x32xf32, #tpu.memory_space<vmem>>, %arg3: memref<1x32xf32, #tpu.memory_space<vmem>>, %arg4: memref<512x32xf32, #tpu.memory_space<vmem>>) attributes {dimension_semantics = [#tpu.dimension_semantics<parallel>], iteration_bounds = array<i64: 1>, scalar_prefetch = 0 : i64, scratch_operands = 0 : i64, tpu.core_type = #tpu.core_type<tc>, window_params = [{transform_indices = @transform_0, window_bounds = array<i64: 512, 288>}, {pipeline_mode = #tpu.pipeline_mode<synchronous>, transform_indices = @transform_1, window_bounds = array<i64: 288, 32>}, {pipeline_mode = #tpu.pipeline_mode<synchronous>, transform_indices = @transform_2, window_bounds = array<i64: 1, 32>}, {transform_indices = @transform_3, window_bounds = array<i64: 512, 32>}]} {
    %c0 = arith.constant 0 : index
    %c0_0 = arith.constant 0 : index
    %0 = vector.load %arg1[%c0, %c0_0] : memref<512x288xf32, #tpu.memory_space<vmem>>, vector<512x288xf32>
    %c0_1 = arith.constant 0 : index
    %c0_2 = arith.constant 0 : index
    %1 = vector.load %arg2[%c0_1, %c0_2] : memref<288x32xf32, #tpu.memory_space<vmem>>, vector<288x32xf32>
    %cst = arith.constant dense<0.000000e+00> : vector<512x32xf32>
    %2 = tpu.matmul %0, %1, %cst {dimension_numbers = #tpu.dot_dimension_numbers<[1], [0], [0], [1], [0, 0, 1, 1], [], []>} : vector<512x288xf32>, vector<288x32xf32>, vector<512x32xf32> -> vector<512x32xf32>
    %c0_3 = arith.constant 0 : index
    %c0_4 = arith.constant 0 : index
    %3 = vector.load %arg3[%c0_3, %c0_4] : memref<1x32xf32, #tpu.memory_space<vmem>>, vector<1x32xf32>
    %4 = vector.broadcast %3 : vector<1x32xf32> to vector<512x32xf32>
    %5 = arith.addf %2, %4 : vector<512x32xf32>
    %c0_5 = arith.constant 0 : index
    %c0_6 = arith.constant 0 : index
    %6 = vector.load %arg4[%c0_5, %c0_6] : memref<512x32xf32, #tpu.memory_space<vmem>>, vector<512x32xf32>
    tpu.vector_store %arg4[%c0_5, %c0_6], %5 {strides = array<i32>} : memref<512x32xf32, #tpu.memory_space<vmem>>, vector<512x32xf32>,
    return
  }
  func.func @transform_0(%arg0: i32) -> (i32, i32) {
    %c0_i32 = arith.constant 0 : i32
    %c0_i32_0 = arith.constant 0 : i32
    return %arg0, %c0_i32 : i32, i32
  }
  func.func @transform_1(%arg0: i32) -> (i32, i32) {
    %c0_i32 = arith.constant 0 : i32
    %c0_i32_0 = arith.constant 0 : i32
    %c0_i32_1 = arith.constant 0 : i32
    return %c0_i32, %c0_i32_0 : i32, i32
  }
  func.func @transform_2(%arg0: i32) -> (i32, i32) {
    %c0_i32 = arith.constant 0 : i32
    %c0_i32_0 = arith.constant 0 : i32
    %c0_i32_1 = arith.constant 0 : i32
    return %c0_i32, %c0_i32_0 : i32, i32
  }
  func.func @transform_3(%arg0: i32) -> (i32, i32) {
    %c0_i32 = arith.constant 0 : i32
    %c0_i32_0 = arith.constant 0 : i32
    return %arg0, %c0_i32 : i32, i32
  }
}

module attributes {stable_mosaic.version = 11 : i64} {
  func.func @_matmul_bias_res_kernel(%arg0: i32, %arg1: memref<512x288xf32, #tpu.memory_space<vmem>>, %arg2: memref<288x32xf32, #tpu.memory_space<vmem>>, %arg3: memref<1x32xf32, #tpu.memory_space<vmem>>, %arg4: memref<512x32xf32, #tpu.memory_space<vmem>>, %arg5: memref<512x32xf32, #tpu.memory_space<vmem>>) attributes {dimension_semantics = [#tpu.dimension_semantics<parallel>], iteration_bounds = array<i64: 1>, scalar_prefetch = 0 : i64, scratch_operands = 0 : i64, tpu.core_type = #tpu.core_type<tc>, window_params = [{transform_indices = @transform_0, window_bounds = array<i64: 512, 288>}, {pipeline_mode = #tpu.pipeline_mode<synchronous>, transform_indices = @transform_1, window_bounds = array<i64: 288, 32>}, {pipeline_mode = #tpu.pipeline_mode<synchronous>, transform_indices = @transform_2, window_bounds = array<i64: 1, 32>}, {transform_indices = @transform_3, window_bounds = array<i64: 512, 32>}, {transform_indices = @transform_4, window_bounds = array<i64: 512, 32>}]} {
    %c0 = arith.constant 0 : index
    %c0_0 = arith.constant 0 : index
    %0 = vector.load %arg1[%c0, %c0_0] : memref<512x288xf32, #tpu.memory_space<vmem>>, vector<512x288xf32>
    %c0_1 = arith.constant 0 : index
    %c0_2 = arith.constant 0 : index
    %1 = vector.load %arg2[%c0_1, %c0_2] : memref<288x32xf32, #tpu.memory_space<vmem>>, vector<288x32xf32>
    %cst = arith.constant dense<0.000000e+00> : vector<512x32xf32>
    %2 = tpu.matmul %0, %1, %cst {dimension_numbers = #tpu.dot_dimension_numbers<[1], [0], [0], [1], [0, 0, 1, 1], [], []>} : vector<512x288xf32>, vector<288x32xf32>, vector<512x32xf32> -> vector<512x32xf32>
    %c0_3 = arith.constant 0 : index
    %c0_4 = arith.constant 0 : index
    %3 = vector.load %arg3[%c0_3, %c0_4] : memref<1x32xf32, #tpu.memory_space<vmem>>, vector<1x32xf32>
    %4 = vector.broadcast %3 : vector<1x32xf32> to vector<512x32xf32>
    %5 = arith.addf %2, %4 : vector<512x32xf32>
    %c0_5 = arith.constant 0 : index
    %c0_6 = arith.constant 0 : index
    %6 = vector.load %arg4[%c0_5, %c0_6] : memref<512x32xf32, #tpu.memory_space<vmem>>, vector<512x32xf32>
    %7 = arith.addf %5, %6 : vector<512x32xf32>
    %c0_7 = arith.constant 0 : index
    %c0_8 = arith.constant 0 : index
    %8 = vector.load %arg5[%c0_7, %c0_8] : memref<512x32xf32, #tpu.memory_space<vmem>>, vector<512x32xf32>
    tpu.vector_store %arg5[%c0_7, %c0_8], %7 {strides = array<i32>} : memref<512x32xf32, #tpu.memory_space<vmem>>, vector<512x32xf32>,
    return
  }
  func.func @transform_0(%arg0: i32) -> (i32, i32) {
    %c0_i32 = arith.constant 0 : i32
    %c0_i32_0 = arith.constant 0 : i32
    return %arg0, %c0_i32 : i32, i32
  }
  func.func @transform_1(%arg0: i32) -> (i32, i32) {
    %c0_i32 = arith.constant 0 : i32
    %c0_i32_0 = arith.constant 0 : i32
    %c0_i32_1 = arith.constant 0 : i32
    return %c0_i32, %c0_i32_0 : i32, i32
  }
  func.func @transform_2(%arg0: i32) -> (i32, i32) {
    %c0_i32 = arith.constant 0 : i32
    %c0_i32_0 = arith.constant 0 : i32
    %c0_i32_1 = arith.constant 0 : i32
    return %c0_i32, %c0_i32_0 : i32, i32
  }
  func.func @transform_3(%arg0: i32) -> (i32, i32) {
    %c0_i32 = arith.constant 0 : i32
    %c0_i32_0 = arith.constant 0 : i32
    return %arg0, %c0_i32 : i32, i32
  }
  func.func @transform_4(%arg0: i32) -> (i32, i32) {
    %c0_i32 = arith.constant 0 : i32
    %c0_i32_0 = arith.constant 0 : i32
    return %arg0, %c0_i32 : i32, i32
  }
}

module attributes {stable_mosaic.version = 11 : i64} {
  func.func @_group_norm_swish_kernel(%arg0: i32, %arg1: memref<1x64x32xf32, #tpu.memory_space<vmem>>, %arg2: memref<1x32xf32, #tpu.memory_space<vmem>>, %arg3: memref<1x32xf32, #tpu.memory_space<vmem>>, %arg4: memref<32x32xf32, #tpu.memory_space<vmem>>, %arg5: memref<1x64x32xf32, #tpu.memory_space<vmem>>) attributes {dimension_semantics = [#tpu.dimension_semantics<parallel>], iteration_bounds = array<i64: 2>, scalar_prefetch = 0 : i64, scratch_operands = 0 : i64, tpu.core_type = #tpu.core_type<tc>, window_params = [{transform_indices = @transform_0, window_bounds = array<i64: 1, 64, 32>}, {pipeline_mode = #tpu.pipeline_mode<synchronous>, transform_indices = @transform_1, window_bounds = array<i64: 1, 32>}, {pipeline_mode = #tpu.pipeline_mode<synchronous>, transform_indices = @transform_2, window_bounds = array<i64: 1, 32>}, {pipeline_mode = #tpu.pipeline_mode<synchronous>, transform_indices = @transform_3, window_bounds = array<i64: 32, 32>}, {transform_indices = @transform_4, window_bounds = array<i64: 1, 64, 32>}]} {
    %c0 = arith.constant 0 : index
    %c0_0 = arith.constant 0 : index
    %c0_1 = arith.constant 0 : index
    %0 = vector.load %arg1[%c0, %c0_0, %c0_1] : memref<1x64x32xf32, #tpu.memory_space<vmem>>, vector<1x64x32xf32>
    %1 = vector.shape_cast %0 : vector<1x64x32xf32> to vector<64x32xf32>
    %cst = arith.constant dense<0.000000e+00> : vector<32xf32>
    %2 = vector.multi_reduction <add>, %1, %cst [0] : vector<64x32xf32> to vector<32xf32>
    %3 = vector.shape_cast %2 : vector<32xf32> to vector<1x32xf32>
    %4 = arith.mulf %1, %1 : vector<64x32xf32>
    %cst_2 = arith.constant dense<0.000000e+00> : vector<32xf32>
    %5 = vector.multi_reduction <add>, %4, %cst_2 [0] : vector<64x32xf32> to vector<32xf32>
    %6 = vector.shape_cast %5 : vector<32xf32> to vector<1x32xf32>
    %c0_3 = arith.constant 0 : index
    %c0_4 = arith.constant 0 : index
    %7 = vector.load %arg4[%c0_3, %c0_4] : memref<32x32xf32, #tpu.memory_space<vmem>>, vector<32x32xf32>
    %cst_5 = arith.constant dense<0.000000e+00> : vector<1x32xf32>
    %8 = tpu.matmul %3, %7, %cst_5 {dimension_numbers = #tpu.dot_dimension_numbers<[1], [0], [0], [1], [0, 0, 1, 1], [], []>} : vector<1x32xf32>, vector<32x32xf32>, vector<1x32xf32> -> vector<1x32xf32>
    %c0_6 = arith.constant 0 : index
    %c0_7 = arith.constant 0 : index
    %9 = vector.load %arg4[%c0_6, %c0_7] : memref<32x32xf32, #tpu.memory_space<vmem>>, vector<32x32xf32>
    %cst_8 = arith.constant dense<0.000000e+00> : vector<1x32xf32>
    %10 = tpu.matmul %6, %9, %cst_8 {dimension_numbers = #tpu.dot_dimension_numbers<[1], [0], [0], [1], [0, 0, 1, 1], [], []>} : vector<1x32xf32>, vector<32x32xf32>, vector<1x32xf32> -> vector<1x32xf32>
    %11 = arith.mulf %8, %8 : vector<1x32xf32>
    %12 = arith.subf %10, %11 : vector<1x32xf32>
    %cst_9 = arith.constant 9.99999997E-7 : f32
    %13 = vector.broadcast %cst_9 : f32 to vector<1x32xf32>
    %14 = arith.addf %12, %13 : vector<1x32xf32>
    %15 = math.rsqrt %14 : vector<1x32xf32>
    %c0_10 = arith.constant 0 : index
    %c0_11 = arith.constant 0 : index
    %16 = vector.load %arg2[%c0_10, %c0_11] : memref<1x32xf32, #tpu.memory_space<vmem>>, vector<1x32xf32>
    %17 = arith.mulf %15, %16 : vector<1x32xf32>
    %18 = vector.broadcast %8 : vector<1x32xf32> to vector<64x32xf32>
    %19 = arith.subf %1, %18 : vector<64x32xf32>
    %20 = vector.broadcast %17 : vector<1x32xf32> to vector<64x32xf32>
    %21 = arith.mulf %19, %20 : vector<64x32xf32>
    %c0_12 = arith.constant 0 : index
    %c0_13 = arith.constant 0 : index
    %22 = vector.load %arg3[%c0_12, %c0_13] : memref<1x32xf32, #tpu.memory_space<vmem>>, vector<1x32xf32>
    %23 = vector.broadcast %22 : vector<1x32xf32> to vector<64x32xf32>
    %24 = arith.addf %21, %23 : vector<64x32xf32>
    %cst_14 = arith.constant 0.000000e+00 : f32
    %25 = vector.broadcast %cst_14 : f32 to vector<64x32xf32>
    %26 = arith.subf %25, %24 : vector<64x32xf32>
    %27 = math.exp %26 : vector<64x32xf32>
    %cst_15 = arith.constant 1.000000e+00 : f32
    %28 = vector.broadcast %cst_15 : f32 to vector<64x32xf32>
    %29 = arith.addf %28, %27 : vector<64x32xf32>
    %cst_16 = arith.constant 1.000000e+00 : f32
    %30 = vector.broadcast %cst_16 : f32 to vector<64x32xf32>
    %31 = arith.divf %30, %29 : vector<64x32xf32>
    %32 = arith.mulf %24, %31 : vector<64x32xf32>
    %c0_17 = arith.constant 0 : index
    %c0_18 = arith.constant 0 : index
    %c0_19 = arith.constant 0 : index
    %33 = vector.load %arg5[%c0_17, %c0_18, %c0_19] : memref<1x64x32xf32, #tpu.memory_space<vmem>>, vector<1x64x32xf32>
    %34 = vector.shape_cast %33 : vector<1x64x32xf32> to vector<64x32xf32>
    %35 = vector.shape_cast %32 : vector<64x32xf32> to vector<1x64x32xf32>
    tpu.vector_store %arg5[%c0_17, %c0_18, %c0_19], %35 {strides = array<i32>} : memref<1x64x32xf32, #tpu.memory_space<vmem>>, vector<1x64x32xf32>,
    return
  }
  func.func @transform_0(%arg0: i32) -> (i32, i32, i32) {
    %c0_i32 = arith.constant 0 : i32
    %c0_i32_0 = arith.constant 0 : i32
    %c0_i32_1 = arith.constant 0 : i32
    return %arg0, %c0_i32, %c0_i32_0 : i32, i32, i32
  }
  func.func @transform_1(%arg0: i32) -> (i32, i32) {
    %c0_i32 = arith.constant 0 : i32
    %c0_i32_0 = arith.constant 0 : i32
    %c0_i32_1 = arith.constant 0 : i32
    return %c0_i32, %c0_i32_0 : i32, i32
  }
  func.func @transform_2(%arg0: i32) -> (i32, i32) {
    %c0_i32 = arith.constant 0 : i32
    %c0_i32_0 = arith.constant 0 : i32
    %c0_i32_1 = arith.constant 0 : i32
    return %c0_i32, %c0_i32_0 : i32, i32
  }
  func.func @transform_3(%arg0: i32) -> (i32, i32) {
    %c0_i32 = arith.constant 0 : i32
    %c0_i32_0 = arith.constant 0 : i32
    %c0_i32_1 = arith.constant 0 : i32
    return %c0_i32, %c0_i32_0 : i32, i32
  }
  func.func @transform_4(%arg0: i32) -> (i32, i32, i32) {
    %c0_i32 = arith.constant 0 : i32
    %c0_i32_0 = arith.constant 0 : i32
    %c0_i32_1 = arith.constant 0 : i32
    return %arg0, %c0_i32, %c0_i32_0 : i32, i32, i32
  }
}

module attributes {stable_mosaic.version = 11 : i64} {
  func.func @_matmul_bias_kernel(%arg0: i32, %arg1: memref<128x288xf32, #tpu.memory_space<vmem>>, %arg2: memref<288x32xf32, #tpu.memory_space<vmem>>, %arg3: memref<1x32xf32, #tpu.memory_space<vmem>>, %arg4: memref<128x32xf32, #tpu.memory_space<vmem>>) attributes {dimension_semantics = [#tpu.dimension_semantics<parallel>], iteration_bounds = array<i64: 1>, scalar_prefetch = 0 : i64, scratch_operands = 0 : i64, tpu.core_type = #tpu.core_type<tc>, window_params = [{transform_indices = @transform_0, window_bounds = array<i64: 128, 288>}, {pipeline_mode = #tpu.pipeline_mode<synchronous>, transform_indices = @transform_1, window_bounds = array<i64: 288, 32>}, {pipeline_mode = #tpu.pipeline_mode<synchronous>, transform_indices = @transform_2, window_bounds = array<i64: 1, 32>}, {transform_indices = @transform_3, window_bounds = array<i64: 128, 32>}]} {
    %c0 = arith.constant 0 : index
    %c0_0 = arith.constant 0 : index
    %0 = vector.load %arg1[%c0, %c0_0] : memref<128x288xf32, #tpu.memory_space<vmem>>, vector<128x288xf32>
    %c0_1 = arith.constant 0 : index
    %c0_2 = arith.constant 0 : index
    %1 = vector.load %arg2[%c0_1, %c0_2] : memref<288x32xf32, #tpu.memory_space<vmem>>, vector<288x32xf32>
    %cst = arith.constant dense<0.000000e+00> : vector<128x32xf32>
    %2 = tpu.matmul %0, %1, %cst {dimension_numbers = #tpu.dot_dimension_numbers<[1], [0], [0], [1], [0, 0, 1, 1], [], []>} : vector<128x288xf32>, vector<288x32xf32>, vector<128x32xf32> -> vector<128x32xf32>
    %c0_3 = arith.constant 0 : index
    %c0_4 = arith.constant 0 : index
    %3 = vector.load %arg3[%c0_3, %c0_4] : memref<1x32xf32, #tpu.memory_space<vmem>>, vector<1x32xf32>
    %4 = vector.broadcast %3 : vector<1x32xf32> to vector<128x32xf32>
    %5 = arith.addf %2, %4 : vector<128x32xf32>
    %c0_5 = arith.constant 0 : index
    %c0_6 = arith.constant 0 : index
    %6 = vector.load %arg4[%c0_5, %c0_6] : memref<128x32xf32, #tpu.memory_space<vmem>>, vector<128x32xf32>
    tpu.vector_store %arg4[%c0_5, %c0_6], %5 {strides = array<i32>} : memref<128x32xf32, #tpu.memory_space<vmem>>, vector<128x32xf32>,
    return
  }
  func.func @transform_0(%arg0: i32) -> (i32, i32) {
    %c0_i32 = arith.constant 0 : i32
    %c0_i32_0 = arith.constant 0 : i32
    return %arg0, %c0_i32 : i32, i32
  }
  func.func @transform_1(%arg0: i32) -> (i32, i32) {
    %c0_i32 = arith.constant 0 : i32
    %c0_i32_0 = arith.constant 0 : i32
    %c0_i32_1 = arith.constant 0 : i32
    return %c0_i32, %c0_i32_0 : i32, i32
  }
  func.func @transform_2(%arg0: i32) -> (i32, i32) {
    %c0_i32 = arith.constant 0 : i32
    %c0_i32_0 = arith.constant 0 : i32
    %c0_i32_1 = arith.constant 0 : i32
    return %c0_i32, %c0_i32_0 : i32, i32
  }
  func.func @transform_3(%arg0: i32) -> (i32, i32) {
    %c0_i32 = arith.constant 0 : i32
    %c0_i32_0 = arith.constant 0 : i32
    return %arg0, %c0_i32 : i32, i32
  }
}

module attributes {stable_mosaic.version = 11 : i64} {
  func.func @_matmul_bias_kernel(%arg0: i32, %arg1: memref<128x288xf32, #tpu.memory_space<vmem>>, %arg2: memref<288x64xf32, #tpu.memory_space<vmem>>, %arg3: memref<1x64xf32, #tpu.memory_space<vmem>>, %arg4: memref<128x64xf32, #tpu.memory_space<vmem>>) attributes {dimension_semantics = [#tpu.dimension_semantics<parallel>], iteration_bounds = array<i64: 1>, scalar_prefetch = 0 : i64, scratch_operands = 0 : i64, tpu.core_type = #tpu.core_type<tc>, window_params = [{transform_indices = @transform_0, window_bounds = array<i64: 128, 288>}, {pipeline_mode = #tpu.pipeline_mode<synchronous>, transform_indices = @transform_1, window_bounds = array<i64: 288, 64>}, {pipeline_mode = #tpu.pipeline_mode<synchronous>, transform_indices = @transform_2, window_bounds = array<i64: 1, 64>}, {transform_indices = @transform_3, window_bounds = array<i64: 128, 64>}]} {
    %c0 = arith.constant 0 : index
    %c0_0 = arith.constant 0 : index
    %0 = vector.load %arg1[%c0, %c0_0] : memref<128x288xf32, #tpu.memory_space<vmem>>, vector<128x288xf32>
    %c0_1 = arith.constant 0 : index
    %c0_2 = arith.constant 0 : index
    %1 = vector.load %arg2[%c0_1, %c0_2] : memref<288x64xf32, #tpu.memory_space<vmem>>, vector<288x64xf32>
    %cst = arith.constant dense<0.000000e+00> : vector<128x64xf32>
    %2 = tpu.matmul %0, %1, %cst {dimension_numbers = #tpu.dot_dimension_numbers<[1], [0], [0], [1], [0, 0, 1, 1], [], []>} : vector<128x288xf32>, vector<288x64xf32>, vector<128x64xf32> -> vector<128x64xf32>
    %c0_3 = arith.constant 0 : index
    %c0_4 = arith.constant 0 : index
    %3 = vector.load %arg3[%c0_3, %c0_4] : memref<1x64xf32, #tpu.memory_space<vmem>>, vector<1x64xf32>
    %4 = vector.broadcast %3 : vector<1x64xf32> to vector<128x64xf32>
    %5 = arith.addf %2, %4 : vector<128x64xf32>
    %c0_5 = arith.constant 0 : index
    %c0_6 = arith.constant 0 : index
    %6 = vector.load %arg4[%c0_5, %c0_6] : memref<128x64xf32, #tpu.memory_space<vmem>>, vector<128x64xf32>
    tpu.vector_store %arg4[%c0_5, %c0_6], %5 {strides = array<i32>} : memref<128x64xf32, #tpu.memory_space<vmem>>, vector<128x64xf32>,
    return
  }
  func.func @transform_0(%arg0: i32) -> (i32, i32) {
    %c0_i32 = arith.constant 0 : i32
    %c0_i32_0 = arith.constant 0 : i32
    return %arg0, %c0_i32 : i32, i32
  }
  func.func @transform_1(%arg0: i32) -> (i32, i32) {
    %c0_i32 = arith.constant 0 : i32
    %c0_i32_0 = arith.constant 0 : i32
    %c0_i32_1 = arith.constant 0 : i32
    return %c0_i32, %c0_i32_0 : i32, i32
  }
  func.func @transform_2(%arg0: i32) -> (i32, i32) {
    %c0_i32 = arith.constant 0 : i32
    %c0_i32_0 = arith.constant 0 : i32
    %c0_i32_1 = arith.constant 0 : i32
    return %c0_i32, %c0_i32_0 : i32, i32
  }
  func.func @transform_3(%arg0: i32) -> (i32, i32) {
    %c0_i32 = arith.constant 0 : i32
    %c0_i32_0 = arith.constant 0 : i32
    return %arg0, %c0_i32 : i32, i32
  }
}

module attributes {stable_mosaic.version = 11 : i64} {
  func.func @_group_norm_swish_kernel(%arg0: i32, %arg1: memref<1x64x64xf32, #tpu.memory_space<vmem>>, %arg2: memref<1x64xf32, #tpu.memory_space<vmem>>, %arg3: memref<1x64xf32, #tpu.memory_space<vmem>>, %arg4: memref<64x64xf32, #tpu.memory_space<vmem>>, %arg5: memref<1x64x64xf32, #tpu.memory_space<vmem>>) attributes {dimension_semantics = [#tpu.dimension_semantics<parallel>], iteration_bounds = array<i64: 2>, scalar_prefetch = 0 : i64, scratch_operands = 0 : i64, tpu.core_type = #tpu.core_type<tc>, window_params = [{transform_indices = @transform_0, window_bounds = array<i64: 1, 64, 64>}, {pipeline_mode = #tpu.pipeline_mode<synchronous>, transform_indices = @transform_1, window_bounds = array<i64: 1, 64>}, {pipeline_mode = #tpu.pipeline_mode<synchronous>, transform_indices = @transform_2, window_bounds = array<i64: 1, 64>}, {pipeline_mode = #tpu.pipeline_mode<synchronous>, transform_indices = @transform_3, window_bounds = array<i64: 64, 64>}, {transform_indices = @transform_4, window_bounds = array<i64: 1, 64, 64>}]} {
    %c0 = arith.constant 0 : index
    %c0_0 = arith.constant 0 : index
    %c0_1 = arith.constant 0 : index
    %0 = vector.load %arg1[%c0, %c0_0, %c0_1] : memref<1x64x64xf32, #tpu.memory_space<vmem>>, vector<1x64x64xf32>
    %1 = vector.shape_cast %0 : vector<1x64x64xf32> to vector<64x64xf32>
    %cst = arith.constant dense<0.000000e+00> : vector<64xf32>
    %2 = vector.multi_reduction <add>, %1, %cst [0] : vector<64x64xf32> to vector<64xf32>
    %3 = vector.shape_cast %2 : vector<64xf32> to vector<1x64xf32>
    %4 = arith.mulf %1, %1 : vector<64x64xf32>
    %cst_2 = arith.constant dense<0.000000e+00> : vector<64xf32>
    %5 = vector.multi_reduction <add>, %4, %cst_2 [0] : vector<64x64xf32> to vector<64xf32>
    %6 = vector.shape_cast %5 : vector<64xf32> to vector<1x64xf32>
    %c0_3 = arith.constant 0 : index
    %c0_4 = arith.constant 0 : index
    %7 = vector.load %arg4[%c0_3, %c0_4] : memref<64x64xf32, #tpu.memory_space<vmem>>, vector<64x64xf32>
    %cst_5 = arith.constant dense<0.000000e+00> : vector<1x64xf32>
    %8 = tpu.matmul %3, %7, %cst_5 {dimension_numbers = #tpu.dot_dimension_numbers<[1], [0], [0], [1], [0, 0, 1, 1], [], []>} : vector<1x64xf32>, vector<64x64xf32>, vector<1x64xf32> -> vector<1x64xf32>
    %c0_6 = arith.constant 0 : index
    %c0_7 = arith.constant 0 : index
    %9 = vector.load %arg4[%c0_6, %c0_7] : memref<64x64xf32, #tpu.memory_space<vmem>>, vector<64x64xf32>
    %cst_8 = arith.constant dense<0.000000e+00> : vector<1x64xf32>
    %10 = tpu.matmul %6, %9, %cst_8 {dimension_numbers = #tpu.dot_dimension_numbers<[1], [0], [0], [1], [0, 0, 1, 1], [], []>} : vector<1x64xf32>, vector<64x64xf32>, vector<1x64xf32> -> vector<1x64xf32>
    %11 = arith.mulf %8, %8 : vector<1x64xf32>
    %12 = arith.subf %10, %11 : vector<1x64xf32>
    %cst_9 = arith.constant 9.99999997E-7 : f32
    %13 = vector.broadcast %cst_9 : f32 to vector<1x64xf32>
    %14 = arith.addf %12, %13 : vector<1x64xf32>
    %15 = math.rsqrt %14 : vector<1x64xf32>
    %c0_10 = arith.constant 0 : index
    %c0_11 = arith.constant 0 : index
    %16 = vector.load %arg2[%c0_10, %c0_11] : memref<1x64xf32, #tpu.memory_space<vmem>>, vector<1x64xf32>
    %17 = arith.mulf %15, %16 : vector<1x64xf32>
    %18 = vector.broadcast %8 : vector<1x64xf32> to vector<64x64xf32>
    %19 = arith.subf %1, %18 : vector<64x64xf32>
    %20 = vector.broadcast %17 : vector<1x64xf32> to vector<64x64xf32>
    %21 = arith.mulf %19, %20 : vector<64x64xf32>
    %c0_12 = arith.constant 0 : index
    %c0_13 = arith.constant 0 : index
    %22 = vector.load %arg3[%c0_12, %c0_13] : memref<1x64xf32, #tpu.memory_space<vmem>>, vector<1x64xf32>
    %23 = vector.broadcast %22 : vector<1x64xf32> to vector<64x64xf32>
    %24 = arith.addf %21, %23 : vector<64x64xf32>
    %cst_14 = arith.constant 0.000000e+00 : f32
    %25 = vector.broadcast %cst_14 : f32 to vector<64x64xf32>
    %26 = arith.subf %25, %24 : vector<64x64xf32>
    %27 = math.exp %26 : vector<64x64xf32>
    %cst_15 = arith.constant 1.000000e+00 : f32
    %28 = vector.broadcast %cst_15 : f32 to vector<64x64xf32>
    %29 = arith.addf %28, %27 : vector<64x64xf32>
    %cst_16 = arith.constant 1.000000e+00 : f32
    %30 = vector.broadcast %cst_16 : f32 to vector<64x64xf32>
    %31 = arith.divf %30, %29 : vector<64x64xf32>
    %32 = arith.mulf %24, %31 : vector<64x64xf32>
    %c0_17 = arith.constant 0 : index
    %c0_18 = arith.constant 0 : index
    %c0_19 = arith.constant 0 : index
    %33 = vector.load %arg5[%c0_17, %c0_18, %c0_19] : memref<1x64x64xf32, #tpu.memory_space<vmem>>, vector<1x64x64xf32>
    %34 = vector.shape_cast %33 : vector<1x64x64xf32> to vector<64x64xf32>
    %35 = vector.shape_cast %32 : vector<64x64xf32> to vector<1x64x64xf32>
    tpu.vector_store %arg5[%c0_17, %c0_18, %c0_19], %35 {strides = array<i32>} : memref<1x64x64xf32, #tpu.memory_space<vmem>>, vector<1x64x64xf32>,
    return
  }
  func.func @transform_0(%arg0: i32) -> (i32, i32, i32) {
    %c0_i32 = arith.constant 0 : i32
    %c0_i32_0 = arith.constant 0 : i32
    %c0_i32_1 = arith.constant 0 : i32
    return %arg0, %c0_i32, %c0_i32_0 : i32, i32, i32
  }
  func.func @transform_1(%arg0: i32) -> (i32, i32) {
    %c0_i32 = arith.constant 0 : i32
    %c0_i32_0 = arith.constant 0 : i32
    %c0_i32_1 = arith.constant 0 : i32
    return %c0_i32, %c0_i32_0 : i32, i32
  }
  func.func @transform_2(%arg0: i32) -> (i32, i32) {
    %c0_i32 = arith.constant 0 : i32
    %c0_i32_0 = arith.constant 0 : i32
    %c0_i32_1 = arith.constant 0 : i32
    return %c0_i32, %c0_i32_0 : i32, i32
  }
  func.func @transform_3(%arg0: i32) -> (i32, i32) {
    %c0_i32 = arith.constant 0 : i32
    %c0_i32_0 = arith.constant 0 : i32
    %c0_i32_1 = arith.constant 0 : i32
    return %c0_i32, %c0_i32_0 : i32, i32
  }
  func.func @transform_4(%arg0: i32) -> (i32, i32, i32) {
    %c0_i32 = arith.constant 0 : i32
    %c0_i32_0 = arith.constant 0 : i32
    %c0_i32_1 = arith.constant 0 : i32
    return %arg0, %c0_i32, %c0_i32_0 : i32, i32, i32
  }
}

module attributes {stable_mosaic.version = 11 : i64} {
  func.func @_matmul_bias_kernel(%arg0: i32, %arg1: memref<128x32xf32, #tpu.memory_space<vmem>>, %arg2: memref<32x64xf32, #tpu.memory_space<vmem>>, %arg3: memref<1x64xf32, #tpu.memory_space<vmem>>, %arg4: memref<128x64xf32, #tpu.memory_space<vmem>>) attributes {dimension_semantics = [#tpu.dimension_semantics<parallel>], iteration_bounds = array<i64: 1>, scalar_prefetch = 0 : i64, scratch_operands = 0 : i64, tpu.core_type = #tpu.core_type<tc>, window_params = [{transform_indices = @transform_0, window_bounds = array<i64: 128, 32>}, {pipeline_mode = #tpu.pipeline_mode<synchronous>, transform_indices = @transform_1, window_bounds = array<i64: 32, 64>}, {pipeline_mode = #tpu.pipeline_mode<synchronous>, transform_indices = @transform_2, window_bounds = array<i64: 1, 64>}, {transform_indices = @transform_3, window_bounds = array<i64: 128, 64>}]} {
    %c0 = arith.constant 0 : index
    %c0_0 = arith.constant 0 : index
    %0 = vector.load %arg1[%c0, %c0_0] : memref<128x32xf32, #tpu.memory_space<vmem>>, vector<128x32xf32>
    %c0_1 = arith.constant 0 : index
    %c0_2 = arith.constant 0 : index
    %1 = vector.load %arg2[%c0_1, %c0_2] : memref<32x64xf32, #tpu.memory_space<vmem>>, vector<32x64xf32>
    %cst = arith.constant dense<0.000000e+00> : vector<128x64xf32>
    %2 = tpu.matmul %0, %1, %cst {dimension_numbers = #tpu.dot_dimension_numbers<[1], [0], [0], [1], [0, 0, 1, 1], [], []>} : vector<128x32xf32>, vector<32x64xf32>, vector<128x64xf32> -> vector<128x64xf32>
    %c0_3 = arith.constant 0 : index
    %c0_4 = arith.constant 0 : index
    %3 = vector.load %arg3[%c0_3, %c0_4] : memref<1x64xf32, #tpu.memory_space<vmem>>, vector<1x64xf32>
    %4 = vector.broadcast %3 : vector<1x64xf32> to vector<128x64xf32>
    %5 = arith.addf %2, %4 : vector<128x64xf32>
    %c0_5 = arith.constant 0 : index
    %c0_6 = arith.constant 0 : index
    %6 = vector.load %arg4[%c0_5, %c0_6] : memref<128x64xf32, #tpu.memory_space<vmem>>, vector<128x64xf32>
    tpu.vector_store %arg4[%c0_5, %c0_6], %5 {strides = array<i32>} : memref<128x64xf32, #tpu.memory_space<vmem>>, vector<128x64xf32>,
    return
  }
  func.func @transform_0(%arg0: i32) -> (i32, i32) {
    %c0_i32 = arith.constant 0 : i32
    %c0_i32_0 = arith.constant 0 : i32
    return %arg0, %c0_i32 : i32, i32
  }
  func.func @transform_1(%arg0: i32) -> (i32, i32) {
    %c0_i32 = arith.constant 0 : i32
    %c0_i32_0 = arith.constant 0 : i32
    %c0_i32_1 = arith.constant 0 : i32
    return %c0_i32, %c0_i32_0 : i32, i32
  }
  func.func @transform_2(%arg0: i32) -> (i32, i32) {
    %c0_i32 = arith.constant 0 : i32
    %c0_i32_0 = arith.constant 0 : i32
    %c0_i32_1 = arith.constant 0 : i32
    return %c0_i32, %c0_i32_0 : i32, i32
  }
  func.func @transform_3(%arg0: i32) -> (i32, i32) {
    %c0_i32 = arith.constant 0 : i32
    %c0_i32_0 = arith.constant 0 : i32
    return %arg0, %c0_i32 : i32, i32
  }
}

module attributes {stable_mosaic.version = 11 : i64} {
  func.func @_matmul_bias_res_kernel(%arg0: i32, %arg1: memref<128x576xf32, #tpu.memory_space<vmem>>, %arg2: memref<576x64xf32, #tpu.memory_space<vmem>>, %arg3: memref<1x64xf32, #tpu.memory_space<vmem>>, %arg4: memref<128x64xf32, #tpu.memory_space<vmem>>, %arg5: memref<128x64xf32, #tpu.memory_space<vmem>>) attributes {dimension_semantics = [#tpu.dimension_semantics<parallel>], iteration_bounds = array<i64: 1>, scalar_prefetch = 0 : i64, scratch_operands = 0 : i64, tpu.core_type = #tpu.core_type<tc>, window_params = [{transform_indices = @transform_0, window_bounds = array<i64: 128, 576>}, {pipeline_mode = #tpu.pipeline_mode<synchronous>, transform_indices = @transform_1, window_bounds = array<i64: 576, 64>}, {pipeline_mode = #tpu.pipeline_mode<synchronous>, transform_indices = @transform_2, window_bounds = array<i64: 1, 64>}, {transform_indices = @transform_3, window_bounds = array<i64: 128, 64>}, {transform_indices = @transform_4, window_bounds = array<i64: 128, 64>}]} {
    %c0 = arith.constant 0 : index
    %c0_0 = arith.constant 0 : index
    %0 = vector.load %arg1[%c0, %c0_0] : memref<128x576xf32, #tpu.memory_space<vmem>>, vector<128x576xf32>
    %c0_1 = arith.constant 0 : index
    %c0_2 = arith.constant 0 : index
    %1 = vector.load %arg2[%c0_1, %c0_2] : memref<576x64xf32, #tpu.memory_space<vmem>>, vector<576x64xf32>
    %cst = arith.constant dense<0.000000e+00> : vector<128x64xf32>
    %2 = tpu.matmul %0, %1, %cst {dimension_numbers = #tpu.dot_dimension_numbers<[1], [0], [0], [1], [0, 0, 1, 1], [], []>} : vector<128x576xf32>, vector<576x64xf32>, vector<128x64xf32> -> vector<128x64xf32>
    %c0_3 = arith.constant 0 : index
    %c0_4 = arith.constant 0 : index
    %3 = vector.load %arg3[%c0_3, %c0_4] : memref<1x64xf32, #tpu.memory_space<vmem>>, vector<1x64xf32>
    %4 = vector.broadcast %3 : vector<1x64xf32> to vector<128x64xf32>
    %5 = arith.addf %2, %4 : vector<128x64xf32>
    %c0_5 = arith.constant 0 : index
    %c0_6 = arith.constant 0 : index
    %6 = vector.load %arg4[%c0_5, %c0_6] : memref<128x64xf32, #tpu.memory_space<vmem>>, vector<128x64xf32>
    %7 = arith.addf %5, %6 : vector<128x64xf32>
    %c0_7 = arith.constant 0 : index
    %c0_8 = arith.constant 0 : index
    %8 = vector.load %arg5[%c0_7, %c0_8] : memref<128x64xf32, #tpu.memory_space<vmem>>, vector<128x64xf32>
    tpu.vector_store %arg5[%c0_7, %c0_8], %7 {strides = array<i32>} : memref<128x64xf32, #tpu.memory_space<vmem>>, vector<128x64xf32>,
    return
  }
  func.func @transform_0(%arg0: i32) -> (i32, i32) {
    %c0_i32 = arith.constant 0 : i32
    %c0_i32_0 = arith.constant 0 : i32
    return %arg0, %c0_i32 : i32, i32
  }
  func.func @transform_1(%arg0: i32) -> (i32, i32) {
    %c0_i32 = arith.constant 0 : i32
    %c0_i32_0 = arith.constant 0 : i32
    %c0_i32_1 = arith.constant 0 : i32
    return %c0_i32, %c0_i32_0 : i32, i32
  }
  func.func @transform_2(%arg0: i32) -> (i32, i32) {
    %c0_i32 = arith.constant 0 : i32
    %c0_i32_0 = arith.constant 0 : i32
    %c0_i32_1 = arith.constant 0 : i32
    return %c0_i32, %c0_i32_0 : i32, i32
  }
  func.func @transform_3(%arg0: i32) -> (i32, i32) {
    %c0_i32 = arith.constant 0 : i32
    %c0_i32_0 = arith.constant 0 : i32
    return %arg0, %c0_i32 : i32, i32
  }
  func.func @transform_4(%arg0: i32) -> (i32, i32) {
    %c0_i32 = arith.constant 0 : i32
    %c0_i32_0 = arith.constant 0 : i32
    return %arg0, %c0_i32 : i32, i32
  }
}

module attributes {stable_mosaic.version = 11 : i64} {
  func.func @_matmul_bias_kernel(%arg0: i32, %arg1: memref<128x576xf32, #tpu.memory_space<vmem>>, %arg2: memref<576x64xf32, #tpu.memory_space<vmem>>, %arg3: memref<1x64xf32, #tpu.memory_space<vmem>>, %arg4: memref<128x64xf32, #tpu.memory_space<vmem>>) attributes {dimension_semantics = [#tpu.dimension_semantics<parallel>], iteration_bounds = array<i64: 1>, scalar_prefetch = 0 : i64, scratch_operands = 0 : i64, tpu.core_type = #tpu.core_type<tc>, window_params = [{transform_indices = @transform_0, window_bounds = array<i64: 128, 576>}, {pipeline_mode = #tpu.pipeline_mode<synchronous>, transform_indices = @transform_1, window_bounds = array<i64: 576, 64>}, {pipeline_mode = #tpu.pipeline_mode<synchronous>, transform_indices = @transform_2, window_bounds = array<i64: 1, 64>}, {transform_indices = @transform_3, window_bounds = array<i64: 128, 64>}]} {
    %c0 = arith.constant 0 : index
    %c0_0 = arith.constant 0 : index
    %0 = vector.load %arg1[%c0, %c0_0] : memref<128x576xf32, #tpu.memory_space<vmem>>, vector<128x576xf32>
    %c0_1 = arith.constant 0 : index
    %c0_2 = arith.constant 0 : index
    %1 = vector.load %arg2[%c0_1, %c0_2] : memref<576x64xf32, #tpu.memory_space<vmem>>, vector<576x64xf32>
    %cst = arith.constant dense<0.000000e+00> : vector<128x64xf32>
    %2 = tpu.matmul %0, %1, %cst {dimension_numbers = #tpu.dot_dimension_numbers<[1], [0], [0], [1], [0, 0, 1, 1], [], []>} : vector<128x576xf32>, vector<576x64xf32>, vector<128x64xf32> -> vector<128x64xf32>
    %c0_3 = arith.constant 0 : index
    %c0_4 = arith.constant 0 : index
    %3 = vector.load %arg3[%c0_3, %c0_4] : memref<1x64xf32, #tpu.memory_space<vmem>>, vector<1x64xf32>
    %4 = vector.broadcast %3 : vector<1x64xf32> to vector<128x64xf32>
    %5 = arith.addf %2, %4 : vector<128x64xf32>
    %c0_5 = arith.constant 0 : index
    %c0_6 = arith.constant 0 : index
    %6 = vector.load %arg4[%c0_5, %c0_6] : memref<128x64xf32, #tpu.memory_space<vmem>>, vector<128x64xf32>
    tpu.vector_store %arg4[%c0_5, %c0_6], %5 {strides = array<i32>} : memref<128x64xf32, #tpu.memory_space<vmem>>, vector<128x64xf32>,
    return
  }
  func.func @transform_0(%arg0: i32) -> (i32, i32) {
    %c0_i32 = arith.constant 0 : i32
    %c0_i32_0 = arith.constant 0 : i32
    return %arg0, %c0_i32 : i32, i32
  }
  func.func @transform_1(%arg0: i32) -> (i32, i32) {
    %c0_i32 = arith.constant 0 : i32
    %c0_i32_0 = arith.constant 0 : i32
    %c0_i32_1 = arith.constant 0 : i32
    return %c0_i32, %c0_i32_0 : i32, i32
  }
  func.func @transform_2(%arg0: i32) -> (i32, i32) {
    %c0_i32 = arith.constant 0 : i32
    %c0_i32_0 = arith.constant 0 : i32
    %c0_i32_1 = arith.constant 0 : i32
    return %c0_i32, %c0_i32_0 : i32, i32
  }
  func.func @transform_3(%arg0: i32) -> (i32, i32) {
    %c0_i32 = arith.constant 0 : i32
    %c0_i32_0 = arith.constant 0 : i32
    return %arg0, %c0_i32 : i32, i32
  }
}

module attributes {stable_mosaic.version = 11 : i64} {
  func.func @_matmul_bias_kernel(%arg0: i32, %arg1: memref<128x576xf32, #tpu.memory_space<vmem>>, %arg2: memref<576x16xf32, #tpu.memory_space<vmem>>, %arg3: memref<1x16xf32, #tpu.memory_space<vmem>>, %arg4: memref<128x16xf32, #tpu.memory_space<vmem>>) attributes {dimension_semantics = [#tpu.dimension_semantics<parallel>], iteration_bounds = array<i64: 1>, scalar_prefetch = 0 : i64, scratch_operands = 0 : i64, tpu.core_type = #tpu.core_type<tc>, window_params = [{transform_indices = @transform_0, window_bounds = array<i64: 128, 576>}, {pipeline_mode = #tpu.pipeline_mode<synchronous>, transform_indices = @transform_1, window_bounds = array<i64: 576, 16>}, {pipeline_mode = #tpu.pipeline_mode<synchronous>, transform_indices = @transform_2, window_bounds = array<i64: 1, 16>}, {transform_indices = @transform_3, window_bounds = array<i64: 128, 16>}]} {
    %c0 = arith.constant 0 : index
    %c0_0 = arith.constant 0 : index
    %0 = vector.load %arg1[%c0, %c0_0] : memref<128x576xf32, #tpu.memory_space<vmem>>, vector<128x576xf32>
    %c0_1 = arith.constant 0 : index
    %c0_2 = arith.constant 0 : index
    %1 = vector.load %arg2[%c0_1, %c0_2] : memref<576x16xf32, #tpu.memory_space<vmem>>, vector<576x16xf32>
    %cst = arith.constant dense<0.000000e+00> : vector<128x16xf32>
    %2 = tpu.matmul %0, %1, %cst {dimension_numbers = #tpu.dot_dimension_numbers<[1], [0], [0], [1], [0, 0, 1, 1], [], []>} : vector<128x576xf32>, vector<576x16xf32>, vector<128x16xf32> -> vector<128x16xf32>
    %c0_3 = arith.constant 0 : index
    %c0_4 = arith.constant 0 : index
    %3 = vector.load %arg3[%c0_3, %c0_4] : memref<1x16xf32, #tpu.memory_space<vmem>>, vector<1x16xf32>
    %4 = vector.broadcast %3 : vector<1x16xf32> to vector<128x16xf32>
    %5 = arith.addf %2, %4 : vector<128x16xf32>
    %c0_5 = arith.constant 0 : index
    %c0_6 = arith.constant 0 : index
    %6 = vector.load %arg4[%c0_5, %c0_6] : memref<128x16xf32, #tpu.memory_space<vmem>>, vector<128x16xf32>
    tpu.vector_store %arg4[%c0_5, %c0_6], %5 {strides = array<i32>} : memref<128x16xf32, #tpu.memory_space<vmem>>, vector<128x16xf32>,
    return
  }
  func.func @transform_0(%arg0: i32) -> (i32, i32) {
    %c0_i32 = arith.constant 0 : i32
    %c0_i32_0 = arith.constant 0 : i32
    return %arg0, %c0_i32 : i32, i32
  }
  func.func @transform_1(%arg0: i32) -> (i32, i32) {
    %c0_i32 = arith.constant 0 : i32
    %c0_i32_0 = arith.constant 0 : i32
    %c0_i32_1 = arith.constant 0 : i32
    return %c0_i32, %c0_i32_0 : i32, i32
  }
  func.func @transform_2(%arg0: i32) -> (i32, i32) {
    %c0_i32 = arith.constant 0 : i32
    %c0_i32_0 = arith.constant 0 : i32
    %c0_i32_1 = arith.constant 0 : i32
    return %c0_i32, %c0_i32_0 : i32, i32
  }
  func.func @transform_3(%arg0: i32) -> (i32, i32) {
    %c0_i32 = arith.constant 0 : i32
    %c0_i32_0 = arith.constant 0 : i32
    return %arg0, %c0_i32 : i32, i32
  }
}

</mosaic_0001>

<bundles_post_ra>
// kernel: _lambda_.22
= control target key start
LH: loop header
LB: loop body
LE: loop exit
PB: predicated region body
PF: predicated region fallthrough
CT: control target
= control target key end

     0   :  { %s1216_s15 = smov 0   ;;  %s1914_s0 = inlined_call_operand.vmem [shape: f32[2,256,32], index: 0, kind: input, shape index: {}]   ;;  %s1915_s1 = inlined_call_operand.vmem [shape: f32[1,32], index: 1, kind: input, shape index: {}]   ;;  %s1916_s2 = inlined_call_operand.vmem [shape: f32[1,32], index: 2, kind: input, shape index: {}]   ;;  %s1917_s3 = inlined_call_operand.vmem [shape: f32[32,32], index: 3, kind: input, shape index: {}]   ;;  %s1918_s4 = inlined_call_operand.vmem [shape: f32[2,256,32], index: 4, kind: output, shape index: {}]  }
   0x1 LB: > { %s979_s16 = sadd.s32 4294967295, %s1186_s15   ;;  %p983_p0 = scmp.ge.s32.totalorder %s1186_s15, 1  ;;  %s1186_s15 = sphi %s1216_s15, %s14_s15  }
   0x2   : > { %p162_p1 = scmp.lt.s32.totalorder %s1186_s15, 3 }
   0x4   : > { %p163_p2 = pnand %p983_p0, %p162_p1 }
   0x6   : > { %166 = sbr.rel (%p163_p2) target bundleno = 424 (0x1a8), region = 36 }
   0xd   : > { %v401_v0 = vld [vmem:[%s1917_s3] sm:$0xff]  ;;  %v402_v1 = vld [vmem:[%s1917_s3 + $0x8] sm:$0xff]  ;;  %v403_v2 = vld [vmem:[%s1917_s3 + $0x10] sm:$0xff]  ;;  %v1188_v3 = vmov 0.0|0.0   ;;  %p188_p3 = scmp.lt.s32.totalorder %s979_s16, 1  ;;  %vm1189_vm0 = vmmov 0  }
   0xe   : > { %1027 = vmatprep.subr.bf16.mxu0 %v1188_v3  ;;  %v1028_v4 = vpack.c.bf16 %v402_v1, %v401_v0  ;;  %1033 = vmatprep.subr.bf16.mxu1 %v1188_v3  ;;  %v404_v5 = vld [vmem:[%s1917_s3 + $0x18] sm:$0xff]  ;;  %v1190_v6 = vmov 0.0   ;;  %vm230_vm1 = vcmask 261120  }
   0xf   : > { %1013 = vmatprep.mubr.msk.f32.mxu0 %vm1189_vm0, %v1190_v6  ;;  %1024 = vmatprep.mubr.msk.f32.mxu1 %vm1189_vm0, %v1190_v6  ;;  %v1031_v7 = vpack.c.bf16 %v404_v5, %v403_v2  ;;  %s1929_s16 = smov (!%p188_p3, %s979_s16), 1 }
  0x10   : > { %1029 = vmatpush3.bf16.msra.mxu0 %v1028_v4  ;;  %1035 = vmatpush3.bf16.msra.mxu1 %v1028_v4  ;;  %s993_s25 = sshll.u32 %s1929_s16, 8 }
  0x11   : > { %1030 = vmatprep.subr.bf16.mxu0 %v1188_v3  ;;  %1036 = vmatprep.subr.bf16.mxu1 %v1188_v3  ;;  %s1244_s28 = scalar_lea.vmem %s1914_s0, %s993_s25  ;;  %s1801_s9 = scalar_lea.vmem %s1918_s4, %s993_s25 }
  0x12   : > { %v1247_v8 = vld [vmem:[%s1244_s28] sm:$0xff]  ;;  %v1250_v9 = vld [vmem:[%s1244_s28 + $0x8] sm:$0xff]  ;;  %v1253_v10 = vld [vmem:[%s1244_s28 + $0x10] sm:$0xff] }
  0x13   : > { %v1256_v11 = vld [vmem:[%s1244_s28 + $0x18] sm:$0xff]  ;;  %v231_v12 = vsel %vm230_vm1, %v1247_v8, 0.0  ;;  %v232_v13 = vsel %vm230_vm1, %v1250_v9, 0.0  ;;  %v234_v14 = vsel %vm230_vm1, %v1253_v10, 0.0  ;;  %v1265_v15 = vld [vmem:[%s1244_s28 + $0x20] sm:$0xff]  ;;  %v1270_v18 = vld [vmem:[%s1244_s28 + $0x28] sm:$0xff]  ;;  %v300_v37 = vmul.f32 %v1247_v8, %v1247_v8 }
  0x14   : > { %1032 = vmatpush3.bf16.msra.mxu0 %v1031_v7  ;;  %1038 = vmatpush3.bf16.msra.mxu1 %v1031_v7  ;;  %v233_v16 = vadd.f32 %v232_v13, %v231_v12  ;;  %v236_v17 = vsel %vm230_vm1, %v1256_v11, 0.0  ;;  %v238_v20 = vsel %vm230_vm1, %v1265_v15, 0.0  ;;  %v1275_v21 = vld [vmem:[%s1244_s28 + $0x30] sm:$0xff]  ;;  %v240_v23 = vsel %vm230_vm1, %v1270_v18, 0.0  ;;  %v1280_v24 = vld [vmem:[%s1244_s28 + $0x38] sm:$0xff]  ;;  %v1285_v27 = vld [vmem:[%s1244_s28 + $0x40] sm:$0xff] }
  0x15   : > { %v242_v26 = vsel %vm230_vm1, %v1275_v21, 0.0  ;;  %v244_v29 = vsel %vm230_vm1, %v1280_v24, 0.0  ;;  %v1290_v30 = vld [vmem:[%s1244_s28 + $0x48] sm:$0xff]  ;;  %v246_v32 = vsel %vm230_vm1, %v1285_v27, 0.0  ;;  %v1295_v33 = vld [vmem:[%s1244_s28 + $0x50] sm:$0xff]  ;;  %v1298_v35 = vld [vmem:[%s1244_s28 + $0x58] sm:$0xff]  ;;  %v301_v38 = vmul.f32 %v1250_v9, %v1250_v9 }
  0x16   : > { %v235_v19 = vadd.f32 %v234_v14, %v233_v16  ;;  %v248_v36 = vsel %vm230_vm1, %v1290_v30, 0.0  ;;  %v302_v39 = vmul.f32 %v1253_v10, %v1253_v10  ;;  %v250_v41 = vsel %vm230_vm1, %v1295_v33, 0.0  ;;  %v1313_v43 = vld [vmem:[%s1244_s28 + $0x60] sm:$0xff]  ;;  %v1323_v50 = vld [vmem:[%s1244_s28 + $0x68] sm:$0xff]  ;;  %v1331_v56 = vld [vmem:[%s1244_s28 + $0x70] sm:$0xff] }
  0x17   : > { %v303_v42 = vmul.f32 %v1256_v11, %v1256_v11  ;;  %v252_v45 = vsel %vm230_vm1, %v1298_v35, 0.0  ;;  %v304_v46 = vmul.f32 %v1265_v15, %v1265_v15  ;;  %v332_v47 = vsel %vm230_vm1, %v300_v37, 0.0  ;;  %v1339_v62 = vld [vmem:[%s1244_s28 + $0x78] sm:$0xff]  ;;  %v1347_v4 = vld [vmem:[%s1244_s28 + $0x80] sm:$0xff]  ;;  %v1355_v14 = vld [vmem:[%s1244_s28 + $0x88] sm:$0xff] }
  0x18   : > { %v237_v22 = vadd.f32 %v236_v17, %v235_v19  ;;  %v333_v48 = vsel %vm230_vm1, %v301_v38, 0.0  ;;  %v335_v49 = vsel %vm230_vm1, %v302_v39, 0.0  ;;  %v254_v53 = vsel %vm230_vm1, %v1313_v43, 0.0 }
  0x19   : > { %v334_v52 = vadd.f32 %v333_v48, %v332_v47  ;;  %v305_v54 = vmul.f32 %v1270_v18, %v1270_v18  ;;  %v337_v55 = vsel %vm230_vm1, %v303_v42, 0.0  ;;  %v256_v59 = vsel %vm230_vm1, %v1323_v50, 0.0  ;;  %v1387_v47 = vld [vmem:[%s1244_s28 + $0xa8] sm:$0xff] }
  0x1a   : > { %v239_v25 = vadd.f32 %v238_v20, %v237_v22  ;;  %v306_v60 = vmul.f32 %v1275_v21, %v1275_v21  ;;  %v339_v61 = vsel %vm230_vm1, %v304_v46, 0.0  ;;  %v258_v1 = vsel %vm230_vm1, %v1331_v56, 0.0 }
  0x1b   : > { %v336_v58 = vadd.f32 %v335_v49, %v334_v52  ;;  %v307_v2 = vmul.f32 %v1280_v24, %v1280_v24  ;;  %v341_v3 = vsel %vm230_vm1, %v305_v54, 0.0  ;;  %v260_v7 = vsel %vm230_vm1, %v1339_v62, 0.0  ;;  %v1395_v54 = vld [vmem:[%s1244_s28 + $0xb0] sm:$0xff] }
  0x1c   : > { %v241_v28 = vadd.f32 %v240_v23, %v239_v25  ;;  %v308_v12 = vmul.f32 %v1285_v27, %v1285_v27  ;;  %v343_v13 = vsel %vm230_vm1, %v306_v60, 0.0  ;;  %v262_v19 = vsel %vm230_vm1, %v1347_v4, 0.0  ;;  %v1363_v23 = vld [vmem:[%s1244_s28 + $0x90] sm:$0xff] }
  0x1d   : > { %v338_v0 = vadd.f32 %v337_v55, %v336_v58  ;;  %v309_v20 = vmul.f32 %v1290_v30, %v1290_v30  ;;  %v345_v22 = vsel %vm230_vm1, %v307_v2, 0.0  ;;  %v266_v37 = vsel %vm230_vm1, %v1363_v23, 0.0 }
  0x1e   : > { %v243_v31 = vadd.f32 %v242_v26, %v241_v28  ;;  %v264_v28 = vsel %vm230_vm1, %v1355_v14, 0.0  ;;  %v311_v38 = vmul.f32 %v1298_v35, %v1298_v35  ;;  %v313_v52 = vmul.f32 %v1323_v50, %v1323_v50 }
  0x1f   : > { %v340_v6 = vadd.f32 %v339_v61, %v338_v0  ;;  %v349_v39 = vsel %vm230_vm1, %v309_v20, 0.0  ;;  %v272_v58 = vsel %vm230_vm1, %v1387_v47, 0.0  ;;  %v1403_v61 = vld [vmem:[%s1244_s28 + $0xb8] sm:$0xff]  ;;  %v315_v2 = vmul.f32 %v1339_v62, %v1339_v62 }
  0x20   : > { %v245_v34 = vadd.f32 %v244_v29, %v243_v31  ;;  %v310_v29 = vmul.f32 %v1295_v33, %v1295_v33  ;;  %v347_v31 = vsel %vm230_vm1, %v308_v12, 0.0  ;;  %v276_v12 = vsel %vm230_vm1, %v1403_v61, 0.0 }
  0x21   : > { %v342_v17 = vadd.f32 %v341_v3, %v340_v6  ;;  %v357_v3 = vsel %vm230_vm1, %v313_v52, 0.0 }
  0x22   : > { %v247_v40 = vadd.f32 %v246_v32, %v245_v34  ;;  %v1371_v32 = vld [vmem:[%s1244_s28 + $0x98] sm:$0xff]  ;;  %v351_v46 = vsel %vm230_vm1, %v310_v29, 0.0 }
  0x23   : > { %v344_v26 = vadd.f32 %v343_v13, %v342_v17  ;;  %v316_v13 = vmul.f32 %v1347_v4, %v1347_v4  ;;  %v1419_v17 = vld [vmem:[%s1244_s28 + $0xc8] sm:$0xff] }
  0x24   : > { %v249_v44 = vadd.f32 %v248_v36, %v247_v40  ;;  %v1379_v40 = vld [vmem:[%s1244_s28 + $0xa0] sm:$0xff] }
  0x25   : > { %v346_v36 = vadd.f32 %v345_v22, %v344_v26  ;;  %v361_v26 = vsel %vm230_vm1, %v315_v2, 0.0  ;;  %v320_v52 = vmul.f32 %v1379_v40, %v1379_v40 }
  0x26   : > { %v251_v51 = vadd.f32 %v250_v41, %v249_v44  ;;  %v268_v44 = vsel %vm230_vm1, %v1371_v32, 0.0 }
  0x27   : > { %v348_v42 = vadd.f32 %v347_v31, %v346_v36  ;;  %v318_v36 = vmul.f32 %v1363_v23, %v1363_v23 }
  0x28   : > { %v253_v57 = vadd.f32 %v252_v45, %v251_v51  ;;  %v312_v45 = vmul.f32 %v1313_v43, %v1313_v43  ;;  %v270_v51 = vsel %vm230_vm1, %v1379_v40, 0.0 }
  0x29   : > { %v350_v49 = vadd.f32 %v349_v39, %v348_v42 }
  0x2a   : > { %v255_v63 = vadd.f32 %v254_v53, %v253_v57  ;;  %v353_v53 = vsel %vm230_vm1, %v311_v38, 0.0  ;;  %v355_v60 = vsel %vm230_vm1, %v312_v45, 0.0  ;;  %v1435_v38 = vld [vmem:[%s1244_s28 + $0xd8] sm:$0xff] }
  0x2b   : > { %v352_v57 = vadd.f32 %v351_v46, %v350_v49  ;;  %v1443_v46 = vld [vmem:[%s1244_s28 + $0xe0] sm:$0xff] }
  0x2c   : > { %v257_v5 = vadd.f32 %v256_v59, %v255_v63  ;;  %v314_v59 = vmul.f32 %v1331_v56, %v1331_v56 }
  0x2d   : > { %v354_v0 = vadd.f32 %v353_v53, %v352_v57  ;;  %v367_v53 = vsel %vm230_vm1, %v318_v36, 0.0 }
  0x2e   : > { %v259_v16 = vadd.f32 %v258_v1, %v257_v5  ;;  %v274_v1 = vsel %vm230_vm1, %v1395_v54, 0.0  ;;  %v1411_v5 = vld [vmem:[%s1244_s28 + $0xc0] sm:$0xff] }
  0x2f   : > { %v278_v22 = vsel %vm230_vm1, %v1411_v5, 0.0 }
  0x30   : > { %v261_v25 = vadd.f32 %v260_v7, %v259_v16  ;;  %v356_v7 = vadd.f32 %v355_v60, %v354_v0  ;;  %v359_v16 = vsel %vm230_vm1, %v314_v59, 0.0  ;;  %v286_v59 = vsel %vm230_vm1, %v1443_v46, 0.0  ;;  %v1459_v0 = vld [vmem:[%s1244_s28 + $0xf0] sm:$0xff] }
  0x31   : > { %v321_v60 = vmul.f32 %v1387_v47, %v1387_v47 }
  0x32   : > { %v263_v34 = vadd.f32 %v262_v19, %v261_v25  ;;  %v358_v20 = vadd.f32 %v357_v3, %v356_v7  ;;  %v317_v25 = vmul.f32 %v1355_v14, %v1355_v14  ;;  %v371_v7 = vsel %vm230_vm1, %v320_v52, 0.0 }
  0x33   : > { %v327_v52 = vmul.f32 %v1435_v38, %v1435_v38 }
  0x34   : > { %v265_v41 = vadd.f32 %v264_v28, %v263_v34  ;;  %v1427_v28 = vld [vmem:[%s1244_s28 + $0xd0] sm:$0xff]  ;;  %v360_v31 = vadd.f32 %v359_v16, %v358_v20  ;;  %v280_v34 = vsel %vm230_vm1, %v1419_v17, 0.0  ;;  %v365_v45 = vsel %vm230_vm1, %v317_v25, 0.0 }
  0x35   : > { %v282_v42 = vsel %vm230_vm1, %v1427_v28, 0.0  ;;  %v323_v20 = vmul.f32 %v1403_v61, %v1403_v61 }
  0x36   : > { %v267_v48 = vadd.f32 %v266_v37, %v265_v41  ;;  %v363_v37 = vsel %vm230_vm1, %v316_v13, 0.0  ;;  %v362_v41 = vadd.f32 %v361_v26, %v360_v31  ;;  %v324_v31 = vmul.f32 %v1411_v5, %v1411_v5 }
  0x38   : > { %v269_v55 = vadd.f32 %v268_v44, %v267_v48  ;;  %v319_v44 = vmul.f32 %v1371_v32, %v1371_v32  ;;  %v364_v49 = vadd.f32 %v363_v37, %v362_v41  ;;  %v377_v41 = vsel %vm230_vm1, %v323_v20, 0.0 }
  0x3a   : > { %v271_v63 = vadd.f32 %v270_v51, %v269_v55  ;;  %v284_v51 = vsel %vm230_vm1, %v1435_v38, 0.0  ;;  %v1451_v55 = vld [vmem:[%s1244_s28 + $0xe8] sm:$0xff] }
  0x3b   : > { %v288_v3 = vsel %vm230_vm1, %v1451_v55, 0.0 }
  0x3c   : > { %v273_v6 = vadd.f32 %v272_v58, %v271_v63  ;;  %v366_v58 = vadd.f32 %v365_v45, %v364_v49  ;;  %v369_v63 = vsel %vm230_vm1, %v319_v44, 0.0  ;;  %v326_v45 = vmul.f32 %v1427_v28, %v1427_v28 }
  0x3e   : > { %v275_v19 = vadd.f32 %v274_v1, %v273_v6  ;;  %v368_v2 = vadd.f32 %v367_v53, %v366_v58  ;;  %v322_v6 = vmul.f32 %v1395_v54, %v1395_v54 }
  0x40   : > { %v277_v29 = vadd.f32 %v276_v12, %v275_v19  ;;  %v1467_v12 = vld [vmem:[%s1244_s28 + $0xf8] sm:$0xff]  ;;  %v370_v16 = vadd.f32 %v369_v63, %v368_v2  ;;  %v290_v19 = vsel %vm230_vm1, %v1459_v0, 0.0  ;;  %v329_v2 = vmul.f32 %v1451_v55, %v1451_v55 }
  0x42   : > { %v279_v39 = vadd.f32 %v278_v22, %v277_v29  ;;  %v373_v22 = vsel %vm230_vm1, %v321_v60, 0.0  ;;  %v372_v26 = vadd.f32 %v371_v7, %v370_v16  ;;  %v292_v29 = vsel %vm230_vm1, %v1467_v12, 0.0 }
  0x43   : > { %v383_v60 = vsel %vm230_vm1, %v326_v45, 0.0 }
  0x44   : > { %v281_v48 = vadd.f32 %v280_v34, %v279_v39  ;;  %v375_v34 = vsel %vm230_vm1, %v322_v6, 0.0  ;;  %v374_v37 = vadd.f32 %v373_v22, %v372_v26  ;;  %v325_v39 = vmul.f32 %v1419_v17, %v1419_v17 }
  0x45   : > { %v331_v22 = vmul.f32 %v1467_v12, %v1467_v12 }
  0x46   : > { %v283_v57 = vadd.f32 %v282_v42, %v281_v48  ;;  %v376_v44 = vadd.f32 %v375_v34, %v374_v37  ;;  %v379_v48 = vsel %vm230_vm1, %v324_v31, 0.0  ;;  %v381_v53 = vsel %vm230_vm1, %v325_v39, 0.0 }
  0x48   : > { %v285_v1 = vadd.f32 %v284_v51, %v283_v57  ;;  %v378_v51 = vadd.f32 %v377_v41, %v376_v44 }
  0x4a   : > { %v287_v13 = vadd.f32 %v286_v59, %v285_v1  ;;  %v380_v58 = vadd.f32 %v379_v48, %v378_v51  ;;  %v328_v59 = vmul.f32 %v1443_v46, %v1443_v46 }
  0x4c   : > { %v289_v25 = vadd.f32 %v288_v3, %v287_v13  ;;  %v382_v1 = vadd.f32 %v381_v53, %v380_v58  ;;  %v385_v3 = vsel %vm230_vm1, %v327_v52, 0.0  ;;  %v330_v13 = vmul.f32 %v1459_v0, %v1459_v0 }
  0x4d   : > { %v387_v16 = vsel %vm230_vm1, %v328_v59, 0.0  ;;  %v557_v53 = vlaneseq }
  0x4e   : > { %v291_v36 = vadd.f32 %v290_v19, %v289_v25  ;;  %v384_v7 = vadd.f32 %v383_v60, %v382_v1  ;;  %v389_v25 = vsel %vm230_vm1, %v329_v2, 0.0  ;;  %v391_v31 = vsel %vm230_vm1, %v330_v13, 0.0 }
  0x4f   : > { %v558_v58 = vshrl.u32 %v557_v53, 7 }
  0x50   : > { %v293_v42 = vadd.f32 %v292_v29, %v291_v36  ;;  %v386_v20 = vadd.f32 %v385_v3, %v384_v7  ;;  %v393_v36 = vsel %vm230_vm1, %v331_v22, 0.0 }
  0x51   : > { %v559_v1 = vsub.s32 0, %v558_v58 }
  0x52   : > { %v294_v49 = vrot.slane %v293_v42, 4  ;;  %v388_v29 = vadd.f32 %v387_v16, %v386_v20 }
  0x54   : > { %v295_v57 = vadd.f32 %v294_v49, %v293_v42  ;;  %v390_v34 = vadd.f32 %v389_v25, %v388_v29 }
  0x56   : > { %v296_v63 = vrot.slane %v295_v57, 2  ;;  %v392_v37 = vadd.f32 %v391_v31, %v390_v34 }
  0x58   : > { %v297_v6 = vadd.f32 %v296_v63, %v295_v57  ;;  %v394_v39 = vadd.f32 %v393_v36, %v392_v37 }
  0x5a   : > { %v298_v19 = vrot.slane %v297_v6, 1  ;;  %v395_v41 = vrot.slane %v394_v39, 4 }
  0x5c   : > { %v299_v26 = vadd.f32 %v298_v19, %v297_v6  ;;  %v396_v42 = vadd.f32 %v395_v41, %v394_v39 }
  0x5e   : > { %1014 = vmatmul.mubr.msk.f32.vlgmr.msra.gmra.mrb[0].mxu0 %vm230_vm1, %v299_v26  ;;  %v397_v44 = vrot.slane %v396_v42, 2 }
  0x60   : > { %v398_v45 = vadd.f32 %v397_v44, %v396_v42 }
  0x62   : > { %v399_v48 = vrot.slane %v398_v45, 1 }
  0x64   : > { %v400_v49 = vadd.f32 %v399_v48, %v398_v45 }
  0x66   : > { %1025 = vmatmul.mubr.msk.f32.vlgmr.msra.gmra.mrb[0].mxu1 %vm230_vm1, %v400_v49 }
 0x131   : > { %v474_v51 = vpop.f32.mrb[0].mxu0 }
 0x132   : > { %v1015_v52 = vpop.f32.mrb[1].mxu0  ;;  %v551_v57 = vmul.f32 %v474_v51, %v474_v51  ;;  %v1504_v3 = vrot.slane %v474_v51, %v559_v1 }
 0x134   : > { %v561_v6 = vsub.f32 %v1247_v8, %v1504_v3  ;;  %v562_v7 = vsub.f32 %v1250_v9, %v1504_v3  ;;  %v563_v13 = vsub.f32 %v1253_v10, %v1504_v3  ;;  %v564_v16 = vsub.f32 %v1256_v11, %v1504_v3  ;;  %v555_v11 = vld [vmem:[%s1915_s1] sm:$0x1] }
 0x135   : > { %v565_v19 = vsub.f32 %v1265_v15, %v1504_v3  ;;  %v566_v20 = vsub.f32 %v1270_v18, %v1504_v3  ;;  %v567_v22 = vsub.f32 %v1275_v21, %v1504_v3  ;;  %v568_v8 = vsub.f32 %v1280_v24, %v1504_v3 }
 0x136   : > { %v569_v9 = vsub.f32 %v1285_v27, %v1504_v3  ;;  %v570_v10 = vsub.f32 %v1290_v30, %v1504_v3  ;;  %v571_v15 = vsub.f32 %v1295_v33, %v1504_v3  ;;  %v572_v18 = vsub.f32 %v1298_v35, %v1504_v3 }
 0x137   : > { %v573_v21 = vsub.f32 %v1313_v43, %v1504_v3  ;;  %v574_v24 = vsub.f32 %v1323_v50, %v1504_v3  ;;  %v575_v30 = vsub.f32 %v1331_v56, %v1504_v3  ;;  %v576_v25 = vsub.f32 %v1339_v62, %v1504_v3 }
 0x138   : > { %v577_v26 = vsub.f32 %v1347_v4, %v1504_v3  ;;  %v578_v33 = vsub.f32 %v1355_v14, %v1504_v3  ;;  %v579_v35 = vsub.f32 %v1363_v23, %v1504_v3  ;;  %v580_v43 = vsub.f32 %v1371_v32, %v1504_v3 }
 0x139   : > { %v547_v59 = vpop.f32.mrb[0].mxu1  ;;  %v581_v50 = vsub.f32 %v1379_v40, %v1504_v3  ;;  %v582_v56 = vsub.f32 %v1387_v47, %v1504_v3  ;;  %v583_v62 = vsub.f32 %v1395_v54, %v1504_v3  ;;  %v584_v4 = vsub.f32 %v1403_v61, %v1504_v3 }
 0x13a   : > { %v552_v60 = vsub.f32 %v547_v59, %v551_v57  ;;  %v1026_v63 = vpop.f32.mrb[1].mxu1  ;;  %v585_v14 = vsub.f32 %v1411_v5, %v1504_v3  ;;  %v586_v23 = vsub.f32 %v1419_v17, %v1504_v3  ;;  %v587_v32 = vsub.f32 %v1427_v28, %v1504_v3 }
 0x13b   : > { %v588_v40 = vsub.f32 %v1435_v38, %v1504_v3  ;;  %v589_v47 = vsub.f32 %v1443_v46, %v1504_v3  ;;  %v590_v54 = vsub.f32 %v1451_v55, %v1504_v3  ;;  %v591_v61 = vsub.f32 %v1459_v0, %v1504_v3 }
 0x13c   : > { %v553_v2 = vadd.f32 1e-06, %v552_v60  ;;  %v592_v5 = vsub.f32 %v1467_v12, %v1504_v3 }
 0x13e   : > { %1050 = vrsqrt.f32 %v553_v2 }
 0x148   : > { %v1051_v27 = vpop.eup %1050 }
 0x149   : > { %v556_v29 = vmul.f32 %v1051_v27, %v555_v11 }
 0x14b   : > { %v596_v31 = vrot.slane %v556_v29, %v559_v1 }
 0x14d   : > { %v597_v17 = vmul.f32 %v596_v31, %v561_v6  ;;  %v598_v34 = vmul.f32 %v596_v31, %v562_v7  ;;  %v599_v36 = vmul.f32 %v596_v31, %v563_v13  ;;  %v600_v28 = vmul.f32 %v596_v31, %v564_v16 }
 0x14e   : > { %v601_v37 = vmul.f32 %v596_v31, %v565_v19  ;;  %v602_v39 = vmul.f32 %v596_v31, %v566_v20  ;;  %v603_v38 = vmul.f32 %v596_v31, %v567_v22  ;;  %v604_v41 = vmul.f32 %v596_v31, %v568_v8  ;;  %v1604_v19 = vld [vmem:[%s1916_s2] ss:$0 sm:$0xff] }
 0x14f   : > { %v605_v42 = vmul.f32 %v596_v31, %v569_v9  ;;  %v606_v44 = vmul.f32 %v596_v31, %v570_v10  ;;  %v607_v46 = vmul.f32 %v596_v31, %v571_v15  ;;  %v608_v45 = vmul.f32 %v596_v31, %v572_v18 }
 0x150   : > { %v609_v48 = vmul.f32 %v596_v31, %v573_v21  ;;  %v610_v55 = vmul.f32 %v596_v31, %v574_v24  ;;  %v611_v49 = vmul.f32 %v596_v31, %v575_v30  ;;  %v612_v51 = vmul.f32 %v596_v31, %v576_v25 }
 0x151   : > { %v613_v0 = vmul.f32 %v596_v31, %v577_v26  ;;  %v614_v52 = vmul.f32 %v596_v31, %v578_v33  ;;  %v1573_v53 = vmul.f32 %v596_v31, %v579_v35  ;;  %v1575_v12 = vmul.f32 %v596_v31, %v580_v43 }
 0x152   : > { %v1577_v57 = vmul.f32 %v596_v31, %v581_v50  ;;  %v1579_v58 = vmul.f32 %v596_v31, %v582_v56  ;;  %v1581_v59 = vmul.f32 %v596_v31, %v583_v62  ;;  %v1583_v60 = vmul.f32 %v596_v31, %v584_v4 }
 0x153   : > { %v1585_v63 = vmul.f32 %v596_v31, %v585_v14  ;;  %v1587_v1 = vmul.f32 %v596_v31, %v586_v23  ;;  %v1589_v2 = vmul.f32 %v596_v31, %v587_v32  ;;  %v1591_v3 = vmul.f32 %v596_v31, %v588_v40 }
 0x154   : > { %v1593_v6 = vmul.f32 %v596_v31, %v589_v47  ;;  %v1595_v7 = vmul.f32 %v596_v31, %v590_v54  ;;  %v1597_v13 = vmul.f32 %v596_v31, %v591_v61  ;;  %v1599_v16 = vmul.f32 %v596_v31, %v592_v5 }
 0x155   : > { %v1607_v20 = vadd.f32 %v1604_v19, %v597_v17  ;;  %v1610_v22 = vadd.f32 %v1604_v19, %v598_v34  ;;  %v1613_v8 = vadd.f32 %v1604_v19, %v599_v36  ;;  %v1616_v9 = vadd.f32 %v1604_v19, %v600_v28 }
 0x156   : > { %v1619_v10 = vadd.f32 %v1604_v19, %v601_v37  ;;  %v1622_v11 = vadd.f32 %v1604_v19, %v602_v39  ;;  %v1625_v15 = vadd.f32 %v1604_v19, %v603_v38  ;;  %v1631_v27 = vadd.f32 %v1604_v19, %v604_v41 }
 0x157   : > { %v668_v18 = vsub.f32 0.0, %v1607_v20  ;;  %v669_v21 = vsub.f32 0.0, %v1610_v22  ;;  %v670_v24 = vsub.f32 0.0, %v1613_v8  ;;  %v671_v30 = vsub.f32 0.0, %v1616_v9 }
 0x158   : > { %v1635_v25 = vadd.f32 %v1604_v19, %v605_v42  ;;  %v672_v26 = vsub.f32 0.0, %v1619_v10  ;;  %v1639_v33 = vadd.f32 %v1604_v19, %v606_v44  ;;  %v673_v35 = vsub.f32 0.0, %v1622_v11 }
 0x159   : > { %v674_v43 = vsub.f32 0.0, %v1625_v15  ;;  %v1644_v50 = vadd.f32 %v1604_v19, %v607_v46  ;;  %v700_v29 = vmul.f32 1.442695, %v668_v18  ;;  %v702_v56 = vmul.f32 1.442695, %v669_v21 }
 0x15a   : > { %v704_v62 = vmul.f32 1.442695, %v670_v24  ;;  %v1647_v4 = vadd.f32 %v1604_v19, %v608_v45  ;;  %v675_v14 = vsub.f32 0.0, %v1631_v27  ;;  %v706_v23 = vmul.f32 1.442695, %v671_v30 }
 0x15b   : > { %v1651_v32 = vadd.f32 %v1604_v19, %v609_v48  ;;  %v676_v40 = vsub.f32 0.0, %v1635_v25  ;;  %1052 = vpow2.f32 %v700_v29  ;;  %v708_v31 = vmul.f32 1.442695, %v672_v26 }
 0x15c   : > { %v1655_v47 = vadd.f32 %v1604_v19, %v610_v55  ;;  %v677_v54 = vsub.f32 0.0, %v1639_v33  ;;  %1054 = vpow2.f32 %v702_v56  ;;  %v710_v61 = vmul.f32 1.442695, %v673_v35 }
 0x15d   : > { %v1659_v5 = vadd.f32 %v1604_v19, %v611_v49  ;;  %v678_v17 = vsub.f32 0.0, %v1644_v50  ;;  %1056 = vpow2.f32 %v704_v62  ;;  %v712_v34 = vmul.f32 1.442695, %v674_v43 }
 0x15e   : > { %v1663_v36 = vadd.f32 %v1604_v19, %v612_v51  ;;  %v679_v28 = vsub.f32 0.0, %v1647_v4  ;;  %1058 = vpow2.f32 %v706_v23  ;;  %v714_v37 = vmul.f32 1.442695, %v675_v14 }
 0x15f   : > { %v1667_v39 = vadd.f32 %v1604_v19, %v613_v0  ;;  %v680_v38 = vsub.f32 0.0, %v1651_v32  ;;  %1060 = vpow2.f32 %v708_v31  ;;  %v716_v41 = vmul.f32 1.442695, %v676_v40 }
 0x160   : > { %v1671_v42 = vadd.f32 %v1604_v19, %v614_v52  ;;  %v681_v44 = vsub.f32 0.0, %v1655_v47  ;;  %1062 = vpow2.f32 %v710_v61  ;;  %v718_v46 = vmul.f32 1.442695, %v677_v54 }
 0x161   : > { %v1676_v45 = vadd.f32 %v1604_v19, %v1573_v53  ;;  %v682_v48 = vsub.f32 0.0, %v1659_v5  ;;  %1064 = vpow2.f32 %v712_v34  ;;  %v720_v55 = vmul.f32 1.442695, %v678_v17 }
 0x162   : > { %v1681_v49 = vadd.f32 %v1604_v19, %v1575_v12  ;;  %v683_v51 = vsub.f32 0.0, %v1663_v36  ;;  %1066 = vpow2.f32 %v714_v37  ;;  %v722_v0 = vmul.f32 1.442695, %v679_v28 }
 0x163   : > { %v1686_v52 = vadd.f32 %v1604_v19, %v1577_v57  ;;  %v684_v18 = vsub.f32 0.0, %v1667_v39  ;;  %1068 = vpow2.f32 %v716_v41  ;;  %v724_v53 = vmul.f32 1.442695, %v680_v38 }
 0x164   : > { %v1691_v21 = vadd.f32 %v1604_v19, %v1579_v58  ;;  %v685_v24 = vsub.f32 0.0, %v1671_v42  ;;  %1070 = vpow2.f32 %v718_v46  ;;  %v726_v12 = vmul.f32 1.442695, %v681_v44 }
 0x165   : > { %v1694_v30 = vpop.eup %1052  ;;  %v1698_v26 = vadd.f32 %v1604_v19, %v1581_v59  ;;  %v686_v57 = vsub.f32 0.0, %v1676_v45  ;;  %1072 = vpow2.f32 %v720_v55  ;;  %v728_v35 = vmul.f32 1.442695, %v682_v48 }
 0x166   : > { %v1701_v43 = vpop.eup %1054  ;;  %v1705_v58 = vadd.f32 %v1604_v19, %v1583_v60  ;;  %v687_v29 = vsub.f32 0.0, %v1681_v49  ;;  %1074 = vpow2.f32 %v722_v0  ;;  %v730_v56 = vmul.f32 1.442695, %v683_v51 }
 0x167   : > { %v1708_v62 = vpop.eup %1056  ;;  %v1712_v59 = vadd.f32 %v1604_v19, %v1585_v63  ;;  %v688_v14 = vsub.f32 0.0, %v1686_v52  ;;  %1076 = vpow2.f32 %v724_v53  ;;  %v732_v23 = vmul.f32 1.442695, %v684_v18 }
 0x168   : > { %v1715_v40 = vpop.eup %1058  ;;  %v1719_v60 = vadd.f32 %v1604_v19, %v1587_v1  ;;  %v689_v31 = vsub.f32 0.0, %v1691_v21  ;;  %1078 = vpow2.f32 %v726_v12  ;;  %v734_v54 = vmul.f32 1.442695, %v685_v24 }
 0x169   : > { %v1722_v61 = vpop.eup %1060  ;;  %v1726_v63 = vadd.f32 %v1604_v19, %v1589_v2  ;;  %v690_v17 = vsub.f32 0.0, %v1698_v26  ;;  %1080 = vpow2.f32 %v728_v35  ;;  %v736_v34 = vmul.f32 1.442695, %v686_v57 }
 0x16a   : > { %v1729_v28 = vpop.eup %1062  ;;  %v1733_v1 = vadd.f32 %v1604_v19, %v1591_v3  ;;  %v691_v37 = vsub.f32 0.0, %v1705_v58  ;;  %1082 = vpow2.f32 %v730_v56  ;;  %v738_v38 = vmul.f32 1.442695, %v687_v29 }
 0x16b   : > { %v1736_v41 = vpop.eup %1064  ;;  %v1740_v2 = vadd.f32 %v1604_v19, %v1593_v6  ;;  %v692_v44 = vsub.f32 0.0, %v1712_v59  ;;  %1084 = vpow2.f32 %v732_v23  ;;  %v740_v46 = vmul.f32 1.442695, %v688_v14 }
 0x16c   : > { %v1743_v48 = vpop.eup %1066  ;;  %v1747_v3 = vadd.f32 %v1604_v19, %v1595_v7  ;;  %v693_v55 = vsub.f32 0.0, %v1719_v60  ;;  %1086 = vpow2.f32 %v734_v54  ;;  %v742_v51 = vmul.f32 1.442695, %v689_v31 }
 0x16d   : > { %1922 = vst [vmem:[#allocation2_spill] sm:$0xff] %v1740_v2  ;;  %v1069_v0 = vpop.eup %1068  ;;  %v1752_v18 = vadd.f32 %v1604_v19, %v1597_v13  ;;  %v694_v6 = vsub.f32 0.0, %v1726_v63  ;;  %1088 = vpow2.f32 %v736_v34  ;;  %v744_v53 = vmul.f32 1.442695, %v690_v17 }
 0x16e   : > { %1923 = vst [vmem:[#allocation3_spill] sm:$0xff] %v1747_v3  ;;  %v1071_v24 = vpop.eup %1070  ;;  %v1757_v12 = vadd.f32 %v1604_v19, %v1599_v16  ;;  %v695_v7 = vsub.f32 0.0, %v1733_v1  ;;  %1090 = vpow2.f32 %v738_v38  ;;  %v746_v57 = vmul.f32 1.442695, %v691_v37 }
 0x16f   : > { %1924 = vst [vmem:[#allocation4_spill] sm:$0xff] %v1752_v18  ;;  %v1073_v35 = vpop.eup %1072  ;;  %v696_v29 = vsub.f32 0.0, %v1740_v2  ;;  %1092 = vpow2.f32 %v740_v46  ;;  %v748_v56 = vmul.f32 1.442695, %v692_v44  ;;  %v697_v14 = vsub.f32 0.0, %v1747_v3 }
 0x170   : > { %v1075_v13 = vpop.eup %1074  ;;  %1094 = vpow2.f32 %v742_v51  ;;  %v750_v23 = vmul.f32 1.442695, %v693_v55  ;;  %v698_v54 = vsub.f32 0.0, %v1752_v18  ;;  %v752_v16 = vmul.f32 1.442695, %v694_v6 }
 0x171   : > { %v1077_v31 = vpop.eup %1076  ;;  %1096 = vpow2.f32 %v744_v53  ;;  %v699_v17 = vsub.f32 0.0, %v1757_v12  ;;  %v754_v34 = vmul.f32 1.442695, %v695_v7  ;;  %v756_v38 = vmul.f32 1.442695, %v696_v29 }
 0x172   : > { %v1079_v19 = vpop.eup %1078  ;;  %1098 = vpow2.f32 %v746_v57  ;;  %v758_v44 = vmul.f32 1.442695, %v697_v14  ;;  %v760_v51 = vmul.f32 1.442695, %v698_v54  ;;  %v764_v6 = vadd.f32 1.0, %v1694_v30 }
 0x173   : > { %v1081_v37 = vpop.eup %1080  ;;  %1100 = vpow2.f32 %v748_v56  ;;  %v762_v3 = vmul.f32 1.442695, %v699_v17  ;;  %v765_v7 = vadd.f32 1.0, %v1701_v43  ;;  %v766_v29 = vadd.f32 1.0, %v1708_v62 }
 0x174   : > { %v1083_v46 = vpop.eup %1082  ;;  %1102 = vpow2.f32 %v750_v23  ;;  %v767_v14 = vadd.f32 1.0, %v1715_v40  ;;  %v768_v54 = vadd.f32 1.0, %v1722_v61  ;;  %v770_v17 = vadd.f32 1.0, %v1736_v41 }
 0x175   : > { %v1085_v2 = vpop.eup %1084  ;;  %1104 = vpow2.f32 %v752_v16  ;;  %v769_v16 = vadd.f32 1.0, %v1729_v28 }
 0x176   : > { %v1087_v55 = vpop.eup %1086  ;;  %1106 = vpow2.f32 %v754_v34  ;;  %v772_v34 = vadd.f32 1.0, %v1069_v0  ;;  %v777_v0 = vadd.f32 1.0, %v1079_v19 }
 0x177   : > { %v1089_v18 = vpop.eup %1088  ;;  %1108 = vpow2.f32 %v756_v38  ;;  %v773_v38 = vadd.f32 1.0, %v1071_v24  ;;  %v778_v24 = vadd.f32 1.0, %v1081_v37 }
 0x178   : > { %v1091_v53 = vpop.eup %1090  ;;  %1110 = vpow2.f32 %v758_v44  ;;  %v774_v44 = vadd.f32 1.0, %v1073_v35 }
 0x179   : > { %v1766_v57 = vpop.eup %1092  ;;  %1112 = vpow2.f32 %v760_v51  ;;  %v775_v51 = vadd.f32 1.0, %v1075_v13  ;;  %v779_v13 = vadd.f32 1.0, %v1083_v46  ;;  %v782_v46 = vadd.f32 1.0, %v1089_v18 }
 0x17a   : > { %v1769_v56 = vpop.eup %1094  ;;  %1114 = vpow2.f32 %v762_v3  ;;  %v771_v3 = vadd.f32 1.0, %v1743_v48  ;;  %v776_v48 = vadd.f32 1.0, %v1077_v31 }
 0x17b   : > { %v1772_v23 = vpop.eup %1096  ;;  %1116 = vrcp.f32 %v764_v6 }
 0x17c   : > { %v1775_v30 = vpop.eup %1098  ;;  %1118 = vrcp.f32 %v765_v7 }
 0x17d   : > { %v1778_v43 = vpop.eup %1100  ;;  %1120 = vrcp.f32 %v766_v29 }
 0x17e   : > { %v1781_v62 = vpop.eup %1102  ;;  %1122 = vrcp.f32 %v767_v14 }
 0x17f   : > { %v1784_v40 = vpop.eup %1104  ;;  %1124 = vrcp.f32 %v768_v54  ;;  %v780_v54 = vadd.f32 1.0, %v1085_v2  ;;  %v783_v2 = vadd.f32 1.0, %v1091_v53 }
 0x180   : > { %v1786_v61 = vpop.eup %1106  ;;  %1126 = vrcp.f32 %v769_v16 }
 0x181   : > { %v1788_v28 = vpop.eup %1108  ;;  %1128 = vrcp.f32 %v770_v17  ;;  %v781_v17 = vadd.f32 1.0, %v1087_v55  ;;  %v784_v55 = vadd.f32 1.0, %v1766_v57 }
 0x182   : > { %v1790_v41 = vpop.eup %1110  ;;  %1130 = vrcp.f32 %v771_v3 }
 0x183   : > { %v1792_v6 = vpop.eup %1112  ;;  %1132 = vrcp.f32 %v772_v34 }
 0x184   : > { %v1794_v7 = vpop.eup %1114  ;;  %1134 = vrcp.f32 %v773_v38  ;;  %v785_v38 = vadd.f32 1.0, %v1769_v56 }
 0x185   : > { %v1117_v29 = vpop.eup %1116  ;;  %1136 = vrcp.f32 %v774_v44  ;;  %v786_v44 = vadd.f32 1.0, %v1772_v23 }
 0x186   : > { %v1119_v35 = vpop.eup %1118  ;;  %1138 = vrcp.f32 %v775_v51  ;;  %v860_v31 = vmul.f32 %v1117_v29, %v1607_v20  ;;  %v787_v51 = vadd.f32 1.0, %v1775_v30  ;;  %v790_v29 = vadd.f32 1.0, %v1784_v40 }
 0x187   : > { %v1121_v14 = vpop.eup %1120  ;;  %1140 = vrcp.f32 %v776_v48  ;;  %v861_v19 = vmul.f32 %v1119_v35, %v1610_v22  ;;  %v788_v48 = vadd.f32 1.0, %v1778_v43  ;;  %v792_v35 = vadd.f32 1.0, %v1788_v28 }
 0x188   : > { %v1123_v16 = vpop.eup %1122  ;;  %1142 = vrcp.f32 %v777_v0  ;;  %v862_v3 = vmul.f32 %v1121_v14, %v1613_v8  ;;  %892 = vst.msk [vmem:[%s1801_s9] sm:$0xff] %vm230_vm1, %v860_v31  ;;  %v789_v0 = vadd.f32 1.0, %v1781_v62  ;;  %v794_v31 = vadd.f32 1.0, %v1792_v6 }
 0x189   : > { %v1125_v37 = vpop.eup %1124  ;;  %1144 = vrcp.f32 %v778_v24  ;;  %v863_v34 = vmul.f32 %v1123_v16, %v1616_v9  ;;  %893 = vst.msk [vmem:[%s1801_s9 + $0x8] sm:$0xff] %vm230_vm1, %v861_v19  ;;  %v791_v24 = vadd.f32 1.0, %v1786_v61  ;;  %v795_v14 = vadd.f32 1.0, %v1794_v7 }
 0x18a   : > { %v1127_v20 = vpop.eup %1126  ;;  %1146 = vrcp.f32 %v779_v13  ;;  %v864_v22 = vmul.f32 %v1125_v37, %v1619_v10  ;;  %894 = vst.msk [vmem:[%s1801_s9 + $0x10] sm:$0xff] %vm230_vm1, %v862_v3  ;;  %v793_v13 = vadd.f32 1.0, %v1790_v41 }
 0x18b   : > { %v1129_v8 = vpop.eup %1128  ;;  %1148 = vrcp.f32 %v780_v54  ;;  %v865_v18 = vmul.f32 %v1127_v20, %v1622_v11  ;;  %895 = vst.msk [vmem:[%s1801_s9 + $0x18] sm:$0xff] %vm230_vm1, %v863_v34 }
 0x18c   : > { %v1131_v9 = vpop.eup %1130  ;;  %1150 = vrcp.f32 %v781_v17  ;;  %v866_v53 = vmul.f32 %v1129_v8, %v1625_v15  ;;  %896 = vst.msk [vmem:[%s1801_s9 + $0x20] sm:$0xff] %vm230_vm1, %v864_v22  ;;  %v1925_v22 = vld [vmem:[#allocation2_spill] sm:$0xff] }
 0x18d   : > { %v1133_v10 = vpop.eup %1132  ;;  %1152 = vrcp.f32 %v782_v46  ;;  %v867_v57 = vmul.f32 %v1131_v9, %v1631_v27  ;;  %897 = vst.msk [vmem:[%s1801_s9 + $0x28] sm:$0xff] %vm230_vm1, %v865_v18  ;;  %v1927_v9 = vld [vmem:[#allocation4_spill] sm:$0xff] }
 0x18e   : > { %v1135_v11 = vpop.eup %1134  ;;  %1154 = vrcp.f32 %v783_v2  ;;  %v868_v56 = vmul.f32 %v1133_v10, %v1635_v25  ;;  %898 = vst.msk [vmem:[%s1801_s9 + $0x30] sm:$0xff] %vm230_vm1, %v866_v53 }
 0x18f   : > { %v1137_v15 = vpop.eup %1136  ;;  %1156 = vrcp.f32 %v784_v55  ;;  %v869_v23 = vmul.f32 %v1135_v11, %v1639_v33  ;;  %899 = vst.msk [vmem:[%s1801_s9 + $0x38] sm:$0xff] %vm230_vm1, %v867_v57  ;;  %v1926_v55 = vld [vmem:[#allocation3_spill] sm:$0xff] }
 0x190   : > { %v1139_v27 = vpop.eup %1138  ;;  %1158 = vrcp.f32 %v785_v38  ;;  %v870_v30 = vmul.f32 %v1137_v15, %v1644_v50  ;;  %900 = vst.msk [vmem:[%s1801_s9 + $0x40] sm:$0xff] %vm230_vm1, %v868_v56 }
 0x191   : > { %v1141_v25 = vpop.eup %1140  ;;  %1160 = vrcp.f32 %v786_v44  ;;  %v871_v43 = vmul.f32 %v1139_v27, %v1647_v4  ;;  %901 = vst.msk [vmem:[%s1801_s9 + $0x48] sm:$0xff] %vm230_vm1, %v869_v23 }
 0x192   : > { %v1143_v33 = vpop.eup %1142  ;;  %1162 = vrcp.f32 %v787_v51  ;;  %v872_v62 = vmul.f32 %v1141_v25, %v1651_v32  ;;  %902 = vst.msk [vmem:[%s1801_s9 + $0x50] sm:$0xff] %vm230_vm1, %v870_v30 }
 0x193   : > { %v1145_v50 = vpop.eup %1144  ;;  %1164 = vrcp.f32 %v788_v48  ;;  %v873_v40 = vmul.f32 %v1143_v33, %v1655_v47  ;;  %903 = vst.msk [vmem:[%s1801_s9 + $0x58] sm:$0xff] %vm230_vm1, %v871_v43 }
 0x194   : > { %v1147_v4 = vpop.eup %1146  ;;  %1166 = vrcp.f32 %v789_v0  ;;  %v874_v61 = vmul.f32 %v1145_v50, %v1659_v5  ;;  %904 = vst.msk [vmem:[%s1801_s9 + $0x60] sm:$0xff] %vm230_vm1, %v872_v62 }
 0x195   : > { %v1149_v32 = vpop.eup %1148  ;;  %1168 = vrcp.f32 %v790_v29  ;;  %v875_v28 = vmul.f32 %v1147_v4, %v1663_v36  ;;  %905 = vst.msk [vmem:[%s1801_s9 + $0x68] sm:$0xff] %vm230_vm1, %v873_v40 }
 0x196   : > { %v1151_v47 = vpop.eup %1150  ;;  %1170 = vrcp.f32 %v791_v24  ;;  %v876_v41 = vmul.f32 %v1149_v32, %v1667_v39  ;;  %906 = vst.msk [vmem:[%s1801_s9 + $0x70] sm:$0xff] %vm230_vm1, %v874_v61 }
 0x197   : > { %v1153_v5 = vpop.eup %1152  ;;  %1172 = vrcp.f32 %v792_v35  ;;  %v877_v6 = vmul.f32 %v1151_v47, %v1671_v42  ;;  %907 = vst.msk [vmem:[%s1801_s9 + $0x78] sm:$0xff] %vm230_vm1, %v875_v28 }
 0x198   : > { %v1155_v36 = vpop.eup %1154  ;;  %1174 = vrcp.f32 %v793_v13  ;;  %v878_v54 = vmul.f32 %v1153_v5, %v1676_v45  ;;  %908 = vst.msk [vmem:[%s1801_s9 + $0x80] sm:$0xff] %vm230_vm1, %v876_v41 }
 0x199   : > { %v1157_v7 = vpop.eup %1156  ;;  %1176 = vrcp.f32 %v794_v31  ;;  %v879_v39 = vmul.f32 %v1155_v36, %v1681_v49  ;;  %909 = vst.msk [vmem:[%s1801_s9 + $0x88] sm:$0xff] %vm230_vm1, %v877_v6 }
 0x19a   : > { %v1159_v19 = vpop.eup %1158  ;;  %1178 = vrcp.f32 %v795_v14  ;;  %v880_v42 = vmul.f32 %v1157_v7, %v1686_v52  ;;  %910 = vst.msk [vmem:[%s1801_s9 + $0x90] sm:$0xff] %vm230_vm1, %v878_v54 }
 0x19b   : > { %v1161_v16 = vpop.eup %1160  ;;  %v881_v45 = vmul.f32 %v1159_v19, %v1691_v21  ;;  %911 = vst.msk [vmem:[%s1801_s9 + $0x98] sm:$0xff] %vm230_vm1, %v879_v39 }
 0x19c   : > { %v1163_v17 = vpop.eup %1162  ;;  %v882_v3 = vmul.f32 %v1161_v16, %v1698_v26  ;;  %912 = vst.msk [vmem:[%s1801_s9 + $0xa0] sm:$0xff] %vm230_vm1, %v880_v42 }
 0x19d   : > { %v1165_v49 = vpop.eup %1164  ;;  %v883_v37 = vmul.f32 %v1163_v17, %v1705_v58  ;;  %913 = vst.msk [vmem:[%s1801_s9 + $0xa8] sm:$0xff] %vm230_vm1, %v881_v45 }
 0x19e   : > { %v1167_v52 = vpop.eup %1166  ;;  %v884_v46 = vmul.f32 %v1165_v49, %v1712_v59  ;;  %914 = vst.msk [vmem:[%s1801_s9 + $0xb0] sm:$0xff] %vm230_vm1, %v882_v3 }
 0x19f   : > { %v1169_v21 = vpop.eup %1168  ;;  %v885_v34 = vmul.f32 %v1167_v52, %v1719_v60  ;;  %915 = vst.msk [vmem:[%s1801_s9 + $0xb8] sm:$0xff] %vm230_vm1, %v883_v37 }
 0x1a0   : > { %v1171_v26 = vpop.eup %1170  ;;  %v886_v20 = vmul.f32 %v1169_v21, %v1726_v63  ;;  %916 = vst.msk [vmem:[%s1801_s9 + $0xc0] sm:$0xff] %vm230_vm1, %v884_v46 }
 0x1a1   : > { %v1173_v58 = vpop.eup %1172  ;;  %v887_v59 = vmul.f32 %v1171_v26, %v1733_v1  ;;  %917 = vst.msk [vmem:[%s1801_s9 + $0xc8] sm:$0xff] %vm230_vm1, %v885_v34 }
 0x1a2   : > { %v1175_v2 = vpop.eup %1174  ;;  %v888_v8 = vmul.f32 %v1173_v58, %v1925_v22  ;;  %918 = vst.msk [vmem:[%s1801_s9 + $0xd0] sm:$0xff] %vm230_vm1, %v886_v20 }
 0x1a3   : > { %v1177_v60 = vpop.eup %1176  ;;  %v889_v18 = vmul.f32 %v1175_v2, %v1926_v55  ;;  %919 = vst.msk [vmem:[%s1801_s9 + $0xd8] sm:$0xff] %vm230_vm1, %v887_v59 }
 0x1a4   : > { %v1179_v63 = vpop.eup %1178  ;;  %v890_v38 = vmul.f32 %v1177_v60, %v1927_v9  ;;  %920 = vst.msk [vmem:[%s1801_s9 + $0xe0] sm:$0xff] %vm230_vm1, %v888_v8 }
 0x1a5   : > { %v891_v53 = vmul.f32 %v1179_v63, %v1757_v12  ;;  %921 = vst.msk [vmem:[%s1801_s9 + $0xe8] sm:$0xff] %vm230_vm1, %v889_v18 }
 0x1a6   : > { %922 = vst.msk [vmem:[%s1801_s9 + $0xf0] sm:$0xff] %vm230_vm1, %v890_v38 }
 0x1a7   : > { %923 = vst.msk [vmem:[%s1801_s9 + $0xf8] sm:$0xff] %vm230_vm1, %v891_v53 }
 0x1a8 PF: > { %s14_s15 = sadd.s32 1, %s1186_s15  }
 0x1a9   : > { %p11_p4 = scmp.ge.s32.totalorder %s14_s15, 4  }
 0x1ab   :  { %13 = sbr.rel (!%p11_p4) target bundleno = 1 (0x1), region = 66 }

// kernel: _lambda_.21
= control target key start
LH: loop header
LB: loop body
LE: loop exit
PB: predicated region body
PF: predicated region fallthrough
CT: control target
= control target key end

     0   :  { %vm282_vm0 = vcmask 1042432   ;;  %vm89_vm1 = vcmask 220160   ;;  %vm993_vm2 = vmmov 1   ;;  %vm671_vm4 = vcmask 261120   ;;  %s1607_s1 = inlined_call_operand.vmem [shape: f32[27,32], index: 1, kind: input, shape index: {}]   ;;  %s1608_s0 = inlined_call_operand.vmem [shape: f32[512,27], index: 0, kind: input, shape index: {}]   ;;  %s1609_s2 = inlined_call_operand.vmem [shape: f32[1,32], index: 2, kind: input, shape index: {}]   ;;  %s1610_s3 = inlined_call_operand.vmem [shape: f32[512,32], index: 3, kind: output, shape index: {}]  }
   0x1   :  { %v78_v0 = vld [vmem:[%s1607_s1] sm:$0xff]  ;;  %v79_v1 = vld [vmem:[%s1607_s1 + $0x8] sm:$0xff]  ;;  %v80_v2 = vld [vmem:[%s1607_s1 + $0x10] sm:$0xff] }
   0x2   :  { %v978_v3 = vpack.c.bf16 %v79_v1, %v78_v0  ;;  %v81_v4 = vld [vmem:[%s1607_s1 + $0x18] sm:$0x7]  ;;  %v14_v5 = vld [vmem:[%s1608_s0] sm:$0xff]  ;;  %vm983_vm3 = vmpackc.low %vm282_vm0, %vm993_vm2 }
   0x3   :  { %v982_v6 = vpack.c.bf16 %v81_v4, %v80_v2  ;;  %882 = vmatprep.mubr.msk.f32.mxu0 %vm89_vm1, %v14_v5  ;;  %v46_v7 = vld [vmem:[%s1608_s0 + $0x100] sm:$0xff]  ;;  %v15_v8 = vld [vmem:[%s1608_s0 + $0x8] sm:$0xff]  ;;  %v16_v10 = vld [vmem:[%s1608_s0 + $0x10] sm:$0xff] }
   0x4   :  { %979 = vmatprep.subr.bf16.mxu0 %v978_v3  ;;  %988 = vmatprep.subr.bf16.mxu1 %v978_v3  ;;  %v47_v9 = vld [vmem:[%s1608_s0 + $0x108] sm:$0xff]  ;;  %v48_v11 = vld [vmem:[%s1608_s0 + $0x110] sm:$0xff]  ;;  %v17_v12 = vld [vmem:[%s1608_s0 + $0x18] sm:$0xff] }
   0x5   :  { %981 = vmatpush3.bf16.msra.mxu0 %v978_v3  ;;  %990 = vmatpush3.bf16.msra.mxu1 %v978_v3  ;;  %v49_v13 = vld [vmem:[%s1608_s0 + $0x118] sm:$0xff]  ;;  %v18_v14 = vld [vmem:[%s1608_s0 + $0x20] sm:$0xff]  ;;  %v19_v16 = vld [vmem:[%s1608_s0 + $0x28] sm:$0xff] }
   0x6   :  { %984 = vmatprep.subr.msk.bf16.mxu0 %vm983_vm3, %v982_v6  ;;  %989 = vmatprep.subr.msk.bf16.mxu1 %vm983_vm3, %v982_v6  ;;  %v50_v15 = vld [vmem:[%s1608_s0 + $0x120] sm:$0xff]  ;;  %v51_v17 = vld [vmem:[%s1608_s0 + $0x128] sm:$0xff]  ;;  %v20_v18 = vld [vmem:[%s1608_s0 + $0x30] sm:$0xff] }
   0x7   :  { %930 = vmatprep.mubr.msk.f32.mxu1 %vm89_vm1, %v46_v7  ;;  %v52_v19 = vld [vmem:[%s1608_s0 + $0x130] sm:$0xff]  ;;  %v21_v20 = vld [vmem:[%s1608_s0 + $0x38] sm:$0xff]  ;;  %v22_v22 = vld [vmem:[%s1608_s0 + $0x40] sm:$0xff] }
   0x8   :  { %v53_v21 = vld [vmem:[%s1608_s0 + $0x138] sm:$0xff]  ;;  %v54_v23 = vld [vmem:[%s1608_s0 + $0x140] sm:$0xff]  ;;  %v23_v24 = vld [vmem:[%s1608_s0 + $0x48] sm:$0xff] }
   0x9   :  { %987 = vmatpush3.bf16.msk.msra.mxu0 %vm983_vm3, %v982_v6  ;;  %991 = vmatpush3.bf16.msk.msra.mxu1 %vm983_vm3, %v982_v6  ;;  %v55_v25 = vld [vmem:[%s1608_s0 + $0x148] sm:$0xff]  ;;  %v24_v26 = vld [vmem:[%s1608_s0 + $0x50] sm:$0xff]  ;;  %v25_v28 = vld [vmem:[%s1608_s0 + $0x58] sm:$0xff] }
   0xa   :  { %v56_v27 = vld [vmem:[%s1608_s0 + $0x150] sm:$0xff]  ;;  %v57_v29 = vld [vmem:[%s1608_s0 + $0x158] sm:$0xff]  ;;  %v26_v30 = vld [vmem:[%s1608_s0 + $0x60] sm:$0xff] }
   0xb   :  { %v58_v31 = vld [vmem:[%s1608_s0 + $0x160] sm:$0xff]  ;;  %v27_v32 = vld [vmem:[%s1608_s0 + $0x68] sm:$0xff]  ;;  %v28_v34 = vld [vmem:[%s1608_s0 + $0x70] sm:$0xff] }
   0xc   :  { %883 = vmatmul.mubr.msk.f32.vlgmr.msra.gmra.mrb[0].mxu0 %vm89_vm1, %v15_v8  ;;  %931 = vmatmul.mubr.msk.f32.vlgmr.msra.gmra.mrb[0].mxu1 %vm89_vm1, %v47_v9  ;;  %v59_v33 = vld [vmem:[%s1608_s0 + $0x168] sm:$0xff]  ;;  %v60_v35 = vld [vmem:[%s1608_s0 + $0x170] sm:$0xff]  ;;  %v29_v36 = vld [vmem:[%s1608_s0 + $0x78] sm:$0xff] }
   0xd   :  { %885 = vmatprep.mubr.msk.f32.mxu0 %vm89_vm1, %v16_v10  ;;  %933 = vmatprep.mubr.msk.f32.mxu1 %vm89_vm1, %v48_v11  ;;  %v61_v37 = vld [vmem:[%s1608_s0 + $0x178] sm:$0xff]  ;;  %v30_v38 = vld [vmem:[%s1608_s0 + $0x80] sm:$0xff]  ;;  %v31_v40 = vld [vmem:[%s1608_s0 + $0x88] sm:$0xff] }
   0xe   :  { %v62_v39 = vld [vmem:[%s1608_s0 + $0x180] sm:$0xff]  ;;  %v63_v41 = vld [vmem:[%s1608_s0 + $0x188] sm:$0xff]  ;;  %v32_v42 = vld [vmem:[%s1608_s0 + $0x90] sm:$0xff] }
   0xf   :  { %v64_v43 = vld [vmem:[%s1608_s0 + $0x190] sm:$0xff]  ;;  %v33_v44 = vld [vmem:[%s1608_s0 + $0x98] sm:$0xff]  ;;  %v34_v46 = vld [vmem:[%s1608_s0 + $0xa0] sm:$0xff] }
  0x10   :  { %886 = vmatmul.mubr.msk.f32.gmra.mrb[2].mxu0 %vm89_vm1, %v17_v12  ;;  %934 = vmatmul.mubr.msk.f32.gmra.mrb[2].mxu1 %vm89_vm1, %v49_v13  ;;  %v65_v45 = vld [vmem:[%s1608_s0 + $0x198] sm:$0xff]  ;;  %v66_v47 = vld [vmem:[%s1608_s0 + $0x1a0] sm:$0xff]  ;;  %v35_v48 = vld [vmem:[%s1608_s0 + $0xa8] sm:$0xff] }
  0x11   :  { %888 = vmatprep.mubr.msk.f32.mxu0 %vm89_vm1, %v18_v14  ;;  %936 = vmatprep.mubr.msk.f32.mxu1 %vm89_vm1, %v50_v15  ;;  %v67_v49 = vld [vmem:[%s1608_s0 + $0x1a8] sm:$0xff]  ;;  %v36_v50 = vld [vmem:[%s1608_s0 + $0xb0] sm:$0xff]  ;;  %v37_v52 = vld [vmem:[%s1608_s0 + $0xb8] sm:$0xff] }
  0x12   :  { %v68_v51 = vld [vmem:[%s1608_s0 + $0x1b0] sm:$0xff]  ;;  %v69_v53 = vld [vmem:[%s1608_s0 + $0x1b8] sm:$0xff]  ;;  %v38_v54 = vld [vmem:[%s1608_s0 + $0xc0] sm:$0xff] }
  0x13   :  { %v70_v55 = vld [vmem:[%s1608_s0 + $0x1c0] sm:$0xff]  ;;  %v39_v56 = vld [vmem:[%s1608_s0 + $0xc8] sm:$0xff]  ;;  %v40_v58 = vld [vmem:[%s1608_s0 + $0xd0] sm:$0xff] }
  0x14   :  { %889 = vmatmul.mubr.msk.f32.gmra.mrb[4].mxu0 %vm89_vm1, %v19_v16  ;;  %937 = vmatmul.mubr.msk.f32.gmra.mrb[4].mxu1 %vm89_vm1, %v51_v17  ;;  %v71_v57 = vld [vmem:[%s1608_s0 + $0x1c8] sm:$0xff]  ;;  %v72_v59 = vld [vmem:[%s1608_s0 + $0x1d0] sm:$0xff]  ;;  %v41_v60 = vld [vmem:[%s1608_s0 + $0xd8] sm:$0xff] }
  0x15   :  { %891 = vmatprep.mubr.msk.f32.mxu0 %vm89_vm1, %v20_v18  ;;  %939 = vmatprep.mubr.msk.f32.mxu1 %vm89_vm1, %v52_v19  ;;  %v73_v61 = vld [vmem:[%s1608_s0 + $0x1d8] sm:$0xff]  ;;  %v42_v62 = vld [vmem:[%s1608_s0 + $0xe0] sm:$0xff]  ;;  %v43_v0 = vld [vmem:[%s1608_s0 + $0xe8] sm:$0xff] }
  0x16   :  { %v74_v63 = vld [vmem:[%s1608_s0 + $0x1e0] sm:$0xff]  ;;  %v75_v1 = vld [vmem:[%s1608_s0 + $0x1e8] sm:$0xff]  ;;  %v44_v2 = vld [vmem:[%s1608_s0 + $0xf0] sm:$0xff] }
  0x17   :  { %v76_v3 = vld [vmem:[%s1608_s0 + $0x1f0] sm:$0xff]  ;;  %v45_v4 = vld [vmem:[%s1608_s0 + $0xf8] sm:$0xff]  ;;  %v1285_v6 = vld [vmem:[%s1609_s2] ss:$0 sm:$0xff] }
  0x18   :  { %892 = vmatmul.mubr.msk.f32.gmra.mrb[6].mxu0 %vm89_vm1, %v21_v20  ;;  %940 = vmatmul.mubr.msk.f32.gmra.mrb[6].mxu1 %vm89_vm1, %v53_v21  ;;  %v77_v5 = vld [vmem:[%s1608_s0 + $0x1f8] sm:$0xff] }
  0x19   :  { %894 = vmatprep.mubr.msk.f32.mxu0 %vm89_vm1, %v22_v22  ;;  %942 = vmatprep.mubr.msk.f32.mxu1 %vm89_vm1, %v54_v23 }
  0x1c   :  { %895 = vmatmul.mubr.msk.f32.gmra.mrb[8].mxu0 %vm89_vm1, %v23_v24  ;;  %943 = vmatmul.mubr.msk.f32.gmra.mrb[8].mxu1 %vm89_vm1, %v55_v25 }
  0x1d   :  { %897 = vmatprep.mubr.msk.f32.mxu0 %vm89_vm1, %v24_v26  ;;  %945 = vmatprep.mubr.msk.f32.mxu1 %vm89_vm1, %v56_v27 }
  0x20   :  { %898 = vmatmul.mubr.msk.f32.gmra.mrb[10].mxu0 %vm89_vm1, %v25_v28  ;;  %946 = vmatmul.mubr.msk.f32.gmra.mrb[10].mxu1 %vm89_vm1, %v57_v29 }
  0x21   :  { %900 = vmatprep.mubr.msk.f32.mxu0 %vm89_vm1, %v26_v30  ;;  %948 = vmatprep.mubr.msk.f32.mxu1 %vm89_vm1, %v58_v31 }
  0x24   :  { %901 = vmatmul.mubr.msk.f32.gmra.mrb[12].mxu0 %vm89_vm1, %v27_v32  ;;  %949 = vmatmul.mubr.msk.f32.gmra.mrb[12].mxu1 %vm89_vm1, %v59_v33 }
  0x25   :  { %903 = vmatprep.mubr.msk.f32.mxu0 %vm89_vm1, %v28_v34  ;;  %951 = vmatprep.mubr.msk.f32.mxu1 %vm89_vm1, %v60_v35 }
  0x28   :  { %904 = vmatmul.mubr.msk.f32.gmra.mrb[14].mxu0 %vm89_vm1, %v29_v36  ;;  %952 = vmatmul.mubr.msk.f32.gmra.mrb[14].mxu1 %vm89_vm1, %v61_v37 }
  0x29   :  { %906 = vmatprep.mubr.msk.f32.mxu0 %vm89_vm1, %v30_v38  ;;  %954 = vmatprep.mubr.msk.f32.mxu1 %vm89_vm1, %v62_v39 }
  0x2c   :  { %907 = vmatmul.mubr.msk.f32.gmra.mrb[16].mxu0 %vm89_vm1, %v31_v40  ;;  %955 = vmatmul.mubr.msk.f32.gmra.mrb[16].mxu1 %vm89_vm1, %v63_v41 }
  0x2d   :  { %909 = vmatprep.mubr.msk.f32.mxu0 %vm89_vm1, %v32_v42  ;;  %957 = vmatprep.mubr.msk.f32.mxu1 %vm89_vm1, %v64_v43 }
  0x30   :  { %910 = vmatmul.mubr.msk.f32.gmra.mrb[18].mxu0 %vm89_vm1, %v33_v44  ;;  %958 = vmatmul.mubr.msk.f32.gmra.mrb[18].mxu1 %vm89_vm1, %v65_v45 }
  0x31   :  { %912 = vmatprep.mubr.msk.f32.mxu0 %vm89_vm1, %v34_v46  ;;  %960 = vmatprep.mubr.msk.f32.mxu1 %vm89_vm1, %v66_v47 }
  0x34   :  { %913 = vmatmul.mubr.msk.f32.gmra.mrb[20].mxu0 %vm89_vm1, %v35_v48  ;;  %961 = vmatmul.mubr.msk.f32.gmra.mrb[20].mxu1 %vm89_vm1, %v67_v49 }
  0x35   :  { %915 = vmatprep.mubr.msk.f32.mxu0 %vm89_vm1, %v36_v50  ;;  %963 = vmatprep.mubr.msk.f32.mxu1 %vm89_vm1, %v68_v51 }
  0x38   :  { %916 = vmatmul.mubr.msk.f32.gmra.mrb[22].mxu0 %vm89_vm1, %v37_v52  ;;  %964 = vmatmul.mubr.msk.f32.gmra.mrb[22].mxu1 %vm89_vm1, %v69_v53 }
  0x39   :  { %918 = vmatprep.mubr.msk.f32.mxu0 %vm89_vm1, %v38_v54  ;;  %966 = vmatprep.mubr.msk.f32.mxu1 %vm89_vm1, %v70_v55 }
  0x3c   :  { %919 = vmatmul.mubr.msk.f32.gmra.mrb[24].mxu0 %vm89_vm1, %v39_v56  ;;  %967 = vmatmul.mubr.msk.f32.gmra.mrb[24].mxu1 %vm89_vm1, %v71_v57 }
  0x3d   :  { %921 = vmatprep.mubr.msk.f32.mxu0 %vm89_vm1, %v40_v58  ;;  %969 = vmatprep.mubr.msk.f32.mxu1 %vm89_vm1, %v72_v59 }
  0x40   :  { %922 = vmatmul.mubr.msk.f32.gmra.mrb[26].mxu0 %vm89_vm1, %v41_v60  ;;  %970 = vmatmul.mubr.msk.f32.gmra.mrb[26].mxu1 %vm89_vm1, %v73_v61 }
  0x41   :  { %924 = vmatprep.mubr.msk.f32.mxu0 %vm89_vm1, %v42_v62  ;;  %972 = vmatprep.mubr.msk.f32.mxu1 %vm89_vm1, %v74_v63 }
  0x44   :  { %925 = vmatmul.mubr.msk.f32.gmra.mrb[28].mxu0 %vm89_vm1, %v43_v0  ;;  %973 = vmatmul.mubr.msk.f32.gmra.mrb[28].mxu1 %vm89_vm1, %v75_v1 }
  0x45   :  { %927 = vmatprep.mubr.msk.f32.mxu0 %vm89_vm1, %v44_v2  ;;  %975 = vmatprep.mubr.msk.f32.mxu1 %vm89_vm1, %v76_v3 }
  0x48   :  { %928 = vmatmul.mubr.msk.f32.gmra.mrb[30].mxu0 %vm89_vm1, %v45_v4  ;;  %976 = vmatmul.mubr.msk.f32.gmra.mrb[30].mxu1 %vm89_vm1, %v77_v5 }
  0xdf   :  { %v884_v7 = vpop.f32.mrb[0].mxu0  ;;  %v932_v8 = vpop.f32.mrb[0].mxu1 }
  0xe0   :  { %v358_v9 = vadd.f32 %v884_v7, %v1285_v6  ;;  %v518_v10 = vadd.f32 %v932_v8, %v1285_v6  ;;  %v352_v11 = vpop.f32.mrb[1].mxu0  ;;  %v512_v12 = vpop.f32.mrb[1].mxu1 }
  0xe1   :  { %v353_v13 = vadd.f32 %v1285_v6, %v352_v11  ;;  %v513_v14 = vadd.f32 %v1285_v6, %v512_v12 }
  0xe2   :  { %673 = vst.msk [vmem:[%s1610_s3 + $0x8] sm:$0xff] %vm671_vm4, %v358_v9  ;;  %705 = vst.msk [vmem:[%s1610_s3 + $0x108] sm:$0xff] %vm671_vm4, %v518_v10 }
  0xe3   :  { %672 = vst.msk [vmem:[%s1610_s3] sm:$0xff] %vm671_vm4, %v353_v13  ;;  %704 = vst.msk [vmem:[%s1610_s3 + $0x100] sm:$0xff] %vm671_vm4, %v513_v14  ;;  %v887_v15 = vpop.f32.mrb[2].mxu0  ;;  %v935_v16 = vpop.f32.mrb[2].mxu1 }
  0xe4   :  { %v368_v17 = vadd.f32 %v887_v15, %v1285_v6  ;;  %v528_v18 = vadd.f32 %v935_v16, %v1285_v6  ;;  %v362_v19 = vpop.f32.mrb[3].mxu0  ;;  %v522_v20 = vpop.f32.mrb[3].mxu1 }
  0xe5   :  { %v363_v21 = vadd.f32 %v1285_v6, %v362_v19  ;;  %v523_v22 = vadd.f32 %v1285_v6, %v522_v20 }
  0xe6   :  { %675 = vst.msk [vmem:[%s1610_s3 + $0x18] sm:$0xff] %vm671_vm4, %v368_v17  ;;  %707 = vst.msk [vmem:[%s1610_s3 + $0x118] sm:$0xff] %vm671_vm4, %v528_v18 }
  0xe7   :  { %674 = vst.msk [vmem:[%s1610_s3 + $0x10] sm:$0xff] %vm671_vm4, %v363_v21  ;;  %706 = vst.msk [vmem:[%s1610_s3 + $0x110] sm:$0xff] %vm671_vm4, %v523_v22  ;;  %v890_v23 = vpop.f32.mrb[4].mxu0  ;;  %v938_v24 = vpop.f32.mrb[4].mxu1 }
  0xe8   :  { %v378_v25 = vadd.f32 %v890_v23, %v1285_v6  ;;  %v538_v26 = vadd.f32 %v938_v24, %v1285_v6  ;;  %v372_v27 = vpop.f32.mrb[5].mxu0  ;;  %v532_v28 = vpop.f32.mrb[5].mxu1 }
  0xe9   :  { %v373_v29 = vadd.f32 %v1285_v6, %v372_v27  ;;  %v533_v30 = vadd.f32 %v1285_v6, %v532_v28 }
  0xea   :  { %677 = vst.msk [vmem:[%s1610_s3 + $0x28] sm:$0xff] %vm671_vm4, %v378_v25  ;;  %709 = vst.msk [vmem:[%s1610_s3 + $0x128] sm:$0xff] %vm671_vm4, %v538_v26 }
  0xeb   :  { %676 = vst.msk [vmem:[%s1610_s3 + $0x20] sm:$0xff] %vm671_vm4, %v373_v29  ;;  %708 = vst.msk [vmem:[%s1610_s3 + $0x120] sm:$0xff] %vm671_vm4, %v533_v30  ;;  %v893_v31 = vpop.f32.mrb[6].mxu0  ;;  %v941_v32 = vpop.f32.mrb[6].mxu1 }
  0xec   :  { %v388_v33 = vadd.f32 %v893_v31, %v1285_v6  ;;  %v548_v34 = vadd.f32 %v941_v32, %v1285_v6  ;;  %v382_v35 = vpop.f32.mrb[7].mxu0  ;;  %v542_v36 = vpop.f32.mrb[7].mxu1 }
  0xed   :  { %v383_v37 = vadd.f32 %v1285_v6, %v382_v35  ;;  %v543_v38 = vadd.f32 %v1285_v6, %v542_v36 }
  0xee   :  { %679 = vst.msk [vmem:[%s1610_s3 + $0x38] sm:$0xff] %vm671_vm4, %v388_v33  ;;  %711 = vst.msk [vmem:[%s1610_s3 + $0x138] sm:$0xff] %vm671_vm4, %v548_v34 }
  0xef   :  { %678 = vst.msk [vmem:[%s1610_s3 + $0x30] sm:$0xff] %vm671_vm4, %v383_v37  ;;  %710 = vst.msk [vmem:[%s1610_s3 + $0x130] sm:$0xff] %vm671_vm4, %v543_v38  ;;  %v896_v39 = vpop.f32.mrb[8].mxu0  ;;  %v944_v40 = vpop.f32.mrb[8].mxu1 }
  0xf0   :  { %v398_v41 = vadd.f32 %v896_v39, %v1285_v6  ;;  %v558_v42 = vadd.f32 %v944_v40, %v1285_v6  ;;  %v392_v43 = vpop.f32.mrb[9].mxu0  ;;  %v552_v44 = vpop.f32.mrb[9].mxu1 }
  0xf1   :  { %v393_v45 = vadd.f32 %v1285_v6, %v392_v43  ;;  %v553_v46 = vadd.f32 %v1285_v6, %v552_v44 }
  0xf2   :  { %681 = vst.msk [vmem:[%s1610_s3 + $0x48] sm:$0xff] %vm671_vm4, %v398_v41  ;;  %713 = vst.msk [vmem:[%s1610_s3 + $0x148] sm:$0xff] %vm671_vm4, %v558_v42 }
  0xf3   :  { %680 = vst.msk [vmem:[%s1610_s3 + $0x40] sm:$0xff] %vm671_vm4, %v393_v45  ;;  %712 = vst.msk [vmem:[%s1610_s3 + $0x140] sm:$0xff] %vm671_vm4, %v553_v46  ;;  %v899_v47 = vpop.f32.mrb[10].mxu0  ;;  %v947_v48 = vpop.f32.mrb[10].mxu1 }
  0xf4   :  { %v408_v49 = vadd.f32 %v899_v47, %v1285_v6  ;;  %v568_v50 = vadd.f32 %v947_v48, %v1285_v6  ;;  %v402_v51 = vpop.f32.mrb[11].mxu0  ;;  %v562_v52 = vpop.f32.mrb[11].mxu1 }
  0xf5   :  { %v403_v53 = vadd.f32 %v1285_v6, %v402_v51  ;;  %v563_v54 = vadd.f32 %v1285_v6, %v562_v52 }
  0xf6   :  { %683 = vst.msk [vmem:[%s1610_s3 + $0x58] sm:$0xff] %vm671_vm4, %v408_v49  ;;  %715 = vst.msk [vmem:[%s1610_s3 + $0x158] sm:$0xff] %vm671_vm4, %v568_v50 }
  0xf7   :  { %682 = vst.msk [vmem:[%s1610_s3 + $0x50] sm:$0xff] %vm671_vm4, %v403_v53  ;;  %714 = vst.msk [vmem:[%s1610_s3 + $0x150] sm:$0xff] %vm671_vm4, %v563_v54  ;;  %v902_v55 = vpop.f32.mrb[12].mxu0  ;;  %v950_v56 = vpop.f32.mrb[12].mxu1 }
  0xf8   :  { %v418_v57 = vadd.f32 %v902_v55, %v1285_v6  ;;  %v578_v58 = vadd.f32 %v950_v56, %v1285_v6  ;;  %v412_v59 = vpop.f32.mrb[13].mxu0  ;;  %v572_v60 = vpop.f32.mrb[13].mxu1 }
  0xf9   :  { %v413_v61 = vadd.f32 %v1285_v6, %v412_v59  ;;  %v573_v62 = vadd.f32 %v1285_v6, %v572_v60 }
  0xfa   :  { %685 = vst.msk [vmem:[%s1610_s3 + $0x68] sm:$0xff] %vm671_vm4, %v418_v57  ;;  %717 = vst.msk [vmem:[%s1610_s3 + $0x168] sm:$0xff] %vm671_vm4, %v578_v58 }
  0xfb   :  { %684 = vst.msk [vmem:[%s1610_s3 + $0x60] sm:$0xff] %vm671_vm4, %v413_v61  ;;  %716 = vst.msk [vmem:[%s1610_s3 + $0x160] sm:$0xff] %vm671_vm4, %v573_v62  ;;  %v905_v63 = vpop.f32.mrb[14].mxu0  ;;  %v953_v0 = vpop.f32.mrb[14].mxu1 }
  0xfc   :  { %v428_v1 = vadd.f32 %v905_v63, %v1285_v6  ;;  %v588_v2 = vadd.f32 %v953_v0, %v1285_v6  ;;  %v422_v3 = vpop.f32.mrb[15].mxu0  ;;  %v582_v4 = vpop.f32.mrb[15].mxu1 }
  0xfd   :  { %v423_v5 = vadd.f32 %v1285_v6, %v422_v3  ;;  %v583_v7 = vadd.f32 %v1285_v6, %v582_v4 }
  0xfe   :  { %687 = vst.msk [vmem:[%s1610_s3 + $0x78] sm:$0xff] %vm671_vm4, %v428_v1  ;;  %719 = vst.msk [vmem:[%s1610_s3 + $0x178] sm:$0xff] %vm671_vm4, %v588_v2 }
  0xff   :  { %686 = vst.msk [vmem:[%s1610_s3 + $0x70] sm:$0xff] %vm671_vm4, %v423_v5  ;;  %718 = vst.msk [vmem:[%s1610_s3 + $0x170] sm:$0xff] %vm671_vm4, %v583_v7  ;;  %v908_v8 = vpop.f32.mrb[16].mxu0  ;;  %v956_v9 = vpop.f32.mrb[16].mxu1 }
 0x100   :  { %v438_v10 = vadd.f32 %v908_v8, %v1285_v6  ;;  %v598_v11 = vadd.f32 %v956_v9, %v1285_v6  ;;  %v432_v12 = vpop.f32.mrb[17].mxu0  ;;  %v592_v13 = vpop.f32.mrb[17].mxu1 }
 0x101   :  { %v433_v14 = vadd.f32 %v1285_v6, %v432_v12  ;;  %v593_v15 = vadd.f32 %v1285_v6, %v592_v13 }
 0x102   :  { %689 = vst.msk [vmem:[%s1610_s3 + $0x88] sm:$0xff] %vm671_vm4, %v438_v10  ;;  %721 = vst.msk [vmem:[%s1610_s3 + $0x188] sm:$0xff] %vm671_vm4, %v598_v11 }
 0x103   :  { %688 = vst.msk [vmem:[%s1610_s3 + $0x80] sm:$0xff] %vm671_vm4, %v433_v14  ;;  %720 = vst.msk [vmem:[%s1610_s3 + $0x180] sm:$0xff] %vm671_vm4, %v593_v15  ;;  %v911_v16 = vpop.f32.mrb[18].mxu0  ;;  %v959_v17 = vpop.f32.mrb[18].mxu1 }
 0x104   :  { %v448_v18 = vadd.f32 %v911_v16, %v1285_v6  ;;  %v608_v19 = vadd.f32 %v959_v17, %v1285_v6  ;;  %v442_v20 = vpop.f32.mrb[19].mxu0  ;;  %v602_v21 = vpop.f32.mrb[19].mxu1 }
 0x105   :  { %v443_v22 = vadd.f32 %v1285_v6, %v442_v20  ;;  %v603_v23 = vadd.f32 %v1285_v6, %v602_v21 }
 0x106   :  { %691 = vst.msk [vmem:[%s1610_s3 + $0x98] sm:$0xff] %vm671_vm4, %v448_v18  ;;  %723 = vst.msk [vmem:[%s1610_s3 + $0x198] sm:$0xff] %vm671_vm4, %v608_v19 }
 0x107   :  { %690 = vst.msk [vmem:[%s1610_s3 + $0x90] sm:$0xff] %vm671_vm4, %v443_v22  ;;  %722 = vst.msk [vmem:[%s1610_s3 + $0x190] sm:$0xff] %vm671_vm4, %v603_v23  ;;  %v914_v24 = vpop.f32.mrb[20].mxu0  ;;  %v962_v25 = vpop.f32.mrb[20].mxu1 }
 0x108   :  { %v458_v26 = vadd.f32 %v914_v24, %v1285_v6  ;;  %v618_v27 = vadd.f32 %v962_v25, %v1285_v6  ;;  %v452_v28 = vpop.f32.mrb[21].mxu0  ;;  %v612_v29 = vpop.f32.mrb[21].mxu1 }
 0x109   :  { %v453_v30 = vadd.f32 %v1285_v6, %v452_v28  ;;  %v613_v31 = vadd.f32 %v1285_v6, %v612_v29 }
 0x10a   :  { %693 = vst.msk [vmem:[%s1610_s3 + $0xa8] sm:$0xff] %vm671_vm4, %v458_v26  ;;  %725 = vst.msk [vmem:[%s1610_s3 + $0x1a8] sm:$0xff] %vm671_vm4, %v618_v27 }
 0x10b   :  { %692 = vst.msk [vmem:[%s1610_s3 + $0xa0] sm:$0xff] %vm671_vm4, %v453_v30  ;;  %724 = vst.msk [vmem:[%s1610_s3 + $0x1a0] sm:$0xff] %vm671_vm4, %v613_v31  ;;  %v917_v32 = vpop.f32.mrb[22].mxu0  ;;  %v965_v33 = vpop.f32.mrb[22].mxu1 }
 0x10c   :  { %v468_v34 = vadd.f32 %v917_v32, %v1285_v6  ;;  %v628_v35 = vadd.f32 %v965_v33, %v1285_v6  ;;  %v462_v36 = vpop.f32.mrb[23].mxu0  ;;  %v622_v37 = vpop.f32.mrb[23].mxu1 }
 0x10d   :  { %v463_v38 = vadd.f32 %v1285_v6, %v462_v36  ;;  %v623_v39 = vadd.f32 %v1285_v6, %v622_v37 }
 0x10e   :  { %695 = vst.msk [vmem:[%s1610_s3 + $0xb8] sm:$0xff] %vm671_vm4, %v468_v34  ;;  %727 = vst.msk [vmem:[%s1610_s3 + $0x1b8] sm:$0xff] %vm671_vm4, %v628_v35 }
 0x10f   :  { %694 = vst.msk [vmem:[%s1610_s3 + $0xb0] sm:$0xff] %vm671_vm4, %v463_v38  ;;  %726 = vst.msk [vmem:[%s1610_s3 + $0x1b0] sm:$0xff] %vm671_vm4, %v623_v39  ;;  %v920_v40 = vpop.f32.mrb[24].mxu0  ;;  %v968_v41 = vpop.f32.mrb[24].mxu1 }
 0x110   :  { %v478_v42 = vadd.f32 %v920_v40, %v1285_v6  ;;  %v638_v43 = vadd.f32 %v968_v41, %v1285_v6  ;;  %v472_v44 = vpop.f32.mrb[25].mxu0  ;;  %v632_v45 = vpop.f32.mrb[25].mxu1 }
 0x111   :  { %v473_v46 = vadd.f32 %v1285_v6, %v472_v44  ;;  %v633_v47 = vadd.f32 %v1285_v6, %v632_v45 }
 0x112   :  { %697 = vst.msk [vmem:[%s1610_s3 + $0xc8] sm:$0xff] %vm671_vm4, %v478_v42  ;;  %729 = vst.msk [vmem:[%s1610_s3 + $0x1c8] sm:$0xff] %vm671_vm4, %v638_v43 }
 0x113   :  { %696 = vst.msk [vmem:[%s1610_s3 + $0xc0] sm:$0xff] %vm671_vm4, %v473_v46  ;;  %728 = vst.msk [vmem:[%s1610_s3 + $0x1c0] sm:$0xff] %vm671_vm4, %v633_v47  ;;  %v923_v48 = vpop.f32.mrb[26].mxu0  ;;  %v971_v49 = vpop.f32.mrb[26].mxu1 }
 0x114   :  { %v488_v50 = vadd.f32 %v923_v48, %v1285_v6  ;;  %v648_v51 = vadd.f32 %v971_v49, %v1285_v6  ;;  %v482_v52 = vpop.f32.mrb[27].mxu0  ;;  %v642_v53 = vpop.f32.mrb[27].mxu1 }
 0x115   :  { %v483_v54 = vadd.f32 %v1285_v6, %v482_v52  ;;  %v643_v55 = vadd.f32 %v1285_v6, %v642_v53 }
 0x116   :  { %699 = vst.msk [vmem:[%s1610_s3 + $0xd8] sm:$0xff] %vm671_vm4, %v488_v50  ;;  %731 = vst.msk [vmem:[%s1610_s3 + $0x1d8] sm:$0xff] %vm671_vm4, %v648_v51 }
 0x117   :  { %698 = vst.msk [vmem:[%s1610_s3 + $0xd0] sm:$0xff] %vm671_vm4, %v483_v54  ;;  %730 = vst.msk [vmem:[%s1610_s3 + $0x1d0] sm:$0xff] %vm671_vm4, %v643_v55  ;;  %v926_v56 = vpop.f32.mrb[28].mxu0  ;;  %v974_v57 = vpop.f32.mrb[28].mxu1 }
 0x118   :  { %v498_v58 = vadd.f32 %v926_v56, %v1285_v6  ;;  %v658_v59 = vadd.f32 %v974_v57, %v1285_v6  ;;  %v492_v60 = vpop.f32.mrb[29].mxu0  ;;  %v652_v61 = vpop.f32.mrb[29].mxu1 }
 0x119   :  { %v493_v62 = vadd.f32 %v1285_v6, %v492_v60  ;;  %v653_v63 = vadd.f32 %v1285_v6, %v652_v61 }
 0x11a   :  { %701 = vst.msk [vmem:[%s1610_s3 + $0xe8] sm:$0xff] %vm671_vm4, %v498_v58  ;;  %733 = vst.msk [vmem:[%s1610_s3 + $0x1e8] sm:$0xff] %vm671_vm4, %v658_v59 }
 0x11b   :  { %700 = vst.msk [vmem:[%s1610_s3 + $0xe0] sm:$0xff] %vm671_vm4, %v493_v62  ;;  %732 = vst.msk [vmem:[%s1610_s3 + $0x1e0] sm:$0xff] %vm671_vm4, %v653_v63  ;;  %v929_v0 = vpop.f32.mrb[30].mxu0  ;;  %v977_v1 = vpop.f32.mrb[30].mxu1 }
 0x11c   :  { %v508_v2 = vadd.f32 %v929_v0, %v1285_v6  ;;  %v668_v3 = vadd.f32 %v977_v1, %v1285_v6  ;;  %v502_v4 = vpop.f32.mrb[31].mxu0  ;;  %v662_v5 = vpop.f32.mrb[31].mxu1 }
 0x11d   :  { %v503_v7 = vadd.f32 %v1285_v6, %v502_v4  ;;  %v663_v8 = vadd.f32 %v1285_v6, %v662_v5 }
 0x11e   :  { %703 = vst.msk [vmem:[%s1610_s3 + $0xf8] sm:$0xff] %vm671_vm4, %v508_v2  ;;  %735 = vst.msk [vmem:[%s1610_s3 + $0x1f8] sm:$0xff] %vm671_vm4, %v668_v3 }
 0x11f   :  { %702 = vst.msk [vmem:[%s1610_s3 + $0xf0] sm:$0xff] %vm671_vm4, %v503_v7  ;;  %734 = vst.msk [vmem:[%s1610_s3 + $0x1f0] sm:$0xff] %vm671_vm4, %v663_v8 }

// kernel: _lambda_.23
= control target key start
LH: loop header
LB: loop body
LE: loop exit
PB: predicated region body
PF: predicated region fallthrough
CT: control target
= control target key end

     0   :  { %v1606_v0 = vmov 0.0|0.0   ;;  %vm249_vm0 = vcmask 261120   ;;  %s2849_s1 = inlined_call_operand.vmem [shape: f32[288,32], index: 1, kind: input, shape index: {}]   ;;  %s2850_s0 = inlined_call_operand.vmem [shape: f32[512,288], index: 0, kind: input, shape index: {}]   ;;  %s2851_s2 = inlined_call_operand.vmem [shape: f32[1,32], index: 2, kind: input, shape index: {}]   ;;  %s2852_s3 = inlined_call_operand.vmem [shape: f32[512,32], index: 3, kind: output, shape index: {}]  }
   0x1   :  { %1517 = vmatprep.subr.bf16.mxu0 %v1606_v0  ;;  %1573 = vmatprep.subr.bf16.mxu1 %v1606_v0  ;;  %v206_v1 = vld [vmem:[%s2849_s1] sm:$0xff]  ;;  %v207_v2 = vld [vmem:[%s2849_s1 + $0x8] sm:$0xff]  ;;  %v208_v3 = vld [vmem:[%s2849_s1 + $0x10] sm:$0xff] }
   0x2   :  { %v1518_v4 = vpack.c.bf16 %v207_v2, %v206_v1  ;;  %v209_v5 = vld [vmem:[%s2849_s1 + $0x18] sm:$0xff]  ;;  %v210_v7 = vld [vmem:[%s2849_s1 + $0x20] sm:$0xff]  ;;  %v211_v8 = vld [vmem:[%s2849_s1 + $0x28] sm:$0xff] }
   0x3   :  { %v1521_v6 = vpack.c.bf16 %v209_v5, %v208_v3  ;;  %v1524_v9 = vpack.c.bf16 %v211_v8, %v210_v7  ;;  %v212_v10 = vld [vmem:[%s2849_s1 + $0x30] sm:$0xff]  ;;  %v213_v11 = vld [vmem:[%s2849_s1 + $0x38] sm:$0xff]  ;;  %v15_v12 = vld [vmem:[%s2850_s0 + $0x8] sm:$0xff] }
   0x4   :  { %1519 = vmatpush1.bf16.msra.mxu0 %v1518_v4  ;;  %1589 = vmatpush1.bf16.msra.mxu1 %v1518_v4  ;;  %v1527_v13 = vpack.c.bf16 %v213_v11, %v212_v10  ;;  %v159_v14 = vld [vmem:[%s2850_s0 + $0x488] sm:$0xff]  ;;  %v214_v15 = vld [vmem:[%s2849_s1 + $0x40] sm:$0xff]  ;;  %v216_v18 = vld [vmem:[%s2849_s1 + $0x50] sm:$0xff] }
   0x5   :  { %1520 = vmatprep.subr.bf16.mxu0 %v1606_v0  ;;  %1574 = vmatprep.subr.bf16.mxu1 %v1606_v0  ;;  %v215_v16 = vld [vmem:[%s2849_s1 + $0x48] sm:$0xff]  ;;  %v217_v19 = vld [vmem:[%s2849_s1 + $0x58] sm:$0xff]  ;;  %v218_v21 = vld [vmem:[%s2849_s1 + $0x60] sm:$0xff] }
   0x6   :  { %506 = vmatprep.mubr.f32.mxu0 %v15_v12  ;;  %746 = vmatprep.mubr.f32.mxu1 %v159_v14  ;;  %v1530_v17 = vpack.c.bf16 %v215_v16, %v214_v15  ;;  %v1533_v20 = vpack.c.bf16 %v217_v19, %v216_v18  ;;  %v219_v22 = vld [vmem:[%s2849_s1 + $0x68] sm:$0xff]  ;;  %v220_v24 = vld [vmem:[%s2849_s1 + $0x70] sm:$0xff]  ;;  %v221_v25 = vld [vmem:[%s2849_s1 + $0x78] sm:$0xff] }
   0x7   :  { %v1536_v23 = vpack.c.bf16 %v219_v22, %v218_v21  ;;  %v1539_v26 = vpack.c.bf16 %v221_v25, %v220_v24  ;;  %v222_v27 = vld [vmem:[%s2849_s1 + $0x80] sm:$0xff]  ;;  %v223_v28 = vld [vmem:[%s2849_s1 + $0x88] sm:$0xff]  ;;  %v224_v30 = vld [vmem:[%s2849_s1 + $0x90] sm:$0xff] }
   0x8   :  { %1522 = vmatpush1.bf16.msra.mxu0 %v1521_v6  ;;  %1590 = vmatpush1.bf16.msra.mxu1 %v1521_v6  ;;  %v1542_v29 = vpack.c.bf16 %v223_v28, %v222_v27  ;;  %v225_v31 = vld [vmem:[%s2849_s1 + $0x98] sm:$0xff]  ;;  %v226_v33 = vld [vmem:[%s2849_s1 + $0xa0] sm:$0xff]  ;;  %v227_v34 = vld [vmem:[%s2849_s1 + $0xa8] sm:$0xff] }
   0x9   :  { %1523 = vmatprep.subr.bf16.mxu0 %v1606_v0  ;;  %1575 = vmatprep.subr.bf16.mxu1 %v1606_v0  ;;  %v1545_v32 = vpack.c.bf16 %v225_v31, %v224_v30  ;;  %v1548_v35 = vpack.c.bf16 %v227_v34, %v226_v33  ;;  %v228_v36 = vld [vmem:[%s2849_s1 + $0xb0] sm:$0xff]  ;;  %v229_v37 = vld [vmem:[%s2849_s1 + $0xb8] sm:$0xff]  ;;  %v230_v39 = vld [vmem:[%s2849_s1 + $0xc0] sm:$0xff] }
   0xa   :  { %v1551_v38 = vpack.c.bf16 %v229_v37, %v228_v36  ;;  %v231_v40 = vld [vmem:[%s2849_s1 + $0xc8] sm:$0xff]  ;;  %v232_v42 = vld [vmem:[%s2849_s1 + $0xd0] sm:$0xff]  ;;  %v233_v43 = vld [vmem:[%s2849_s1 + $0xd8] sm:$0xff] }
   0xb   :  { %v1554_v41 = vpack.c.bf16 %v231_v40, %v230_v39  ;;  %v1557_v44 = vpack.c.bf16 %v233_v43, %v232_v42  ;;  %v234_v45 = vld [vmem:[%s2849_s1 + $0xe0] sm:$0xff]  ;;  %v235_v46 = vld [vmem:[%s2849_s1 + $0xe8] sm:$0xff]  ;;  %v236_v48 = vld [vmem:[%s2849_s1 + $0xf0] sm:$0xff] }
   0xc   :  { %1525 = vmatpush1.bf16.msra.mxu0 %v1524_v9  ;;  %1591 = vmatpush1.bf16.msra.mxu1 %v1524_v9  ;;  %v1560_v47 = vpack.c.bf16 %v235_v46, %v234_v45  ;;  %v237_v49 = vld [vmem:[%s2849_s1 + $0xf8] sm:$0xff]  ;;  %v238_v50 = vld [vmem:[%s2849_s1 + $0x100] sm:$0xff]  ;;  %v239_v51 = vld [vmem:[%s2849_s1 + $0x108] sm:$0xff] }
   0xd   :  { %1526 = vmatprep.subr.bf16.mxu0 %v1606_v0  ;;  %1576 = vmatprep.subr.bf16.mxu1 %v1606_v0  ;;  %v1563_v52 = vpack.c.bf16 %v237_v49, %v236_v48  ;;  %v1565_v53 = vpack.c.bf16 %v239_v51, %v238_v50  ;;  %v240_v54 = vld [vmem:[%s2849_s1 + $0x110] sm:$0xff]  ;;  %v241_v55 = vld [vmem:[%s2849_s1 + $0x118] sm:$0xff]  ;;  %v14_v56 = vld [vmem:[%s2850_s0] sm:$0xff] }
   0xe   :  { %v158_v57 = vld [vmem:[%s2850_s0 + $0x480] sm:$0xff]  ;;  %v1569_v59 = vpack.c.bf16 %v241_v55, %v240_v54  ;;  %v17_v61 = vld [vmem:[%s2850_s0 + $0x18] sm:$0xff]  ;;  %v20_v1 = vld [vmem:[%s2850_s0 + $0x30] sm:$0xff] }
   0xf   :  { %v18_v58 = vld [vmem:[%s2850_s0 + $0x20] sm:$0xff]  ;;  %v161_v62 = vld [vmem:[%s2850_s0 + $0x498] sm:$0xff]  ;;  %v164_v2 = vld [vmem:[%s2850_s0 + $0x4b0] sm:$0xff] }
  0x10   :  { %1528 = vmatpush1.bf16.msra.mxu0 %v1527_v13  ;;  %1592 = vmatpush1.bf16.msra.mxu1 %v1527_v13  ;;  %v162_v60 = vld [vmem:[%s2850_s0 + $0x4a0] sm:$0xff]  ;;  %v21_v63 = vld [vmem:[%s2850_s0 + $0x38] sm:$0xff]  ;;  %v24_v3 = vld [vmem:[%s2850_s0 + $0x50] sm:$0xff] }
  0x11   :  { %1529 = vmatprep.subr.bf16.mxu0 %v1606_v0  ;;  %1577 = vmatprep.subr.bf16.mxu1 %v1606_v0  ;;  %v168_v4 = vld [vmem:[%s2850_s0 + $0x4d0] sm:$0xff]  ;;  %v23_v5 = vld [vmem:[%s2850_s0 + $0x48] sm:$0xff]  ;;  %v26_v9 = vld [vmem:[%s2850_s0 + $0x60] sm:$0xff] }
  0x12   :  { %v167_v6 = vld [vmem:[%s2850_s0 + $0x4c8] sm:$0xff]  ;;  %v170_v10 = vld [vmem:[%s2850_s0 + $0x4e0] sm:$0xff]  ;;  %v29_v13 = vld [vmem:[%s2850_s0 + $0x78] sm:$0xff] }
  0x13   :  { %v27_v7 = vld [vmem:[%s2850_s0 + $0x68] sm:$0xff]  ;;  %v30_v11 = vld [vmem:[%s2850_s0 + $0x80] sm:$0xff]  ;;  %v173_v14 = vld [vmem:[%s2850_s0 + $0x4f8] sm:$0xff] }
  0x14   :  { %1531 = vmatpush1.bf16.msra.mxu0 %v1530_v17  ;;  %1593 = vmatpush1.bf16.msra.mxu1 %v1530_v17  ;;  %v171_v8 = vld [vmem:[%s2850_s0 + $0x4e8] sm:$0xff]  ;;  %v174_v12 = vld [vmem:[%s2850_s0 + $0x500] sm:$0xff]  ;;  %v33_v15 = vld [vmem:[%s2850_s0 + $0x98] sm:$0xff] }
  0x15   :  { %1532 = vmatprep.subr.bf16.mxu0 %v1606_v0  ;;  %1578 = vmatprep.subr.bf16.mxu1 %v1606_v0  ;;  %v177_v16 = vld [vmem:[%s2850_s0 + $0x518] sm:$0xff]  ;;  %v32_v17 = vld [vmem:[%s2850_s0 + $0x90] sm:$0xff]  ;;  %v35_v21 = vld [vmem:[%s2850_s0 + $0xa8] sm:$0xff] }
  0x16   :  { %v176_v18 = vld [vmem:[%s2850_s0 + $0x510] sm:$0xff]  ;;  %v179_v22 = vld [vmem:[%s2850_s0 + $0x528] sm:$0xff]  ;;  %v38_v25 = vld [vmem:[%s2850_s0 + $0xc0] sm:$0xff] }
  0x17   :  { %v36_v19 = vld [vmem:[%s2850_s0 + $0xb0] sm:$0xff]  ;;  %v183_v24 = vld [vmem:[%s2850_s0 + $0x548] sm:$0xff]  ;;  %v42_v27 = vld [vmem:[%s2850_s0 + $0xe0] sm:$0xff] }
  0x18   :  { %1534 = vmatpush1.bf16.msra.mxu0 %v1533_v20  ;;  %1594 = vmatpush1.bf16.msra.mxu1 %v1533_v20  ;;  %v180_v20 = vld [vmem:[%s2850_s0 + $0x530] sm:$0xff]  ;;  %v186_v28 = vld [vmem:[%s2850_s0 + $0x560] sm:$0xff]  ;;  %v185_v30 = vld [vmem:[%s2850_s0 + $0x558] sm:$0xff] }
  0x19   :  { %1535 = vmatprep.subr.bf16.mxu0 %v1606_v0  ;;  %1579 = vmatprep.subr.bf16.mxu1 %v1606_v0  ;;  %v45_v31 = vld [vmem:[%s2850_s0 + $0xf8] sm:$0xff]  ;;  %v44_v33 = vld [vmem:[%s2850_s0 + $0xf0] sm:$0xff]  ;;  %v47_v37 = vld [vmem:[%s2850_s0 + $0x108] sm:$0xff] }
  0x1a   :  { %v188_v34 = vld [vmem:[%s2850_s0 + $0x570] sm:$0xff]  ;;  %v51_v39 = vld [vmem:[%s2850_s0 + $0x128] sm:$0xff]  ;;  %v194_v42 = vld [vmem:[%s2850_s0 + $0x5a0] sm:$0xff] }
  0x1b   :  { %v192_v36 = vld [vmem:[%s2850_s0 + $0x590] sm:$0xff]  ;;  %v195_v40 = vld [vmem:[%s2850_s0 + $0x5a8] sm:$0xff]  ;;  %v54_v43 = vld [vmem:[%s2850_s0 + $0x140] sm:$0xff] }
  0x1c   :  { %1537 = vmatpush1.bf16.msra.mxu0 %v1536_v23  ;;  %1595 = vmatpush1.bf16.msra.mxu1 %v1536_v23  ;;  %v39_v23 = vld [vmem:[%s2850_s0 + $0xc8] sm:$0xff]  ;;  %v53_v45 = vld [vmem:[%s2850_s0 + $0x138] sm:$0xff]  ;;  %v56_v49 = vld [vmem:[%s2850_s0 + $0x150] sm:$0xff] }
  0x1d   :  { %1538 = vmatprep.subr.bf16.mxu0 %v1606_v0  ;;  %1580 = vmatprep.subr.bf16.mxu1 %v1606_v0  ;;  %v197_v46 = vld [vmem:[%s2850_s0 + $0x5b8] sm:$0xff]  ;;  %v200_v50 = vld [vmem:[%s2850_s0 + $0x5d0] sm:$0xff]  ;;  %v203_v54 = vld [vmem:[%s2850_s0 + $0x5e8] sm:$0xff] }
  0x1e   :  { %v201_v48 = vld [vmem:[%s2850_s0 + $0x5d8] sm:$0xff]  ;;  %v60_v51 = vld [vmem:[%s2850_s0 + $0x170] sm:$0xff]  ;;  %v63_v55 = vld [vmem:[%s2850_s0 + $0x188] sm:$0xff] }
  0x20   :  { %1540 = vmatpush1.bf16.msra.mxu0 %v1539_v26  ;;  %1596 = vmatpush1.bf16.msra.mxu1 %v1539_v26  ;;  %v182_v26 = vld [vmem:[%s2850_s0 + $0x540] sm:$0xff] }
  0x21   :  { %1541 = vmatprep.subr.bf16.mxu0 %v1606_v0  ;;  %1581 = vmatprep.subr.bf16.mxu1 %v1606_v0 }
  0x24   :  { %1543 = vmatpush1.bf16.msra.mxu0 %v1542_v29  ;;  %1597 = vmatpush1.bf16.msra.mxu1 %v1542_v29  ;;  %v41_v29 = vld [vmem:[%s2850_s0 + $0xd8] sm:$0xff] }
  0x25   :  { %1544 = vmatprep.subr.bf16.mxu0 %v1606_v0  ;;  %1582 = vmatprep.subr.bf16.mxu1 %v1606_v0 }
  0x28   :  { %1546 = vmatpush1.bf16.msra.mxu0 %v1545_v32  ;;  %1598 = vmatpush1.bf16.msra.mxu1 %v1545_v32  ;;  %v189_v32 = vld [vmem:[%s2850_s0 + $0x578] sm:$0xff] }
  0x29   :  { %1547 = vmatprep.subr.bf16.mxu0 %v1606_v0  ;;  %1583 = vmatprep.subr.bf16.mxu1 %v1606_v0 }
  0x2c   :  { %1549 = vmatpush1.bf16.msra.mxu0 %v1548_v35  ;;  %1599 = vmatpush1.bf16.msra.mxu1 %v1548_v35  ;;  %v48_v35 = vld [vmem:[%s2850_s0 + $0x110] sm:$0xff] }
  0x2d   :  { %1550 = vmatprep.subr.bf16.mxu0 %v1606_v0  ;;  %1584 = vmatprep.subr.bf16.mxu1 %v1606_v0 }
  0x30   :  { %1552 = vmatpush1.bf16.msra.mxu0 %v1551_v38  ;;  %1600 = vmatpush1.bf16.msra.mxu1 %v1551_v38  ;;  %v191_v38 = vld [vmem:[%s2850_s0 + $0x588] sm:$0xff] }
  0x31   :  { %1553 = vmatprep.subr.bf16.mxu0 %v1606_v0  ;;  %1585 = vmatprep.subr.bf16.mxu1 %v1606_v0 }
  0x34   :  { %1555 = vmatpush1.bf16.msra.mxu0 %v1554_v41  ;;  %1601 = vmatpush1.bf16.msra.mxu1 %v1554_v41  ;;  %v50_v41 = vld [vmem:[%s2850_s0 + $0x120] sm:$0xff] }
  0x35   :  { %1556 = vmatprep.subr.bf16.mxu0 %v1606_v0  ;;  %1586 = vmatprep.subr.bf16.mxu1 %v1606_v0 }
  0x38   :  { %1558 = vmatpush1.bf16.msra.mxu0 %v1557_v44  ;;  %1602 = vmatpush1.bf16.msra.mxu1 %v1557_v44  ;;  %v198_v44 = vld [vmem:[%s2850_s0 + $0x5c0] sm:$0xff] }
  0x39   :  { %1559 = vmatprep.subr.bf16.mxu0 %v1606_v0  ;;  %1587 = vmatprep.subr.bf16.mxu1 %v1606_v0 }
  0x3c   :  { %1561 = vmatpush1.bf16.msra.mxu0 %v1560_v47  ;;  %1603 = vmatpush1.bf16.msra.mxu1 %v1560_v47  ;;  %v57_v47 = vld [vmem:[%s2850_s0 + $0x158] sm:$0xff] }
  0x3d   :  { %1562 = vmatprep.subr.bf16.mxu0 %v1606_v0  ;;  %1588 = vmatprep.subr.bf16.mxu1 %v1606_v0  ;;  %v165_v0 = vld [vmem:[%s2850_s0 + $0x4b8] sm:$0xff] }
  0x40   :  { %1564 = vmatpush1.bf16.msra.mxu0 %v1563_v52  ;;  %1604 = vmatpush1.bf16.msra.mxu1 %v1563_v52  ;;  %v204_v52 = vld [vmem:[%s2850_s0 + $0x5f0] sm:$0xff] }
  0x41   :  { %1566 = vmatprep.subr.bf16.mxu1 %v1565_v53 }
  0x43   :  { %507 = vmatmul.mubr.f32.vlgmr.msra.gmra.mrb[0].mxu0 %v14_v56  ;;  %747 = vmatmul.mubr.f32.vlgmr.msra.gmra.mrb[0].mxu1 %v158_v57  ;;  %v16_v56 = vld [vmem:[%s2850_s0 + $0x10] sm:$0xff]  ;;  %v62_v57 = vld [vmem:[%s2850_s0 + $0x180] sm:$0xff] }
  0x44   :  { %1568 = vmatpush3.bf16.msra.mxu1 %v1565_v53  ;;  %511 = vmatprep.mubr.f32.mxu0 %v18_v58  ;;  %v59_v53 = vld [vmem:[%s2850_s0 + $0x168] sm:$0xff] }
  0x45   :  { %751 = vmatprep.mubr.f32.mxu1 %v162_v60  ;;  %1570 = vmatprep.subr.bf16.mxu1 %v1569_v59  ;;  %v19_v58 = vld [vmem:[%s2850_s0 + $0x28] sm:$0xff]  ;;  %v22_v60 = vld [vmem:[%s2850_s0 + $0x40] sm:$0xff] }
  0x47   :  { %512 = vmatmul.mubr.f32.gmra.mrb[2].mxu0 %v17_v61  ;;  %752 = vmatmul.mubr.f32.gmra.mrb[2].mxu1 %v161_v62  ;;  %v65_v61 = vld [vmem:[%s2850_s0 + $0x198] sm:$0xff] }
  0x48   :  { %516 = vmatprep.mubr.f32.mxu0 %v21_v63  ;;  %756 = vmatprep.mubr.f32.mxu1 %v165_v0  ;;  %v25_v62 = vld [vmem:[%s2850_s0 + $0x58] sm:$0xff]  ;;  %v28_v0 = vld [vmem:[%s2850_s0 + $0x70] sm:$0xff] }
  0x49   :  { %1572 = vmatpush3.bf16.msra.mxu1 %v1569_v59  ;;  %v66_v59 = vld [vmem:[%s2850_s0 + $0x1a0] sm:$0xff]  ;;  %v69_v63 = vld [vmem:[%s2850_s0 + $0x1b8] sm:$0xff] }
  0x4b   :  { %517 = vmatmul.mubr.f32.gmra.mrb[4].mxu0 %v20_v1  ;;  %757 = vmatmul.mubr.f32.gmra.mrb[4].mxu1 %v164_v2  ;;  %v68_v1 = vld [vmem:[%s2850_s0 + $0x1b0] sm:$0xff]  ;;  %v31_v2 = vld [vmem:[%s2850_s0 + $0x88] sm:$0xff] }
  0x4c   :  { %521 = vmatprep.mubr.f32.mxu0 %v24_v3  ;;  %761 = vmatprep.mubr.f32.mxu1 %v168_v4  ;;  %v72_v3 = vld [vmem:[%s2850_s0 + $0x1d0] sm:$0xff]  ;;  %v34_v4 = vld [vmem:[%s2850_s0 + $0xa0] sm:$0xff] }
  0x4f   :  { %522 = vmatmul.mubr.f32.gmra.mrb[6].mxu0 %v23_v5  ;;  %762 = vmatmul.mubr.f32.gmra.mrb[6].mxu1 %v167_v6  ;;  %v71_v5 = vld [vmem:[%s2850_s0 + $0x1c8] sm:$0xff]  ;;  %v37_v6 = vld [vmem:[%s2850_s0 + $0xb8] sm:$0xff] }
  0x50   :  { %526 = vmatprep.mubr.f32.mxu0 %v27_v7  ;;  %766 = vmatprep.mubr.f32.mxu1 %v171_v8  ;;  %v75_v7 = vld [vmem:[%s2850_s0 + $0x1e8] sm:$0xff]  ;;  %v40_v8 = vld [vmem:[%s2850_s0 + $0xd0] sm:$0xff] }
  0x53   :  { %527 = vmatmul.mubr.f32.gmra.mrb[8].mxu0 %v26_v9  ;;  %767 = vmatmul.mubr.f32.gmra.mrb[8].mxu1 %v170_v10  ;;  %v74_v9 = vld [vmem:[%s2850_s0 + $0x1e0] sm:$0xff]  ;;  %v43_v10 = vld [vmem:[%s2850_s0 + $0xe8] sm:$0xff] }
  0x54   :  { %531 = vmatprep.mubr.f32.mxu0 %v30_v11  ;;  %771 = vmatprep.mubr.f32.mxu1 %v174_v12  ;;  %v78_v11 = vld [vmem:[%s2850_s0 + $0x200] sm:$0xff] }
  0x55   :  { %v46_v12 = vld [vmem:[%s2850_s0 + $0x100] sm:$0xff] }
  0x57   :  { %532 = vmatmul.mubr.f32.gmra.mrb[10].mxu0 %v29_v13  ;;  %772 = vmatmul.mubr.f32.gmra.mrb[10].mxu1 %v173_v14  ;;  %v77_v13 = vld [vmem:[%s2850_s0 + $0x1f8] sm:$0xff] }
  0x58   :  { %536 = vmatprep.mubr.f32.mxu0 %v33_v15  ;;  %776 = vmatprep.mubr.f32.mxu1 %v177_v16  ;;  %v49_v14 = vld [vmem:[%s2850_s0 + $0x118] sm:$0xff]  ;;  %v52_v16 = vld [vmem:[%s2850_s0 + $0x130] sm:$0xff] }
  0x59   :  { %v81_v15 = vld [vmem:[%s2850_s0 + $0x218] sm:$0xff] }
  0x5b   :  { %537 = vmatmul.mubr.f32.gmra.mrb[12].mxu0 %v32_v17  ;;  %777 = vmatmul.mubr.f32.gmra.mrb[12].mxu1 %v176_v18  ;;  %v80_v17 = vld [vmem:[%s2850_s0 + $0x210] sm:$0xff]  ;;  %v55_v18 = vld [vmem:[%s2850_s0 + $0x148] sm:$0xff] }
  0x5c   :  { %541 = vmatprep.mubr.f32.mxu0 %v36_v19  ;;  %781 = vmatprep.mubr.f32.mxu1 %v180_v20  ;;  %v84_v19 = vld [vmem:[%s2850_s0 + $0x230] sm:$0xff]  ;;  %v58_v20 = vld [vmem:[%s2850_s0 + $0x160] sm:$0xff] }
  0x5f   :  { %542 = vmatmul.mubr.f32.gmra.mrb[14].mxu0 %v35_v21  ;;  %782 = vmatmul.mubr.f32.gmra.mrb[14].mxu1 %v179_v22  ;;  %v83_v21 = vld [vmem:[%s2850_s0 + $0x228] sm:$0xff]  ;;  %v61_v22 = vld [vmem:[%s2850_s0 + $0x178] sm:$0xff] }
  0x60   :  { %546 = vmatprep.mubr.f32.mxu0 %v39_v23  ;;  %786 = vmatprep.mubr.f32.mxu1 %v183_v24  ;;  %v87_v23 = vld [vmem:[%s2850_s0 + $0x248] sm:$0xff]  ;;  %v64_v24 = vld [vmem:[%s2850_s0 + $0x190] sm:$0xff] }
  0x63   :  { %547 = vmatmul.mubr.f32.gmra.mrb[16].mxu0 %v38_v25  ;;  %787 = vmatmul.mubr.f32.gmra.mrb[16].mxu1 %v182_v26  ;;  %v86_v25 = vld [vmem:[%s2850_s0 + $0x240] sm:$0xff]  ;;  %v67_v26 = vld [vmem:[%s2850_s0 + $0x1a8] sm:$0xff] }
  0x64   :  { %551 = vmatprep.mubr.f32.mxu0 %v42_v27  ;;  %791 = vmatprep.mubr.f32.mxu1 %v186_v28  ;;  %v90_v27 = vld [vmem:[%s2850_s0 + $0x260] sm:$0xff] }
  0x65   :  { %v70_v28 = vld [vmem:[%s2850_s0 + $0x1c0] sm:$0xff] }
  0x67   :  { %552 = vmatmul.mubr.f32.gmra.mrb[18].mxu0 %v41_v29  ;;  %792 = vmatmul.mubr.f32.gmra.mrb[18].mxu1 %v185_v30  ;;  %v89_v29 = vld [vmem:[%s2850_s0 + $0x258] sm:$0xff] }
  0x68   :  { %556 = vmatprep.mubr.f32.mxu0 %v45_v31  ;;  %796 = vmatprep.mubr.f32.mxu1 %v189_v32  ;;  %v73_v30 = vld [vmem:[%s2850_s0 + $0x1d8] sm:$0xff]  ;;  %v76_v32 = vld [vmem:[%s2850_s0 + $0x1f0] sm:$0xff] }
  0x69   :  { %v93_v31 = vld [vmem:[%s2850_s0 + $0x278] sm:$0xff] }
  0x6b   :  { %557 = vmatmul.mubr.f32.gmra.mrb[20].mxu0 %v44_v33  ;;  %797 = vmatmul.mubr.f32.gmra.mrb[20].mxu1 %v188_v34  ;;  %v92_v33 = vld [vmem:[%s2850_s0 + $0x270] sm:$0xff]  ;;  %v79_v34 = vld [vmem:[%s2850_s0 + $0x208] sm:$0xff] }
  0x6c   :  { %561 = vmatprep.mubr.f32.mxu0 %v48_v35  ;;  %801 = vmatprep.mubr.f32.mxu1 %v192_v36  ;;  %v96_v35 = vld [vmem:[%s2850_s0 + $0x290] sm:$0xff]  ;;  %v82_v36 = vld [vmem:[%s2850_s0 + $0x220] sm:$0xff] }
  0x6f   :  { %562 = vmatmul.mubr.f32.gmra.mrb[22].mxu0 %v47_v37  ;;  %802 = vmatmul.mubr.f32.gmra.mrb[22].mxu1 %v191_v38  ;;  %v95_v37 = vld [vmem:[%s2850_s0 + $0x288] sm:$0xff]  ;;  %v85_v38 = vld [vmem:[%s2850_s0 + $0x238] sm:$0xff] }
  0x70   :  { %566 = vmatprep.mubr.f32.mxu0 %v51_v39  ;;  %806 = vmatprep.mubr.f32.mxu1 %v195_v40  ;;  %v99_v39 = vld [vmem:[%s2850_s0 + $0x2a8] sm:$0xff]  ;;  %v88_v40 = vld [vmem:[%s2850_s0 + $0x250] sm:$0xff] }
  0x73   :  { %567 = vmatmul.mubr.f32.gmra.mrb[24].mxu0 %v50_v41  ;;  %807 = vmatmul.mubr.f32.gmra.mrb[24].mxu1 %v194_v42  ;;  %v98_v41 = vld [vmem:[%s2850_s0 + $0x2a0] sm:$0xff]  ;;  %v91_v42 = vld [vmem:[%s2850_s0 + $0x268] sm:$0xff] }
  0x74   :  { %571 = vmatprep.mubr.f32.mxu0 %v54_v43  ;;  %811 = vmatprep.mubr.f32.mxu1 %v198_v44  ;;  %v102_v43 = vld [vmem:[%s2850_s0 + $0x2c0] sm:$0xff] }
  0x75   :  { %v94_v44 = vld [vmem:[%s2850_s0 + $0x280] sm:$0xff] }
  0x77   :  { %572 = vmatmul.mubr.f32.gmra.mrb[26].mxu0 %v53_v45  ;;  %812 = vmatmul.mubr.f32.gmra.mrb[26].mxu1 %v197_v46  ;;  %v101_v45 = vld [vmem:[%s2850_s0 + $0x2b8] sm:$0xff] }
  0x78   :  { %576 = vmatprep.mubr.f32.mxu0 %v57_v47  ;;  %816 = vmatprep.mubr.f32.mxu1 %v201_v48  ;;  %v97_v46 = vld [vmem:[%s2850_s0 + $0x298] sm:$0xff]  ;;  %v100_v48 = vld [vmem:[%s2850_s0 + $0x2b0] sm:$0xff] }
  0x79   :  { %v105_v47 = vld [vmem:[%s2850_s0 + $0x2d8] sm:$0xff] }
  0x7b   :  { %577 = vmatmul.mubr.f32.gmra.mrb[28].mxu0 %v56_v49  ;;  %817 = vmatmul.mubr.f32.gmra.mrb[28].mxu1 %v200_v50  ;;  %v104_v49 = vld [vmem:[%s2850_s0 + $0x2d0] sm:$0xff]  ;;  %v103_v50 = vld [vmem:[%s2850_s0 + $0x2c8] sm:$0xff] }
  0x7c   :  { %581 = vmatprep.mubr.f32.mxu0 %v60_v51  ;;  %821 = vmatprep.mubr.f32.mxu1 %v204_v52  ;;  %v108_v51 = vld [vmem:[%s2850_s0 + $0x2f0] sm:$0xff]  ;;  %v106_v52 = vld [vmem:[%s2850_s0 + $0x2e0] sm:$0xff] }
  0x7f   :  { %582 = vmatmul.mubr.f32.gmra.mrb[30].mxu0 %v59_v53  ;;  %822 = vmatmul.mubr.f32.gmra.mrb[30].mxu1 %v203_v54  ;;  %v107_v53 = vld [vmem:[%s2850_s0 + $0x2e8] sm:$0xff]  ;;  %v109_v54 = vld [vmem:[%s2850_s0 + $0x2f8] sm:$0xff] }
  0x80   :  { %586 = vmatprep.mubr.f32.mxu0 %v63_v55  ;;  %1421 = vmatprep.mubr.msk.f32.mxu1 %vm249_vm0, %v16_v56  ;;  %v111_v55 = vld [vmem:[%s2850_s0 + $0x308] sm:$0xff]  ;;  %v112_v56 = vld [vmem:[%s2850_s0 + $0x310] sm:$0xff] }
  0x83   :  { %587 = vmatmul.mubr.f32.gmra.mrb[32].mxu0 %v62_v57  ;;  %1422 = vmatmul.mubr.msk.f32.vlgmr.msra.gmra.mrb[32].mxu1 %vm249_vm0, %v19_v58  ;;  %v110_v57 = vld [vmem:[%s2850_s0 + $0x300] sm:$0xff]  ;;  %v115_v58 = vld [vmem:[%s2850_s0 + $0x328] sm:$0xff] }
  0x84   :  { %591 = vmatprep.mubr.f32.mxu0 %v66_v59  ;;  %1424 = vmatprep.mubr.msk.f32.mxu1 %vm249_vm0, %v22_v60  ;;  %v114_v59 = vld [vmem:[%s2850_s0 + $0x320] sm:$0xff] }
  0x85   :  { %v118_v60 = vld [vmem:[%s2850_s0 + $0x340] sm:$0xff] }
  0x87   :  { %592 = vmatmul.mubr.f32.gmra.mrb[34].mxu0 %v65_v61  ;;  %1425 = vmatmul.mubr.msk.f32.gmra.mrb[34].mxu1 %vm249_vm0, %v25_v62  ;;  %v113_v61 = vld [vmem:[%s2850_s0 + $0x318] sm:$0xff] }
  0x88   :  { %596 = vmatprep.mubr.f32.mxu0 %v69_v63  ;;  %1427 = vmatprep.mubr.msk.f32.mxu1 %vm249_vm0, %v28_v0  ;;  %v121_v62 = vld [vmem:[%s2850_s0 + $0x358] sm:$0xff]  ;;  %v124_v0 = vld [vmem:[%s2850_s0 + $0x370] sm:$0xff] }
  0x89   :  { %v117_v63 = vld [vmem:[%s2850_s0 + $0x338] sm:$0xff] }
  0x8b   :  { %597 = vmatmul.mubr.f32.gmra.mrb[36].mxu0 %v68_v1  ;;  %1428 = vmatmul.mubr.msk.f32.gmra.mrb[36].mxu1 %vm249_vm0, %v31_v2  ;;  %v116_v1 = vld [vmem:[%s2850_s0 + $0x330] sm:$0xff]  ;;  %v127_v2 = vld [vmem:[%s2850_s0 + $0x388] sm:$0xff] }
  0x8c   :  { %601 = vmatprep.mubr.f32.mxu0 %v72_v3  ;;  %1430 = vmatprep.mubr.msk.f32.mxu1 %vm249_vm0, %v34_v4  ;;  %v120_v3 = vld [vmem:[%s2850_s0 + $0x350] sm:$0xff]  ;;  %v130_v4 = vld [vmem:[%s2850_s0 + $0x3a0] sm:$0xff] }
  0x8f   :  { %602 = vmatmul.mubr.f32.gmra.mrb[38].mxu0 %v71_v5  ;;  %1431 = vmatmul.mubr.msk.f32.gmra.mrb[38].mxu1 %vm249_vm0, %v37_v6  ;;  %v119_v5 = vld [vmem:[%s2850_s0 + $0x348] sm:$0xff]  ;;  %v133_v6 = vld [vmem:[%s2850_s0 + $0x3b8] sm:$0xff] }
  0x90   :  { %606 = vmatprep.mubr.f32.mxu0 %v75_v7  ;;  %1433 = vmatprep.mubr.msk.f32.mxu1 %vm249_vm0, %v40_v8  ;;  %v123_v7 = vld [vmem:[%s2850_s0 + $0x368] sm:$0xff]  ;;  %v136_v8 = vld [vmem:[%s2850_s0 + $0x3d0] sm:$0xff] }
  0x93   :  { %607 = vmatmul.mubr.f32.gmra.mrb[40].mxu0 %v74_v9  ;;  %1434 = vmatmul.mubr.msk.f32.gmra.mrb[40].mxu1 %vm249_vm0, %v43_v10  ;;  %v122_v9 = vld [vmem:[%s2850_s0 + $0x360] sm:$0xff]  ;;  %v139_v10 = vld [vmem:[%s2850_s0 + $0x3e8] sm:$0xff] }
  0x94   :  { %611 = vmatprep.mubr.f32.mxu0 %v78_v11  ;;  %1436 = vmatprep.mubr.msk.f32.mxu1 %vm249_vm0, %v46_v12  ;;  %v126_v11 = vld [vmem:[%s2850_s0 + $0x380] sm:$0xff] }
  0x95   :  { %v142_v12 = vld [vmem:[%s2850_s0 + $0x400] sm:$0xff] }
  0x97   :  { %612 = vmatmul.mubr.f32.gmra.mrb[42].mxu0 %v77_v13  ;;  %1437 = vmatmul.mubr.msk.f32.gmra.mrb[42].mxu1 %vm249_vm0, %v49_v14  ;;  %v125_v13 = vld [vmem:[%s2850_s0 + $0x378] sm:$0xff] }
  0x98   :  { %616 = vmatprep.mubr.f32.mxu0 %v81_v15  ;;  %1439 = vmatprep.mubr.msk.f32.mxu1 %vm249_vm0, %v52_v16  ;;  %v145_v14 = vld [vmem:[%s2850_s0 + $0x418] sm:$0xff]  ;;  %v148_v16 = vld [vmem:[%s2850_s0 + $0x430] sm:$0xff] }
  0x99   :  { %v129_v15 = vld [vmem:[%s2850_s0 + $0x398] sm:$0xff] }
  0x9b   :  { %617 = vmatmul.mubr.f32.gmra.mrb[44].mxu0 %v80_v17  ;;  %1440 = vmatmul.mubr.msk.f32.gmra.mrb[44].mxu1 %vm249_vm0, %v55_v18  ;;  %v128_v17 = vld [vmem:[%s2850_s0 + $0x390] sm:$0xff]  ;;  %v151_v18 = vld [vmem:[%s2850_s0 + $0x448] sm:$0xff] }
  0x9c   :  { %621 = vmatprep.mubr.f32.mxu0 %v84_v19  ;;  %1442 = vmatprep.mubr.msk.f32.mxu1 %vm249_vm0, %v58_v20  ;;  %v132_v19 = vld [vmem:[%s2850_s0 + $0x3b0] sm:$0xff]  ;;  %v154_v20 = vld [vmem:[%s2850_s0 + $0x460] sm:$0xff] }
  0x9f   :  { %622 = vmatmul.mubr.f32.gmra.mrb[46].mxu0 %v83_v21  ;;  %1443 = vmatmul.mubr.msk.f32.gmra.mrb[46].mxu1 %vm249_vm0, %v61_v22  ;;  %v131_v21 = vld [vmem:[%s2850_s0 + $0x3a8] sm:$0xff]  ;;  %v157_v22 = vld [vmem:[%s2850_s0 + $0x478] sm:$0xff] }
  0xa0   :  { %626 = vmatprep.mubr.f32.mxu0 %v87_v23  ;;  %1445 = vmatprep.mubr.msk.f32.mxu1 %vm249_vm0, %v64_v24  ;;  %v135_v23 = vld [vmem:[%s2850_s0 + $0x3c8] sm:$0xff]  ;;  %v160_v24 = vld [vmem:[%s2850_s0 + $0x490] sm:$0xff] }
  0xa3   :  { %627 = vmatmul.mubr.f32.gmra.mrb[48].mxu0 %v86_v25  ;;  %1446 = vmatmul.mubr.msk.f32.gmra.mrb[48].mxu1 %vm249_vm0, %v67_v26  ;;  %v134_v25 = vld [vmem:[%s2850_s0 + $0x3c0] sm:$0xff]  ;;  %v163_v26 = vld [vmem:[%s2850_s0 + $0x4a8] sm:$0xff] }
  0xa4   :  { %631 = vmatprep.mubr.f32.mxu0 %v90_v27  ;;  %1448 = vmatprep.mubr.msk.f32.mxu1 %vm249_vm0, %v70_v28  ;;  %v138_v27 = vld [vmem:[%s2850_s0 + $0x3e0] sm:$0xff] }
  0xa5   :  { %v166_v28 = vld [vmem:[%s2850_s0 + $0x4c0] sm:$0xff] }
  0xa7   :  { %632 = vmatmul.mubr.f32.gmra.mrb[50].mxu0 %v89_v29  ;;  %1449 = vmatmul.mubr.msk.f32.gmra.mrb[50].mxu1 %vm249_vm0, %v73_v30  ;;  %v137_v29 = vld [vmem:[%s2850_s0 + $0x3d8] sm:$0xff] }
  0xa8   :  { %636 = vmatprep.mubr.f32.mxu0 %v93_v31  ;;  %1451 = vmatprep.mubr.msk.f32.mxu1 %vm249_vm0, %v76_v32  ;;  %v169_v30 = vld [vmem:[%s2850_s0 + $0x4d8] sm:$0xff]  ;;  %v172_v32 = vld [vmem:[%s2850_s0 + $0x4f0] sm:$0xff] }
  0xa9   :  { %v141_v31 = vld [vmem:[%s2850_s0 + $0x3f8] sm:$0xff] }
  0xab   :  { %637 = vmatmul.mubr.f32.gmra.mrb[52].mxu0 %v92_v33  ;;  %1452 = vmatmul.mubr.msk.f32.gmra.mrb[52].mxu1 %vm249_vm0, %v79_v34  ;;  %v140_v33 = vld [vmem:[%s2850_s0 + $0x3f0] sm:$0xff]  ;;  %v175_v34 = vld [vmem:[%s2850_s0 + $0x508] sm:$0xff] }
  0xac   :  { %641 = vmatprep.mubr.f32.mxu0 %v96_v35  ;;  %1454 = vmatprep.mubr.msk.f32.mxu1 %vm249_vm0, %v82_v36  ;;  %v144_v35 = vld [vmem:[%s2850_s0 + $0x410] sm:$0xff]  ;;  %v178_v36 = vld [vmem:[%s2850_s0 + $0x520] sm:$0xff] }
  0xaf   :  { %642 = vmatmul.mubr.f32.gmra.mrb[54].mxu0 %v95_v37  ;;  %1455 = vmatmul.mubr.msk.f32.gmra.mrb[54].mxu1 %vm249_vm0, %v85_v38  ;;  %v143_v37 = vld [vmem:[%s2850_s0 + $0x408] sm:$0xff]  ;;  %v181_v38 = vld [vmem:[%s2850_s0 + $0x538] sm:$0xff] }
  0xb0   :  { %646 = vmatprep.mubr.f32.mxu0 %v99_v39  ;;  %1457 = vmatprep.mubr.msk.f32.mxu1 %vm249_vm0, %v88_v40  ;;  %v147_v39 = vld [vmem:[%s2850_s0 + $0x428] sm:$0xff]  ;;  %v184_v40 = vld [vmem:[%s2850_s0 + $0x550] sm:$0xff] }
  0xb3   :  { %647 = vmatmul.mubr.f32.gmra.mrb[56].mxu0 %v98_v41  ;;  %1458 = vmatmul.mubr.msk.f32.gmra.mrb[56].mxu1 %vm249_vm0, %v91_v42  ;;  %v146_v41 = vld [vmem:[%s2850_s0 + $0x420] sm:$0xff]  ;;  %v187_v42 = vld [vmem:[%s2850_s0 + $0x568] sm:$0xff] }
  0xb4   :  { %651 = vmatprep.mubr.f32.mxu0 %v102_v43  ;;  %1460 = vmatprep.mubr.msk.f32.mxu1 %vm249_vm0, %v94_v44  ;;  %v150_v43 = vld [vmem:[%s2850_s0 + $0x440] sm:$0xff] }
  0xb5   :  { %v190_v44 = vld [vmem:[%s2850_s0 + $0x580] sm:$0xff] }
  0xb7   :  { %652 = vmatmul.mubr.f32.gmra.mrb[58].mxu0 %v101_v45  ;;  %1461 = vmatmul.mubr.msk.f32.gmra.mrb[58].mxu1 %vm249_vm0, %v97_v46  ;;  %v149_v45 = vld [vmem:[%s2850_s0 + $0x438] sm:$0xff] }
  0xb8   :  { %656 = vmatprep.mubr.f32.mxu0 %v105_v47  ;;  %1463 = vmatprep.mubr.msk.f32.mxu1 %vm249_vm0, %v100_v48  ;;  %v193_v46 = vld [vmem:[%s2850_s0 + $0x598] sm:$0xff]  ;;  %v196_v48 = vld [vmem:[%s2850_s0 + $0x5b0] sm:$0xff] }
  0xb9   :  { %v153_v47 = vld [vmem:[%s2850_s0 + $0x458] sm:$0xff] }
  0xbb   :  { %657 = vmatmul.mubr.f32.gmra.mrb[60].mxu0 %v104_v49  ;;  %1464 = vmatmul.mubr.msk.f32.gmra.mrb[60].mxu1 %vm249_vm0, %v103_v50  ;;  %v152_v49 = vld [vmem:[%s2850_s0 + $0x450] sm:$0xff]  ;;  %v199_v50 = vld [vmem:[%s2850_s0 + $0x5c8] sm:$0xff] }
  0xbc   :  { %661 = vmatprep.mubr.f32.mxu0 %v108_v51  ;;  %1466 = vmatprep.mubr.msk.f32.mxu1 %vm249_vm0, %v106_v52  ;;  %v156_v51 = vld [vmem:[%s2850_s0 + $0x470] sm:$0xff]  ;;  %v202_v52 = vld [vmem:[%s2850_s0 + $0x5e0] sm:$0xff] }
  0xbf   :  { %662 = vmatmul.mubr.f32.gmra.mrb[62].mxu0 %v107_v53  ;;  %1467 = vmatmul.mubr.msk.f32.gmra.mrb[62].mxu1 %vm249_vm0, %v109_v54  ;;  %v155_v53 = vld [vmem:[%s2850_s0 + $0x468] sm:$0xff]  ;;  %v205_v54 = vld [vmem:[%s2850_s0 + $0x5f8] sm:$0xff] }
  0xc0   :  { %666 = vmatprep.mubr.f32.mxu0 %v111_v55  ;;  %1469 = vmatprep.mubr.msk.f32.mxu1 %vm249_vm0, %v112_v56 }
  0xc3   :  { %667 = vmatmul.mubr.f32.gmra.mrb[64].mxu0 %v110_v57  ;;  %1470 = vmatmul.mubr.msk.f32.gmra.mrb[64].mxu1 %vm249_vm0, %v115_v58 }
  0xc4   :  { %671 = vmatprep.mubr.f32.mxu0 %v114_v59  ;;  %1472 = vmatprep.mubr.msk.f32.mxu1 %vm249_vm0, %v118_v60 }
  0xc7   :  { %672 = vmatmul.mubr.f32.gmra.mrb[66].mxu0 %v113_v61  ;;  %1473 = vmatmul.mubr.msk.f32.gmra.mrb[66].mxu1 %vm249_vm0, %v121_v62 }
  0xc8   :  { %676 = vmatprep.mubr.f32.mxu0 %v117_v63  ;;  %1475 = vmatprep.mubr.msk.f32.mxu1 %vm249_vm0, %v124_v0 }
  0xcb   :  { %677 = vmatmul.mubr.f32.gmra.mrb[68].mxu0 %v116_v1  ;;  %1476 = vmatmul.mubr.msk.f32.gmra.mrb[68].mxu1 %vm249_vm0, %v127_v2 }
  0xcc   :  { %681 = vmatprep.mubr.f32.mxu0 %v120_v3  ;;  %1478 = vmatprep.mubr.msk.f32.mxu1 %vm249_vm0, %v130_v4 }
  0xcf   :  { %682 = vmatmul.mubr.f32.gmra.mrb[70].mxu0 %v119_v5  ;;  %1479 = vmatmul.mubr.msk.f32.gmra.mrb[70].mxu1 %vm249_vm0, %v133_v6 }
  0xd0   :  { %686 = vmatprep.mubr.f32.mxu0 %v123_v7  ;;  %1481 = vmatprep.mubr.msk.f32.mxu1 %vm249_vm0, %v136_v8 }
  0xd3   :  { %687 = vmatmul.mubr.f32.gmra.mrb[72].mxu0 %v122_v9  ;;  %1482 = vmatmul.mubr.msk.f32.gmra.mrb[72].mxu1 %vm249_vm0, %v139_v10 }
  0xd4   :  { %691 = vmatprep.mubr.f32.mxu0 %v126_v11  ;;  %1484 = vmatprep.mubr.msk.f32.mxu1 %vm249_vm0, %v142_v12 }
  0xd7   :  { %692 = vmatmul.mubr.f32.gmra.mrb[74].mxu0 %v125_v13  ;;  %1485 = vmatmul.mubr.msk.f32.gmra.mrb[74].mxu1 %vm249_vm0, %v145_v14 }
  0xd8   :  { %696 = vmatprep.mubr.f32.mxu0 %v129_v15  ;;  %1487 = vmatprep.mubr.msk.f32.mxu1 %vm249_vm0, %v148_v16 }
  0xdb   :  { %697 = vmatmul.mubr.f32.gmra.mrb[76].mxu0 %v128_v17  ;;  %1488 = vmatmul.mubr.msk.f32.gmra.mrb[76].mxu1 %vm249_vm0, %v151_v18 }
  0xdc   :  { %701 = vmatprep.mubr.f32.mxu0 %v132_v19  ;;  %1490 = vmatprep.mubr.msk.f32.mxu1 %vm249_vm0, %v154_v20 }
  0xdf   :  { %702 = vmatmul.mubr.f32.gmra.mrb[78].mxu0 %v131_v21  ;;  %1491 = vmatmul.mubr.msk.f32.gmra.mrb[78].mxu1 %vm249_vm0, %v157_v22 }
  0xe0   :  { %706 = vmatprep.mubr.f32.mxu0 %v135_v23  ;;  %1493 = vmatprep.mubr.msk.f32.mxu1 %vm249_vm0, %v160_v24 }
  0xe3   :  { %707 = vmatmul.mubr.f32.gmra.mrb[80].mxu0 %v134_v25  ;;  %1494 = vmatmul.mubr.msk.f32.gmra.mrb[80].mxu1 %vm249_vm0, %v163_v26 }
  0xe4   :  { %711 = vmatprep.mubr.f32.mxu0 %v138_v27  ;;  %1496 = vmatprep.mubr.msk.f32.mxu1 %vm249_vm0, %v166_v28 }
  0xe7   :  { %712 = vmatmul.mubr.f32.gmra.mrb[82].mxu0 %v137_v29  ;;  %1497 = vmatmul.mubr.msk.f32.gmra.mrb[82].mxu1 %vm249_vm0, %v169_v30 }
  0xe8   :  { %716 = vmatprep.mubr.f32.mxu0 %v141_v31  ;;  %1499 = vmatprep.mubr.msk.f32.mxu1 %vm249_vm0, %v172_v32 }
  0xeb   :  { %717 = vmatmul.mubr.f32.gmra.mrb[84].mxu0 %v140_v33  ;;  %1500 = vmatmul.mubr.msk.f32.gmra.mrb[84].mxu1 %vm249_vm0, %v175_v34 }
  0xec   :  { %721 = vmatprep.mubr.f32.mxu0 %v144_v35  ;;  %1502 = vmatprep.mubr.msk.f32.mxu1 %vm249_vm0, %v178_v36 }
  0xef   :  { %722 = vmatmul.mubr.f32.gmra.mrb[86].mxu0 %v143_v37  ;;  %1503 = vmatmul.mubr.msk.f32.gmra.mrb[86].mxu1 %vm249_vm0, %v181_v38 }
  0xf0   :  { %726 = vmatprep.mubr.f32.mxu0 %v147_v39  ;;  %1505 = vmatprep.mubr.msk.f32.mxu1 %vm249_vm0, %v184_v40 }
  0xf3   :  { %727 = vmatmul.mubr.f32.gmra.mrb[88].mxu0 %v146_v41  ;;  %1506 = vmatmul.mubr.msk.f32.gmra.mrb[88].mxu1 %vm249_vm0, %v187_v42 }
  0xf4   :  { %731 = vmatprep.mubr.f32.mxu0 %v150_v43  ;;  %1508 = vmatprep.mubr.msk.f32.mxu1 %vm249_vm0, %v190_v44 }
  0xf7   :  { %732 = vmatmul.mubr.f32.gmra.mrb[90].mxu0 %v149_v45  ;;  %1509 = vmatmul.mubr.msk.f32.gmra.mrb[90].mxu1 %vm249_vm0, %v193_v46 }
  0xf8   :  { %736 = vmatprep.mubr.f32.mxu0 %v153_v47  ;;  %1511 = vmatprep.mubr.msk.f32.mxu1 %vm249_vm0, %v196_v48 }
  0xfb   :  { %737 = vmatmul.mubr.f32.gmra.mrb[92].mxu0 %v152_v49  ;;  %1512 = vmatmul.mubr.msk.f32.gmra.mrb[92].mxu1 %vm249_vm0, %v199_v50 }
  0xfc   :  { %741 = vmatprep.mubr.f32.mxu0 %v156_v51  ;;  %1514 = vmatprep.mubr.msk.f32.mxu1 %vm249_vm0, %v202_v52 }
  0xff   :  { %742 = vmatmul.mubr.f32.gmra.mrb[94].mxu0 %v155_v53  ;;  %1515 = vmatmul.mubr.msk.f32.gmra.mrb[94].mxu1 %vm249_vm0, %v205_v54  ;;  %v2472_v53 = vld [vmem:[%s2851_s2] ss:$0 sm:$0xff] }
 0x116   :  { %v2407_v55 = vpop.f32.mrb[0].mxu0  ;;  %v2409_v56 = vpop.f32.mrb[0].mxu1 }
 0x117   :  { %v510_v57 = vpop.f32.mrb[1].mxu0  ;;  %v750_v58 = vpop.f32.mrb[1].mxu1 }
 0x11a   :  { %v513_v59 = vpop.f32.mrb[2].mxu0  ;;  %v2411_v60 = vpop.f32.mrb[2].mxu1 }
 0x11b   :  { %v515_v61 = vpop.f32.mrb[3].mxu0  ;;  %v755_v62 = vpop.f32.mrb[3].mxu1  ;;  %v514_v58 = vadd.f32 %v2472_v53, %v513_v59 }
 0x11c   :  { %v509_v61 = vadd.f32 %v2472_v53, %v2407_v55 }
 0x11e   :  { %v2413_v63 = vpop.f32.mrb[4].mxu0  ;;  %v2415_v0 = vpop.f32.mrb[4].mxu1 }
 0x11f   :  { %v520_v1 = vpop.f32.mrb[5].mxu0  ;;  %v760_v2 = vpop.f32.mrb[5].mxu1  ;;  %v519_v59 = vadd.f32 %v2472_v53, %v2413_v63 }
 0x122   :  { %v2417_v3 = vpop.f32.mrb[6].mxu0  ;;  %v2419_v4 = vpop.f32.mrb[6].mxu1 }
 0x123   :  { %v525_v5 = vpop.f32.mrb[7].mxu0  ;;  %v765_v6 = vpop.f32.mrb[7].mxu1 }
 0x126   :  { %v2421_v7 = vpop.f32.mrb[8].mxu0  ;;  %v2423_v8 = vpop.f32.mrb[8].mxu1 }
 0x127   :  { %v530_v9 = vpop.f32.mrb[9].mxu0  ;;  %v770_v10 = vpop.f32.mrb[9].mxu1  ;;  %v529_v63 = vadd.f32 %v2472_v53, %v2421_v7 }
 0x128   :  { %v524_v10 = vadd.f32 %v2472_v53, %v2417_v3 }
 0x12a   :  { %v2425_v11 = vpop.f32.mrb[10].mxu0  ;;  %v2427_v12 = vpop.f32.mrb[10].mxu1 }
 0x12b   :  { %v535_v13 = vpop.f32.mrb[11].mxu0  ;;  %v775_v14 = vpop.f32.mrb[11].mxu1 }
 0x12e   :  { %v2429_v15 = vpop.f32.mrb[12].mxu0  ;;  %v2431_v16 = vpop.f32.mrb[12].mxu1 }
 0x12f   :  { %v540_v17 = vpop.f32.mrb[13].mxu0  ;;  %v780_v18 = vpop.f32.mrb[13].mxu1  ;;  %v539_v7 = vadd.f32 %v2472_v53, %v2429_v15 }
 0x132   :  { %v2433_v19 = vpop.f32.mrb[14].mxu0  ;;  %v2435_v20 = vpop.f32.mrb[14].mxu1 }
 0x133   :  { %v545_v21 = vpop.f32.mrb[15].mxu0  ;;  %v785_v22 = vpop.f32.mrb[15].mxu1 }
 0x134   :  { %v534_v21 = vadd.f32 %v2472_v53, %v2425_v11 }
 0x136   :  { %v2437_v23 = vpop.f32.mrb[16].mxu0  ;;  %v2439_v24 = vpop.f32.mrb[16].mxu1 }
 0x137   :  { %v550_v25 = vpop.f32.mrb[17].mxu0  ;;  %v790_v26 = vpop.f32.mrb[17].mxu1  ;;  %v549_v15 = vadd.f32 %v2472_v53, %v2437_v23 }
 0x13a   :  { %v2441_v27 = vpop.f32.mrb[18].mxu0  ;;  %v2443_v28 = vpop.f32.mrb[18].mxu1 }
 0x13b   :  { %v555_v29 = vpop.f32.mrb[19].mxu0  ;;  %v795_v30 = vpop.f32.mrb[19].mxu1 }
 0x13e   :  { %v2445_v31 = vpop.f32.mrb[20].mxu0  ;;  %v2447_v32 = vpop.f32.mrb[20].mxu1 }
 0x13f   :  { %v560_v33 = vpop.f32.mrb[21].mxu0  ;;  %v800_v34 = vpop.f32.mrb[21].mxu1  ;;  %v559_v23 = vadd.f32 %v2472_v53, %v2445_v31 }
 0x140   :  { %v544_v33 = vadd.f32 %v2472_v53, %v2433_v19  ;;  %v554_v19 = vadd.f32 %v2472_v53, %v2441_v27 }
 0x142   :  { %v2449_v35 = vpop.f32.mrb[22].mxu0  ;;  %v2451_v36 = vpop.f32.mrb[22].mxu1 }
 0x143   :  { %v565_v37 = vpop.f32.mrb[23].mxu0  ;;  %v805_v38 = vpop.f32.mrb[23].mxu1  ;;  %v564_v27 = vadd.f32 %v2472_v53, %v2449_v35 }
 0x146   :  { %v2453_v39 = vpop.f32.mrb[24].mxu0  ;;  %v2455_v40 = vpop.f32.mrb[24].mxu1 }
 0x147   :  { %v570_v41 = vpop.f32.mrb[25].mxu0  ;;  %v810_v42 = vpop.f32.mrb[25].mxu1  ;;  %v569_v31 = vadd.f32 %v2472_v53, %v2453_v39 }
 0x14a   :  { %v2457_v43 = vpop.f32.mrb[26].mxu0  ;;  %v2459_v44 = vpop.f32.mrb[26].mxu1 }
 0x14b   :  { %v575_v45 = vpop.f32.mrb[27].mxu0  ;;  %v815_v46 = vpop.f32.mrb[27].mxu1  ;;  %v574_v35 = vadd.f32 %v2472_v53, %v2457_v43 }
 0x14e   :  { %v2461_v47 = vpop.f32.mrb[28].mxu0  ;;  %v2463_v48 = vpop.f32.mrb[28].mxu1 }
 0x14f   :  { %v580_v49 = vpop.f32.mrb[29].mxu0  ;;  %v820_v50 = vpop.f32.mrb[29].mxu1  ;;  %v579_v39 = vadd.f32 %v2472_v53, %v2461_v47 }
 0x152   :  { %v2465_v51 = vpop.f32.mrb[30].mxu0  ;;  %v2467_v52 = vpop.f32.mrb[30].mxu1 }
 0x153   :  { %v585_v54 = vpop.f32.mrb[31].mxu0  ;;  %v825_v57 = vpop.f32.mrb[31].mxu1  ;;  %v584_v43 = vadd.f32 %v2472_v53, %v2465_v51 }
 0x156   :  { %v2477_v62 = vpop.f32.mrb[32].mxu0  ;;  %v1423_v1 = vpop.f32.mrb[32].mxu1 }
 0x157   :  { %v899_v2 = vadd.f32 %v1423_v1, %v514_v58  ;;  %v590_v5 = vpop.f32.mrb[33].mxu0  ;;  %v893_v6 = vpop.f32.mrb[33].mxu1  ;;  %v589_v47 = vadd.f32 %v2472_v53, %v2477_v62 }
 0x158   :  { %v894_v9 = vadd.f32 %v893_v6, %v509_v61 }
 0x159   :  { %1213 = vst.msk [vmem:[%s2852_s3 + $0x8] sm:$0xff] %vm249_vm0, %v899_v2 }
 0x15a   :  { %1212 = vst.msk [vmem:[%s2852_s3] sm:$0xff] %vm249_vm0, %v894_v9  ;;  %v2491_v55 = vpop.f32.mrb[34].mxu0  ;;  %v1426_v13 = vpop.f32.mrb[34].mxu1 }
 0x15b   :  { %v909_v14 = vadd.f32 %v1426_v13, %v524_v10  ;;  %v595_v17 = vpop.f32.mrb[35].mxu0  ;;  %v903_v18 = vpop.f32.mrb[35].mxu1  ;;  %v594_v51 = vadd.f32 %v2472_v53, %v2491_v55 }
 0x15c   :  { %v904_v3 = vadd.f32 %v903_v18, %v519_v59 }
 0x15d   :  { %1215 = vst.msk [vmem:[%s2852_s3 + $0x18] sm:$0xff] %vm249_vm0, %v909_v14 }
 0x15e   :  { %1214 = vst.msk [vmem:[%s2852_s3 + $0x10] sm:$0xff] %vm249_vm0, %v904_v3  ;;  %v2505_v22 = vpop.f32.mrb[36].mxu0  ;;  %v1429_v25 = vpop.f32.mrb[36].mxu1 }
 0x15f   :  { %v919_v26 = vadd.f32 %v1429_v25, %v534_v21  ;;  %v600_v29 = vpop.f32.mrb[37].mxu0  ;;  %v913_v30 = vpop.f32.mrb[37].mxu1  ;;  %v599_v62 = vadd.f32 %v2472_v53, %v2505_v22 }
 0x160   :  { %v914_v11 = vadd.f32 %v913_v30, %v529_v63 }
 0x161   :  { %1217 = vst.msk [vmem:[%s2852_s3 + $0x28] sm:$0xff] %vm249_vm0, %v919_v26 }
 0x162   :  { %1216 = vst.msk [vmem:[%s2852_s3 + $0x20] sm:$0xff] %vm249_vm0, %v914_v11  ;;  %v603_v34 = vpop.f32.mrb[38].mxu0  ;;  %v1432_v37 = vpop.f32.mrb[38].mxu1 }
 0x163   :  { %v929_v38 = vadd.f32 %v1432_v37, %v544_v33  ;;  %v605_v41 = vpop.f32.mrb[39].mxu0  ;;  %v923_v42 = vpop.f32.mrb[39].mxu1  ;;  %v604_v55 = vadd.f32 %v2472_v53, %v603_v34 }
 0x164   :  { %v924_v45 = vadd.f32 %v923_v42, %v539_v7 }
 0x165   :  { %1219 = vst.msk [vmem:[%s2852_s3 + $0x38] sm:$0xff] %vm249_vm0, %v929_v38 }
 0x166   :  { %1218 = vst.msk [vmem:[%s2852_s3 + $0x30] sm:$0xff] %vm249_vm0, %v924_v45  ;;  %v608_v46 = vpop.f32.mrb[40].mxu0  ;;  %v1435_v49 = vpop.f32.mrb[40].mxu1 }
 0x167   :  { %v939_v50 = vadd.f32 %v1435_v49, %v554_v19  ;;  %v610_v54 = vpop.f32.mrb[41].mxu0  ;;  %v933_v57 = vpop.f32.mrb[41].mxu1  ;;  %v609_v22 = vadd.f32 %v2472_v53, %v608_v46 }
 0x168   :  { %v934_v58 = vadd.f32 %v933_v57, %v549_v15 }
 0x169   :  { %1221 = vst.msk [vmem:[%s2852_s3 + $0x48] sm:$0xff] %vm249_vm0, %v939_v50 }
 0x16a   :  { %1220 = vst.msk [vmem:[%s2852_s3 + $0x40] sm:$0xff] %vm249_vm0, %v934_v58  ;;  %v613_v61 = vpop.f32.mrb[42].mxu0  ;;  %v1438_v1 = vpop.f32.mrb[42].mxu1 }
 0x16b   :  { %v949_v2 = vadd.f32 %v1438_v1, %v564_v27  ;;  %v615_v5 = vpop.f32.mrb[43].mxu0  ;;  %v943_v6 = vpop.f32.mrb[43].mxu1  ;;  %v614_v34 = vadd.f32 %v2472_v53, %v613_v61 }
 0x16c   :  { %v944_v9 = vadd.f32 %v943_v6, %v559_v23 }
 0x16d   :  { %1223 = vst.msk [vmem:[%s2852_s3 + $0x58] sm:$0xff] %vm249_vm0, %v949_v2 }
 0x16e   :  { %1222 = vst.msk [vmem:[%s2852_s3 + $0x50] sm:$0xff] %vm249_vm0, %v944_v9  ;;  %v618_v10 = vpop.f32.mrb[44].mxu0  ;;  %v1441_v59 = vpop.f32.mrb[44].mxu1 }
 0x16f   :  { %v959_v13 = vadd.f32 %v1441_v59, %v574_v35  ;;  %v620_v14 = vpop.f32.mrb[45].mxu0  ;;  %v953_v17 = vpop.f32.mrb[45].mxu1  ;;  %v619_v46 = vadd.f32 %v2472_v53, %v618_v10 }
 0x170   :  { %v954_v18 = vadd.f32 %v953_v17, %v569_v31 }
 0x171   :  { %1225 = vst.msk [vmem:[%s2852_s3 + $0x68] sm:$0xff] %vm249_vm0, %v959_v13 }
 0x172   :  { %1224 = vst.msk [vmem:[%s2852_s3 + $0x60] sm:$0xff] %vm249_vm0, %v954_v18  ;;  %v623_v3 = vpop.f32.mrb[46].mxu0  ;;  %v1444_v21 = vpop.f32.mrb[46].mxu1 }
 0x173   :  { %v969_v63 = vadd.f32 %v1444_v21, %v584_v43  ;;  %v625_v25 = vpop.f32.mrb[47].mxu0  ;;  %v963_v26 = vpop.f32.mrb[47].mxu1  ;;  %v624_v61 = vadd.f32 %v2472_v53, %v623_v3 }
 0x174   :  { %v964_v29 = vadd.f32 %v963_v26, %v579_v39 }
 0x175   :  { %1227 = vst.msk [vmem:[%s2852_s3 + $0x78] sm:$0xff] %vm249_vm0, %v969_v63 }
 0x176   :  { %1226 = vst.msk [vmem:[%s2852_s3 + $0x70] sm:$0xff] %vm249_vm0, %v964_v29  ;;  %v628_v30 = vpop.f32.mrb[48].mxu0  ;;  %v1447_v11 = vpop.f32.mrb[48].mxu1 }
 0x177   :  { %v979_v33 = vadd.f32 %v1447_v11, %v594_v51  ;;  %v630_v7 = vpop.f32.mrb[49].mxu0  ;;  %v973_v37 = vpop.f32.mrb[49].mxu1  ;;  %v629_v10 = vadd.f32 %v2472_v53, %v628_v30 }
 0x178   :  { %v974_v38 = vadd.f32 %v973_v37, %v589_v47 }
 0x179   :  { %1229 = vst.msk [vmem:[%s2852_s3 + $0x88] sm:$0xff] %vm249_vm0, %v979_v33 }
 0x17a   :  { %1228 = vst.msk [vmem:[%s2852_s3 + $0x80] sm:$0xff] %vm249_vm0, %v974_v38  ;;  %v633_v41 = vpop.f32.mrb[50].mxu0  ;;  %v1450_v42 = vpop.f32.mrb[50].mxu1 }
 0x17b   :  { %v989_v45 = vadd.f32 %v1450_v42, %v604_v55  ;;  %v635_v19 = vpop.f32.mrb[51].mxu0  ;;  %v983_v15 = vpop.f32.mrb[51].mxu1  ;;  %v634_v31 = vadd.f32 %v2472_v53, %v633_v41 }
 0x17c   :  { %v984_v49 = vadd.f32 %v983_v15, %v599_v62 }
 0x17d   :  { %1231 = vst.msk [vmem:[%s2852_s3 + $0x98] sm:$0xff] %vm249_vm0, %v989_v45 }
 0x17e   :  { %1230 = vst.msk [vmem:[%s2852_s3 + $0x90] sm:$0xff] %vm249_vm0, %v984_v49  ;;  %v638_v50 = vpop.f32.mrb[52].mxu0  ;;  %v1453_v54 = vpop.f32.mrb[52].mxu1 }
 0x17f   :  { %v999_v57 = vadd.f32 %v1453_v54, %v614_v34  ;;  %v640_v58 = vpop.f32.mrb[53].mxu0  ;;  %v993_v27 = vpop.f32.mrb[53].mxu1  ;;  %v639_v3 = vadd.f32 %v2472_v53, %v638_v50 }
 0x180   :  { %v994_v23 = vadd.f32 %v993_v27, %v609_v22 }
 0x181   :  { %1233 = vst.msk [vmem:[%s2852_s3 + $0xa8] sm:$0xff] %vm249_vm0, %v999_v57 }
 0x182   :  { %1232 = vst.msk [vmem:[%s2852_s3 + $0xa0] sm:$0xff] %vm249_vm0, %v994_v23  ;;  %v643_v1 = vpop.f32.mrb[54].mxu0  ;;  %v1456_v2 = vpop.f32.mrb[54].mxu1 }
 0x183   :  { %v1009_v5 = vadd.f32 %v1456_v2, %v624_v61  ;;  %v645_v6 = vpop.f32.mrb[55].mxu0  ;;  %v1003_v9 = vpop.f32.mrb[55].mxu1  ;;  %v644_v39 = vadd.f32 %v2472_v53, %v643_v1 }
 0x184   :  { %v1004_v35 = vadd.f32 %v1003_v9, %v619_v46 }
 0x185   :  { %1235 = vst.msk [vmem:[%s2852_s3 + $0xb8] sm:$0xff] %vm249_vm0, %v1009_v5 }
 0x186   :  { %1234 = vst.msk [vmem:[%s2852_s3 + $0xb0] sm:$0xff] %vm249_vm0, %v1004_v35  ;;  %v648_v59 = vpop.f32.mrb[56].mxu0  ;;  %v1459_v13 = vpop.f32.mrb[56].mxu1 }
 0x187   :  { %v1019_v14 = vadd.f32 %v1459_v13, %v634_v31  ;;  %v650_v17 = vpop.f32.mrb[57].mxu0  ;;  %v1013_v18 = vpop.f32.mrb[57].mxu1  ;;  %v649_v30 = vadd.f32 %v2472_v53, %v648_v59 }
 0x188   :  { %v1014_v43 = vadd.f32 %v1013_v18, %v629_v10 }
 0x189   :  { %1237 = vst.msk [vmem:[%s2852_s3 + $0xc8] sm:$0xff] %vm249_vm0, %v1019_v14 }
 0x18a   :  { %1236 = vst.msk [vmem:[%s2852_s3 + $0xc0] sm:$0xff] %vm249_vm0, %v1014_v43  ;;  %v653_v21 = vpop.f32.mrb[58].mxu0  ;;  %v1462_v63 = vpop.f32.mrb[58].mxu1 }
 0x18b   :  { %v1029_v25 = vadd.f32 %v1462_v63, %v644_v39  ;;  %v655_v26 = vpop.f32.mrb[59].mxu0  ;;  %v1023_v29 = vpop.f32.mrb[59].mxu1  ;;  %v654_v47 = vadd.f32 %v2472_v53, %v653_v21 }
 0x18c   :  { %v1024_v51 = vadd.f32 %v1023_v29, %v639_v3 }
 0x18d   :  { %1239 = vst.msk [vmem:[%s2852_s3 + $0xd8] sm:$0xff] %vm249_vm0, %v1029_v25 }
 0x18e   :  { %1238 = vst.msk [vmem:[%s2852_s3 + $0xd0] sm:$0xff] %vm249_vm0, %v1024_v51  ;;  %v658_v11 = vpop.f32.mrb[60].mxu0  ;;  %v1465_v33 = vpop.f32.mrb[60].mxu1 }
 0x18f   :  { %v1039_v7 = vadd.f32 %v1465_v33, %v654_v47  ;;  %v660_v37 = vpop.f32.mrb[61].mxu0  ;;  %v1033_v38 = vpop.f32.mrb[61].mxu1  ;;  %v659_v62 = vadd.f32 %v2472_v53, %v658_v11 }
 0x190   :  { %v1034_v55 = vadd.f32 %v1033_v38, %v649_v30 }
 0x191   :  { %1241 = vst.msk [vmem:[%s2852_s3 + $0xe8] sm:$0xff] %vm249_vm0, %v1039_v7 }
 0x192   :  { %1240 = vst.msk [vmem:[%s2852_s3 + $0xe0] sm:$0xff] %vm249_vm0, %v1034_v55  ;;  %v663_v41 = vpop.f32.mrb[62].mxu0  ;;  %v1468_v42 = vpop.f32.mrb[62].mxu1 }
 0x193   :  { %v664_v45 = vadd.f32 %v2472_v53, %v663_v41  ;;  %v665_v19 = vpop.f32.mrb[63].mxu0  ;;  %v1043_v15 = vpop.f32.mrb[63].mxu1 }
 0x194   :  { %v1044_v49 = vadd.f32 %v1043_v15, %v659_v62 }
 0x195   :  { %v1049_v34 = vadd.f32 %v1468_v42, %v664_v45 }
 0x196   :  { %1242 = vst.msk [vmem:[%s2852_s3 + $0xf0] sm:$0xff] %vm249_vm0, %v1044_v49  ;;  %v668_v22 = vpop.f32.mrb[64].mxu0  ;;  %v1471_v50 = vpop.f32.mrb[64].mxu1 }
 0x197   :  { %1243 = vst.msk [vmem:[%s2852_s3 + $0xf8] sm:$0xff] %vm249_vm0, %v1049_v34  ;;  %v669_v54 = vadd.f32 %v2472_v53, %v668_v22  ;;  %v670_v57 = vpop.f32.mrb[65].mxu0  ;;  %v1053_v58 = vpop.f32.mrb[65].mxu1  ;;  %v754_v22 = vadd.f32 %v2472_v53, %v2411_v60  ;;  %v764_v60 = vadd.f32 %v2472_v53, %v2419_v4 }
 0x199   :  { %v1054_v27 = vadd.f32 %v1053_v58, %v669_v54  ;;  %v749_v54 = vadd.f32 %v2472_v53, %v2409_v56  ;;  %v759_v56 = vadd.f32 %v2472_v53, %v2415_v0  ;;  %v774_v0 = vadd.f32 %v2472_v53, %v2427_v12 }
 0x19a   :  { %v673_v23 = vpop.f32.mrb[66].mxu0  ;;  %v1474_v61 = vpop.f32.mrb[66].mxu1 }
 0x19b   :  { %1244 = vst.msk [vmem:[%s2852_s3 + $0x100] sm:$0xff] %vm249_vm0, %v1054_v27  ;;  %v674_v46 = vadd.f32 %v2472_v53, %v673_v23  ;;  %v675_v1 = vpop.f32.mrb[67].mxu0  ;;  %v1063_v2 = vpop.f32.mrb[67].mxu1 }
 0x19d   :  { %v1059_v5 = vadd.f32 %v1471_v50, %v674_v46 }
 0x19e   :  { %v678_v6 = vpop.f32.mrb[68].mxu0  ;;  %v1477_v9 = vpop.f32.mrb[68].mxu1 }
 0x19f   :  { %1245 = vst.msk [vmem:[%s2852_s3 + $0x108] sm:$0xff] %vm249_vm0, %v1059_v5  ;;  %v679_v35 = vadd.f32 %v2472_v53, %v678_v6  ;;  %v680_v31 = vpop.f32.mrb[69].mxu0  ;;  %v1073_v10 = vpop.f32.mrb[69].mxu1 }
 0x1a1   :  { %v1064_v59 = vadd.f32 %v1063_v2, %v679_v35 }
 0x1a2   :  { %v683_v13 = vpop.f32.mrb[70].mxu0  ;;  %v1480_v14 = vpop.f32.mrb[70].mxu1 }
 0x1a3   :  { %1246 = vst.msk [vmem:[%s2852_s3 + $0x110] sm:$0xff] %vm249_vm0, %v1064_v59  ;;  %v684_v17 = vadd.f32 %v2472_v53, %v683_v13  ;;  %v685_v18 = vpop.f32.mrb[71].mxu0  ;;  %v1083_v43 = vpop.f32.mrb[71].mxu1  ;;  %v769_v13 = vadd.f32 %v2472_v53, %v2423_v8  ;;  %v784_v8 = vadd.f32 %v2472_v53, %v2435_v20 }
 0x1a5   :  { %v1069_v39 = vadd.f32 %v1474_v61, %v684_v17 }
 0x1a6   :  { %v688_v3 = vpop.f32.mrb[72].mxu0  ;;  %v1483_v21 = vpop.f32.mrb[72].mxu1 }
 0x1a7   :  { %1247 = vst.msk [vmem:[%s2852_s3 + $0x118] sm:$0xff] %vm249_vm0, %v1069_v39  ;;  %v689_v63 = vadd.f32 %v2472_v53, %v688_v3  ;;  %v690_v25 = vpop.f32.mrb[73].mxu0  ;;  %v1093_v26 = vpop.f32.mrb[73].mxu1 }
 0x1a9   :  { %v1074_v29 = vadd.f32 %v1073_v10, %v689_v63  ;;  %v779_v63 = vadd.f32 %v2472_v53, %v2431_v16  ;;  %v794_v16 = vadd.f32 %v2472_v53, %v2443_v28 }
 0x1aa   :  { %v693_v51 = vpop.f32.mrb[74].mxu0  ;;  %v2679_v47 = vpop.f32.mrb[74].mxu1 }
 0x1ab   :  { %1248 = vst.msk [vmem:[%s2852_s3 + $0x120] sm:$0xff] %vm249_vm0, %v1074_v29  ;;  %v694_v30 = vadd.f32 %v2472_v53, %v693_v51  ;;  %v695_v11 = vpop.f32.mrb[75].mxu0  ;;  %v1103_v33 = vpop.f32.mrb[75].mxu1 }
 0x1ad   :  { %v1079_v7 = vadd.f32 %v1477_v9, %v694_v30 }
 0x1ae   :  { %v698_v37 = vpop.f32.mrb[76].mxu0  ;;  %v2686_v38 = vpop.f32.mrb[76].mxu1 }
 0x1af   :  { %1249 = vst.msk [vmem:[%s2852_s3 + $0x128] sm:$0xff] %vm249_vm0, %v1079_v7  ;;  %v699_v55 = vadd.f32 %v2472_v53, %v698_v37  ;;  %v700_v62 = vpop.f32.mrb[77].mxu0  ;;  %v2693_v41 = vpop.f32.mrb[77].mxu1  ;;  %v789_v7 = vadd.f32 %v2472_v53, %v2439_v24  ;;  %v804_v24 = vadd.f32 %v2472_v53, %v2451_v36 }
 0x1b1   :  { %v1084_v42 = vadd.f32 %v1083_v43, %v699_v55 }
 0x1b2   :  { %v703_v45 = vpop.f32.mrb[78].mxu0  ;;  %v2695_v19 = vpop.f32.mrb[78].mxu1 }
 0x1b3   :  { %1250 = vst.msk [vmem:[%s2852_s3 + $0x130] sm:$0xff] %vm249_vm0, %v1084_v42  ;;  %v704_v15 = vadd.f32 %v2472_v53, %v703_v45  ;;  %v705_v49 = vpop.f32.mrb[79].mxu0  ;;  %v2702_v34 = vpop.f32.mrb[79].mxu1 }
 0x1b4   :  { %v799_v49 = vadd.f32 %v2472_v53, %v2447_v32  ;;  %v814_v32 = vadd.f32 %v2472_v53, %v2459_v44 }
 0x1b5   :  { %v1089_v50 = vadd.f32 %v1480_v14, %v704_v15 }
 0x1b6   :  { %v708_v57 = vpop.f32.mrb[80].mxu0  ;;  %v1495_v58 = vpop.f32.mrb[80].mxu1 }
 0x1b7   :  { %1251 = vst.msk [vmem:[%s2852_s3 + $0x138] sm:$0xff] %vm249_vm0, %v1089_v50  ;;  %v709_v27 = vadd.f32 %v2472_v53, %v708_v57  ;;  %v1139_v23 = vadd.f32 %v1495_v58, %v754_v22  ;;  %v710_v61 = vpop.f32.mrb[81].mxu0  ;;  %v1133_v46 = vpop.f32.mrb[81].mxu1 }
 0x1b8   :  { %v1134_v1 = vadd.f32 %v1133_v46, %v749_v54 }
 0x1b9   :  { %v1094_v2 = vadd.f32 %v1093_v26, %v709_v27  ;;  %1261 = vst.msk [vmem:[%s2852_s3 + $0x188] sm:$0xff] %vm249_vm0, %v1139_v23  ;;  %v809_v23 = vadd.f32 %v2472_v53, %v2455_v40  ;;  %v824_v40 = vadd.f32 %v2472_v53, %v2467_v52 }
 0x1ba   :  { %1260 = vst.msk [vmem:[%s2852_s3 + $0x180] sm:$0xff] %vm249_vm0, %v1134_v1  ;;  %v713_v5 = vpop.f32.mrb[82].mxu0  ;;  %v1498_v6 = vpop.f32.mrb[82].mxu1 }
 0x1bb   :  { %1252 = vst.msk [vmem:[%s2852_s3 + $0x140] sm:$0xff] %vm249_vm0, %v1094_v2  ;;  %v714_v4 = vadd.f32 %v2472_v53, %v713_v5  ;;  %v1149_v9 = vadd.f32 %v1498_v6, %v764_v60  ;;  %v715_v35 = vpop.f32.mrb[83].mxu0  ;;  %v1143_v31 = vpop.f32.mrb[83].mxu1  ;;  %v819_v5 = vadd.f32 %v2472_v53, %v2463_v48 }
 0x1bc   :  { %v1144_v10 = vadd.f32 %v1143_v31, %v759_v56 }
 0x1bd   :  { %v1099_v59 = vadd.f32 %v1483_v21, %v714_v4  ;;  %1263 = vst.msk [vmem:[%s2852_s3 + $0x198] sm:$0xff] %vm249_vm0, %v1149_v9 }
 0x1be   :  { %1262 = vst.msk [vmem:[%s2852_s3 + $0x190] sm:$0xff] %vm249_vm0, %v1144_v10  ;;  %v718_v14 = vpop.f32.mrb[84].mxu0  ;;  %v1501_v17 = vpop.f32.mrb[84].mxu1 }
 0x1bf   :  { %1253 = vst.msk [vmem:[%s2852_s3 + $0x148] sm:$0xff] %vm249_vm0, %v1099_v59  ;;  %v719_v12 = vadd.f32 %v2472_v53, %v718_v14  ;;  %v1159_v18 = vadd.f32 %v1501_v17, %v774_v0  ;;  %v720_v43 = vpop.f32.mrb[85].mxu0  ;;  %v1153_v39 = vpop.f32.mrb[85].mxu1 }
 0x1c0   :  { %v1154_v3 = vadd.f32 %v1153_v39, %v769_v13 }
 0x1c1   :  { %v1104_v21 = vadd.f32 %v1103_v33, %v719_v12  ;;  %1265 = vst.msk [vmem:[%s2852_s3 + $0x1a8] sm:$0xff] %vm249_vm0, %v1159_v18 }
 0x1c2   :  { %1264 = vst.msk [vmem:[%s2852_s3 + $0x1a0] sm:$0xff] %vm249_vm0, %v1154_v3  ;;  %v723_v25 = vpop.f32.mrb[86].mxu0  ;;  %v1504_v26 = vpop.f32.mrb[86].mxu1 }
 0x1c3   :  { %1254 = vst.msk [vmem:[%s2852_s3 + $0x150] sm:$0xff] %vm249_vm0, %v1104_v21  ;;  %v724_v20 = vadd.f32 %v2472_v53, %v723_v25  ;;  %v1169_v29 = vadd.f32 %v1504_v26, %v784_v8  ;;  %v725_v51 = vpop.f32.mrb[87].mxu0  ;;  %v1163_v30 = vpop.f32.mrb[87].mxu1 }
 0x1c4   :  { %v1164_v11 = vadd.f32 %v1163_v30, %v779_v63 }
 0x1c5   :  { %v1109_v33 = vadd.f32 %v2679_v47, %v724_v20  ;;  %1267 = vst.msk [vmem:[%s2852_s3 + $0x1b8] sm:$0xff] %vm249_vm0, %v1169_v29 }
 0x1c6   :  { %1266 = vst.msk [vmem:[%s2852_s3 + $0x1b0] sm:$0xff] %vm249_vm0, %v1164_v11  ;;  %v728_v37 = vpop.f32.mrb[88].mxu0  ;;  %v1507_v55 = vpop.f32.mrb[88].mxu1 }
 0x1c7   :  { %1255 = vst.msk [vmem:[%s2852_s3 + $0x158] sm:$0xff] %vm249_vm0, %v1109_v33  ;;  %v729_v28 = vadd.f32 %v2472_v53, %v728_v37  ;;  %v1179_v47 = vadd.f32 %v1507_v55, %v794_v16  ;;  %v730_v62 = vpop.f32.mrb[89].mxu0  ;;  %v1173_v42 = vpop.f32.mrb[89].mxu1 }
 0x1c8   :  { %v1174_v45 = vadd.f32 %v1173_v42, %v789_v7 }
 0x1c9   :  { %v1114_v15 = vadd.f32 %v2693_v41, %v729_v28  ;;  %1269 = vst.msk [vmem:[%s2852_s3 + $0x1c8] sm:$0xff] %vm249_vm0, %v1179_v47 }
 0x1ca   :  { %1268 = vst.msk [vmem:[%s2852_s3 + $0x1c0] sm:$0xff] %vm249_vm0, %v1174_v45  ;;  %v733_v22 = vpop.f32.mrb[90].mxu0  ;;  %v1510_v50 = vpop.f32.mrb[90].mxu1 }
 0x1cb   :  { %1256 = vst.msk [vmem:[%s2852_s3 + $0x160] sm:$0xff] %vm249_vm0, %v1114_v15  ;;  %v734_v36 = vadd.f32 %v2472_v53, %v733_v22  ;;  %v1189_v41 = vadd.f32 %v1510_v50, %v804_v24  ;;  %v735_v54 = vpop.f32.mrb[91].mxu0  ;;  %v1183_v57 = vpop.f32.mrb[91].mxu1 }
 0x1cc   :  { %v1184_v58 = vadd.f32 %v1183_v57, %v799_v49 }
 0x1cd   :  { %v1119_v27 = vadd.f32 %v2686_v38, %v734_v36  ;;  %1271 = vst.msk [vmem:[%s2852_s3 + $0x1d8] sm:$0xff] %vm249_vm0, %v1189_v41 }
 0x1ce   :  { %1270 = vst.msk [vmem:[%s2852_s3 + $0x1d0] sm:$0xff] %vm249_vm0, %v1184_v58  ;;  %v738_v61 = vpop.f32.mrb[92].mxu0  ;;  %v1513_v46 = vpop.f32.mrb[92].mxu1 }
 0x1cf   :  { %1257 = vst.msk [vmem:[%s2852_s3 + $0x168] sm:$0xff] %vm249_vm0, %v1119_v27  ;;  %v739_v44 = vadd.f32 %v2472_v53, %v738_v61  ;;  %v1199_v38 = vadd.f32 %v1513_v46, %v814_v32  ;;  %v740_v1 = vpop.f32.mrb[93].mxu0  ;;  %v1193_v60 = vpop.f32.mrb[93].mxu1 }
 0x1d0   :  { %v1194_v2 = vadd.f32 %v1193_v60, %v809_v23 }
 0x1d1   :  { %v1124_v56 = vadd.f32 %v2702_v34, %v739_v44  ;;  %1273 = vst.msk [vmem:[%s2852_s3 + $0x1e8] sm:$0xff] %vm249_vm0, %v1199_v38 }
 0x1d2   :  { %1272 = vst.msk [vmem:[%s2852_s3 + $0x1e0] sm:$0xff] %vm249_vm0, %v1194_v2  ;;  %v743_v6 = vpop.f32.mrb[94].mxu0  ;;  %v1516_v4 = vpop.f32.mrb[94].mxu1 }
 0x1d3   :  { %1258 = vst.msk [vmem:[%s2852_s3 + $0x170] sm:$0xff] %vm249_vm0, %v1124_v56  ;;  %v744_v52 = vadd.f32 %v2472_v53, %v743_v6  ;;  %v1209_v34 = vadd.f32 %v1516_v4, %v824_v40  ;;  %v745_v9 = vpop.f32.mrb[95].mxu0  ;;  %v1203_v35 = vpop.f32.mrb[95].mxu1 }
 0x1d4   :  { %v1204_v31 = vadd.f32 %v1203_v35, %v819_v5 }
 0x1d5   :  { %v1129_v48 = vadd.f32 %v2695_v19, %v744_v52  ;;  %1275 = vst.msk [vmem:[%s2852_s3 + $0x1f8] sm:$0xff] %vm249_vm0, %v1209_v34 }
 0x1d6   :  { %1274 = vst.msk [vmem:[%s2852_s3 + $0x1f0] sm:$0xff] %vm249_vm0, %v1204_v31 }
 0x1d7   :  { %1259 = vst.msk [vmem:[%s2852_s3 + $0x178] sm:$0xff] %vm249_vm0, %v1129_v48 }

// kernel: _lambda_.25
= control target key start
LH: loop header
LB: loop body
LE: loop exit
PB: predicated region body
PF: predicated region fallthrough
CT: control target
= control target key end

     0   :  { %v1737_v0 = vmov 0.0|0.0   ;;  %vm252_vm0 = vcmask 261120   ;;  %s3198_s1 = inlined_call_operand.vmem [shape: f32[288,32], index: 1, kind: input, shape index: {}]   ;;  %s3199_s0 = inlined_call_operand.vmem [shape: f32[512,288], index: 0, kind: input, shape index: {}]   ;;  %s3200_s2 = inlined_call_operand.vmem [shape: f32[1,32], index: 2, kind: input, shape index: {}]   ;;  %s3201_s3 = inlined_call_operand.vmem [shape: f32[512,32], index: 3, kind: input, shape index: {}]   ;;  %s3202_s4 = inlined_call_operand.vmem [shape: f32[512,32], index: 4, kind: output, shape index: {}]  }
   0x1   :  { %1648 = vmatprep.subr.bf16.mxu0 %v1737_v0  ;;  %1704 = vmatprep.subr.bf16.mxu1 %v1737_v0  ;;  %v209_v1 = vld [vmem:[%s3198_s1] sm:$0xff]  ;;  %v210_v2 = vld [vmem:[%s3198_s1 + $0x8] sm:$0xff]  ;;  %v211_v3 = vld [vmem:[%s3198_s1 + $0x10] sm:$0xff] }
   0x2   :  { %v1649_v4 = vpack.c.bf16 %v210_v2, %v209_v1  ;;  %v212_v5 = vld [vmem:[%s3198_s1 + $0x18] sm:$0xff]  ;;  %v213_v7 = vld [vmem:[%s3198_s1 + $0x20] sm:$0xff]  ;;  %v214_v8 = vld [vmem:[%s3198_s1 + $0x28] sm:$0xff] }
   0x3   :  { %v1652_v6 = vpack.c.bf16 %v212_v5, %v211_v3  ;;  %v1655_v9 = vpack.c.bf16 %v214_v8, %v213_v7  ;;  %v215_v10 = vld [vmem:[%s3198_s1 + $0x30] sm:$0xff]  ;;  %v216_v11 = vld [vmem:[%s3198_s1 + $0x38] sm:$0xff]  ;;  %v18_v12 = vld [vmem:[%s3199_s0 + $0x8] sm:$0xff] }
   0x4   :  { %1650 = vmatpush1.bf16.msra.mxu0 %v1649_v4  ;;  %1720 = vmatpush1.bf16.msra.mxu1 %v1649_v4  ;;  %v1658_v13 = vpack.c.bf16 %v216_v11, %v215_v10  ;;  %v162_v14 = vld [vmem:[%s3199_s0 + $0x488] sm:$0xff]  ;;  %v217_v15 = vld [vmem:[%s3198_s1 + $0x40] sm:$0xff]  ;;  %v219_v18 = vld [vmem:[%s3198_s1 + $0x50] sm:$0xff] }
   0x5   :  { %1651 = vmatprep.subr.bf16.mxu0 %v1737_v0  ;;  %1705 = vmatprep.subr.bf16.mxu1 %v1737_v0  ;;  %v218_v16 = vld [vmem:[%s3198_s1 + $0x48] sm:$0xff]  ;;  %v220_v19 = vld [vmem:[%s3198_s1 + $0x58] sm:$0xff]  ;;  %v221_v21 = vld [vmem:[%s3198_s1 + $0x60] sm:$0xff] }
   0x6   :  { %509 = vmatprep.mubr.f32.mxu0 %v18_v12  ;;  %749 = vmatprep.mubr.f32.mxu1 %v162_v14  ;;  %v1661_v17 = vpack.c.bf16 %v218_v16, %v217_v15  ;;  %v1664_v20 = vpack.c.bf16 %v220_v19, %v219_v18  ;;  %v222_v22 = vld [vmem:[%s3198_s1 + $0x68] sm:$0xff]  ;;  %v223_v24 = vld [vmem:[%s3198_s1 + $0x70] sm:$0xff]  ;;  %v224_v25 = vld [vmem:[%s3198_s1 + $0x78] sm:$0xff] }
   0x7   :  { %v1667_v23 = vpack.c.bf16 %v222_v22, %v221_v21  ;;  %v1670_v26 = vpack.c.bf16 %v224_v25, %v223_v24  ;;  %v225_v27 = vld [vmem:[%s3198_s1 + $0x80] sm:$0xff]  ;;  %v226_v28 = vld [vmem:[%s3198_s1 + $0x88] sm:$0xff]  ;;  %v227_v30 = vld [vmem:[%s3198_s1 + $0x90] sm:$0xff] }
   0x8   :  { %1653 = vmatpush1.bf16.msra.mxu0 %v1652_v6  ;;  %1721 = vmatpush1.bf16.msra.mxu1 %v1652_v6  ;;  %v1673_v29 = vpack.c.bf16 %v226_v28, %v225_v27  ;;  %v228_v31 = vld [vmem:[%s3198_s1 + $0x98] sm:$0xff]  ;;  %v229_v33 = vld [vmem:[%s3198_s1 + $0xa0] sm:$0xff]  ;;  %v230_v34 = vld [vmem:[%s3198_s1 + $0xa8] sm:$0xff] }
   0x9   :  { %1654 = vmatprep.subr.bf16.mxu0 %v1737_v0  ;;  %1706 = vmatprep.subr.bf16.mxu1 %v1737_v0  ;;  %v1676_v32 = vpack.c.bf16 %v228_v31, %v227_v30  ;;  %v1679_v35 = vpack.c.bf16 %v230_v34, %v229_v33  ;;  %v231_v36 = vld [vmem:[%s3198_s1 + $0xb0] sm:$0xff]  ;;  %v232_v37 = vld [vmem:[%s3198_s1 + $0xb8] sm:$0xff]  ;;  %v233_v39 = vld [vmem:[%s3198_s1 + $0xc0] sm:$0xff] }
   0xa   :  { %v1682_v38 = vpack.c.bf16 %v232_v37, %v231_v36  ;;  %v234_v40 = vld [vmem:[%s3198_s1 + $0xc8] sm:$0xff]  ;;  %v235_v42 = vld [vmem:[%s3198_s1 + $0xd0] sm:$0xff]  ;;  %v236_v43 = vld [vmem:[%s3198_s1 + $0xd8] sm:$0xff] }
   0xb   :  { %v1685_v41 = vpack.c.bf16 %v234_v40, %v233_v39  ;;  %v1688_v44 = vpack.c.bf16 %v236_v43, %v235_v42  ;;  %v237_v45 = vld [vmem:[%s3198_s1 + $0xe0] sm:$0xff]  ;;  %v238_v46 = vld [vmem:[%s3198_s1 + $0xe8] sm:$0xff]  ;;  %v239_v48 = vld [vmem:[%s3198_s1 + $0xf0] sm:$0xff] }
   0xc   :  { %1656 = vmatpush1.bf16.msra.mxu0 %v1655_v9  ;;  %1722 = vmatpush1.bf16.msra.mxu1 %v1655_v9  ;;  %v1691_v47 = vpack.c.bf16 %v238_v46, %v237_v45  ;;  %v240_v49 = vld [vmem:[%s3198_s1 + $0xf8] sm:$0xff]  ;;  %v241_v50 = vld [vmem:[%s3198_s1 + $0x100] sm:$0xff]  ;;  %v242_v51 = vld [vmem:[%s3198_s1 + $0x108] sm:$0xff] }
   0xd   :  { %1657 = vmatprep.subr.bf16.mxu0 %v1737_v0  ;;  %1707 = vmatprep.subr.bf16.mxu1 %v1737_v0  ;;  %v1694_v52 = vpack.c.bf16 %v240_v49, %v239_v48  ;;  %v1696_v53 = vpack.c.bf16 %v242_v51, %v241_v50  ;;  %v243_v54 = vld [vmem:[%s3198_s1 + $0x110] sm:$0xff]  ;;  %v244_v55 = vld [vmem:[%s3198_s1 + $0x118] sm:$0xff]  ;;  %v17_v56 = vld [vmem:[%s3199_s0] sm:$0xff] }
   0xe   :  { %v161_v57 = vld [vmem:[%s3199_s0 + $0x480] sm:$0xff]  ;;  %v1700_v59 = vpack.c.bf16 %v244_v55, %v243_v54  ;;  %v20_v61 = vld [vmem:[%s3199_s0 + $0x18] sm:$0xff]  ;;  %v23_v1 = vld [vmem:[%s3199_s0 + $0x30] sm:$0xff] }
   0xf   :  { %v21_v58 = vld [vmem:[%s3199_s0 + $0x20] sm:$0xff]  ;;  %v164_v62 = vld [vmem:[%s3199_s0 + $0x498] sm:$0xff]  ;;  %v167_v2 = vld [vmem:[%s3199_s0 + $0x4b0] sm:$0xff] }
  0x10   :  { %1659 = vmatpush1.bf16.msra.mxu0 %v1658_v13  ;;  %1723 = vmatpush1.bf16.msra.mxu1 %v1658_v13  ;;  %v165_v60 = vld [vmem:[%s3199_s0 + $0x4a0] sm:$0xff]  ;;  %v24_v63 = vld [vmem:[%s3199_s0 + $0x38] sm:$0xff]  ;;  %v27_v3 = vld [vmem:[%s3199_s0 + $0x50] sm:$0xff] }
  0x11   :  { %1660 = vmatprep.subr.bf16.mxu0 %v1737_v0  ;;  %1708 = vmatprep.subr.bf16.mxu1 %v1737_v0  ;;  %v171_v4 = vld [vmem:[%s3199_s0 + $0x4d0] sm:$0xff]  ;;  %v26_v5 = vld [vmem:[%s3199_s0 + $0x48] sm:$0xff]  ;;  %v29_v9 = vld [vmem:[%s3199_s0 + $0x60] sm:$0xff] }
  0x12   :  { %v170_v6 = vld [vmem:[%s3199_s0 + $0x4c8] sm:$0xff]  ;;  %v173_v10 = vld [vmem:[%s3199_s0 + $0x4e0] sm:$0xff]  ;;  %v32_v13 = vld [vmem:[%s3199_s0 + $0x78] sm:$0xff] }
  0x13   :  { %v30_v7 = vld [vmem:[%s3199_s0 + $0x68] sm:$0xff]  ;;  %v33_v11 = vld [vmem:[%s3199_s0 + $0x80] sm:$0xff]  ;;  %v176_v14 = vld [vmem:[%s3199_s0 + $0x4f8] sm:$0xff] }
  0x14   :  { %1662 = vmatpush1.bf16.msra.mxu0 %v1661_v17  ;;  %1724 = vmatpush1.bf16.msra.mxu1 %v1661_v17  ;;  %v174_v8 = vld [vmem:[%s3199_s0 + $0x4e8] sm:$0xff]  ;;  %v177_v12 = vld [vmem:[%s3199_s0 + $0x500] sm:$0xff]  ;;  %v36_v15 = vld [vmem:[%s3199_s0 + $0x98] sm:$0xff] }
  0x15   :  { %1663 = vmatprep.subr.bf16.mxu0 %v1737_v0  ;;  %1709 = vmatprep.subr.bf16.mxu1 %v1737_v0  ;;  %v180_v16 = vld [vmem:[%s3199_s0 + $0x518] sm:$0xff]  ;;  %v35_v17 = vld [vmem:[%s3199_s0 + $0x90] sm:$0xff]  ;;  %v38_v21 = vld [vmem:[%s3199_s0 + $0xa8] sm:$0xff] }
  0x16   :  { %v179_v18 = vld [vmem:[%s3199_s0 + $0x510] sm:$0xff]  ;;  %v182_v22 = vld [vmem:[%s3199_s0 + $0x528] sm:$0xff]  ;;  %v41_v25 = vld [vmem:[%s3199_s0 + $0xc0] sm:$0xff] }
  0x17   :  { %v39_v19 = vld [vmem:[%s3199_s0 + $0xb0] sm:$0xff]  ;;  %v186_v24 = vld [vmem:[%s3199_s0 + $0x548] sm:$0xff]  ;;  %v45_v27 = vld [vmem:[%s3199_s0 + $0xe0] sm:$0xff] }
  0x18   :  { %1665 = vmatpush1.bf16.msra.mxu0 %v1664_v20  ;;  %1725 = vmatpush1.bf16.msra.mxu1 %v1664_v20  ;;  %v183_v20 = vld [vmem:[%s3199_s0 + $0x530] sm:$0xff]  ;;  %v189_v28 = vld [vmem:[%s3199_s0 + $0x560] sm:$0xff]  ;;  %v188_v30 = vld [vmem:[%s3199_s0 + $0x558] sm:$0xff] }
  0x19   :  { %1666 = vmatprep.subr.bf16.mxu0 %v1737_v0  ;;  %1710 = vmatprep.subr.bf16.mxu1 %v1737_v0  ;;  %v48_v31 = vld [vmem:[%s3199_s0 + $0xf8] sm:$0xff]  ;;  %v47_v33 = vld [vmem:[%s3199_s0 + $0xf0] sm:$0xff]  ;;  %v50_v37 = vld [vmem:[%s3199_s0 + $0x108] sm:$0xff] }
  0x1a   :  { %v191_v34 = vld [vmem:[%s3199_s0 + $0x570] sm:$0xff]  ;;  %v54_v39 = vld [vmem:[%s3199_s0 + $0x128] sm:$0xff]  ;;  %v197_v42 = vld [vmem:[%s3199_s0 + $0x5a0] sm:$0xff] }
  0x1b   :  { %v195_v36 = vld [vmem:[%s3199_s0 + $0x590] sm:$0xff]  ;;  %v198_v40 = vld [vmem:[%s3199_s0 + $0x5a8] sm:$0xff]  ;;  %v57_v43 = vld [vmem:[%s3199_s0 + $0x140] sm:$0xff] }
  0x1c   :  { %1668 = vmatpush1.bf16.msra.mxu0 %v1667_v23  ;;  %1726 = vmatpush1.bf16.msra.mxu1 %v1667_v23  ;;  %v42_v23 = vld [vmem:[%s3199_s0 + $0xc8] sm:$0xff]  ;;  %v56_v45 = vld [vmem:[%s3199_s0 + $0x138] sm:$0xff]  ;;  %v59_v49 = vld [vmem:[%s3199_s0 + $0x150] sm:$0xff] }
  0x1d   :  { %1669 = vmatprep.subr.bf16.mxu0 %v1737_v0  ;;  %1711 = vmatprep.subr.bf16.mxu1 %v1737_v0  ;;  %v200_v46 = vld [vmem:[%s3199_s0 + $0x5b8] sm:$0xff]  ;;  %v203_v50 = vld [vmem:[%s3199_s0 + $0x5d0] sm:$0xff]  ;;  %v206_v54 = vld [vmem:[%s3199_s0 + $0x5e8] sm:$0xff] }
  0x1e   :  { %v204_v48 = vld [vmem:[%s3199_s0 + $0x5d8] sm:$0xff]  ;;  %v63_v51 = vld [vmem:[%s3199_s0 + $0x170] sm:$0xff]  ;;  %v66_v55 = vld [vmem:[%s3199_s0 + $0x188] sm:$0xff] }
  0x20   :  { %1671 = vmatpush1.bf16.msra.mxu0 %v1670_v26  ;;  %1727 = vmatpush1.bf16.msra.mxu1 %v1670_v26  ;;  %v185_v26 = vld [vmem:[%s3199_s0 + $0x540] sm:$0xff] }
  0x21   :  { %1672 = vmatprep.subr.bf16.mxu0 %v1737_v0  ;;  %1712 = vmatprep.subr.bf16.mxu1 %v1737_v0 }
  0x24   :  { %1674 = vmatpush1.bf16.msra.mxu0 %v1673_v29  ;;  %1728 = vmatpush1.bf16.msra.mxu1 %v1673_v29  ;;  %v44_v29 = vld [vmem:[%s3199_s0 + $0xd8] sm:$0xff] }
  0x25   :  { %1675 = vmatprep.subr.bf16.mxu0 %v1737_v0  ;;  %1713 = vmatprep.subr.bf16.mxu1 %v1737_v0 }
  0x28   :  { %1677 = vmatpush1.bf16.msra.mxu0 %v1676_v32  ;;  %1729 = vmatpush1.bf16.msra.mxu1 %v1676_v32  ;;  %v192_v32 = vld [vmem:[%s3199_s0 + $0x578] sm:$0xff] }
  0x29   :  { %1678 = vmatprep.subr.bf16.mxu0 %v1737_v0  ;;  %1714 = vmatprep.subr.bf16.mxu1 %v1737_v0 }
  0x2c   :  { %1680 = vmatpush1.bf16.msra.mxu0 %v1679_v35  ;;  %1730 = vmatpush1.bf16.msra.mxu1 %v1679_v35  ;;  %v51_v35 = vld [vmem:[%s3199_s0 + $0x110] sm:$0xff] }
  0x2d   :  { %1681 = vmatprep.subr.bf16.mxu0 %v1737_v0  ;;  %1715 = vmatprep.subr.bf16.mxu1 %v1737_v0 }
  0x30   :  { %1683 = vmatpush1.bf16.msra.mxu0 %v1682_v38  ;;  %1731 = vmatpush1.bf16.msra.mxu1 %v1682_v38  ;;  %v194_v38 = vld [vmem:[%s3199_s0 + $0x588] sm:$0xff] }
  0x31   :  { %1684 = vmatprep.subr.bf16.mxu0 %v1737_v0  ;;  %1716 = vmatprep.subr.bf16.mxu1 %v1737_v0 }
  0x34   :  { %1686 = vmatpush1.bf16.msra.mxu0 %v1685_v41  ;;  %1732 = vmatpush1.bf16.msra.mxu1 %v1685_v41  ;;  %v53_v41 = vld [vmem:[%s3199_s0 + $0x120] sm:$0xff] }
  0x35   :  { %1687 = vmatprep.subr.bf16.mxu0 %v1737_v0  ;;  %1717 = vmatprep.subr.bf16.mxu1 %v1737_v0 }
  0x38   :  { %1689 = vmatpush1.bf16.msra.mxu0 %v1688_v44  ;;  %1733 = vmatpush1.bf16.msra.mxu1 %v1688_v44  ;;  %v201_v44 = vld [vmem:[%s3199_s0 + $0x5c0] sm:$0xff] }
  0x39   :  { %1690 = vmatprep.subr.bf16.mxu0 %v1737_v0  ;;  %1718 = vmatprep.subr.bf16.mxu1 %v1737_v0 }
  0x3c   :  { %1692 = vmatpush1.bf16.msra.mxu0 %v1691_v47  ;;  %1734 = vmatpush1.bf16.msra.mxu1 %v1691_v47  ;;  %v60_v47 = vld [vmem:[%s3199_s0 + $0x158] sm:$0xff] }
  0x3d   :  { %1693 = vmatprep.subr.bf16.mxu0 %v1737_v0  ;;  %1719 = vmatprep.subr.bf16.mxu1 %v1737_v0  ;;  %v168_v0 = vld [vmem:[%s3199_s0 + $0x4b8] sm:$0xff] }
  0x40   :  { %1695 = vmatpush1.bf16.msra.mxu0 %v1694_v52  ;;  %1735 = vmatpush1.bf16.msra.mxu1 %v1694_v52  ;;  %v207_v52 = vld [vmem:[%s3199_s0 + $0x5f0] sm:$0xff] }
  0x41   :  { %1697 = vmatprep.subr.bf16.mxu1 %v1696_v53 }
  0x43   :  { %510 = vmatmul.mubr.f32.vlgmr.msra.gmra.mrb[0].mxu0 %v17_v56  ;;  %750 = vmatmul.mubr.f32.vlgmr.msra.gmra.mrb[0].mxu1 %v161_v57  ;;  %v19_v56 = vld [vmem:[%s3199_s0 + $0x10] sm:$0xff]  ;;  %v65_v57 = vld [vmem:[%s3199_s0 + $0x180] sm:$0xff] }
  0x44   :  { %1699 = vmatpush3.bf16.msra.mxu1 %v1696_v53  ;;  %514 = vmatprep.mubr.f32.mxu0 %v21_v58  ;;  %v62_v53 = vld [vmem:[%s3199_s0 + $0x168] sm:$0xff] }
  0x45   :  { %754 = vmatprep.mubr.f32.mxu1 %v165_v60  ;;  %1701 = vmatprep.subr.bf16.mxu1 %v1700_v59  ;;  %v22_v58 = vld [vmem:[%s3199_s0 + $0x28] sm:$0xff]  ;;  %v25_v60 = vld [vmem:[%s3199_s0 + $0x40] sm:$0xff] }
  0x47   :  { %515 = vmatmul.mubr.f32.gmra.mrb[2].mxu0 %v20_v61  ;;  %755 = vmatmul.mubr.f32.gmra.mrb[2].mxu1 %v164_v62  ;;  %v68_v61 = vld [vmem:[%s3199_s0 + $0x198] sm:$0xff] }
  0x48   :  { %519 = vmatprep.mubr.f32.mxu0 %v24_v63  ;;  %759 = vmatprep.mubr.f32.mxu1 %v168_v0  ;;  %v28_v62 = vld [vmem:[%s3199_s0 + $0x58] sm:$0xff]  ;;  %v31_v0 = vld [vmem:[%s3199_s0 + $0x70] sm:$0xff] }
  0x49   :  { %1703 = vmatpush3.bf16.msra.mxu1 %v1700_v59  ;;  %v69_v59 = vld [vmem:[%s3199_s0 + $0x1a0] sm:$0xff]  ;;  %v72_v63 = vld [vmem:[%s3199_s0 + $0x1b8] sm:$0xff] }
  0x4b   :  { %520 = vmatmul.mubr.f32.gmra.mrb[4].mxu0 %v23_v1  ;;  %760 = vmatmul.mubr.f32.gmra.mrb[4].mxu1 %v167_v2  ;;  %v71_v1 = vld [vmem:[%s3199_s0 + $0x1b0] sm:$0xff]  ;;  %v34_v2 = vld [vmem:[%s3199_s0 + $0x88] sm:$0xff] }
  0x4c   :  { %524 = vmatprep.mubr.f32.mxu0 %v27_v3  ;;  %764 = vmatprep.mubr.f32.mxu1 %v171_v4  ;;  %v75_v3 = vld [vmem:[%s3199_s0 + $0x1d0] sm:$0xff]  ;;  %v37_v4 = vld [vmem:[%s3199_s0 + $0xa0] sm:$0xff] }
  0x4f   :  { %525 = vmatmul.mubr.f32.gmra.mrb[6].mxu0 %v26_v5  ;;  %765 = vmatmul.mubr.f32.gmra.mrb[6].mxu1 %v170_v6  ;;  %v74_v5 = vld [vmem:[%s3199_s0 + $0x1c8] sm:$0xff]  ;;  %v40_v6 = vld [vmem:[%s3199_s0 + $0xb8] sm:$0xff] }
  0x50   :  { %529 = vmatprep.mubr.f32.mxu0 %v30_v7  ;;  %769 = vmatprep.mubr.f32.mxu1 %v174_v8  ;;  %v78_v7 = vld [vmem:[%s3199_s0 + $0x1e8] sm:$0xff]  ;;  %v43_v8 = vld [vmem:[%s3199_s0 + $0xd0] sm:$0xff] }
  0x53   :  { %530 = vmatmul.mubr.f32.gmra.mrb[8].mxu0 %v29_v9  ;;  %770 = vmatmul.mubr.f32.gmra.mrb[8].mxu1 %v173_v10  ;;  %v77_v9 = vld [vmem:[%s3199_s0 + $0x1e0] sm:$0xff]  ;;  %v46_v10 = vld [vmem:[%s3199_s0 + $0xe8] sm:$0xff] }
  0x54   :  { %534 = vmatprep.mubr.f32.mxu0 %v33_v11  ;;  %774 = vmatprep.mubr.f32.mxu1 %v177_v12  ;;  %v81_v11 = vld [vmem:[%s3199_s0 + $0x200] sm:$0xff] }
  0x55   :  { %v49_v12 = vld [vmem:[%s3199_s0 + $0x100] sm:$0xff] }
  0x57   :  { %535 = vmatmul.mubr.f32.gmra.mrb[10].mxu0 %v32_v13  ;;  %775 = vmatmul.mubr.f32.gmra.mrb[10].mxu1 %v176_v14  ;;  %v80_v13 = vld [vmem:[%s3199_s0 + $0x1f8] sm:$0xff] }
  0x58   :  { %539 = vmatprep.mubr.f32.mxu0 %v36_v15  ;;  %779 = vmatprep.mubr.f32.mxu1 %v180_v16  ;;  %v52_v14 = vld [vmem:[%s3199_s0 + $0x118] sm:$0xff]  ;;  %v55_v16 = vld [vmem:[%s3199_s0 + $0x130] sm:$0xff] }
  0x59   :  { %v84_v15 = vld [vmem:[%s3199_s0 + $0x218] sm:$0xff] }
  0x5b   :  { %540 = vmatmul.mubr.f32.gmra.mrb[12].mxu0 %v35_v17  ;;  %780 = vmatmul.mubr.f32.gmra.mrb[12].mxu1 %v179_v18  ;;  %v83_v17 = vld [vmem:[%s3199_s0 + $0x210] sm:$0xff]  ;;  %v58_v18 = vld [vmem:[%s3199_s0 + $0x148] sm:$0xff] }
  0x5c   :  { %544 = vmatprep.mubr.f32.mxu0 %v39_v19  ;;  %784 = vmatprep.mubr.f32.mxu1 %v183_v20  ;;  %v87_v19 = vld [vmem:[%s3199_s0 + $0x230] sm:$0xff]  ;;  %v61_v20 = vld [vmem:[%s3199_s0 + $0x160] sm:$0xff] }
  0x5f   :  { %545 = vmatmul.mubr.f32.gmra.mrb[14].mxu0 %v38_v21  ;;  %785 = vmatmul.mubr.f32.gmra.mrb[14].mxu1 %v182_v22  ;;  %v86_v21 = vld [vmem:[%s3199_s0 + $0x228] sm:$0xff]  ;;  %v64_v22 = vld [vmem:[%s3199_s0 + $0x178] sm:$0xff] }
  0x60   :  { %549 = vmatprep.mubr.f32.mxu0 %v42_v23  ;;  %789 = vmatprep.mubr.f32.mxu1 %v186_v24  ;;  %v90_v23 = vld [vmem:[%s3199_s0 + $0x248] sm:$0xff]  ;;  %v67_v24 = vld [vmem:[%s3199_s0 + $0x190] sm:$0xff] }
  0x63   :  { %550 = vmatmul.mubr.f32.gmra.mrb[16].mxu0 %v41_v25  ;;  %790 = vmatmul.mubr.f32.gmra.mrb[16].mxu1 %v185_v26  ;;  %v89_v25 = vld [vmem:[%s3199_s0 + $0x240] sm:$0xff]  ;;  %v70_v26 = vld [vmem:[%s3199_s0 + $0x1a8] sm:$0xff] }
  0x64   :  { %554 = vmatprep.mubr.f32.mxu0 %v45_v27  ;;  %794 = vmatprep.mubr.f32.mxu1 %v189_v28  ;;  %v93_v27 = vld [vmem:[%s3199_s0 + $0x260] sm:$0xff] }
  0x65   :  { %v73_v28 = vld [vmem:[%s3199_s0 + $0x1c0] sm:$0xff] }
  0x67   :  { %555 = vmatmul.mubr.f32.gmra.mrb[18].mxu0 %v44_v29  ;;  %795 = vmatmul.mubr.f32.gmra.mrb[18].mxu1 %v188_v30  ;;  %v92_v29 = vld [vmem:[%s3199_s0 + $0x258] sm:$0xff] }
  0x68   :  { %559 = vmatprep.mubr.f32.mxu0 %v48_v31  ;;  %799 = vmatprep.mubr.f32.mxu1 %v192_v32  ;;  %v76_v30 = vld [vmem:[%s3199_s0 + $0x1d8] sm:$0xff]  ;;  %v79_v32 = vld [vmem:[%s3199_s0 + $0x1f0] sm:$0xff] }
  0x69   :  { %v96_v31 = vld [vmem:[%s3199_s0 + $0x278] sm:$0xff] }
  0x6b   :  { %560 = vmatmul.mubr.f32.gmra.mrb[20].mxu0 %v47_v33  ;;  %800 = vmatmul.mubr.f32.gmra.mrb[20].mxu1 %v191_v34  ;;  %v95_v33 = vld [vmem:[%s3199_s0 + $0x270] sm:$0xff]  ;;  %v82_v34 = vld [vmem:[%s3199_s0 + $0x208] sm:$0xff] }
  0x6c   :  { %564 = vmatprep.mubr.f32.mxu0 %v51_v35  ;;  %804 = vmatprep.mubr.f32.mxu1 %v195_v36  ;;  %v99_v35 = vld [vmem:[%s3199_s0 + $0x290] sm:$0xff]  ;;  %v85_v36 = vld [vmem:[%s3199_s0 + $0x220] sm:$0xff] }
  0x6f   :  { %565 = vmatmul.mubr.f32.gmra.mrb[22].mxu0 %v50_v37  ;;  %805 = vmatmul.mubr.f32.gmra.mrb[22].mxu1 %v194_v38  ;;  %v98_v37 = vld [vmem:[%s3199_s0 + $0x288] sm:$0xff]  ;;  %v88_v38 = vld [vmem:[%s3199_s0 + $0x238] sm:$0xff] }
  0x70   :  { %569 = vmatprep.mubr.f32.mxu0 %v54_v39  ;;  %809 = vmatprep.mubr.f32.mxu1 %v198_v40  ;;  %v102_v39 = vld [vmem:[%s3199_s0 + $0x2a8] sm:$0xff]  ;;  %v91_v40 = vld [vmem:[%s3199_s0 + $0x250] sm:$0xff] }
  0x73   :  { %570 = vmatmul.mubr.f32.gmra.mrb[24].mxu0 %v53_v41  ;;  %810 = vmatmul.mubr.f32.gmra.mrb[24].mxu1 %v197_v42  ;;  %v101_v41 = vld [vmem:[%s3199_s0 + $0x2a0] sm:$0xff]  ;;  %v94_v42 = vld [vmem:[%s3199_s0 + $0x268] sm:$0xff] }
  0x74   :  { %574 = vmatprep.mubr.f32.mxu0 %v57_v43  ;;  %814 = vmatprep.mubr.f32.mxu1 %v201_v44  ;;  %v105_v43 = vld [vmem:[%s3199_s0 + $0x2c0] sm:$0xff] }
  0x75   :  { %v97_v44 = vld [vmem:[%s3199_s0 + $0x280] sm:$0xff] }
  0x77   :  { %575 = vmatmul.mubr.f32.gmra.mrb[26].mxu0 %v56_v45  ;;  %815 = vmatmul.mubr.f32.gmra.mrb[26].mxu1 %v200_v46  ;;  %v104_v45 = vld [vmem:[%s3199_s0 + $0x2b8] sm:$0xff] }
  0x78   :  { %579 = vmatprep.mubr.f32.mxu0 %v60_v47  ;;  %819 = vmatprep.mubr.f32.mxu1 %v204_v48  ;;  %v100_v46 = vld [vmem:[%s3199_s0 + $0x298] sm:$0xff]  ;;  %v103_v48 = vld [vmem:[%s3199_s0 + $0x2b0] sm:$0xff] }
  0x79   :  { %v108_v47 = vld [vmem:[%s3199_s0 + $0x2d8] sm:$0xff] }
  0x7b   :  { %580 = vmatmul.mubr.f32.gmra.mrb[28].mxu0 %v59_v49  ;;  %820 = vmatmul.mubr.f32.gmra.mrb[28].mxu1 %v203_v50  ;;  %v107_v49 = vld [vmem:[%s3199_s0 + $0x2d0] sm:$0xff]  ;;  %v106_v50 = vld [vmem:[%s3199_s0 + $0x2c8] sm:$0xff] }
  0x7c   :  { %584 = vmatprep.mubr.f32.mxu0 %v63_v51  ;;  %824 = vmatprep.mubr.f32.mxu1 %v207_v52  ;;  %v111_v51 = vld [vmem:[%s3199_s0 + $0x2f0] sm:$0xff]  ;;  %v109_v52 = vld [vmem:[%s3199_s0 + $0x2e0] sm:$0xff] }
  0x7f   :  { %585 = vmatmul.mubr.f32.gmra.mrb[30].mxu0 %v62_v53  ;;  %825 = vmatmul.mubr.f32.gmra.mrb[30].mxu1 %v206_v54  ;;  %v110_v53 = vld [vmem:[%s3199_s0 + $0x2e8] sm:$0xff]  ;;  %v112_v54 = vld [vmem:[%s3199_s0 + $0x2f8] sm:$0xff] }
  0x80   :  { %589 = vmatprep.mubr.f32.mxu0 %v66_v55  ;;  %1552 = vmatprep.mubr.msk.f32.mxu1 %vm252_vm0, %v19_v56  ;;  %v114_v55 = vld [vmem:[%s3199_s0 + $0x308] sm:$0xff]  ;;  %v115_v56 = vld [vmem:[%s3199_s0 + $0x310] sm:$0xff] }
  0x83   :  { %590 = vmatmul.mubr.f32.gmra.mrb[32].mxu0 %v65_v57  ;;  %1553 = vmatmul.mubr.msk.f32.vlgmr.msra.gmra.mrb[32].mxu1 %vm252_vm0, %v22_v58  ;;  %v113_v57 = vld [vmem:[%s3199_s0 + $0x300] sm:$0xff]  ;;  %v118_v58 = vld [vmem:[%s3199_s0 + $0x328] sm:$0xff] }
  0x84   :  { %594 = vmatprep.mubr.f32.mxu0 %v69_v59  ;;  %1555 = vmatprep.mubr.msk.f32.mxu1 %vm252_vm0, %v25_v60  ;;  %v117_v59 = vld [vmem:[%s3199_s0 + $0x320] sm:$0xff] }
  0x85   :  { %v121_v60 = vld [vmem:[%s3199_s0 + $0x340] sm:$0xff] }
  0x87   :  { %595 = vmatmul.mubr.f32.gmra.mrb[34].mxu0 %v68_v61  ;;  %1556 = vmatmul.mubr.msk.f32.gmra.mrb[34].mxu1 %vm252_vm0, %v28_v62  ;;  %v116_v61 = vld [vmem:[%s3199_s0 + $0x318] sm:$0xff] }
  0x88   :  { %599 = vmatprep.mubr.f32.mxu0 %v72_v63  ;;  %1558 = vmatprep.mubr.msk.f32.mxu1 %vm252_vm0, %v31_v0  ;;  %v124_v62 = vld [vmem:[%s3199_s0 + $0x358] sm:$0xff]  ;;  %v127_v0 = vld [vmem:[%s3199_s0 + $0x370] sm:$0xff] }
  0x89   :  { %v120_v63 = vld [vmem:[%s3199_s0 + $0x338] sm:$0xff] }
  0x8b   :  { %600 = vmatmul.mubr.f32.gmra.mrb[36].mxu0 %v71_v1  ;;  %1559 = vmatmul.mubr.msk.f32.gmra.mrb[36].mxu1 %vm252_vm0, %v34_v2  ;;  %v119_v1 = vld [vmem:[%s3199_s0 + $0x330] sm:$0xff]  ;;  %v130_v2 = vld [vmem:[%s3199_s0 + $0x388] sm:$0xff] }
  0x8c   :  { %604 = vmatprep.mubr.f32.mxu0 %v75_v3  ;;  %1561 = vmatprep.mubr.msk.f32.mxu1 %vm252_vm0, %v37_v4  ;;  %v123_v3 = vld [vmem:[%s3199_s0 + $0x350] sm:$0xff]  ;;  %v133_v4 = vld [vmem:[%s3199_s0 + $0x3a0] sm:$0xff] }
  0x8f   :  { %605 = vmatmul.mubr.f32.gmra.mrb[38].mxu0 %v74_v5  ;;  %1562 = vmatmul.mubr.msk.f32.gmra.mrb[38].mxu1 %vm252_vm0, %v40_v6  ;;  %v122_v5 = vld [vmem:[%s3199_s0 + $0x348] sm:$0xff]  ;;  %v136_v6 = vld [vmem:[%s3199_s0 + $0x3b8] sm:$0xff] }
  0x90   :  { %609 = vmatprep.mubr.f32.mxu0 %v78_v7  ;;  %1564 = vmatprep.mubr.msk.f32.mxu1 %vm252_vm0, %v43_v8  ;;  %v126_v7 = vld [vmem:[%s3199_s0 + $0x368] sm:$0xff]  ;;  %v139_v8 = vld [vmem:[%s3199_s0 + $0x3d0] sm:$0xff] }
  0x93   :  { %610 = vmatmul.mubr.f32.gmra.mrb[40].mxu0 %v77_v9  ;;  %1565 = vmatmul.mubr.msk.f32.gmra.mrb[40].mxu1 %vm252_vm0, %v46_v10  ;;  %v125_v9 = vld [vmem:[%s3199_s0 + $0x360] sm:$0xff]  ;;  %v142_v10 = vld [vmem:[%s3199_s0 + $0x3e8] sm:$0xff] }
  0x94   :  { %614 = vmatprep.mubr.f32.mxu0 %v81_v11  ;;  %1567 = vmatprep.mubr.msk.f32.mxu1 %vm252_vm0, %v49_v12  ;;  %v129_v11 = vld [vmem:[%s3199_s0 + $0x380] sm:$0xff] }
  0x95   :  { %v145_v12 = vld [vmem:[%s3199_s0 + $0x400] sm:$0xff] }
  0x97   :  { %615 = vmatmul.mubr.f32.gmra.mrb[42].mxu0 %v80_v13  ;;  %1568 = vmatmul.mubr.msk.f32.gmra.mrb[42].mxu1 %vm252_vm0, %v52_v14  ;;  %v128_v13 = vld [vmem:[%s3199_s0 + $0x378] sm:$0xff] }
  0x98   :  { %619 = vmatprep.mubr.f32.mxu0 %v84_v15  ;;  %1570 = vmatprep.mubr.msk.f32.mxu1 %vm252_vm0, %v55_v16  ;;  %v148_v14 = vld [vmem:[%s3199_s0 + $0x418] sm:$0xff]  ;;  %v151_v16 = vld [vmem:[%s3199_s0 + $0x430] sm:$0xff] }
  0x99   :  { %v132_v15 = vld [vmem:[%s3199_s0 + $0x398] sm:$0xff] }
  0x9b   :  { %620 = vmatmul.mubr.f32.gmra.mrb[44].mxu0 %v83_v17  ;;  %1571 = vmatmul.mubr.msk.f32.gmra.mrb[44].mxu1 %vm252_vm0, %v58_v18  ;;  %v131_v17 = vld [vmem:[%s3199_s0 + $0x390] sm:$0xff]  ;;  %v154_v18 = vld [vmem:[%s3199_s0 + $0x448] sm:$0xff] }
  0x9c   :  { %624 = vmatprep.mubr.f32.mxu0 %v87_v19  ;;  %1573 = vmatprep.mubr.msk.f32.mxu1 %vm252_vm0, %v61_v20  ;;  %v135_v19 = vld [vmem:[%s3199_s0 + $0x3b0] sm:$0xff]  ;;  %v157_v20 = vld [vmem:[%s3199_s0 + $0x460] sm:$0xff] }
  0x9f   :  { %625 = vmatmul.mubr.f32.gmra.mrb[46].mxu0 %v86_v21  ;;  %1574 = vmatmul.mubr.msk.f32.gmra.mrb[46].mxu1 %vm252_vm0, %v64_v22  ;;  %v134_v21 = vld [vmem:[%s3199_s0 + $0x3a8] sm:$0xff]  ;;  %v160_v22 = vld [vmem:[%s3199_s0 + $0x478] sm:$0xff] }
  0xa0   :  { %629 = vmatprep.mubr.f32.mxu0 %v90_v23  ;;  %1576 = vmatprep.mubr.msk.f32.mxu1 %vm252_vm0, %v67_v24  ;;  %v138_v23 = vld [vmem:[%s3199_s0 + $0x3c8] sm:$0xff]  ;;  %v163_v24 = vld [vmem:[%s3199_s0 + $0x490] sm:$0xff] }
  0xa3   :  { %630 = vmatmul.mubr.f32.gmra.mrb[48].mxu0 %v89_v25  ;;  %1577 = vmatmul.mubr.msk.f32.gmra.mrb[48].mxu1 %vm252_vm0, %v70_v26  ;;  %v137_v25 = vld [vmem:[%s3199_s0 + $0x3c0] sm:$0xff]  ;;  %v166_v26 = vld [vmem:[%s3199_s0 + $0x4a8] sm:$0xff] }
  0xa4   :  { %634 = vmatprep.mubr.f32.mxu0 %v93_v27  ;;  %1579 = vmatprep.mubr.msk.f32.mxu1 %vm252_vm0, %v73_v28  ;;  %v141_v27 = vld [vmem:[%s3199_s0 + $0x3e0] sm:$0xff] }
  0xa5   :  { %v169_v28 = vld [vmem:[%s3199_s0 + $0x4c0] sm:$0xff] }
  0xa7   :  { %635 = vmatmul.mubr.f32.gmra.mrb[50].mxu0 %v92_v29  ;;  %1580 = vmatmul.mubr.msk.f32.gmra.mrb[50].mxu1 %vm252_vm0, %v76_v30  ;;  %v140_v29 = vld [vmem:[%s3199_s0 + $0x3d8] sm:$0xff] }
  0xa8   :  { %639 = vmatprep.mubr.f32.mxu0 %v96_v31  ;;  %1582 = vmatprep.mubr.msk.f32.mxu1 %vm252_vm0, %v79_v32  ;;  %v172_v30 = vld [vmem:[%s3199_s0 + $0x4d8] sm:$0xff]  ;;  %v175_v32 = vld [vmem:[%s3199_s0 + $0x4f0] sm:$0xff] }
  0xa9   :  { %v144_v31 = vld [vmem:[%s3199_s0 + $0x3f8] sm:$0xff] }
  0xab   :  { %640 = vmatmul.mubr.f32.gmra.mrb[52].mxu0 %v95_v33  ;;  %1583 = vmatmul.mubr.msk.f32.gmra.mrb[52].mxu1 %vm252_vm0, %v82_v34  ;;  %v143_v33 = vld [vmem:[%s3199_s0 + $0x3f0] sm:$0xff]  ;;  %v178_v34 = vld [vmem:[%s3199_s0 + $0x508] sm:$0xff] }
  0xac   :  { %644 = vmatprep.mubr.f32.mxu0 %v99_v35  ;;  %1585 = vmatprep.mubr.msk.f32.mxu1 %vm252_vm0, %v85_v36  ;;  %v147_v35 = vld [vmem:[%s3199_s0 + $0x410] sm:$0xff]  ;;  %v181_v36 = vld [vmem:[%s3199_s0 + $0x520] sm:$0xff] }
  0xaf   :  { %645 = vmatmul.mubr.f32.gmra.mrb[54].mxu0 %v98_v37  ;;  %1586 = vmatmul.mubr.msk.f32.gmra.mrb[54].mxu1 %vm252_vm0, %v88_v38  ;;  %v146_v37 = vld [vmem:[%s3199_s0 + $0x408] sm:$0xff]  ;;  %v184_v38 = vld [vmem:[%s3199_s0 + $0x538] sm:$0xff] }
  0xb0   :  { %649 = vmatprep.mubr.f32.mxu0 %v102_v39  ;;  %1588 = vmatprep.mubr.msk.f32.mxu1 %vm252_vm0, %v91_v40  ;;  %v150_v39 = vld [vmem:[%s3199_s0 + $0x428] sm:$0xff]  ;;  %v187_v40 = vld [vmem:[%s3199_s0 + $0x550] sm:$0xff] }
  0xb3   :  { %650 = vmatmul.mubr.f32.gmra.mrb[56].mxu0 %v101_v41  ;;  %1589 = vmatmul.mubr.msk.f32.gmra.mrb[56].mxu1 %vm252_vm0, %v94_v42  ;;  %v149_v41 = vld [vmem:[%s3199_s0 + $0x420] sm:$0xff]  ;;  %v190_v42 = vld [vmem:[%s3199_s0 + $0x568] sm:$0xff] }
  0xb4   :  { %654 = vmatprep.mubr.f32.mxu0 %v105_v43  ;;  %1591 = vmatprep.mubr.msk.f32.mxu1 %vm252_vm0, %v97_v44  ;;  %v153_v43 = vld [vmem:[%s3199_s0 + $0x440] sm:$0xff] }
  0xb5   :  { %v193_v44 = vld [vmem:[%s3199_s0 + $0x580] sm:$0xff] }
  0xb7   :  { %655 = vmatmul.mubr.f32.gmra.mrb[58].mxu0 %v104_v45  ;;  %1592 = vmatmul.mubr.msk.f32.gmra.mrb[58].mxu1 %vm252_vm0, %v100_v46  ;;  %v152_v45 = vld [vmem:[%s3199_s0 + $0x438] sm:$0xff] }
  0xb8   :  { %659 = vmatprep.mubr.f32.mxu0 %v108_v47  ;;  %1594 = vmatprep.mubr.msk.f32.mxu1 %vm252_vm0, %v103_v48  ;;  %v196_v46 = vld [vmem:[%s3199_s0 + $0x598] sm:$0xff]  ;;  %v199_v48 = vld [vmem:[%s3199_s0 + $0x5b0] sm:$0xff] }
  0xb9   :  { %v156_v47 = vld [vmem:[%s3199_s0 + $0x458] sm:$0xff] }
  0xbb   :  { %660 = vmatmul.mubr.f32.gmra.mrb[60].mxu0 %v107_v49  ;;  %1595 = vmatmul.mubr.msk.f32.gmra.mrb[60].mxu1 %vm252_vm0, %v106_v50  ;;  %v155_v49 = vld [vmem:[%s3199_s0 + $0x450] sm:$0xff]  ;;  %v202_v50 = vld [vmem:[%s3199_s0 + $0x5c8] sm:$0xff] }
  0xbc   :  { %664 = vmatprep.mubr.f32.mxu0 %v111_v51  ;;  %1597 = vmatprep.mubr.msk.f32.mxu1 %vm252_vm0, %v109_v52  ;;  %v159_v51 = vld [vmem:[%s3199_s0 + $0x470] sm:$0xff]  ;;  %v205_v52 = vld [vmem:[%s3199_s0 + $0x5e0] sm:$0xff] }
  0xbf   :  { %665 = vmatmul.mubr.f32.gmra.mrb[62].mxu0 %v110_v53  ;;  %1598 = vmatmul.mubr.msk.f32.gmra.mrb[62].mxu1 %vm252_vm0, %v112_v54  ;;  %v158_v53 = vld [vmem:[%s3199_s0 + $0x468] sm:$0xff]  ;;  %v208_v54 = vld [vmem:[%s3199_s0 + $0x5f8] sm:$0xff] }
  0xc0   :  { %669 = vmatprep.mubr.f32.mxu0 %v114_v55  ;;  %1600 = vmatprep.mubr.msk.f32.mxu1 %vm252_vm0, %v115_v56 }
  0xc3   :  { %670 = vmatmul.mubr.f32.gmra.mrb[64].mxu0 %v113_v57  ;;  %1601 = vmatmul.mubr.msk.f32.gmra.mrb[64].mxu1 %vm252_vm0, %v118_v58 }
  0xc4   :  { %674 = vmatprep.mubr.f32.mxu0 %v117_v59  ;;  %1603 = vmatprep.mubr.msk.f32.mxu1 %vm252_vm0, %v121_v60 }
  0xc7   :  { %675 = vmatmul.mubr.f32.gmra.mrb[66].mxu0 %v116_v61  ;;  %1604 = vmatmul.mubr.msk.f32.gmra.mrb[66].mxu1 %vm252_vm0, %v124_v62 }
  0xc8   :  { %679 = vmatprep.mubr.f32.mxu0 %v120_v63  ;;  %1606 = vmatprep.mubr.msk.f32.mxu1 %vm252_vm0, %v127_v0 }
  0xcb   :  { %680 = vmatmul.mubr.f32.gmra.mrb[68].mxu0 %v119_v1  ;;  %1607 = vmatmul.mubr.msk.f32.gmra.mrb[68].mxu1 %vm252_vm0, %v130_v2 }
  0xcc   :  { %684 = vmatprep.mubr.f32.mxu0 %v123_v3  ;;  %1609 = vmatprep.mubr.msk.f32.mxu1 %vm252_vm0, %v133_v4 }
  0xcf   :  { %685 = vmatmul.mubr.f32.gmra.mrb[70].mxu0 %v122_v5  ;;  %1610 = vmatmul.mubr.msk.f32.gmra.mrb[70].mxu1 %vm252_vm0, %v136_v6 }
  0xd0   :  { %689 = vmatprep.mubr.f32.mxu0 %v126_v7  ;;  %1612 = vmatprep.mubr.msk.f32.mxu1 %vm252_vm0, %v139_v8 }
  0xd3   :  { %690 = vmatmul.mubr.f32.gmra.mrb[72].mxu0 %v125_v9  ;;  %1613 = vmatmul.mubr.msk.f32.gmra.mrb[72].mxu1 %vm252_vm0, %v142_v10 }
  0xd4   :  { %694 = vmatprep.mubr.f32.mxu0 %v129_v11  ;;  %1615 = vmatprep.mubr.msk.f32.mxu1 %vm252_vm0, %v145_v12 }
  0xd7   :  { %695 = vmatmul.mubr.f32.gmra.mrb[74].mxu0 %v128_v13  ;;  %1616 = vmatmul.mubr.msk.f32.gmra.mrb[74].mxu1 %vm252_vm0, %v148_v14 }
  0xd8   :  { %699 = vmatprep.mubr.f32.mxu0 %v132_v15  ;;  %1618 = vmatprep.mubr.msk.f32.mxu1 %vm252_vm0, %v151_v16 }
  0xdb   :  { %700 = vmatmul.mubr.f32.gmra.mrb[76].mxu0 %v131_v17  ;;  %1619 = vmatmul.mubr.msk.f32.gmra.mrb[76].mxu1 %vm252_vm0, %v154_v18 }
  0xdc   :  { %704 = vmatprep.mubr.f32.mxu0 %v135_v19  ;;  %1621 = vmatprep.mubr.msk.f32.mxu1 %vm252_vm0, %v157_v20 }
  0xdf   :  { %705 = vmatmul.mubr.f32.gmra.mrb[78].mxu0 %v134_v21  ;;  %1622 = vmatmul.mubr.msk.f32.gmra.mrb[78].mxu1 %vm252_vm0, %v160_v22 }
  0xe0   :  { %709 = vmatprep.mubr.f32.mxu0 %v138_v23  ;;  %1624 = vmatprep.mubr.msk.f32.mxu1 %vm252_vm0, %v163_v24 }
  0xe3   :  { %710 = vmatmul.mubr.f32.gmra.mrb[80].mxu0 %v137_v25  ;;  %1625 = vmatmul.mubr.msk.f32.gmra.mrb[80].mxu1 %vm252_vm0, %v166_v26 }
  0xe4   :  { %714 = vmatprep.mubr.f32.mxu0 %v141_v27  ;;  %1627 = vmatprep.mubr.msk.f32.mxu1 %vm252_vm0, %v169_v28 }
  0xe7   :  { %715 = vmatmul.mubr.f32.gmra.mrb[82].mxu0 %v140_v29  ;;  %1628 = vmatmul.mubr.msk.f32.gmra.mrb[82].mxu1 %vm252_vm0, %v172_v30 }
  0xe8   :  { %719 = vmatprep.mubr.f32.mxu0 %v144_v31  ;;  %1630 = vmatprep.mubr.msk.f32.mxu1 %vm252_vm0, %v175_v32 }
  0xeb   :  { %720 = vmatmul.mubr.f32.gmra.mrb[84].mxu0 %v143_v33  ;;  %1631 = vmatmul.mubr.msk.f32.gmra.mrb[84].mxu1 %vm252_vm0, %v178_v34 }
  0xec   :  { %724 = vmatprep.mubr.f32.mxu0 %v147_v35  ;;  %1633 = vmatprep.mubr.msk.f32.mxu1 %vm252_vm0, %v181_v36 }
  0xef   :  { %725 = vmatmul.mubr.f32.gmra.mrb[86].mxu0 %v146_v37  ;;  %1634 = vmatmul.mubr.msk.f32.gmra.mrb[86].mxu1 %vm252_vm0, %v184_v38 }
  0xf0   :  { %729 = vmatprep.mubr.f32.mxu0 %v150_v39  ;;  %1636 = vmatprep.mubr.msk.f32.mxu1 %vm252_vm0, %v187_v40 }
  0xf3   :  { %730 = vmatmul.mubr.f32.gmra.mrb[88].mxu0 %v149_v41  ;;  %1637 = vmatmul.mubr.msk.f32.gmra.mrb[88].mxu1 %vm252_vm0, %v190_v42 }
  0xf4   :  { %734 = vmatprep.mubr.f32.mxu0 %v153_v43  ;;  %1639 = vmatprep.mubr.msk.f32.mxu1 %vm252_vm0, %v193_v44 }
  0xf7   :  { %735 = vmatmul.mubr.f32.gmra.mrb[90].mxu0 %v152_v45  ;;  %1640 = vmatmul.mubr.msk.f32.gmra.mrb[90].mxu1 %vm252_vm0, %v196_v46 }
  0xf8   :  { %739 = vmatprep.mubr.f32.mxu0 %v156_v47  ;;  %1642 = vmatprep.mubr.msk.f32.mxu1 %vm252_vm0, %v199_v48 }
  0xfb   :  { %740 = vmatmul.mubr.f32.gmra.mrb[92].mxu0 %v155_v49  ;;  %1643 = vmatmul.mubr.msk.f32.gmra.mrb[92].mxu1 %vm252_vm0, %v202_v50 }
  0xfc   :  { %744 = vmatprep.mubr.f32.mxu0 %v159_v51  ;;  %1645 = vmatprep.mubr.msk.f32.mxu1 %vm252_vm0, %v205_v52 }
  0xff   :  { %745 = vmatmul.mubr.f32.gmra.mrb[94].mxu0 %v158_v53  ;;  %1646 = vmatmul.mubr.msk.f32.gmra.mrb[94].mxu1 %vm252_vm0, %v208_v54  ;;  %v2610_v53 = vld [vmem:[%s3200_s2] ss:$0 sm:$0xff] }
 0x116   :  { %v2543_v55 = vpop.f32.mrb[0].mxu0  ;;  %v2545_v56 = vpop.f32.mrb[0].mxu1 }
 0x117   :  { %v513_v57 = vpop.f32.mrb[1].mxu0  ;;  %v753_v58 = vpop.f32.mrb[1].mxu1 }
 0x11a   :  { %v2547_v59 = vpop.f32.mrb[2].mxu0  ;;  %v2549_v60 = vpop.f32.mrb[2].mxu1 }
 0x11b   :  { %v518_v61 = vpop.f32.mrb[3].mxu0  ;;  %v758_v62 = vpop.f32.mrb[3].mxu1  ;;  %v517_v58 = vadd.f32 %v2610_v53, %v2547_v59 }
 0x11c   :  { %v512_v61 = vadd.f32 %v2610_v53, %v2543_v55 }
 0x11e   :  { %v2551_v63 = vpop.f32.mrb[4].mxu0  ;;  %v2553_v0 = vpop.f32.mrb[4].mxu1 }
 0x11f   :  { %v523_v1 = vpop.f32.mrb[5].mxu0  ;;  %v763_v2 = vpop.f32.mrb[5].mxu1  ;;  %v522_v55 = vadd.f32 %v2610_v53, %v2551_v63  ;;  %v1217_v63 = vld [vmem:[%s3201_s3 + $0x10] sm:$0xff] }
 0x120   :  { %v1216_v2 = vld [vmem:[%s3201_s3 + $0x8] sm:$0xff] }
 0x122   :  { %v2555_v3 = vpop.f32.mrb[6].mxu0  ;;  %v2557_v4 = vpop.f32.mrb[6].mxu1 }
 0x123   :  { %v528_v5 = vpop.f32.mrb[7].mxu0  ;;  %v768_v6 = vpop.f32.mrb[7].mxu1  ;;  %v527_v59 = vadd.f32 %v2610_v53, %v2555_v3 }
 0x126   :  { %v2559_v7 = vpop.f32.mrb[8].mxu0  ;;  %v2561_v8 = vpop.f32.mrb[8].mxu1 }
 0x127   :  { %v533_v9 = vpop.f32.mrb[9].mxu0  ;;  %v773_v10 = vpop.f32.mrb[9].mxu1 }
 0x128   :  { %v1215_v10 = vld [vmem:[%s3201_s3] sm:$0xff] }
 0x12a   :  { %v2563_v11 = vpop.f32.mrb[10].mxu0  ;;  %v2565_v12 = vpop.f32.mrb[10].mxu1 }
 0x12b   :  { %v538_v13 = vpop.f32.mrb[11].mxu0  ;;  %v778_v14 = vpop.f32.mrb[11].mxu1 }
 0x12e   :  { %v2567_v15 = vpop.f32.mrb[12].mxu0  ;;  %v2569_v16 = vpop.f32.mrb[12].mxu1 }
 0x12f   :  { %v543_v17 = vpop.f32.mrb[13].mxu0  ;;  %v783_v18 = vpop.f32.mrb[13].mxu1 }
 0x132   :  { %v2571_v19 = vpop.f32.mrb[14].mxu0  ;;  %v2573_v20 = vpop.f32.mrb[14].mxu1 }
 0x133   :  { %v548_v21 = vpop.f32.mrb[15].mxu0  ;;  %v788_v22 = vpop.f32.mrb[15].mxu1 }
 0x134   :  { %v1218_v22 = vld [vmem:[%s3201_s3 + $0x18] sm:$0xff] }
 0x136   :  { %v2575_v23 = vpop.f32.mrb[16].mxu0  ;;  %v2577_v24 = vpop.f32.mrb[16].mxu1 }
 0x137   :  { %v553_v25 = vpop.f32.mrb[17].mxu0  ;;  %v793_v26 = vpop.f32.mrb[17].mxu1 }
 0x13a   :  { %v2579_v27 = vpop.f32.mrb[18].mxu0  ;;  %v2581_v28 = vpop.f32.mrb[18].mxu1 }
 0x13b   :  { %v558_v29 = vpop.f32.mrb[19].mxu0  ;;  %v798_v30 = vpop.f32.mrb[19].mxu1 }
 0x13c   :  { %v537_v30 = vadd.f32 %v2610_v53, %v2563_v11 }
 0x13e   :  { %v2583_v31 = vpop.f32.mrb[20].mxu0  ;;  %v2585_v32 = vpop.f32.mrb[20].mxu1 }
 0x13f   :  { %v563_v33 = vpop.f32.mrb[21].mxu0  ;;  %v803_v34 = vpop.f32.mrb[21].mxu1 }
 0x140   :  { %v532_v34 = vadd.f32 %v2610_v53, %v2559_v7  ;;  %v1219_v7 = vld [vmem:[%s3201_s3 + $0x20] sm:$0xff] }
 0x142   :  { %v2587_v35 = vpop.f32.mrb[22].mxu0  ;;  %v2589_v36 = vpop.f32.mrb[22].mxu1 }
 0x143   :  { %v568_v37 = vpop.f32.mrb[23].mxu0  ;;  %v808_v38 = vpop.f32.mrb[23].mxu1 }
 0x146   :  { %v2591_v39 = vpop.f32.mrb[24].mxu0  ;;  %v2593_v40 = vpop.f32.mrb[24].mxu1 }
 0x147   :  { %v573_v41 = vpop.f32.mrb[25].mxu0  ;;  %v813_v42 = vpop.f32.mrb[25].mxu1 }
 0x148   :  { %v1220_v42 = vld [vmem:[%s3201_s3 + $0x28] sm:$0xff] }
 0x14a   :  { %v2595_v43 = vpop.f32.mrb[26].mxu0  ;;  %v2597_v44 = vpop.f32.mrb[26].mxu1 }
 0x14b   :  { %v578_v45 = vpop.f32.mrb[27].mxu0  ;;  %v818_v46 = vpop.f32.mrb[27].mxu1 }
 0x14e   :  { %v2599_v47 = vpop.f32.mrb[28].mxu0  ;;  %v2601_v48 = vpop.f32.mrb[28].mxu1 }
 0x14f   :  { %v583_v49 = vpop.f32.mrb[29].mxu0  ;;  %v823_v50 = vpop.f32.mrb[29].mxu1 }
 0x150   :  { %v547_v50 = vadd.f32 %v2610_v53, %v2571_v19 }
 0x152   :  { %v2603_v51 = vpop.f32.mrb[30].mxu0  ;;  %v2605_v52 = vpop.f32.mrb[30].mxu1 }
 0x153   :  { %v588_v54 = vpop.f32.mrb[31].mxu0  ;;  %v828_v57 = vpop.f32.mrb[31].mxu1 }
 0x154   :  { %v542_v57 = vadd.f32 %v2610_v53, %v2567_v15  ;;  %v1221_v15 = vld [vmem:[%s3201_s3 + $0x30] sm:$0xff] }
 0x156   :  { %v2616_v62 = vpop.f32.mrb[32].mxu0  ;;  %v1554_v1 = vpop.f32.mrb[32].mxu1 }
 0x157   :  { %v902_v5 = vadd.f32 %v1554_v1, %v517_v58  ;;  %v593_v6 = vpop.f32.mrb[33].mxu0  ;;  %v896_v9 = vpop.f32.mrb[33].mxu1 }
 0x158   :  { %v897_v13 = vadd.f32 %v896_v9, %v512_v61 }
 0x159   :  { %v1280_v14 = vadd.f32 %v1216_v2, %v902_v5  ;;  %v1222_v2 = vld [vmem:[%s3201_s3 + $0x38] sm:$0xff] }
 0x15a   :  { %v1279_v17 = vadd.f32 %v1215_v10, %v897_v13  ;;  %v2628_v18 = vpop.f32.mrb[34].mxu0  ;;  %v1557_v21 = vpop.f32.mrb[34].mxu1  ;;  %v557_v10 = vadd.f32 %v2610_v53, %v2579_v27 }
 0x15b   :  { %1344 = vst.msk [vmem:[%s3202_s4 + $0x8] sm:$0xff] %vm252_vm0, %v1280_v14  ;;  %v912_v25 = vadd.f32 %v1557_v21, %v527_v59  ;;  %v598_v26 = vpop.f32.mrb[35].mxu0  ;;  %v906_v3 = vpop.f32.mrb[35].mxu1  ;;  %v552_v59 = vadd.f32 %v2610_v53, %v2575_v23  ;;  %v1224_v21 = vld [vmem:[%s3201_s3 + $0x48] sm:$0xff]  ;;  %v1223_v23 = vld [vmem:[%s3201_s3 + $0x40] sm:$0xff] }
 0x15c   :  { %1343 = vst.msk [vmem:[%s3202_s4] sm:$0xff] %vm252_vm0, %v1279_v17  ;;  %v907_v29 = vadd.f32 %v906_v3, %v522_v55  ;;  %v567_v3 = vadd.f32 %v2610_v53, %v2587_v35 }
 0x15d   :  { %v1282_v33 = vadd.f32 %v1218_v22, %v912_v25 }
 0x15e   :  { %v1281_v37 = vadd.f32 %v1217_v63, %v907_v29  ;;  %v2648_v38 = vpop.f32.mrb[36].mxu0  ;;  %v1560_v41 = vpop.f32.mrb[36].mxu1  ;;  %v562_v29 = vadd.f32 %v2610_v53, %v2583_v31  ;;  %v1225_v31 = vld [vmem:[%s3201_s3 + $0x50] sm:$0xff] }
 0x15f   :  { %1346 = vst.msk [vmem:[%s3202_s4 + $0x18] sm:$0xff] %vm252_vm0, %v1282_v33  ;;  %v922_v45 = vadd.f32 %v1560_v41, %v537_v30  ;;  %v603_v46 = vpop.f32.mrb[37].mxu0  ;;  %v916_v11 = vpop.f32.mrb[37].mxu1 }
 0x160   :  { %1345 = vst.msk [vmem:[%s3202_s4 + $0x10] sm:$0xff] %vm252_vm0, %v1281_v37  ;;  %v917_v49 = vadd.f32 %v916_v11, %v532_v34  ;;  %v1226_v37 = vld [vmem:[%s3201_s3 + $0x58] sm:$0xff]  ;;  %v577_v46 = vadd.f32 %v2610_v53, %v2595_v43 }
 0x161   :  { %v1284_v54 = vadd.f32 %v1220_v42, %v922_v45 }
 0x162   :  { %v1283_v58 = vadd.f32 %v1219_v7, %v917_v49  ;;  %v2668_v61 = vpop.f32.mrb[38].mxu0  ;;  %v1563_v1 = vpop.f32.mrb[38].mxu1  ;;  %v572_v7 = vadd.f32 %v2610_v53, %v2591_v39  ;;  %v1227_v39 = vld [vmem:[%s3201_s3 + $0x60] sm:$0xff] }
 0x163   :  { %1348 = vst.msk [vmem:[%s3202_s4 + $0x28] sm:$0xff] %vm252_vm0, %v1284_v54  ;;  %v932_v5 = vadd.f32 %v1563_v1, %v547_v50  ;;  %v608_v6 = vpop.f32.mrb[39].mxu0  ;;  %v926_v19 = vpop.f32.mrb[39].mxu1 }
 0x164   :  { %1347 = vst.msk [vmem:[%s3202_s4 + $0x20] sm:$0xff] %vm252_vm0, %v1283_v58  ;;  %v927_v9 = vadd.f32 %v926_v19, %v542_v57  ;;  %v1228_v57 = vld [vmem:[%s3201_s3 + $0x68] sm:$0xff]  ;;  %v582_v19 = vadd.f32 %v2610_v53, %v2599_v47 }
 0x165   :  { %v1286_v13 = vadd.f32 %v1222_v2, %v932_v5  ;;  %v587_v5 = vadd.f32 %v2610_v53, %v2603_v51  ;;  %v1229_v51 = vld [vmem:[%s3201_s3 + $0x70] sm:$0xff] }
 0x166   :  { %v1285_v14 = vadd.f32 %v1221_v15, %v927_v9  ;;  %v2688_v55 = vpop.f32.mrb[40].mxu0  ;;  %v1566_v17 = vpop.f32.mrb[40].mxu1 }
 0x167   :  { %1350 = vst.msk [vmem:[%s3202_s4 + $0x38] sm:$0xff] %vm252_vm0, %v1286_v13  ;;  %v942_v22 = vadd.f32 %v1566_v17, %v557_v10  ;;  %v613_v25 = vpop.f32.mrb[41].mxu0  ;;  %v936_v27 = vpop.f32.mrb[41].mxu1  ;;  %v1230_v13 = vld [vmem:[%s3201_s3 + $0x78] sm:$0xff] }
 0x168   :  { %1349 = vst.msk [vmem:[%s3202_s4 + $0x30] sm:$0xff] %vm252_vm0, %v1285_v14  ;;  %v937_v26 = vadd.f32 %v936_v27, %v552_v59  ;;  %v592_v25 = vadd.f32 %v2610_v53, %v2616_v62 }
 0x169   :  { %v1288_v63 = vadd.f32 %v1224_v21, %v942_v22  ;;  %v597_v21 = vadd.f32 %v2610_v53, %v2628_v18  ;;  %v1231_v18 = vld [vmem:[%s3201_s3 + $0x80] sm:$0xff] }
 0x16a   :  { %v1287_v30 = vadd.f32 %v1223_v23, %v937_v26  ;;  %v2708_v33 = vpop.f32.mrb[42].mxu0  ;;  %v1569_v34 = vpop.f32.mrb[42].mxu1 }
 0x16b   :  { %1352 = vst.msk [vmem:[%s3202_s4 + $0x48] sm:$0xff] %vm252_vm0, %v1288_v63  ;;  %v952_v41 = vadd.f32 %v1569_v34, %v567_v3  ;;  %v618_v42 = vpop.f32.mrb[43].mxu0  ;;  %v946_v35 = vpop.f32.mrb[43].mxu1  ;;  %v1232_v3 = vld [vmem:[%s3201_s3 + $0x88] sm:$0xff]  ;;  %v607_v34 = vadd.f32 %v2610_v53, %v2668_v61  ;;  %v1233_v61 = vld [vmem:[%s3201_s3 + $0x90] sm:$0xff] }
 0x16c   :  { %1351 = vst.msk [vmem:[%s3202_s4 + $0x40] sm:$0xff] %vm252_vm0, %v1287_v30  ;;  %v947_v45 = vadd.f32 %v946_v35, %v562_v29 }
 0x16d   :  { %v1290_v11 = vadd.f32 %v1226_v37, %v952_v41  ;;  %v602_v41 = vadd.f32 %v2610_v53, %v2648_v38 }
 0x16e   :  { %v1289_v49 = vadd.f32 %v1225_v31, %v947_v45  ;;  %v2728_v50 = vpop.f32.mrb[44].mxu0  ;;  %v1572_v54 = vpop.f32.mrb[44].mxu1  ;;  %v1234_v45 = vld [vmem:[%s3201_s3 + $0x98] sm:$0xff] }
 0x16f   :  { %1354 = vst.msk [vmem:[%s3202_s4 + $0x58] sm:$0xff] %vm252_vm0, %v1290_v11  ;;  %v962_v58 = vadd.f32 %v1572_v54, %v577_v46  ;;  %v623_v1 = vpop.f32.mrb[45].mxu0  ;;  %v956_v43 = vpop.f32.mrb[45].mxu1 }
 0x170   :  { %1353 = vst.msk [vmem:[%s3202_s4 + $0x50] sm:$0xff] %vm252_vm0, %v1289_v49  ;;  %v957_v2 = vadd.f32 %v956_v43, %v572_v7  ;;  %v617_v49 = vadd.f32 %v2610_v53, %v2708_v33  ;;  %v1235_v33 = vld [vmem:[%s3201_s3 + $0xa0] sm:$0xff] }
 0x171   :  { %v1292_v6 = vadd.f32 %v1228_v57, %v962_v58  ;;  %v612_v57 = vadd.f32 %v2610_v53, %v2688_v55 }
 0x172   :  { %v1291_v15 = vadd.f32 %v1227_v39, %v957_v2  ;;  %v626_v9 = vpop.f32.mrb[46].mxu0  ;;  %v1575_v10 = vpop.f32.mrb[46].mxu1  ;;  %v1236_v39 = vld [vmem:[%s3201_s3 + $0xa8] sm:$0xff] }
 0x173   :  { %1356 = vst.msk [vmem:[%s3202_s4 + $0x68] sm:$0xff] %vm252_vm0, %v1292_v6  ;;  %v972_v59 = vadd.f32 %v1575_v10, %v587_v5  ;;  %v628_v14 = vpop.f32.mrb[47].mxu0  ;;  %v966_v17 = vpop.f32.mrb[47].mxu1  ;;  %v622_v10 = vadd.f32 %v2610_v53, %v2728_v50 }
 0x174   :  { %1355 = vst.msk [vmem:[%s3202_s4 + $0x60] sm:$0xff] %vm252_vm0, %v1291_v15  ;;  %v967_v47 = vadd.f32 %v966_v17, %v582_v19  ;;  %v627_v19 = vadd.f32 %v2610_v53, %v626_v9  ;;  %v1238_v17 = vld [vmem:[%s3201_s3 + $0xb8] sm:$0xff]  ;;  %v1237_v9 = vld [vmem:[%s3201_s3 + $0xb0] sm:$0xff] }
 0x175   :  { %v1294_v22 = vadd.f32 %v1230_v13, %v972_v59 }
 0x176   :  { %v1293_v27 = vadd.f32 %v1229_v51, %v967_v47  ;;  %v631_v23 = vpop.f32.mrb[48].mxu0  ;;  %v1578_v26 = vpop.f32.mrb[48].mxu1 }
 0x177   :  { %1358 = vst.msk [vmem:[%s3202_s4 + $0x78] sm:$0xff] %vm252_vm0, %v1294_v22  ;;  %v982_v63 = vadd.f32 %v1578_v26, %v597_v21  ;;  %v633_v29 = vpop.f32.mrb[49].mxu0  ;;  %v976_v30 = vpop.f32.mrb[49].mxu1 }
 0x178   :  { %1357 = vst.msk [vmem:[%s3202_s4 + $0x70] sm:$0xff] %vm252_vm0, %v1293_v27  ;;  %v977_v62 = vadd.f32 %v976_v30, %v592_v25  ;;  %v632_v27 = vadd.f32 %v2610_v53, %v631_v23  ;;  %v1240_v29 = vld [vmem:[%s3201_s3 + $0xc8] sm:$0xff] }
 0x179   :  { %v1296_v37 = vadd.f32 %v1232_v3, %v982_v63 }
 0x17a   :  { %v1295_v42 = vadd.f32 %v1231_v18, %v977_v62  ;;  %v636_v35 = vpop.f32.mrb[50].mxu0  ;;  %v1581_v31 = vpop.f32.mrb[50].mxu1 }
 0x17b   :  { %1360 = vst.msk [vmem:[%s3202_s4 + $0x88] sm:$0xff] %vm252_vm0, %v1296_v37  ;;  %v992_v46 = vadd.f32 %v1581_v31, %v607_v34  ;;  %v638_v11 = vpop.f32.mrb[51].mxu0  ;;  %v986_v7 = vpop.f32.mrb[51].mxu1  ;;  %v637_v22 = vadd.f32 %v2610_v53, %v636_v35  ;;  %v1239_v34 = vld [vmem:[%s3201_s3 + $0xc0] sm:$0xff] }
 0x17c   :  { %1359 = vst.msk [vmem:[%s3202_s4 + $0x80] sm:$0xff] %vm252_vm0, %v1295_v42  ;;  %v987_v38 = vadd.f32 %v986_v7, %v602_v41 }
 0x17d   :  { %v1298_v54 = vadd.f32 %v1234_v45, %v992_v46  ;;  %v1242_v46 = vld [vmem:[%s3201_s3 + $0xd8] sm:$0xff] }
 0x17e   :  { %v1297_v58 = vadd.f32 %v1233_v61, %v987_v38  ;;  %v641_v1 = vpop.f32.mrb[52].mxu0  ;;  %v1584_v43 = vpop.f32.mrb[52].mxu1  ;;  %v1241_v38 = vld [vmem:[%s3201_s3 + $0xd0] sm:$0xff] }
 0x17f   :  { %1362 = vst.msk [vmem:[%s3202_s4 + $0x98] sm:$0xff] %vm252_vm0, %v1298_v54  ;;  %v1002_v2 = vadd.f32 %v1584_v43, %v617_v49  ;;  %v643_v5 = vpop.f32.mrb[53].mxu0  ;;  %v996_v6 = vpop.f32.mrb[53].mxu1  ;;  %v642_v42 = vadd.f32 %v2610_v53, %v641_v1 }
 0x180   :  { %1361 = vst.msk [vmem:[%s3202_s4 + $0x90] sm:$0xff] %vm252_vm0, %v1297_v58  ;;  %v997_v55 = vadd.f32 %v996_v6, %v612_v57 }
 0x181   :  { %v1300_v15 = vadd.f32 %v1236_v39, %v1002_v2  ;;  %v1244_v2 = vld [vmem:[%s3201_s3 + $0xe8] sm:$0xff] }
 0x182   :  { %v1299_v13 = vadd.f32 %v1235_v33, %v997_v55  ;;  %v646_v59 = vpop.f32.mrb[54].mxu0  ;;  %v1587_v14 = vpop.f32.mrb[54].mxu1  ;;  %v1243_v55 = vld [vmem:[%s3201_s3 + $0xe0] sm:$0xff] }
 0x183   :  { %1364 = vst.msk [vmem:[%s3202_s4 + $0xa8] sm:$0xff] %vm252_vm0, %v1300_v15  ;;  %v1012_v51 = vadd.f32 %v1587_v14, %v627_v19  ;;  %v648_v47 = vpop.f32.mrb[55].mxu0  ;;  %v1006_v21 = vpop.f32.mrb[55].mxu1  ;;  %v647_v37 = vadd.f32 %v2610_v53, %v646_v59 }
 0x184   :  { %1363 = vst.msk [vmem:[%s3202_s4 + $0xa0] sm:$0xff] %vm252_vm0, %v1299_v13  ;;  %v1007_v50 = vadd.f32 %v1006_v21, %v622_v10  ;;  %v1245_v21 = vld [vmem:[%s3201_s3 + $0xf0] sm:$0xff] }
 0x185   :  { %v1302_v25 = vadd.f32 %v1238_v17, %v1012_v51 }
 0x186   :  { %v1301_v26 = vadd.f32 %v1237_v9, %v1007_v50  ;;  %v651_v3 = vpop.f32.mrb[56].mxu0  ;;  %v1590_v63 = vpop.f32.mrb[56].mxu1  ;;  %v1246_v9 = vld [vmem:[%s3201_s3 + $0xf8] sm:$0xff] }
 0x187   :  { %1366 = vst.msk [vmem:[%s3202_s4 + $0xb8] sm:$0xff] %vm252_vm0, %v1302_v25  ;;  %v1022_v30 = vadd.f32 %v1590_v63, %v637_v22  ;;  %v653_v18 = vpop.f32.mrb[57].mxu0  ;;  %v1016_v62 = vpop.f32.mrb[57].mxu1  ;;  %v652_v58 = vadd.f32 %v2610_v53, %v651_v3 }
 0x188   :  { %1365 = vst.msk [vmem:[%s3202_s4 + $0xb0] sm:$0xff] %vm252_vm0, %v1301_v26  ;;  %v1017_v23 = vadd.f32 %v1016_v62, %v632_v27  ;;  %v1247_v18 = vld [vmem:[%s3201_s3 + $0x100] sm:$0xff] }
 0x189   :  { %v1304_v41 = vadd.f32 %v1240_v29, %v1022_v30 }
 0x18a   :  { %v1303_v35 = vadd.f32 %v1239_v34, %v1017_v23  ;;  %v656_v31 = vpop.f32.mrb[58].mxu0  ;;  %v1593_v45 = vpop.f32.mrb[58].mxu1 }
 0x18b   :  { %1368 = vst.msk [vmem:[%s3202_s4 + $0xc8] sm:$0xff] %vm252_vm0, %v1304_v41  ;;  %v1032_v11 = vadd.f32 %v1593_v45, %v647_v37  ;;  %v658_v7 = vpop.f32.mrb[59].mxu0  ;;  %v1026_v61 = vpop.f32.mrb[59].mxu1  ;;  %v657_v54 = vadd.f32 %v2610_v53, %v656_v31  ;;  %v1248_v31 = vld [vmem:[%s3201_s3 + $0x108] sm:$0xff] }
 0x18c   :  { %1367 = vst.msk [vmem:[%s3202_s4 + $0xc0] sm:$0xff] %vm252_vm0, %v1303_v35  ;;  %v1027_v49 = vadd.f32 %v1026_v61, %v642_v42 }
 0x18d   :  { %v1306_v57 = vadd.f32 %v1242_v46, %v1032_v11 }
 0x18e   :  { %v1305_v1 = vadd.f32 %v1241_v38, %v1027_v49  ;;  %v661_v43 = vpop.f32.mrb[60].mxu0  ;;  %v1596_v39 = vpop.f32.mrb[60].mxu1 }
 0x18f   :  { %1370 = vst.msk [vmem:[%s3202_s4 + $0xd8] sm:$0xff] %vm252_vm0, %v1306_v57  ;;  %v1042_v5 = vadd.f32 %v1596_v39, %v657_v54  ;;  %v663_v6 = vpop.f32.mrb[61].mxu0  ;;  %v1036_v33 = vpop.f32.mrb[61].mxu1  ;;  %v662_v10 = vadd.f32 %v2610_v53, %v661_v43  ;;  %v1249_v54 = vld [vmem:[%s3201_s3 + $0x110] sm:$0xff] }
 0x190   :  { %1369 = vst.msk [vmem:[%s3202_s4 + $0xd0] sm:$0xff] %vm252_vm0, %v1305_v1  ;;  %v1037_v19 = vadd.f32 %v1036_v33, %v652_v58  ;;  %v1250_v6 = vld [vmem:[%s3201_s3 + $0x118] sm:$0xff] }
 0x191   :  { %v1308_v15 = vadd.f32 %v1244_v2, %v1042_v5 }
 0x192   :  { %v1307_v13 = vadd.f32 %v1243_v55, %v1037_v19  ;;  %v666_v59 = vpop.f32.mrb[62].mxu0  ;;  %v1599_v14 = vpop.f32.mrb[62].mxu1 }
 0x193   :  { %1372 = vst.msk [vmem:[%s3202_s4 + $0xe8] sm:$0xff] %vm252_vm0, %v1308_v15  ;;  %v667_v17 = vadd.f32 %v2610_v53, %v666_v59  ;;  %v668_v51 = vpop.f32.mrb[63].mxu0  ;;  %v1046_v47 = vpop.f32.mrb[63].mxu1 }
 0x194   :  { %1371 = vst.msk [vmem:[%s3202_s4 + $0xe0] sm:$0xff] %vm252_vm0, %v1307_v13  ;;  %v1047_v50 = vadd.f32 %v1046_v47, %v662_v10 }
 0x195   :  { %v1052_v22 = vadd.f32 %v1599_v14, %v667_v17  ;;  %v1251_v14 = vld [vmem:[%s3201_s3 + $0x120] sm:$0xff] }
 0x196   :  { %v1309_v25 = vadd.f32 %v1245_v21, %v1047_v50  ;;  %v671_v27 = vpop.f32.mrb[64].mxu0  ;;  %v1602_v26 = vpop.f32.mrb[64].mxu1 }
 0x197   :  { %v1310_v3 = vadd.f32 %v1246_v9, %v1052_v22  ;;  %v672_v63 = vadd.f32 %v2610_v53, %v671_v27  ;;  %v673_v29 = vpop.f32.mrb[65].mxu0  ;;  %v1056_v30 = vpop.f32.mrb[65].mxu1 }
 0x198   :  { %1373 = vst.msk [vmem:[%s3202_s4 + $0xf0] sm:$0xff] %vm252_vm0, %v1309_v25  ;;  %v1252_v25 = vld [vmem:[%s3201_s3 + $0x128] sm:$0xff] }
 0x199   :  { %1374 = vst.msk [vmem:[%s3202_s4 + $0xf8] sm:$0xff] %vm252_vm0, %v1310_v3  ;;  %v1057_v62 = vadd.f32 %v1056_v30, %v672_v63 }
 0x19a   :  { %v676_v34 = vpop.f32.mrb[66].mxu0  ;;  %v1605_v23 = vpop.f32.mrb[66].mxu1 }
 0x19b   :  { %v1311_v37 = vadd.f32 %v1247_v18, %v1057_v62  ;;  %v677_v41 = vadd.f32 %v2610_v53, %v676_v34  ;;  %v678_v42 = vpop.f32.mrb[67].mxu0  ;;  %v1066_v35 = vpop.f32.mrb[67].mxu1  ;;  %v1253_v62 = vld [vmem:[%s3201_s3 + $0x130] sm:$0xff] }
 0x19d   :  { %1375 = vst.msk [vmem:[%s3202_s4 + $0x100] sm:$0xff] %vm252_vm0, %v1311_v37  ;;  %v1062_v45 = vadd.f32 %v1602_v26, %v677_v41 }
 0x19e   :  { %v681_v46 = vpop.f32.mrb[68].mxu0  ;;  %v1608_v11 = vpop.f32.mrb[68].mxu1 }
 0x19f   :  { %v1312_v7 = vadd.f32 %v1248_v31, %v1062_v45  ;;  %v682_v61 = vadd.f32 %v2610_v53, %v681_v46  ;;  %v683_v38 = vpop.f32.mrb[69].mxu0  ;;  %v1076_v49 = vpop.f32.mrb[69].mxu1  ;;  %v1254_v45 = vld [vmem:[%s3201_s3 + $0x138] sm:$0xff]  ;;  %v757_v46 = vadd.f32 %v2610_v53, %v2549_v60 }
 0x1a1   :  { %1376 = vst.msk [vmem:[%s3202_s4 + $0x108] sm:$0xff] %vm252_vm0, %v1312_v7  ;;  %v1067_v57 = vadd.f32 %v1066_v35, %v682_v61  ;;  %v752_v7 = vadd.f32 %v2610_v53, %v2545_v56  ;;  %v1255_v56 = vld [vmem:[%s3201_s3 + $0x140] sm:$0xff] }
 0x1a2   :  { %v686_v58 = vpop.f32.mrb[70].mxu0  ;;  %v1611_v1 = vpop.f32.mrb[70].mxu1 }
 0x1a3   :  { %v1313_v43 = vadd.f32 %v1249_v54, %v1067_v57  ;;  %v687_v39 = vadd.f32 %v2610_v53, %v686_v58  ;;  %v688_v2 = vpop.f32.mrb[71].mxu0  ;;  %v1086_v5 = vpop.f32.mrb[71].mxu1 }
 0x1a4   :  { %v767_v2 = vadd.f32 %v2610_v53, %v2557_v4 }
 0x1a5   :  { %1377 = vst.msk [vmem:[%s3202_s4 + $0x110] sm:$0xff] %vm252_vm0, %v1313_v43  ;;  %v1072_v33 = vadd.f32 %v1605_v23, %v687_v39  ;;  %v1263_v39 = vld [vmem:[%s3201_s3 + $0x180] sm:$0xff] }
 0x1a6   :  { %v691_v55 = vpop.f32.mrb[72].mxu0  ;;  %v2933_v19 = vpop.f32.mrb[72].mxu1 }
 0x1a7   :  { %v1314_v15 = vadd.f32 %v1250_v6, %v1072_v33  ;;  %v692_v10 = vadd.f32 %v2610_v53, %v691_v55  ;;  %v693_v13 = vpop.f32.mrb[73].mxu0  ;;  %v1096_v59 = vpop.f32.mrb[73].mxu1  ;;  %v762_v33 = vadd.f32 %v2610_v53, %v2553_v0  ;;  %v1265_v0 = vld [vmem:[%s3201_s3 + $0x190] sm:$0xff] }
 0x1a8   :  { %v1266_v13 = vld [vmem:[%s3201_s3 + $0x198] sm:$0xff] }
 0x1a9   :  { %1378 = vst.msk [vmem:[%s3202_s4 + $0x118] sm:$0xff] %vm252_vm0, %v1314_v15  ;;  %v1077_v17 = vadd.f32 %v1076_v49, %v692_v10  ;;  %v1264_v49 = vld [vmem:[%s3201_s3 + $0x188] sm:$0xff] }
 0x1aa   :  { %v696_v51 = vpop.f32.mrb[74].mxu0  ;;  %v2943_v47 = vpop.f32.mrb[74].mxu1 }
 0x1ab   :  { %v1315_v21 = vadd.f32 %v1251_v14, %v1077_v17  ;;  %v697_v9 = vadd.f32 %v2610_v53, %v696_v51  ;;  %v698_v50 = vpop.f32.mrb[75].mxu0  ;;  %v2946_v22 = vpop.f32.mrb[75].mxu1 }
 0x1ac   :  { %v777_v50 = vadd.f32 %v2610_v53, %v2565_v12 }
 0x1ad   :  { %1379 = vst.msk [vmem:[%s3202_s4 + $0x120] sm:$0xff] %vm252_vm0, %v1315_v21  ;;  %v1082_v27 = vadd.f32 %v1608_v11, %v697_v9  ;;  %v1256_v21 = vld [vmem:[%s3201_s3 + $0x148] sm:$0xff] }
 0x1ae   :  { %v701_v26 = vpop.f32.mrb[76].mxu0  ;;  %v2955_v3 = vpop.f32.mrb[76].mxu1 }
 0x1af   :  { %v1316_v63 = vadd.f32 %v1252_v25, %v1082_v27  ;;  %v702_v29 = vadd.f32 %v2610_v53, %v701_v26  ;;  %v703_v30 = vpop.f32.mrb[77].mxu0  ;;  %v2958_v18 = vpop.f32.mrb[77].mxu1  ;;  %v772_v26 = vadd.f32 %v2610_v53, %v2561_v8  ;;  %v1267_v8 = vld [vmem:[%s3201_s3 + $0x1a0] sm:$0xff] }
 0x1b1   :  { %1380 = vst.msk [vmem:[%s3202_s4 + $0x128] sm:$0xff] %vm252_vm0, %v1316_v63  ;;  %v1087_v34 = vadd.f32 %v1086_v5, %v702_v29 }
 0x1b2   :  { %v706_v23 = vpop.f32.mrb[78].mxu0  ;;  %v2967_v37 = vpop.f32.mrb[78].mxu1 }
 0x1b3   :  { %v1317_v41 = vadd.f32 %v1253_v62, %v1087_v34  ;;  %v707_v42 = vadd.f32 %v2610_v53, %v706_v23  ;;  %v708_v35 = vpop.f32.mrb[79].mxu0  ;;  %v2970_v31 = vpop.f32.mrb[79].mxu1  ;;  %v1268_v62 = vld [vmem:[%s3201_s3 + $0x1a8] sm:$0xff] }
 0x1b5   :  { %1381 = vst.msk [vmem:[%s3202_s4 + $0x130] sm:$0xff] %vm252_vm0, %v1317_v41  ;;  %v1092_v11 = vadd.f32 %v1611_v1, %v707_v42  ;;  %v1257_v42 = vld [vmem:[%s3201_s3 + $0x150] sm:$0xff] }
 0x1b6   :  { %v711_v61 = vpop.f32.mrb[80].mxu0  ;;  %v1626_v38 = vpop.f32.mrb[80].mxu1 }
 0x1b7   :  { %v1318_v54 = vadd.f32 %v1254_v45, %v1092_v11  ;;  %v712_v57 = vadd.f32 %v2610_v53, %v711_v61  ;;  %v1142_v58 = vadd.f32 %v1626_v38, %v757_v46  ;;  %v713_v60 = vpop.f32.mrb[81].mxu0  ;;  %v1136_v43 = vpop.f32.mrb[81].mxu1  ;;  %v787_v45 = vadd.f32 %v2610_v53, %v2573_v20 }
 0x1b8   :  { %v1137_v1 = vadd.f32 %v1136_v43, %v752_v7  ;;  %v782_v7 = vadd.f32 %v2610_v53, %v2569_v16  ;;  %v1269_v16 = vld [vmem:[%s3201_s3 + $0x1b0] sm:$0xff]  ;;  %v1258_v43 = vld [vmem:[%s3201_s3 + $0x158] sm:$0xff] }
 0x1b9   :  { %1382 = vst.msk [vmem:[%s3202_s4 + $0x138] sm:$0xff] %vm252_vm0, %v1318_v54  ;;  %v1097_v5 = vadd.f32 %v1096_v59, %v712_v57  ;;  %v1328_v6 = vadd.f32 %v1264_v49, %v1142_v58  ;;  %v1270_v54 = vld [vmem:[%s3201_s3 + $0x1b8] sm:$0xff] }
 0x1ba   :  { %v1327_v55 = vadd.f32 %v1263_v39, %v1137_v1  ;;  %v716_v15 = vpop.f32.mrb[82].mxu0  ;;  %v1629_v10 = vpop.f32.mrb[82].mxu1 }
 0x1bb   :  { %v1319_v14 = vadd.f32 %v1255_v56, %v1097_v5  ;;  %1392 = vst.msk [vmem:[%s3202_s4 + $0x188] sm:$0xff] %vm252_vm0, %v1328_v6  ;;  %v717_v4 = vadd.f32 %v2610_v53, %v716_v15  ;;  %v1152_v59 = vadd.f32 %v1629_v10, %v767_v2  ;;  %v718_v17 = vpop.f32.mrb[83].mxu0  ;;  %v1146_v51 = vpop.f32.mrb[83].mxu1  ;;  %v797_v56 = vadd.f32 %v2610_v53, %v2581_v28  ;;  %v1272_v15 = vld [vmem:[%s3201_s3 + $0x1c8] sm:$0xff] }
 0x1bc   :  { %1391 = vst.msk [vmem:[%s3202_s4 + $0x180] sm:$0xff] %vm252_vm0, %v1327_v55  ;;  %v1147_v9 = vadd.f32 %v1146_v51, %v762_v33  ;;  %v792_v5 = vadd.f32 %v2610_v53, %v2577_v24  ;;  %v1271_v24 = vld [vmem:[%s3201_s3 + $0x1c0] sm:$0xff]  ;;  %v807_v17 = vadd.f32 %v2610_v53, %v2589_v36 }
 0x1bd   :  { %1383 = vst.msk [vmem:[%s3202_s4 + $0x140] sm:$0xff] %vm252_vm0, %v1319_v14  ;;  %v1102_v25 = vadd.f32 %v2933_v19, %v717_v4  ;;  %v1330_v27 = vadd.f32 %v1266_v13, %v1152_v59  ;;  %v1259_v4 = vld [vmem:[%s3201_s3 + $0x160] sm:$0xff] }
 0x1be   :  { %v1329_v63 = vadd.f32 %v1265_v0, %v1147_v9  ;;  %v721_v29 = vpop.f32.mrb[84].mxu0  ;;  %v1632_v30 = vpop.f32.mrb[84].mxu1 }
 0x1bf   :  { %v1320_v34 = vadd.f32 %v1256_v21, %v1102_v25  ;;  %1394 = vst.msk [vmem:[%s3202_s4 + $0x198] sm:$0xff] %vm252_vm0, %v1330_v27  ;;  %v722_v12 = vadd.f32 %v2610_v53, %v721_v29  ;;  %v1162_v19 = vadd.f32 %v1632_v30, %v777_v50  ;;  %v723_v23 = vpop.f32.mrb[85].mxu0  ;;  %v1156_v41 = vpop.f32.mrb[85].mxu1  ;;  %v802_v21 = vadd.f32 %v2610_v53, %v2585_v32  ;;  %v1274_v27 = vld [vmem:[%s3201_s3 + $0x1d8] sm:$0xff]  ;;  %v1273_v32 = vld [vmem:[%s3201_s3 + $0x1d0] sm:$0xff]  ;;  %v1260_v30 = vld [vmem:[%s3201_s3 + $0x168] sm:$0xff] }
 0x1c0   :  { %1393 = vst.msk [vmem:[%s3202_s4 + $0x190] sm:$0xff] %vm252_vm0, %v1329_v63  ;;  %v1157_v35 = vadd.f32 %v1156_v41, %v772_v26  ;;  %v812_v23 = vadd.f32 %v2610_v53, %v2593_v40  ;;  %v1275_v40 = vld [vmem:[%s3201_s3 + $0x1e0] sm:$0xff] }
 0x1c1   :  { %1384 = vst.msk [vmem:[%s3202_s4 + $0x148] sm:$0xff] %vm252_vm0, %v1320_v34  ;;  %v1107_v46 = vadd.f32 %v2946_v22, %v722_v12  ;;  %v1332_v11 = vadd.f32 %v1268_v62, %v1162_v19  ;;  %v817_v34 = vadd.f32 %v2610_v53, %v2597_v44 }
 0x1c2   :  { %v1331_v61 = vadd.f32 %v1267_v8, %v1157_v35  ;;  %v726_v38 = vpop.f32.mrb[86].mxu0  ;;  %v1635_v49 = vpop.f32.mrb[86].mxu1  ;;  %v1276_v35 = vld [vmem:[%s3201_s3 + $0x1e8] sm:$0xff] }
 0x1c3   :  { %v1321_v57 = vadd.f32 %v1257_v42, %v1107_v46  ;;  %1396 = vst.msk [vmem:[%s3202_s4 + $0x1a8] sm:$0xff] %vm252_vm0, %v1332_v11  ;;  %v727_v20 = vadd.f32 %v2610_v53, %v726_v38  ;;  %v1172_v22 = vadd.f32 %v1635_v49, %v787_v45  ;;  %v728_v58 = vpop.f32.mrb[87].mxu0  ;;  %v1166_v60 = vpop.f32.mrb[87].mxu1  ;;  %v827_v38 = vadd.f32 %v2610_v53, %v2605_v52 }
 0x1c4   :  { %1395 = vst.msk [vmem:[%s3202_s4 + $0x1a0] sm:$0xff] %vm252_vm0, %v1331_v61  ;;  %v1167_v39 = vadd.f32 %v1166_v60, %v782_v7  ;;  %v1261_v7 = vld [vmem:[%s3201_s3 + $0x170] sm:$0xff]  ;;  %v1278_v60 = vld [vmem:[%s3201_s3 + $0x1f8] sm:$0xff] }
 0x1c5   :  { %1385 = vst.msk [vmem:[%s3202_s4 + $0x150] sm:$0xff] %vm252_vm0, %v1321_v57  ;;  %v1112_v1 = vadd.f32 %v2943_v47, %v727_v20  ;;  %v1334_v2 = vadd.f32 %v1270_v54, %v1172_v22  ;;  %v822_v57 = vadd.f32 %v2610_v53, %v2601_v48  ;;  %v1277_v48 = vld [vmem:[%s3201_s3 + $0x1f0] sm:$0xff] }
 0x1c6   :  { %v1333_v6 = vadd.f32 %v1269_v16, %v1167_v39  ;;  %v731_v33 = vpop.f32.mrb[88].mxu0  ;;  %v1638_v55 = vpop.f32.mrb[88].mxu1 }
 0x1c7   :  { %v1322_v10 = vadd.f32 %v1258_v43, %v1112_v1  ;;  %1398 = vst.msk [vmem:[%s3202_s4 + $0x1b8] sm:$0xff] %vm252_vm0, %v1334_v2  ;;  %v732_v28 = vadd.f32 %v2610_v53, %v731_v33  ;;  %v1182_v47 = vadd.f32 %v1638_v55, %v797_v56  ;;  %v733_v13 = vpop.f32.mrb[89].mxu0  ;;  %v1176_v14 = vpop.f32.mrb[89].mxu1  ;;  %v1262_v56 = vld [vmem:[%s3201_s3 + $0x178] sm:$0xff] }
 0x1c8   :  { %1397 = vst.msk [vmem:[%s3202_s4 + $0x1b0] sm:$0xff] %vm252_vm0, %v1333_v6  ;;  %v1177_v59 = vadd.f32 %v1176_v14, %v792_v5 }
 0x1c9   :  { %1386 = vst.msk [vmem:[%s3202_s4 + $0x158] sm:$0xff] %vm252_vm0, %v1322_v10  ;;  %v1117_v51 = vadd.f32 %v2958_v18, %v732_v28  ;;  %v1336_v0 = vadd.f32 %v1272_v15, %v1182_v47 }
 0x1ca   :  { %v1335_v9 = vadd.f32 %v1271_v24, %v1177_v59  ;;  %v736_v50 = vpop.f32.mrb[90].mxu0  ;;  %v1641_v25 = vpop.f32.mrb[90].mxu1 }
 0x1cb   :  { %v1323_v26 = vadd.f32 %v1259_v4, %v1117_v51  ;;  %1400 = vst.msk [vmem:[%s3202_s4 + $0x1c8] sm:$0xff] %vm252_vm0, %v1336_v0  ;;  %v737_v36 = vadd.f32 %v2610_v53, %v736_v50  ;;  %v1192_v18 = vadd.f32 %v1641_v25, %v807_v17  ;;  %v738_v63 = vpop.f32.mrb[91].mxu0  ;;  %v1186_v29 = vpop.f32.mrb[91].mxu1 }
 0x1cc   :  { %1399 = vst.msk [vmem:[%s3202_s4 + $0x1c0] sm:$0xff] %vm252_vm0, %v1335_v9  ;;  %v1187_v62 = vadd.f32 %v1186_v29, %v802_v21 }
 0x1cd   :  { %1387 = vst.msk [vmem:[%s3202_s4 + $0x160] sm:$0xff] %vm252_vm0, %v1323_v26  ;;  %v1122_v12 = vadd.f32 %v2955_v3, %v737_v36  ;;  %v1338_v19 = vadd.f32 %v1274_v27, %v1192_v18 }
 0x1ce   :  { %v1337_v41 = vadd.f32 %v1273_v32, %v1187_v62  ;;  %v741_v8 = vpop.f32.mrb[92].mxu0  ;;  %v1644_v42 = vpop.f32.mrb[92].mxu1 }
 0x1cf   :  { %v1324_v45 = vadd.f32 %v1260_v30, %v1122_v12  ;;  %1402 = vst.msk [vmem:[%s3202_s4 + $0x1d8] sm:$0xff] %vm252_vm0, %v1338_v19  ;;  %v742_v44 = vadd.f32 %v2610_v53, %v741_v8  ;;  %v1202_v3 = vadd.f32 %v1644_v42, %v817_v34  ;;  %v743_v46 = vpop.f32.mrb[93].mxu0  ;;  %v1196_v11 = vpop.f32.mrb[93].mxu1 }
 0x1d0   :  { %1401 = vst.msk [vmem:[%s3202_s4 + $0x1d0] sm:$0xff] %vm252_vm0, %v1337_v41  ;;  %v1197_v61 = vadd.f32 %v1196_v11, %v812_v23 }
 0x1d1   :  { %1388 = vst.msk [vmem:[%s3202_s4 + $0x168] sm:$0xff] %vm252_vm0, %v1324_v45  ;;  %v1127_v49 = vadd.f32 %v2970_v31, %v742_v44  ;;  %v1340_v54 = vadd.f32 %v1276_v35, %v1202_v3 }
 0x1d2   :  { %v1339_v20 = vadd.f32 %v1275_v40, %v1197_v61  ;;  %v746_v22 = vpop.f32.mrb[94].mxu0  ;;  %v1647_v58 = vpop.f32.mrb[94].mxu1 }
 0x1d3   :  { %v1325_v16 = vadd.f32 %v1261_v7, %v1127_v49  ;;  %1404 = vst.msk [vmem:[%s3202_s4 + $0x1e8] sm:$0xff] %vm252_vm0, %v1340_v54  ;;  %v747_v52 = vadd.f32 %v2610_v53, %v746_v22  ;;  %v1212_v31 = vadd.f32 %v1647_v58, %v827_v38  ;;  %v748_v43 = vpop.f32.mrb[95].mxu0  ;;  %v1206_v39 = vpop.f32.mrb[95].mxu1 }
 0x1d4   :  { %1403 = vst.msk [vmem:[%s3202_s4 + $0x1e0] sm:$0xff] %vm252_vm0, %v1339_v20  ;;  %v1207_v1 = vadd.f32 %v1206_v39, %v822_v57 }
 0x1d5   :  { %1389 = vst.msk [vmem:[%s3202_s4 + $0x170] sm:$0xff] %vm252_vm0, %v1325_v16  ;;  %v1132_v53 = vadd.f32 %v2967_v37, %v747_v52  ;;  %v1342_v2 = vadd.f32 %v1278_v60, %v1212_v31 }
 0x1d6   :  { %v1341_v5 = vadd.f32 %v1277_v48, %v1207_v1 }
 0x1d7   :  { %v1326_v6 = vadd.f32 %v1262_v56, %v1132_v53  ;;  %1406 = vst.msk [vmem:[%s3202_s4 + $0x1f8] sm:$0xff] %vm252_vm0, %v1342_v2 }
 0x1d8   :  { %1405 = vst.msk [vmem:[%s3202_s4 + $0x1f0] sm:$0xff] %vm252_vm0, %v1341_v5 }
 0x1d9   :  { %1390 = vst.msk [vmem:[%s3202_s4 + $0x178] sm:$0xff] %vm252_vm0, %v1326_v6 }

// kernel: _lambda_.27
= control target key start
LH: loop header
LB: loop body
LE: loop exit
PB: predicated region body
PF: predicated region fallthrough
CT: control target
= control target key end

     0   :  { %s712_s15 = smov 0   ;;  %s848_s0 = inlined_call_operand.vmem [shape: f32[2,64,32], index: 0, kind: input, shape index: {}]   ;;  %s849_s1 = inlined_call_operand.vmem [shape: f32[1,32], index: 1, kind: input, shape index: {}]   ;;  %s850_s2 = inlined_call_operand.vmem [shape: f32[1,32], index: 2, kind: input, shape index: {}]   ;;  %s851_s3 = inlined_call_operand.vmem [shape: f32[32,32], index: 3, kind: input, shape index: {}]   ;;  %s852_s4 = inlined_call_operand.vmem [shape: f32[2,64,32], index: 4, kind: output, shape index: {}]  }
   0x1 LB: > { %s571_s16 = sadd.s32 4294967295, %s682_s15   ;;  %p575_p0 = scmp.ge.s32.totalorder %s682_s15, 1  ;;  %s682_s15 = sphi %s712_s15, %s14_s15  }
   0x2   : > { %p162_p1 = scmp.lt.s32.totalorder %s682_s15, 3 }
   0x4   : > { %p163_p2 = pnand %p575_p0, %p162_p1 }
   0x5   : > { %v257_v0 = vld [vmem:[%s851_s3] sm:$0xff] (!%p163_p2)  ;;  %v258_v1 = vld [vmem:[%s851_s3 + $0x8] sm:$0xff] (!%p163_p2)  ;;  %v259_v2 = vld [vmem:[%s851_s3 + $0x10] sm:$0xff] (!%p163_p2)  ;;  %v684_v3 = vmov (!%p163_p2), 0.0|0.0   ;;  %p188_p3 = scmp.lt.s32.totalorder (!%p163_p2), %s571_s16, 1  ;;  %vm685_vm0 = vmmov (!%p163_p2), 0  }
   0x6   : > { %166 = sbr.rel (%p163_p2) target bundleno = 320 (0x140), region = 36  ;;  %619 = vmatprep.subr.bf16.mxu0 (!%p163_p2), %v684_v3  ;;  %v620_v4 = vpack.c.bf16 (!%p163_p2), %v258_v1, %v257_v0  ;;  %625 = vmatprep.subr.bf16.mxu1 (!%p163_p2), %v684_v3  ;;  %v260_v5 = vld [vmem:[%s851_s3 + $0x18] sm:$0xff] (!%p163_p2)  ;;  %v686_v6 = vmov (!%p163_p2), 0.0   ;;  %vm206_vm1 = vcmask (!%p163_p2), 261120  }
   0x7   : > { %605 = vmatprep.mubr.msk.f32.mxu0 (!%p163_p2), %vm685_vm0, %v686_v6  ;;  %616 = vmatprep.mubr.msk.f32.mxu1 (!%p163_p2), %vm685_vm0, %v686_v6  ;;  %v623_v7 = vpack.c.bf16 (!%p163_p2), %v260_v5, %v259_v2  ;;  %v413_v6 = vlaneseq (!%p163_p2) }
   0x8   : > { %621 = vmatpush3.bf16.msra.mxu0 (!%p163_p2), %v620_v4  ;;  %627 = vmatpush3.bf16.msra.mxu1 (!%p163_p2), %v620_v4 }
   0x9   : > { %622 = vmatprep.subr.bf16.mxu0 (!%p163_p2), %v684_v3  ;;  %628 = vmatprep.subr.bf16.mxu1 (!%p163_p2), %v684_v3 }
   0xc   : > { %624 = vmatpush3.bf16.msra.mxu0 (!%p163_p2), %v623_v7  ;;  %630 = vmatpush3.bf16.msra.mxu1 (!%p163_p2), %v623_v7 }
   0xd   : > { %s854_s16 = smov (!%p188_p3, %s571_s16), 1 }
   0xe   : > { %s585_s25 = sshll.u32 %s854_s16, 6 }
   0xf   : > { %s192_s28 = scalar_lea.vmem %s848_s0, %s585_s25  ;;  %s197_s9 = scalar_lea.vmem %s852_s4, %s585_s25 }
  0x10   : > { %v740_v8 = vld [vmem:[%s192_s28] sm:$0xff]  ;;  %v742_v9 = vld [vmem:[%s192_s28 + $0x8] sm:$0xff]  ;;  %v744_v10 = vld [vmem:[%s192_s28 + $0x10] sm:$0xff] }
  0x11   : > { %v746_v11 = vld [vmem:[%s192_s28 + $0x18] sm:$0xff]  ;;  %v207_v12 = vsel %vm206_vm1, %v740_v8, 0.0  ;;  %v208_v13 = vsel %vm206_vm1, %v742_v9, 0.0  ;;  %v210_v14 = vsel %vm206_vm1, %v744_v10, 0.0  ;;  %v228_v15 = vmul.f32 %v740_v8, %v740_v8  ;;  %v756_v16 = vld [vmem:[%s192_s28 + $0x20] sm:$0xff]  ;;  %v764_v21 = vld [vmem:[%s192_s28 + $0x28] sm:$0xff] }
  0x12   : > { %v209_v17 = vadd.f32 %v208_v13, %v207_v12  ;;  %v212_v18 = vsel %vm206_vm1, %v746_v11, 0.0  ;;  %v229_v19 = vmul.f32 %v742_v9, %v742_v9  ;;  %v230_v20 = vmul.f32 %v744_v10, %v744_v10  ;;  %v774_v28 = vld [vmem:[%s192_s28 + $0x30] sm:$0xff]  ;;  %v782_v35 = vld [vmem:[%s192_s28 + $0x38] sm:$0xff] }
  0x13   : > { %v231_v23 = vmul.f32 %v746_v11, %v746_v11  ;;  %v214_v24 = vsel %vm206_vm1, %v756_v16, 0.0  ;;  %v232_v25 = vmul.f32 %v756_v16, %v756_v16  ;;  %v236_v26 = vsel %vm206_vm1, %v228_v15, 0.0 }
  0x14   : > { %v211_v22 = vadd.f32 %v210_v14, %v209_v17  ;;  %v237_v27 = vsel %vm206_vm1, %v229_v19, 0.0  ;;  %v239_v31 = vsel %vm206_vm1, %v230_v20, 0.0  ;;  %v216_v32 = vsel %vm206_vm1, %v764_v21, 0.0 }
  0x15   : > { %v238_v30 = vadd.f32 %v237_v27, %v236_v26  ;;  %v233_v33 = vmul.f32 %v764_v21, %v764_v21  ;;  %v241_v34 = vsel %vm206_vm1, %v231_v23, 0.0  ;;  %v218_v38 = vsel %vm206_vm1, %v774_v28, 0.0 }
  0x16   : > { %v213_v29 = vadd.f32 %v212_v18, %v211_v22  ;;  %v234_v39 = vmul.f32 %v774_v28, %v774_v28  ;;  %v243_v40 = vsel %vm206_vm1, %v232_v25, 0.0  ;;  %v220_v43 = vsel %vm206_vm1, %v782_v35, 0.0  ;;  %v411_v18 = vld [vmem:[%s849_s1] sm:$0x1] }
  0x17   : > { %v240_v37 = vadd.f32 %v239_v31, %v238_v30  ;;  %v235_v44 = vmul.f32 %v782_v35, %v782_v35  ;;  %v245_v45 = vsel %vm206_vm1, %v233_v33, 0.0  ;;  %v414_v14 = vshrl.u32 %v413_v6, 7 }
  0x18   : > { %v215_v36 = vadd.f32 %v214_v24, %v213_v29  ;;  %v247_v48 = vsel %vm206_vm1, %v234_v39, 0.0 }
  0x19   : > { %v242_v42 = vadd.f32 %v241_v34, %v240_v37  ;;  %v249_v51 = vsel %vm206_vm1, %v235_v44, 0.0  ;;  %v415_v15 = vsub.s32 0, %v414_v14 }
  0x1a   : > { %v217_v41 = vadd.f32 %v216_v32, %v215_v36  ;;  %v582_v32 = vld [vmem:[%s850_s2] ss:$0 sm:$0xff] }
  0x1b   : > { %v244_v47 = vadd.f32 %v243_v40, %v242_v42 }
  0x1c   : > { %v219_v46 = vadd.f32 %v218_v38, %v217_v41 }
  0x1d   : > { %v246_v50 = vadd.f32 %v245_v45, %v244_v47 }
  0x1e   : > { %v221_v49 = vadd.f32 %v220_v43, %v219_v46 }
  0x1f   : > { %v248_v53 = vadd.f32 %v247_v48, %v246_v50 }
  0x20   : > { %v222_v52 = vrot.slane %v221_v49, 4 }
  0x21   : > { %v250_v55 = vadd.f32 %v249_v51, %v248_v53 }
  0x22   : > { %v223_v54 = vadd.f32 %v222_v52, %v221_v49 }
  0x23   : > { %v251_v57 = vrot.slane %v250_v55, 4 }
  0x24   : > { %v224_v56 = vrot.slane %v223_v54, 2 }
  0x25   : > { %v252_v59 = vadd.f32 %v251_v57, %v250_v55 }
  0x26   : > { %v225_v58 = vadd.f32 %v224_v56, %v223_v54 }
  0x27   : > { %v253_v61 = vrot.slane %v252_v59, 2 }
  0x28   : > { %v226_v60 = vrot.slane %v225_v58, 1 }
  0x29   : > { %v254_v63 = vadd.f32 %v253_v61, %v252_v59 }
  0x2a   : > { %v227_v62 = vadd.f32 %v226_v60, %v225_v58 }
  0x2b   : > { %v255_v0 = vrot.slane %v254_v63, 1 }
  0x2c   : > { %606 = vmatmul.mubr.msk.f32.vlgmr.msra.gmra.mrb[0].mxu0 %vm206_vm1, %v227_v62 }
  0x2d   : > { %v256_v1 = vadd.f32 %v255_v0, %v254_v63 }
  0x2f   : > { %617 = vmatmul.mubr.msk.f32.vlgmr.msra.gmra.mrb[0].mxu1 %vm206_vm1, %v256_v1 }
  0xff   : > { %v330_v2 = vpop.f32.mrb[0].mxu0 }
 0x100   : > { %v407_v3 = vmul.f32 %v330_v2, %v330_v2  ;;  %v607_v4 = vpop.f32.mrb[1].mxu0  ;;  %v416_v17 = vrot.slane %v330_v2, %v415_v15 }
 0x102   : > { %v403_v5 = vpop.f32.mrb[0].mxu1  ;;  %v417_v22 = vsub.f32 %v740_v8, %v416_v17  ;;  %v418_v23 = vsub.f32 %v742_v9, %v416_v17  ;;  %v419_v24 = vsub.f32 %v744_v10, %v416_v17  ;;  %v420_v25 = vsub.f32 %v746_v11, %v416_v17 }
 0x103   : > { %v408_v7 = vsub.f32 %v403_v5, %v407_v3  ;;  %v618_v12 = vpop.f32.mrb[1].mxu1  ;;  %v421_v27 = vsub.f32 %v756_v16, %v416_v17  ;;  %v422_v29 = vsub.f32 %v764_v21, %v416_v17  ;;  %v423_v30 = vsub.f32 %v774_v28, %v416_v17 }
 0x104   : > { %v424_v31 = vsub.f32 %v782_v35, %v416_v17 }
 0x105   : > { %v409_v13 = vadd.f32 1e-06, %v408_v7 }
 0x107   : > { %642 = vrsqrt.f32 %v409_v13 }
 0x111   : > { %v643_v19 = vpop.eup %642 }
 0x112   : > { %v412_v20 = vmul.f32 %v643_v19, %v411_v18 }
 0x114   : > { %v428_v26 = vrot.slane %v412_v20, %v415_v15 }
 0x116   : > { %v429_v8 = vmul.f32 %v428_v26, %v417_v22  ;;  %v430_v33 = vmul.f32 %v428_v26, %v418_v23  ;;  %v431_v9 = vmul.f32 %v428_v26, %v419_v24  ;;  %v432_v34 = vmul.f32 %v428_v26, %v420_v25 }
 0x117   : > { %v433_v10 = vmul.f32 %v428_v26, %v421_v27  ;;  %v434_v36 = vmul.f32 %v428_v26, %v422_v29  ;;  %v435_v11 = vmul.f32 %v428_v26, %v423_v30  ;;  %v436_v37 = vmul.f32 %v428_v26, %v424_v31 }
 0x118   : > { %v444_v38 = vadd.f32 %v582_v32, %v429_v8  ;;  %v445_v16 = vadd.f32 %v582_v32, %v430_v33  ;;  %v446_v39 = vadd.f32 %v582_v32, %v431_v9  ;;  %v812_v21 = vadd.f32 %v582_v32, %v432_v34 }
 0x119   : > { %v814_v28 = vadd.f32 %v582_v32, %v433_v10  ;;  %v816_v35 = vadd.f32 %v582_v32, %v434_v36  ;;  %v818_v40 = vadd.f32 %v582_v32, %v435_v11  ;;  %v820_v41 = vadd.f32 %v582_v32, %v436_v37 }
 0x11a   : > { %v452_v42 = vsub.f32 0.0, %v444_v38  ;;  %v453_v43 = vsub.f32 0.0, %v445_v16  ;;  %v454_v44 = vsub.f32 0.0, %v446_v39  ;;  %v455_v45 = vsub.f32 0.0, %v812_v21 }
 0x11b   : > { %v456_v46 = vsub.f32 0.0, %v814_v28  ;;  %v457_v47 = vsub.f32 0.0, %v816_v35  ;;  %v458_v48 = vsub.f32 0.0, %v818_v40  ;;  %v459_v52 = vsub.f32 0.0, %v820_v41 }
 0x11c   : > { %v460_v49 = vmul.f32 1.442695, %v452_v42  ;;  %v462_v50 = vmul.f32 1.442695, %v453_v43  ;;  %v464_v51 = vmul.f32 1.442695, %v454_v44 }
 0x11d   : > { %v466_v53 = vmul.f32 1.442695, %v455_v45  ;;  %v468_v54 = vmul.f32 1.442695, %v456_v46  ;;  %v470_v55 = vmul.f32 1.442695, %v457_v47 }
 0x11e   : > { %644 = vpow2.f32 %v460_v49  ;;  %v472_v56 = vmul.f32 1.442695, %v458_v48  ;;  %v474_v57 = vmul.f32 1.442695, %v459_v52 }
 0x11f   : > { %646 = vpow2.f32 %v462_v50 }
 0x120   : > { %648 = vpow2.f32 %v464_v51 }
 0x121   : > { %650 = vpow2.f32 %v466_v53 }
 0x122   : > { %652 = vpow2.f32 %v468_v54 }
 0x123   : > { %654 = vpow2.f32 %v470_v55 }
 0x124   : > { %656 = vpow2.f32 %v472_v56 }
 0x125   : > { %658 = vpow2.f32 %v474_v57 }
 0x128   : > { %v645_v58 = vpop.eup %644 }
 0x129   : > { %v647_v59 = vpop.eup %646  ;;  %v476_v60 = vadd.f32 1.0, %v645_v58 }
 0x12a   : > { %v649_v61 = vpop.eup %648  ;;  %v477_v62 = vadd.f32 1.0, %v647_v59 }
 0x12b   : > { %v651_v63 = vpop.eup %650  ;;  %v478_v0 = vadd.f32 1.0, %v649_v61  ;;  %660 = vrcp.f32 %v476_v60 }
 0x12c   : > { %v653_v1 = vpop.eup %652  ;;  %v479_v2 = vadd.f32 1.0, %v651_v63  ;;  %662 = vrcp.f32 %v477_v62 }
 0x12d   : > { %v655_v3 = vpop.eup %654  ;;  %v480_v4 = vadd.f32 1.0, %v653_v1  ;;  %664 = vrcp.f32 %v478_v0 }
 0x12e   : > { %v657_v5 = vpop.eup %656  ;;  %v481_v6 = vadd.f32 1.0, %v655_v3  ;;  %666 = vrcp.f32 %v479_v2 }
 0x12f   : > { %v659_v7 = vpop.eup %658  ;;  %v482_v12 = vadd.f32 1.0, %v657_v5  ;;  %668 = vrcp.f32 %v480_v4 }
 0x130   : > { %v483_v13 = vadd.f32 1.0, %v659_v7  ;;  %670 = vrcp.f32 %v481_v6 }
 0x131   : > { %672 = vrcp.f32 %v482_v12 }
 0x132   : > { %674 = vrcp.f32 %v483_v13 }
 0x135   : > { %v661_v14 = vpop.eup %660 }
 0x136   : > { %v663_v15 = vpop.eup %662  ;;  %v500_v17 = vmul.f32 %v661_v14, %v444_v38 }
 0x137   : > { %v665_v18 = vpop.eup %664  ;;  %v501_v19 = vmul.f32 %v663_v15, %v445_v16 }
 0x138   : > { %v667_v20 = vpop.eup %666  ;;  %v502_v22 = vmul.f32 %v665_v18, %v446_v39  ;;  %508 = vst.msk [vmem:[%s197_s9] sm:$0xff] %vm206_vm1, %v500_v17 }
 0x139   : > { %v669_v23 = vpop.eup %668  ;;  %v503_v24 = vmul.f32 %v667_v20, %v812_v21  ;;  %509 = vst.msk [vmem:[%s197_s9 + $0x8] sm:$0xff] %vm206_vm1, %v501_v19 }
 0x13a   : > { %v671_v25 = vpop.eup %670  ;;  %v504_v26 = vmul.f32 %v669_v23, %v814_v28  ;;  %510 = vst.msk [vmem:[%s197_s9 + $0x10] sm:$0xff] %vm206_vm1, %v502_v22 }
 0x13b   : > { %v673_v27 = vpop.eup %672  ;;  %v505_v29 = vmul.f32 %v671_v25, %v816_v35  ;;  %511 = vst.msk [vmem:[%s197_s9 + $0x18] sm:$0xff] %vm206_vm1, %v503_v24 }
 0x13c   : > { %v675_v30 = vpop.eup %674  ;;  %v506_v31 = vmul.f32 %v673_v27, %v818_v40  ;;  %512 = vst.msk [vmem:[%s197_s9 + $0x20] sm:$0xff] %vm206_vm1, %v504_v26 }
 0x13d   : > { %v507_v32 = vmul.f32 %v675_v30, %v820_v41  ;;  %513 = vst.msk [vmem:[%s197_s9 + $0x28] sm:$0xff] %vm206_vm1, %v505_v29 }
 0x13e   : > { %514 = vst.msk [vmem:[%s197_s9 + $0x30] sm:$0xff] %vm206_vm1, %v506_v31 }
 0x13f   : > { %515 = vst.msk [vmem:[%s197_s9 + $0x38] sm:$0xff] %vm206_vm1, %v507_v32 }
 0x140 PF: > { %s14_s15 = sadd.s32 1, %s682_s15  }
 0x141   : > { %p11_p4 = scmp.ge.s32.totalorder %s14_s15, 4  }
 0x143   :  { %13 = sbr.rel (!%p11_p4) target bundleno = 1 (0x1), region = 66 }

// kernel: _lambda_.26
= control target key start
LH: loop header
LB: loop body
LE: loop exit
PB: predicated region body
PF: predicated region fallthrough
CT: control target
= control target key end

     0   :  { %vm105_vm0 = vcmask 261120   ;;  %s1054_s1 = inlined_call_operand.vmem [shape: f32[288,32], index: 1, kind: input, shape index: {}]   ;;  %s1055_s0 = inlined_call_operand.vmem [shape: f32[128,288], index: 0, kind: input, shape index: {}]   ;;  %s1056_s2 = inlined_call_operand.vmem [shape: f32[1,32], index: 2, kind: input, shape index: {}]   ;;  %s1057_s3 = inlined_call_operand.vmem [shape: f32[128,32], index: 3, kind: output, shape index: {}]  }
   0x1   :  { %v78_v0 = vld [vmem:[%s1054_s1 + $0x80] sm:$0xff]  ;;  %v79_v1 = vld [vmem:[%s1054_s1 + $0x88] sm:$0xff]  ;;  %v80_v5 = vld [vmem:[%s1054_s1 + $0x90] sm:$0xff] }
   0x2   :  { %v62_v2 = vld [vmem:[%s1054_s1] sm:$0xff]  ;;  %v613_v3 = vpack.c.bf16 %v79_v1, %v78_v0  ;;  %v63_v4 = vld [vmem:[%s1054_s1 + $0x8] sm:$0xff]  ;;  %v81_v6 = vld [vmem:[%s1054_s1 + $0x98] sm:$0xff] }
   0x3   :  { %v615_v7 = vpack.c.bf16 %v63_v4, %v62_v2  ;;  %v617_v8 = vpack.c.bf16 %v81_v6, %v80_v5  ;;  %v64_v9 = vld [vmem:[%s1054_s1 + $0x10] sm:$0xff]  ;;  %v65_v10 = vld [vmem:[%s1054_s1 + $0x18] sm:$0xff]  ;;  %v82_v11 = vld [vmem:[%s1054_s1 + $0xa0] sm:$0xff] }
   0x4   :  { %614 = vmatprep.subr.bf16.mxu0 %v613_v3  ;;  %653 = vmatprep.subr.bf16.mxu1 %v613_v3  ;;  %v83_v12 = vld [vmem:[%s1054_s1 + $0xa8] sm:$0xff]  ;;  %v619_v13 = vpack.c.bf16 %v65_v10, %v64_v9  ;;  %v66_v15 = vld [vmem:[%s1054_s1 + $0x20] sm:$0xff]  ;;  %v84_v17 = vld [vmem:[%s1054_s1 + $0xb0] sm:$0xff] }
   0x5   :  { %616 = vmatpush3.bf16.msra.mxu0 %v615_v7  ;;  %661 = vmatpush3.bf16.msra.mxu1 %v615_v7  ;;  %v621_v14 = vpack.c.bf16 %v83_v12, %v82_v11  ;;  %v67_v16 = vld [vmem:[%s1054_s1 + $0x28] sm:$0xff]  ;;  %v85_v18 = vld [vmem:[%s1054_s1 + $0xb8] sm:$0xff]  ;;  %v68_v21 = vld [vmem:[%s1054_s1 + $0x30] sm:$0xff] }
   0x6   :  { %618 = vmatprep.subr.bf16.mxu0 %v617_v8  ;;  %654 = vmatprep.subr.bf16.mxu1 %v617_v8  ;;  %v623_v19 = vpack.c.bf16 %v67_v16, %v66_v15  ;;  %v625_v20 = vpack.c.bf16 %v85_v18, %v84_v17  ;;  %v69_v22 = vld [vmem:[%s1054_s1 + $0x38] sm:$0xff]  ;;  %v86_v23 = vld [vmem:[%s1054_s1 + $0xc0] sm:$0xff]  ;;  %v87_v24 = vld [vmem:[%s1054_s1 + $0xc8] sm:$0xff] }
   0x7   :  { %v15_v25 = vld [vmem:[%s1055_s0 + $0x8] sm:$0xff]  ;;  %v627_v27 = vpack.c.bf16 %v69_v22, %v68_v21  ;;  %v629_v28 = vpack.c.bf16 %v87_v24, %v86_v23  ;;  %v70_v29 = vld [vmem:[%s1054_s1 + $0x40] sm:$0xff]  ;;  %v88_v31 = vld [vmem:[%s1054_s1 + $0xd0] sm:$0xff] }
   0x8   :  { %218 = vmatprep.mubr.f32.mxu0 %v15_v25  ;;  %v51_v26 = vld [vmem:[%s1055_s0 + $0x128] sm:$0xff]  ;;  %v89_v32 = vld [vmem:[%s1054_s1 + $0xd8] sm:$0xff]  ;;  %v72_v35 = vld [vmem:[%s1054_s1 + $0x50] sm:$0xff] }
   0x9   :  { %620 = vmatpush3.bf16.msra.mxu0 %v619_v13  ;;  %662 = vmatpush3.bf16.msra.mxu1 %v619_v13  ;;  %v71_v30 = vld [vmem:[%s1054_s1 + $0x48] sm:$0xff]  ;;  %v633_v34 = vpack.c.bf16 %v89_v32, %v88_v31  ;;  %v73_v36 = vld [vmem:[%s1054_s1 + $0x58] sm:$0xff]  ;;  %v90_v37 = vld [vmem:[%s1054_s1 + $0xe0] sm:$0xff] }
   0xa   :  { %622 = vmatprep.subr.bf16.mxu0 %v621_v14  ;;  %655 = vmatprep.subr.bf16.mxu1 %v621_v14  ;;  %v631_v33 = vpack.c.bf16 %v71_v30, %v70_v29  ;;  %v91_v38 = vld [vmem:[%s1054_s1 + $0xe8] sm:$0xff]  ;;  %v635_v39 = vpack.c.bf16 %v73_v36, %v72_v35  ;;  %v74_v41 = vld [vmem:[%s1054_s1 + $0x60] sm:$0xff]  ;;  %v92_v43 = vld [vmem:[%s1054_s1 + $0xf0] sm:$0xff] }
   0xb   :  { %278 = vmatprep.mubr.f32.mxu1 %v51_v26  ;;  %v637_v40 = vpack.c.bf16 %v91_v38, %v90_v37  ;;  %v75_v42 = vld [vmem:[%s1054_s1 + $0x68] sm:$0xff]  ;;  %v93_v44 = vld [vmem:[%s1054_s1 + $0xf8] sm:$0xff]  ;;  %v76_v47 = vld [vmem:[%s1054_s1 + $0x70] sm:$0xff] }
   0xc   :  { %v639_v45 = vpack.c.bf16 %v75_v42, %v74_v41  ;;  %v641_v46 = vpack.c.bf16 %v93_v44, %v92_v43  ;;  %v77_v48 = vld [vmem:[%s1054_s1 + $0x78] sm:$0xff]  ;;  %v94_v49 = vld [vmem:[%s1054_s1 + $0x100] sm:$0xff]  ;;  %v95_v50 = vld [vmem:[%s1054_s1 + $0x108] sm:$0xff] }
   0xd   :  { %624 = vmatpush3.bf16.msra.mxu0 %v623_v19  ;;  %663 = vmatpush3.bf16.msra.mxu1 %v623_v19  ;;  %v643_v51 = vpack.c.bf16 %v77_v48, %v76_v47  ;;  %v645_v52 = vpack.c.bf16 %v95_v50, %v94_v49  ;;  %v96_v53 = vld [vmem:[%s1054_s1 + $0x110] sm:$0xff]  ;;  %v97_v54 = vld [vmem:[%s1054_s1 + $0x118] sm:$0xff]  ;;  %v14_v55 = vld [vmem:[%s1055_s0] sm:$0xff] }
   0xe   :  { %626 = vmatprep.subr.bf16.mxu0 %v625_v20  ;;  %656 = vmatprep.subr.bf16.mxu1 %v625_v20  ;;  %v50_v56 = vld [vmem:[%s1055_s0 + $0x120] sm:$0xff]  ;;  %v649_v59 = vpack.c.bf16 %v97_v54, %v96_v53  ;;  %v17_v60 = vld [vmem:[%s1055_s0 + $0x18] sm:$0xff]  ;;  %v20_v0 = vld [vmem:[%s1055_s0 + $0x30] sm:$0xff] }
   0xf   :  { %v18_v57 = vld [vmem:[%s1055_s0 + $0x20] sm:$0xff]  ;;  %v53_v61 = vld [vmem:[%s1055_s0 + $0x138] sm:$0xff]  ;;  %v56_v1 = vld [vmem:[%s1055_s0 + $0x150] sm:$0xff] }
  0x10   :  { %v54_v58 = vld [vmem:[%s1055_s0 + $0x140] sm:$0xff]  ;;  %v21_v62 = vld [vmem:[%s1055_s0 + $0x38] sm:$0xff]  ;;  %v24_v2 = vld [vmem:[%s1055_s0 + $0x50] sm:$0xff] }
  0x11   :  { %628 = vmatpush3.bf16.msra.mxu0 %v627_v27  ;;  %664 = vmatpush3.bf16.msra.mxu1 %v627_v27  ;;  %v57_v63 = vld [vmem:[%s1055_s0 + $0x158] sm:$0xff]  ;;  %v60_v3 = vld [vmem:[%s1055_s0 + $0x170] sm:$0xff]  ;;  %v23_v4 = vld [vmem:[%s1055_s0 + $0x48] sm:$0xff] }
  0x12   :  { %630 = vmatprep.subr.bf16.mxu0 %v629_v28  ;;  %657 = vmatprep.subr.bf16.mxu1 %v629_v28  ;;  %v59_v5 = vld [vmem:[%s1055_s0 + $0x168] sm:$0xff]  ;;  %v16_v7 = vld [vmem:[%s1055_s0 + $0x10] sm:$0xff]  ;;  %v26_v8 = vld [vmem:[%s1055_s0 + $0x60] sm:$0xff] }
  0x13   :  { %v27_v6 = vld [vmem:[%s1055_s0 + $0x68] sm:$0xff]  ;;  %v30_v10 = vld [vmem:[%s1055_s0 + $0x80] sm:$0xff]  ;;  %v29_v12 = vld [vmem:[%s1055_s0 + $0x78] sm:$0xff] }
  0x14   :  { %v19_v9 = vld [vmem:[%s1055_s0 + $0x28] sm:$0xff]  ;;  %v22_v11 = vld [vmem:[%s1055_s0 + $0x40] sm:$0xff]  ;;  %v25_v13 = vld [vmem:[%s1055_s0 + $0x58] sm:$0xff] }
  0x15   :  { %632 = vmatpush3.bf16.msra.mxu0 %v631_v33  ;;  %665 = vmatpush3.bf16.msra.mxu1 %v631_v33  ;;  %v33_v14 = vld [vmem:[%s1055_s0 + $0x98] sm:$0xff]  ;;  %v28_v15 = vld [vmem:[%s1055_s0 + $0x70] sm:$0xff]  ;;  %v31_v17 = vld [vmem:[%s1055_s0 + $0x88] sm:$0xff] }
  0x16   :  { %634 = vmatprep.subr.bf16.mxu0 %v633_v34  ;;  %658 = vmatprep.subr.bf16.mxu1 %v633_v34  ;;  %v32_v16 = vld [vmem:[%s1055_s0 + $0x90] sm:$0xff]  ;;  %v34_v19 = vld [vmem:[%s1055_s0 + $0xa0] sm:$0xff]  ;;  %v35_v20 = vld [vmem:[%s1055_s0 + $0xa8] sm:$0xff] }
  0x17   :  { %v36_v18 = vld [vmem:[%s1055_s0 + $0xb0] sm:$0xff]  ;;  %v37_v21 = vld [vmem:[%s1055_s0 + $0xb8] sm:$0xff]  ;;  %v39_v22 = vld [vmem:[%s1055_s0 + $0xc8] sm:$0xff] }
  0x18   :  { %v40_v23 = vld [vmem:[%s1055_s0 + $0xd0] sm:$0xff]  ;;  %v38_v24 = vld [vmem:[%s1055_s0 + $0xc0] sm:$0xff]  ;;  %v43_v25 = vld [vmem:[%s1055_s0 + $0xe8] sm:$0xff] }
  0x19   :  { %636 = vmatpush3.bf16.msra.mxu0 %v635_v39  ;;  %666 = vmatpush3.bf16.msra.mxu1 %v635_v39  ;;  %v42_v26 = vld [vmem:[%s1055_s0 + $0xe0] sm:$0xff]  ;;  %v41_v28 = vld [vmem:[%s1055_s0 + $0xd8] sm:$0xff]  ;;  %v52_v31 = vld [vmem:[%s1055_s0 + $0x130] sm:$0xff] }
  0x1a   :  { %638 = vmatprep.subr.bf16.mxu0 %v637_v40  ;;  %659 = vmatprep.subr.bf16.mxu1 %v637_v40  ;;  %v46_v27 = vld [vmem:[%s1055_s0 + $0x100] sm:$0xff]  ;;  %v49_v29 = vld [vmem:[%s1055_s0 + $0x118] sm:$0xff]  ;;  %v44_v32 = vld [vmem:[%s1055_s0 + $0xf0] sm:$0xff] }
  0x1b   :  { %v45_v30 = vld [vmem:[%s1055_s0 + $0xf8] sm:$0xff]  ;;  %v55_v33 = vld [vmem:[%s1055_s0 + $0x148] sm:$0xff]  ;;  %v48_v34 = vld [vmem:[%s1055_s0 + $0x110] sm:$0xff] }
  0x1c   :  { %v58_v35 = vld [vmem:[%s1055_s0 + $0x160] sm:$0xff]  ;;  %v47_v36 = vld [vmem:[%s1055_s0 + $0x108] sm:$0xff]  ;;  %v61_v37 = vld [vmem:[%s1055_s0 + $0x178] sm:$0xff] }
  0x1d   :  { %640 = vmatpush3.bf16.msra.mxu0 %v639_v45  ;;  %667 = vmatpush3.bf16.msra.mxu1 %v639_v45 }
  0x1e   :  { %642 = vmatprep.subr.bf16.mxu0 %v641_v46  ;;  %660 = vmatprep.subr.bf16.mxu1 %v641_v46 }
  0x21   :  { %644 = vmatpush3.bf16.msra.mxu0 %v643_v51  ;;  %668 = vmatpush3.bf16.msra.mxu1 %v643_v51 }
  0x22   :  { %646 = vmatprep.subr.bf16.mxu1 %v645_v52 }
  0x24   :  { %219 = vmatmul.mubr.f32.vlgmr.msra.gmra.mrb[0].mxu0 %v14_v55  ;;  %279 = vmatmul.mubr.f32.vlgmr.msra.gmra.mrb[0].mxu1 %v50_v56 }
  0x25   :  { %223 = vmatprep.mubr.f32.mxu0 %v18_v57  ;;  %283 = vmatprep.mubr.f32.mxu1 %v54_v58 }
  0x26   :  { %648 = vmatpush3.bf16.msra.mxu1 %v645_v52 }
  0x27   :  { %650 = vmatprep.subr.bf16.mxu1 %v649_v59 }
  0x28   :  { %224 = vmatmul.mubr.f32.gmra.mrb[2].mxu0 %v17_v60  ;;  %284 = vmatmul.mubr.f32.gmra.mrb[2].mxu1 %v53_v61  ;;  %v966_v60 = vld [vmem:[%s1056_s2] ss:$0 sm:$0xff] }
  0x29   :  { %228 = vmatprep.mubr.f32.mxu0 %v21_v62  ;;  %288 = vmatprep.mubr.f32.mxu1 %v57_v63 }
  0x2a   :  { %652 = vmatpush3.bf16.msra.mxu1 %v649_v59 }
  0x2c   :  { %229 = vmatmul.mubr.f32.gmra.mrb[4].mxu0 %v20_v0  ;;  %289 = vmatmul.mubr.f32.gmra.mrb[4].mxu1 %v56_v1 }
  0x2d   :  { %233 = vmatprep.mubr.f32.mxu0 %v24_v2  ;;  %293 = vmatprep.mubr.f32.mxu1 %v60_v3 }
  0x30   :  { %234 = vmatmul.mubr.f32.gmra.mrb[6].mxu0 %v23_v4  ;;  %294 = vmatmul.mubr.f32.gmra.mrb[6].mxu1 %v59_v5 }
  0x31   :  { %238 = vmatprep.mubr.f32.mxu0 %v27_v6  ;;  %589 = vmatprep.mubr.msk.f32.mxu1 %vm105_vm0, %v16_v7 }
  0x34   :  { %239 = vmatmul.mubr.f32.gmra.mrb[8].mxu0 %v26_v8  ;;  %590 = vmatmul.mubr.msk.f32.vlgmr.msra.gmra.mrb[8].mxu1 %vm105_vm0, %v19_v9 }
  0x35   :  { %243 = vmatprep.mubr.f32.mxu0 %v30_v10  ;;  %592 = vmatprep.mubr.msk.f32.mxu1 %vm105_vm0, %v22_v11 }
  0x38   :  { %244 = vmatmul.mubr.f32.gmra.mrb[10].mxu0 %v29_v12  ;;  %593 = vmatmul.mubr.msk.f32.gmra.mrb[10].mxu1 %vm105_vm0, %v25_v13 }
  0x39   :  { %248 = vmatprep.mubr.f32.mxu0 %v33_v14  ;;  %595 = vmatprep.mubr.msk.f32.mxu1 %vm105_vm0, %v28_v15 }
  0x3c   :  { %249 = vmatmul.mubr.f32.gmra.mrb[12].mxu0 %v32_v16  ;;  %596 = vmatmul.mubr.msk.f32.gmra.mrb[12].mxu1 %vm105_vm0, %v31_v17 }
  0x3d   :  { %253 = vmatprep.mubr.f32.mxu0 %v36_v18  ;;  %598 = vmatprep.mubr.msk.f32.mxu1 %vm105_vm0, %v34_v19 }
  0x40   :  { %254 = vmatmul.mubr.f32.gmra.mrb[14].mxu0 %v35_v20  ;;  %599 = vmatmul.mubr.msk.f32.gmra.mrb[14].mxu1 %vm105_vm0, %v37_v21 }
  0x41   :  { %258 = vmatprep.mubr.f32.mxu0 %v39_v22  ;;  %601 = vmatprep.mubr.msk.f32.mxu1 %vm105_vm0, %v40_v23 }
  0x44   :  { %259 = vmatmul.mubr.f32.gmra.mrb[16].mxu0 %v38_v24  ;;  %602 = vmatmul.mubr.msk.f32.gmra.mrb[16].mxu1 %vm105_vm0, %v43_v25 }
  0x45   :  { %263 = vmatprep.mubr.f32.mxu0 %v42_v26  ;;  %604 = vmatprep.mubr.msk.f32.mxu1 %vm105_vm0, %v46_v27 }
  0x48   :  { %264 = vmatmul.mubr.f32.gmra.mrb[18].mxu0 %v41_v28  ;;  %605 = vmatmul.mubr.msk.f32.gmra.mrb[18].mxu1 %vm105_vm0, %v49_v29 }
  0x49   :  { %268 = vmatprep.mubr.f32.mxu0 %v45_v30  ;;  %607 = vmatprep.mubr.msk.f32.mxu1 %vm105_vm0, %v52_v31 }
  0x4c   :  { %269 = vmatmul.mubr.f32.gmra.mrb[20].mxu0 %v44_v32  ;;  %608 = vmatmul.mubr.msk.f32.gmra.mrb[20].mxu1 %vm105_vm0, %v55_v33 }
  0x4d   :  { %273 = vmatprep.mubr.f32.mxu0 %v48_v34  ;;  %610 = vmatprep.mubr.msk.f32.mxu1 %vm105_vm0, %v58_v35 }
  0x50   :  { %274 = vmatmul.mubr.f32.gmra.mrb[22].mxu0 %v47_v36  ;;  %611 = vmatmul.mubr.msk.f32.gmra.mrb[22].mxu1 %vm105_vm0, %v61_v37 }
  0xf7   :  { %v513_v38 = vpop.f32.mrb[0].mxu0  ;;  %v549_v39 = vpop.f32.mrb[0].mxu1 }
  0xf8   :  { %v514_v40 = vpop.f32.mrb[1].mxu0  ;;  %v550_v41 = vpop.f32.mrb[1].mxu1 }
  0xf9   :  { %v515_v42 = vadd.f32 %v514_v40, %v513_v38  ;;  %v957_v43 = vadd.f32 %v550_v41, %v549_v39 }
  0xfb   :  { %v516_v44 = vpop.f32.mrb[2].mxu0  ;;  %v552_v45 = vpop.f32.mrb[2].mxu1  ;;  %v221_v2 = vadd.f32 %v515_v42, %v966_v60 }
  0xfc   :  { %v517_v46 = vpop.f32.mrb[3].mxu0  ;;  %v553_v47 = vpop.f32.mrb[3].mxu1 }
  0xfd   :  { %v518_v48 = vadd.f32 %v517_v46, %v516_v44  ;;  %v959_v49 = vadd.f32 %v553_v47, %v552_v45 }
  0xff   :  { %v519_v50 = vpop.f32.mrb[4].mxu0  ;;  %v555_v51 = vpop.f32.mrb[4].mxu1  ;;  %v226_v63 = vadd.f32 %v518_v48, %v966_v60  ;;  %v286_v48 = vadd.f32 %v959_v49, %v966_v60 }
 0x100   :  { %v520_v52 = vpop.f32.mrb[5].mxu0  ;;  %v556_v53 = vpop.f32.mrb[5].mxu1 }
 0x101   :  { %v521_v54 = vadd.f32 %v520_v52, %v519_v50  ;;  %v961_v55 = vadd.f32 %v556_v53, %v555_v51  ;;  %v281_v53 = vadd.f32 %v957_v43, %v966_v60 }
 0x103   :  { %v522_v56 = vpop.f32.mrb[6].mxu0  ;;  %v558_v57 = vpop.f32.mrb[6].mxu1  ;;  %v231_v11 = vadd.f32 %v521_v54, %v966_v60 }
 0x104   :  { %v523_v58 = vpop.f32.mrb[7].mxu0  ;;  %v559_v59 = vpop.f32.mrb[7].mxu1 }
 0x105   :  { %v524_v61 = vadd.f32 %v523_v58, %v522_v56  ;;  %v968_v62 = vadd.f32 %v559_v59, %v558_v57 }
 0x107   :  { %v525_v0 = vpop.f32.mrb[8].mxu0  ;;  %v591_v1 = vpop.f32.mrb[8].mxu1  ;;  %v236_v8 = vadd.f32 %v524_v61, %v966_v60  ;;  %v296_v49 = vadd.f32 %v968_v62, %v966_v60 }
 0x108   :  { %v371_v3 = vadd.f32 %v591_v1, %v226_v63  ;;  %v526_v4 = vpop.f32.mrb[9].mxu0  ;;  %v365_v5 = vpop.f32.mrb[9].mxu1  ;;  %v291_v1 = vadd.f32 %v961_v55, %v966_v60 }
 0x109   :  { %v527_v6 = vadd.f32 %v526_v4, %v525_v0  ;;  %v366_v7 = vadd.f32 %v365_v5, %v221_v2 }
 0x10a   :  { %445 = vst.msk [vmem:[%s1057_s3 + $0x8] sm:$0xff] %vm105_vm0, %v371_v3 }
 0x10b   :  { %444 = vst.msk [vmem:[%s1057_s3] sm:$0xff] %vm105_vm0, %v366_v7  ;;  %v528_v9 = vpop.f32.mrb[10].mxu0  ;;  %v594_v10 = vpop.f32.mrb[10].mxu1  ;;  %v241_v20 = vadd.f32 %v527_v6, %v966_v60 }
 0x10c   :  { %v381_v12 = vadd.f32 %v594_v10, %v236_v8  ;;  %v529_v13 = vpop.f32.mrb[11].mxu0  ;;  %v375_v14 = vpop.f32.mrb[11].mxu1 }
 0x10d   :  { %v530_v15 = vadd.f32 %v529_v13, %v528_v9  ;;  %v376_v16 = vadd.f32 %v375_v14, %v231_v11 }
 0x10e   :  { %447 = vst.msk [vmem:[%s1057_s3 + $0x18] sm:$0xff] %vm105_vm0, %v381_v12 }
 0x10f   :  { %446 = vst.msk [vmem:[%s1057_s3 + $0x10] sm:$0xff] %vm105_vm0, %v376_v16  ;;  %v531_v17 = vpop.f32.mrb[12].mxu0  ;;  %v246_v18 = vadd.f32 %v530_v15, %v966_v60  ;;  %v597_v19 = vpop.f32.mrb[12].mxu1 }
 0x110   :  { %v532_v21 = vpop.f32.mrb[13].mxu0  ;;  %v385_v22 = vpop.f32.mrb[13].mxu1 }
 0x111   :  { %v391_v23 = vadd.f32 %v597_v19, %v246_v18  ;;  %v533_v24 = vadd.f32 %v532_v21, %v531_v17  ;;  %v386_v25 = vadd.f32 %v385_v22, %v241_v20 }
 0x113   :  { %449 = vst.msk [vmem:[%s1057_s3 + $0x28] sm:$0xff] %vm105_vm0, %v391_v23  ;;  %448 = vst.msk [vmem:[%s1057_s3 + $0x20] sm:$0xff] %vm105_vm0, %v386_v25  ;;  %v534_v26 = vpop.f32.mrb[14].mxu0  ;;  %v600_v27 = vpop.f32.mrb[14].mxu1  ;;  %v251_v28 = vadd.f32 %v533_v24, %v966_v60 }
 0x114   :  { %v535_v29 = vpop.f32.mrb[15].mxu0  ;;  %v395_v30 = vpop.f32.mrb[15].mxu1 }
 0x115   :  { %v536_v31 = vadd.f32 %v535_v29, %v534_v26  ;;  %v396_v32 = vadd.f32 %v395_v30, %v251_v28 }
 0x117   :  { %v256_v33 = vadd.f32 %v536_v31, %v966_v60  ;;  %450 = vst.msk [vmem:[%s1057_s3 + $0x30] sm:$0xff] %vm105_vm0, %v396_v32  ;;  %v537_v34 = vpop.f32.mrb[16].mxu0  ;;  %v603_v35 = vpop.f32.mrb[16].mxu1 }
 0x118   :  { %v538_v36 = vpop.f32.mrb[17].mxu0  ;;  %v405_v37 = vpop.f32.mrb[17].mxu1 }
 0x119   :  { %v401_v38 = vadd.f32 %v600_v27, %v256_v33  ;;  %v539_v39 = vadd.f32 %v538_v36, %v537_v34 }
 0x11b   :  { %451 = vst.msk [vmem:[%s1057_s3 + $0x38] sm:$0xff] %vm105_vm0, %v401_v38  ;;  %v540_v40 = vpop.f32.mrb[18].mxu0  ;;  %v261_v41 = vadd.f32 %v539_v39, %v966_v60  ;;  %v606_v42 = vpop.f32.mrb[18].mxu1 }
 0x11c   :  { %v541_v44 = vpop.f32.mrb[19].mxu0  ;;  %v415_v45 = vpop.f32.mrb[19].mxu1 }
 0x11d   :  { %v406_v46 = vadd.f32 %v405_v37, %v261_v41  ;;  %v542_v47 = vadd.f32 %v541_v44, %v540_v40 }
 0x11f   :  { %452 = vst.msk [vmem:[%s1057_s3 + $0x40] sm:$0xff] %vm105_vm0, %v406_v46  ;;  %v266_v50 = vadd.f32 %v542_v47, %v966_v60  ;;  %v543_v51 = vpop.f32.mrb[20].mxu0  ;;  %v609_v52 = vpop.f32.mrb[20].mxu1 }
 0x120   :  { %v431_v54 = vadd.f32 %v609_v52, %v286_v48  ;;  %v544_v56 = vpop.f32.mrb[21].mxu0  ;;  %v425_v57 = vpop.f32.mrb[21].mxu1 }
 0x121   :  { %v411_v58 = vadd.f32 %v603_v35, %v266_v50  ;;  %v545_v59 = vadd.f32 %v544_v56, %v543_v51  ;;  %v426_v61 = vadd.f32 %v425_v57, %v281_v53 }
 0x122   :  { %457 = vst.msk [vmem:[%s1057_s3 + $0x68] sm:$0xff] %vm105_vm0, %v431_v54 }
 0x123   :  { %453 = vst.msk [vmem:[%s1057_s3 + $0x48] sm:$0xff] %vm105_vm0, %v411_v58  ;;  %v271_v43 = vadd.f32 %v545_v59, %v966_v60  ;;  %456 = vst.msk [vmem:[%s1057_s3 + $0x60] sm:$0xff] %vm105_vm0, %v426_v61  ;;  %v546_v63 = vpop.f32.mrb[22].mxu0  ;;  %v612_v0 = vpop.f32.mrb[22].mxu1 }
 0x124   :  { %v441_v2 = vadd.f32 %v612_v0, %v296_v49  ;;  %v547_v3 = vpop.f32.mrb[23].mxu0  ;;  %v435_v62 = vpop.f32.mrb[23].mxu1 }
 0x125   :  { %v416_v4 = vadd.f32 %v415_v45, %v271_v43  ;;  %v548_v5 = vadd.f32 %v547_v3, %v546_v63  ;;  %v436_v6 = vadd.f32 %v435_v62, %v291_v1 }
 0x126   :  { %459 = vst.msk [vmem:[%s1057_s3 + $0x78] sm:$0xff] %vm105_vm0, %v441_v2 }
 0x127   :  { %454 = vst.msk [vmem:[%s1057_s3 + $0x50] sm:$0xff] %vm105_vm0, %v416_v4  ;;  %v276_v7 = vadd.f32 %v548_v5, %v966_v60  ;;  %458 = vst.msk [vmem:[%s1057_s3 + $0x70] sm:$0xff] %vm105_vm0, %v436_v6 }
 0x129   :  { %v421_v55 = vadd.f32 %v606_v42, %v276_v7 }
 0x12b   :  { %455 = vst.msk [vmem:[%s1057_s3 + $0x58] sm:$0xff] %vm105_vm0, %v421_v55 }

// kernel: _lambda_.28
= control target key start
LH: loop header
LB: loop body
LE: loop exit
PB: predicated region body
PF: predicated region fallthrough
CT: control target
= control target key end

     0   :  { %vm105_vm0 = vcmask 261120   ;;  %vm444_vm1 = vcmask 523264   ;;  %s1055_s1 = inlined_call_operand.vmem [shape: f32[288,64], index: 1, kind: input, shape index: {}]   ;;  %s1056_s0 = inlined_call_operand.vmem [shape: f32[128,288], index: 0, kind: input, shape index: {}]   ;;  %s1057_s2 = inlined_call_operand.vmem [shape: f32[1,64], index: 2, kind: input, shape index: {}]   ;;  %s1058_s3 = inlined_call_operand.vmem [shape: f32[128,64], index: 3, kind: output, shape index: {}]  }
   0x1   :  { %v78_v0 = vld [vmem:[%s1055_s1 + $0x80] sm:$0xff]  ;;  %v79_v1 = vld [vmem:[%s1055_s1 + $0x88] sm:$0xff]  ;;  %v80_v5 = vld [vmem:[%s1055_s1 + $0x90] sm:$0xff] }
   0x2   :  { %v62_v2 = vld [vmem:[%s1055_s1] sm:$0xff]  ;;  %v614_v3 = vpack.c.bf16 %v79_v1, %v78_v0  ;;  %v63_v4 = vld [vmem:[%s1055_s1 + $0x8] sm:$0xff]  ;;  %v81_v6 = vld [vmem:[%s1055_s1 + $0x98] sm:$0xff] }
   0x3   :  { %v616_v7 = vpack.c.bf16 %v63_v4, %v62_v2  ;;  %v618_v8 = vpack.c.bf16 %v81_v6, %v80_v5  ;;  %v64_v9 = vld [vmem:[%s1055_s1 + $0x10] sm:$0xff]  ;;  %v65_v10 = vld [vmem:[%s1055_s1 + $0x18] sm:$0xff]  ;;  %v82_v11 = vld [vmem:[%s1055_s1 + $0xa0] sm:$0xff] }
   0x4   :  { %615 = vmatprep.subr.bf16.mxu0 %v614_v3  ;;  %654 = vmatprep.subr.bf16.mxu1 %v614_v3  ;;  %v83_v12 = vld [vmem:[%s1055_s1 + $0xa8] sm:$0xff]  ;;  %v620_v13 = vpack.c.bf16 %v65_v10, %v64_v9  ;;  %v66_v15 = vld [vmem:[%s1055_s1 + $0x20] sm:$0xff]  ;;  %v84_v17 = vld [vmem:[%s1055_s1 + $0xb0] sm:$0xff] }
   0x5   :  { %617 = vmatpush3.bf16.msra.mxu0 %v616_v7  ;;  %662 = vmatpush3.bf16.msra.mxu1 %v616_v7  ;;  %v622_v14 = vpack.c.bf16 %v83_v12, %v82_v11  ;;  %v67_v16 = vld [vmem:[%s1055_s1 + $0x28] sm:$0xff]  ;;  %v85_v18 = vld [vmem:[%s1055_s1 + $0xb8] sm:$0xff]  ;;  %v68_v21 = vld [vmem:[%s1055_s1 + $0x30] sm:$0xff] }
   0x6   :  { %619 = vmatprep.subr.bf16.mxu0 %v618_v8  ;;  %655 = vmatprep.subr.bf16.mxu1 %v618_v8  ;;  %v624_v19 = vpack.c.bf16 %v67_v16, %v66_v15  ;;  %v626_v20 = vpack.c.bf16 %v85_v18, %v84_v17  ;;  %v69_v22 = vld [vmem:[%s1055_s1 + $0x38] sm:$0xff]  ;;  %v86_v23 = vld [vmem:[%s1055_s1 + $0xc0] sm:$0xff]  ;;  %v87_v24 = vld [vmem:[%s1055_s1 + $0xc8] sm:$0xff] }
   0x7   :  { %v15_v25 = vld [vmem:[%s1056_s0 + $0x8] sm:$0xff]  ;;  %v628_v27 = vpack.c.bf16 %v69_v22, %v68_v21  ;;  %v630_v28 = vpack.c.bf16 %v87_v24, %v86_v23  ;;  %v70_v29 = vld [vmem:[%s1055_s1 + $0x40] sm:$0xff]  ;;  %v88_v31 = vld [vmem:[%s1055_s1 + $0xd0] sm:$0xff] }
   0x8   :  { %218 = vmatprep.mubr.f32.mxu0 %v15_v25  ;;  %v51_v26 = vld [vmem:[%s1056_s0 + $0x128] sm:$0xff]  ;;  %v89_v32 = vld [vmem:[%s1055_s1 + $0xd8] sm:$0xff]  ;;  %v72_v35 = vld [vmem:[%s1055_s1 + $0x50] sm:$0xff] }
   0x9   :  { %621 = vmatpush3.bf16.msra.mxu0 %v620_v13  ;;  %663 = vmatpush3.bf16.msra.mxu1 %v620_v13  ;;  %v71_v30 = vld [vmem:[%s1055_s1 + $0x48] sm:$0xff]  ;;  %v634_v34 = vpack.c.bf16 %v89_v32, %v88_v31  ;;  %v73_v36 = vld [vmem:[%s1055_s1 + $0x58] sm:$0xff]  ;;  %v90_v37 = vld [vmem:[%s1055_s1 + $0xe0] sm:$0xff] }
   0xa   :  { %623 = vmatprep.subr.bf16.mxu0 %v622_v14  ;;  %656 = vmatprep.subr.bf16.mxu1 %v622_v14  ;;  %v632_v33 = vpack.c.bf16 %v71_v30, %v70_v29  ;;  %v91_v38 = vld [vmem:[%s1055_s1 + $0xe8] sm:$0xff]  ;;  %v636_v39 = vpack.c.bf16 %v73_v36, %v72_v35  ;;  %v74_v41 = vld [vmem:[%s1055_s1 + $0x60] sm:$0xff]  ;;  %v92_v43 = vld [vmem:[%s1055_s1 + $0xf0] sm:$0xff] }
   0xb   :  { %278 = vmatprep.mubr.f32.mxu1 %v51_v26  ;;  %v638_v40 = vpack.c.bf16 %v91_v38, %v90_v37  ;;  %v75_v42 = vld [vmem:[%s1055_s1 + $0x68] sm:$0xff]  ;;  %v93_v44 = vld [vmem:[%s1055_s1 + $0xf8] sm:$0xff]  ;;  %v76_v47 = vld [vmem:[%s1055_s1 + $0x70] sm:$0xff] }
   0xc   :  { %v640_v45 = vpack.c.bf16 %v75_v42, %v74_v41  ;;  %v642_v46 = vpack.c.bf16 %v93_v44, %v92_v43  ;;  %v77_v48 = vld [vmem:[%s1055_s1 + $0x78] sm:$0xff]  ;;  %v94_v49 = vld [vmem:[%s1055_s1 + $0x100] sm:$0xff]  ;;  %v95_v50 = vld [vmem:[%s1055_s1 + $0x108] sm:$0xff] }
   0xd   :  { %625 = vmatpush3.bf16.msra.mxu0 %v624_v19  ;;  %664 = vmatpush3.bf16.msra.mxu1 %v624_v19  ;;  %v644_v51 = vpack.c.bf16 %v77_v48, %v76_v47  ;;  %v646_v52 = vpack.c.bf16 %v95_v50, %v94_v49  ;;  %v96_v53 = vld [vmem:[%s1055_s1 + $0x110] sm:$0xff]  ;;  %v97_v54 = vld [vmem:[%s1055_s1 + $0x118] sm:$0xff]  ;;  %v14_v55 = vld [vmem:[%s1056_s0] sm:$0xff] }
   0xe   :  { %627 = vmatprep.subr.bf16.mxu0 %v626_v20  ;;  %657 = vmatprep.subr.bf16.mxu1 %v626_v20  ;;  %v50_v56 = vld [vmem:[%s1056_s0 + $0x120] sm:$0xff]  ;;  %v650_v59 = vpack.c.bf16 %v97_v54, %v96_v53  ;;  %v17_v60 = vld [vmem:[%s1056_s0 + $0x18] sm:$0xff]  ;;  %v20_v0 = vld [vmem:[%s1056_s0 + $0x30] sm:$0xff] }
   0xf   :  { %v18_v57 = vld [vmem:[%s1056_s0 + $0x20] sm:$0xff]  ;;  %v53_v61 = vld [vmem:[%s1056_s0 + $0x138] sm:$0xff]  ;;  %v56_v1 = vld [vmem:[%s1056_s0 + $0x150] sm:$0xff] }
  0x10   :  { %v54_v58 = vld [vmem:[%s1056_s0 + $0x140] sm:$0xff]  ;;  %v21_v62 = vld [vmem:[%s1056_s0 + $0x38] sm:$0xff]  ;;  %v24_v2 = vld [vmem:[%s1056_s0 + $0x50] sm:$0xff] }
  0x11   :  { %629 = vmatpush3.bf16.msra.mxu0 %v628_v27  ;;  %665 = vmatpush3.bf16.msra.mxu1 %v628_v27  ;;  %v57_v63 = vld [vmem:[%s1056_s0 + $0x158] sm:$0xff]  ;;  %v60_v3 = vld [vmem:[%s1056_s0 + $0x170] sm:$0xff]  ;;  %v23_v4 = vld [vmem:[%s1056_s0 + $0x48] sm:$0xff] }
  0x12   :  { %631 = vmatprep.subr.bf16.mxu0 %v630_v28  ;;  %658 = vmatprep.subr.bf16.mxu1 %v630_v28  ;;  %v59_v5 = vld [vmem:[%s1056_s0 + $0x168] sm:$0xff]  ;;  %v16_v7 = vld [vmem:[%s1056_s0 + $0x10] sm:$0xff]  ;;  %v26_v8 = vld [vmem:[%s1056_s0 + $0x60] sm:$0xff] }
  0x13   :  { %v27_v6 = vld [vmem:[%s1056_s0 + $0x68] sm:$0xff]  ;;  %v30_v10 = vld [vmem:[%s1056_s0 + $0x80] sm:$0xff]  ;;  %v29_v12 = vld [vmem:[%s1056_s0 + $0x78] sm:$0xff] }
  0x14   :  { %v19_v9 = vld [vmem:[%s1056_s0 + $0x28] sm:$0xff]  ;;  %v22_v11 = vld [vmem:[%s1056_s0 + $0x40] sm:$0xff]  ;;  %v25_v13 = vld [vmem:[%s1056_s0 + $0x58] sm:$0xff] }
  0x15   :  { %633 = vmatpush3.bf16.msra.mxu0 %v632_v33  ;;  %666 = vmatpush3.bf16.msra.mxu1 %v632_v33  ;;  %v33_v14 = vld [vmem:[%s1056_s0 + $0x98] sm:$0xff]  ;;  %v28_v15 = vld [vmem:[%s1056_s0 + $0x70] sm:$0xff]  ;;  %v31_v17 = vld [vmem:[%s1056_s0 + $0x88] sm:$0xff] }
  0x16   :  { %635 = vmatprep.subr.bf16.mxu0 %v634_v34  ;;  %659 = vmatprep.subr.bf16.mxu1 %v634_v34  ;;  %v32_v16 = vld [vmem:[%s1056_s0 + $0x90] sm:$0xff]  ;;  %v34_v19 = vld [vmem:[%s1056_s0 + $0xa0] sm:$0xff]  ;;  %v35_v20 = vld [vmem:[%s1056_s0 + $0xa8] sm:$0xff] }
  0x17   :  { %v36_v18 = vld [vmem:[%s1056_s0 + $0xb0] sm:$0xff]  ;;  %v37_v21 = vld [vmem:[%s1056_s0 + $0xb8] sm:$0xff]  ;;  %v39_v22 = vld [vmem:[%s1056_s0 + $0xc8] sm:$0xff] }
  0x18   :  { %v40_v23 = vld [vmem:[%s1056_s0 + $0xd0] sm:$0xff]  ;;  %v38_v24 = vld [vmem:[%s1056_s0 + $0xc0] sm:$0xff]  ;;  %v43_v25 = vld [vmem:[%s1056_s0 + $0xe8] sm:$0xff] }
  0x19   :  { %637 = vmatpush3.bf16.msra.mxu0 %v636_v39  ;;  %667 = vmatpush3.bf16.msra.mxu1 %v636_v39  ;;  %v42_v26 = vld [vmem:[%s1056_s0 + $0xe0] sm:$0xff]  ;;  %v41_v28 = vld [vmem:[%s1056_s0 + $0xd8] sm:$0xff]  ;;  %v52_v31 = vld [vmem:[%s1056_s0 + $0x130] sm:$0xff] }
  0x1a   :  { %639 = vmatprep.subr.bf16.mxu0 %v638_v40  ;;  %660 = vmatprep.subr.bf16.mxu1 %v638_v40  ;;  %v46_v27 = vld [vmem:[%s1056_s0 + $0x100] sm:$0xff]  ;;  %v49_v29 = vld [vmem:[%s1056_s0 + $0x118] sm:$0xff]  ;;  %v44_v32 = vld [vmem:[%s1056_s0 + $0xf0] sm:$0xff] }
  0x1b   :  { %v45_v30 = vld [vmem:[%s1056_s0 + $0xf8] sm:$0xff]  ;;  %v55_v33 = vld [vmem:[%s1056_s0 + $0x148] sm:$0xff]  ;;  %v48_v34 = vld [vmem:[%s1056_s0 + $0x110] sm:$0xff] }
  0x1c   :  { %v58_v35 = vld [vmem:[%s1056_s0 + $0x160] sm:$0xff]  ;;  %v47_v36 = vld [vmem:[%s1056_s0 + $0x108] sm:$0xff]  ;;  %v61_v37 = vld [vmem:[%s1056_s0 + $0x178] sm:$0xff] }
  0x1d   :  { %641 = vmatpush3.bf16.msra.mxu0 %v640_v45  ;;  %668 = vmatpush3.bf16.msra.mxu1 %v640_v45 }
  0x1e   :  { %643 = vmatprep.subr.bf16.mxu0 %v642_v46  ;;  %661 = vmatprep.subr.bf16.mxu1 %v642_v46 }
  0x21   :  { %645 = vmatpush3.bf16.msra.mxu0 %v644_v51  ;;  %669 = vmatpush3.bf16.msra.mxu1 %v644_v51 }
  0x22   :  { %647 = vmatprep.subr.bf16.mxu1 %v646_v52 }
  0x24   :  { %219 = vmatmul.mubr.f32.vlgmr.msra.gmra.mrb[0].mxu0 %v14_v55  ;;  %279 = vmatmul.mubr.f32.vlgmr.msra.gmra.mrb[0].mxu1 %v50_v56 }
  0x25   :  { %223 = vmatprep.mubr.f32.mxu0 %v18_v57  ;;  %283 = vmatprep.mubr.f32.mxu1 %v54_v58 }
  0x26   :  { %649 = vmatpush3.bf16.msra.mxu1 %v646_v52 }
  0x27   :  { %651 = vmatprep.subr.bf16.mxu1 %v650_v59 }
  0x28   :  { %224 = vmatmul.mubr.f32.gmra.mrb[2].mxu0 %v17_v60  ;;  %284 = vmatmul.mubr.f32.gmra.mrb[2].mxu1 %v53_v61  ;;  %v967_v60 = vld [vmem:[%s1057_s2] ss:$0 sm:$0xff] }
  0x29   :  { %228 = vmatprep.mubr.f32.mxu0 %v21_v62  ;;  %288 = vmatprep.mubr.f32.mxu1 %v57_v63 }
  0x2a   :  { %653 = vmatpush3.bf16.msra.mxu1 %v650_v59 }
  0x2c   :  { %229 = vmatmul.mubr.f32.gmra.mrb[4].mxu0 %v20_v0  ;;  %289 = vmatmul.mubr.f32.gmra.mrb[4].mxu1 %v56_v1 }
  0x2d   :  { %233 = vmatprep.mubr.f32.mxu0 %v24_v2  ;;  %293 = vmatprep.mubr.f32.mxu1 %v60_v3 }
  0x30   :  { %234 = vmatmul.mubr.f32.gmra.mrb[6].mxu0 %v23_v4  ;;  %294 = vmatmul.mubr.f32.gmra.mrb[6].mxu1 %v59_v5 }
  0x31   :  { %238 = vmatprep.mubr.f32.mxu0 %v27_v6  ;;  %590 = vmatprep.mubr.msk.f32.mxu1 %vm105_vm0, %v16_v7 }
  0x34   :  { %239 = vmatmul.mubr.f32.gmra.mrb[8].mxu0 %v26_v8  ;;  %591 = vmatmul.mubr.msk.f32.vlgmr.msra.gmra.mrb[8].mxu1 %vm105_vm0, %v19_v9 }
  0x35   :  { %243 = vmatprep.mubr.f32.mxu0 %v30_v10  ;;  %593 = vmatprep.mubr.msk.f32.mxu1 %vm105_vm0, %v22_v11 }
  0x38   :  { %244 = vmatmul.mubr.f32.gmra.mrb[10].mxu0 %v29_v12  ;;  %594 = vmatmul.mubr.msk.f32.gmra.mrb[10].mxu1 %vm105_vm0, %v25_v13 }
  0x39   :  { %248 = vmatprep.mubr.f32.mxu0 %v33_v14  ;;  %596 = vmatprep.mubr.msk.f32.mxu1 %vm105_vm0, %v28_v15 }
  0x3c   :  { %249 = vmatmul.mubr.f32.gmra.mrb[12].mxu0 %v32_v16  ;;  %597 = vmatmul.mubr.msk.f32.gmra.mrb[12].mxu1 %vm105_vm0, %v31_v17 }
  0x3d   :  { %253 = vmatprep.mubr.f32.mxu0 %v36_v18  ;;  %599 = vmatprep.mubr.msk.f32.mxu1 %vm105_vm0, %v34_v19 }
  0x40   :  { %254 = vmatmul.mubr.f32.gmra.mrb[14].mxu0 %v35_v20  ;;  %600 = vmatmul.mubr.msk.f32.gmra.mrb[14].mxu1 %vm105_vm0, %v37_v21 }
  0x41   :  { %258 = vmatprep.mubr.f32.mxu0 %v39_v22  ;;  %602 = vmatprep.mubr.msk.f32.mxu1 %vm105_vm0, %v40_v23 }
  0x44   :  { %259 = vmatmul.mubr.f32.gmra.mrb[16].mxu0 %v38_v24  ;;  %603 = vmatmul.mubr.msk.f32.gmra.mrb[16].mxu1 %vm105_vm0, %v43_v25 }
  0x45   :  { %263 = vmatprep.mubr.f32.mxu0 %v42_v26  ;;  %605 = vmatprep.mubr.msk.f32.mxu1 %vm105_vm0, %v46_v27 }
  0x48   :  { %264 = vmatmul.mubr.f32.gmra.mrb[18].mxu0 %v41_v28  ;;  %606 = vmatmul.mubr.msk.f32.gmra.mrb[18].mxu1 %vm105_vm0, %v49_v29 }
  0x49   :  { %268 = vmatprep.mubr.f32.mxu0 %v45_v30  ;;  %608 = vmatprep.mubr.msk.f32.mxu1 %vm105_vm0, %v52_v31 }
  0x4c   :  { %269 = vmatmul.mubr.f32.gmra.mrb[20].mxu0 %v44_v32  ;;  %609 = vmatmul.mubr.msk.f32.gmra.mrb[20].mxu1 %vm105_vm0, %v55_v33 }
  0x4d   :  { %273 = vmatprep.mubr.f32.mxu0 %v48_v34  ;;  %611 = vmatprep.mubr.msk.f32.mxu1 %vm105_vm0, %v58_v35 }
  0x50   :  { %274 = vmatmul.mubr.f32.gmra.mrb[22].mxu0 %v47_v36  ;;  %612 = vmatmul.mubr.msk.f32.gmra.mrb[22].mxu1 %vm105_vm0, %v61_v37 }
  0xf7   :  { %v514_v38 = vpop.f32.mrb[0].mxu0  ;;  %v550_v39 = vpop.f32.mrb[0].mxu1 }
  0xf8   :  { %v515_v40 = vpop.f32.mrb[1].mxu0  ;;  %v551_v41 = vpop.f32.mrb[1].mxu1 }
  0xf9   :  { %v516_v42 = vadd.f32 %v515_v40, %v514_v38  ;;  %v958_v43 = vadd.f32 %v551_v41, %v550_v39 }
  0xfb   :  { %v517_v44 = vpop.f32.mrb[2].mxu0  ;;  %v553_v45 = vpop.f32.mrb[2].mxu1  ;;  %v221_v2 = vadd.f32 %v516_v42, %v967_v60 }
  0xfc   :  { %v518_v46 = vpop.f32.mrb[3].mxu0  ;;  %v554_v47 = vpop.f32.mrb[3].mxu1 }
  0xfd   :  { %v519_v48 = vadd.f32 %v518_v46, %v517_v44  ;;  %v960_v49 = vadd.f32 %v554_v47, %v553_v45 }
  0xff   :  { %v520_v50 = vpop.f32.mrb[4].mxu0  ;;  %v556_v51 = vpop.f32.mrb[4].mxu1  ;;  %v226_v63 = vadd.f32 %v519_v48, %v967_v60  ;;  %v286_v48 = vadd.f32 %v960_v49, %v967_v60 }
 0x100   :  { %v521_v52 = vpop.f32.mrb[5].mxu0  ;;  %v557_v53 = vpop.f32.mrb[5].mxu1 }
 0x101   :  { %v522_v54 = vadd.f32 %v521_v52, %v520_v50  ;;  %v962_v55 = vadd.f32 %v557_v53, %v556_v51  ;;  %v281_v53 = vadd.f32 %v958_v43, %v967_v60 }
 0x103   :  { %v523_v56 = vpop.f32.mrb[6].mxu0  ;;  %v559_v57 = vpop.f32.mrb[6].mxu1  ;;  %v231_v11 = vadd.f32 %v522_v54, %v967_v60 }
 0x104   :  { %v524_v58 = vpop.f32.mrb[7].mxu0  ;;  %v560_v59 = vpop.f32.mrb[7].mxu1 }
 0x105   :  { %v525_v61 = vadd.f32 %v524_v58, %v523_v56  ;;  %v969_v62 = vadd.f32 %v560_v59, %v559_v57 }
 0x107   :  { %v526_v0 = vpop.f32.mrb[8].mxu0  ;;  %v592_v1 = vpop.f32.mrb[8].mxu1  ;;  %v236_v8 = vadd.f32 %v525_v61, %v967_v60  ;;  %v296_v49 = vadd.f32 %v969_v62, %v967_v60 }
 0x108   :  { %v371_v3 = vadd.f32 %v592_v1, %v226_v63  ;;  %v527_v4 = vpop.f32.mrb[9].mxu0  ;;  %v365_v5 = vpop.f32.mrb[9].mxu1  ;;  %v291_v1 = vadd.f32 %v962_v55, %v967_v60 }
 0x109   :  { %v528_v6 = vadd.f32 %v527_v4, %v526_v0  ;;  %v366_v7 = vadd.f32 %v365_v5, %v221_v2 }
 0x10a   :  { %446 = vst.msk [vmem:[%s1058_s3 + $0x8] sm:$0xff] %vm444_vm1, %v371_v3 }
 0x10b   :  { %445 = vst.msk [vmem:[%s1058_s3] sm:$0xff] %vm444_vm1, %v366_v7  ;;  %v529_v9 = vpop.f32.mrb[10].mxu0  ;;  %v595_v10 = vpop.f32.mrb[10].mxu1  ;;  %v241_v20 = vadd.f32 %v528_v6, %v967_v60 }
 0x10c   :  { %v381_v12 = vadd.f32 %v595_v10, %v236_v8  ;;  %v530_v13 = vpop.f32.mrb[11].mxu0  ;;  %v375_v14 = vpop.f32.mrb[11].mxu1 }
 0x10d   :  { %v531_v15 = vadd.f32 %v530_v13, %v529_v9  ;;  %v376_v16 = vadd.f32 %v375_v14, %v231_v11 }
 0x10e   :  { %448 = vst.msk [vmem:[%s1058_s3 + $0x18] sm:$0xff] %vm444_vm1, %v381_v12 }
 0x10f   :  { %447 = vst.msk [vmem:[%s1058_s3 + $0x10] sm:$0xff] %vm444_vm1, %v376_v16  ;;  %v532_v17 = vpop.f32.mrb[12].mxu0  ;;  %v246_v18 = vadd.f32 %v531_v15, %v967_v60  ;;  %v598_v19 = vpop.f32.mrb[12].mxu1 }
 0x110   :  { %v533_v21 = vpop.f32.mrb[13].mxu0  ;;  %v385_v22 = vpop.f32.mrb[13].mxu1 }
 0x111   :  { %v391_v23 = vadd.f32 %v598_v19, %v246_v18  ;;  %v534_v24 = vadd.f32 %v533_v21, %v532_v17  ;;  %v386_v25 = vadd.f32 %v385_v22, %v241_v20 }
 0x113   :  { %450 = vst.msk [vmem:[%s1058_s3 + $0x28] sm:$0xff] %vm444_vm1, %v391_v23  ;;  %449 = vst.msk [vmem:[%s1058_s3 + $0x20] sm:$0xff] %vm444_vm1, %v386_v25  ;;  %v535_v26 = vpop.f32.mrb[14].mxu0  ;;  %v601_v27 = vpop.f32.mrb[14].mxu1  ;;  %v251_v28 = vadd.f32 %v534_v24, %v967_v60 }
 0x114   :  { %v536_v29 = vpop.f32.mrb[15].mxu0  ;;  %v395_v30 = vpop.f32.mrb[15].mxu1 }
 0x115   :  { %v537_v31 = vadd.f32 %v536_v29, %v535_v26  ;;  %v396_v32 = vadd.f32 %v395_v30, %v251_v28 }
 0x117   :  { %v256_v33 = vadd.f32 %v537_v31, %v967_v60  ;;  %451 = vst.msk [vmem:[%s1058_s3 + $0x30] sm:$0xff] %vm444_vm1, %v396_v32  ;;  %v538_v34 = vpop.f32.mrb[16].mxu0  ;;  %v604_v35 = vpop.f32.mrb[16].mxu1 }
 0x118   :  { %v539_v36 = vpop.f32.mrb[17].mxu0  ;;  %v405_v37 = vpop.f32.mrb[17].mxu1 }
 0x119   :  { %v401_v38 = vadd.f32 %v601_v27, %v256_v33  ;;  %v540_v39 = vadd.f32 %v539_v36, %v538_v34 }
 0x11b   :  { %452 = vst.msk [vmem:[%s1058_s3 + $0x38] sm:$0xff] %vm444_vm1, %v401_v38  ;;  %v541_v40 = vpop.f32.mrb[18].mxu0  ;;  %v261_v41 = vadd.f32 %v540_v39, %v967_v60  ;;  %v607_v42 = vpop.f32.mrb[18].mxu1 }
 0x11c   :  { %v542_v44 = vpop.f32.mrb[19].mxu0  ;;  %v415_v45 = vpop.f32.mrb[19].mxu1 }
 0x11d   :  { %v406_v46 = vadd.f32 %v405_v37, %v261_v41  ;;  %v543_v47 = vadd.f32 %v542_v44, %v541_v40 }
 0x11f   :  { %453 = vst.msk [vmem:[%s1058_s3 + $0x40] sm:$0xff] %vm444_vm1, %v406_v46  ;;  %v266_v50 = vadd.f32 %v543_v47, %v967_v60  ;;  %v544_v51 = vpop.f32.mrb[20].mxu0  ;;  %v610_v52 = vpop.f32.mrb[20].mxu1 }
 0x120   :  { %v431_v54 = vadd.f32 %v610_v52, %v286_v48  ;;  %v545_v56 = vpop.f32.mrb[21].mxu0  ;;  %v425_v57 = vpop.f32.mrb[21].mxu1 }
 0x121   :  { %v411_v58 = vadd.f32 %v604_v35, %v266_v50  ;;  %v546_v59 = vadd.f32 %v545_v56, %v544_v51  ;;  %v426_v61 = vadd.f32 %v425_v57, %v281_v53 }
 0x122   :  { %458 = vst.msk [vmem:[%s1058_s3 + $0x68] sm:$0xff] %vm444_vm1, %v431_v54 }
 0x123   :  { %454 = vst.msk [vmem:[%s1058_s3 + $0x48] sm:$0xff] %vm444_vm1, %v411_v58  ;;  %v271_v43 = vadd.f32 %v546_v59, %v967_v60  ;;  %457 = vst.msk [vmem:[%s1058_s3 + $0x60] sm:$0xff] %vm444_vm1, %v426_v61  ;;  %v547_v63 = vpop.f32.mrb[22].mxu0  ;;  %v613_v0 = vpop.f32.mrb[22].mxu1 }
 0x124   :  { %v441_v2 = vadd.f32 %v613_v0, %v296_v49  ;;  %v548_v3 = vpop.f32.mrb[23].mxu0  ;;  %v435_v62 = vpop.f32.mrb[23].mxu1 }
 0x125   :  { %v416_v4 = vadd.f32 %v415_v45, %v271_v43  ;;  %v549_v5 = vadd.f32 %v548_v3, %v547_v63  ;;  %v436_v6 = vadd.f32 %v435_v62, %v291_v1 }
 0x126   :  { %460 = vst.msk [vmem:[%s1058_s3 + $0x78] sm:$0xff] %vm444_vm1, %v441_v2 }
 0x127   :  { %455 = vst.msk [vmem:[%s1058_s3 + $0x50] sm:$0xff] %vm444_vm1, %v416_v4  ;;  %v276_v7 = vadd.f32 %v549_v5, %v967_v60  ;;  %459 = vst.msk [vmem:[%s1058_s3 + $0x70] sm:$0xff] %vm444_vm1, %v436_v6 }
 0x129   :  { %v421_v55 = vadd.f32 %v607_v42, %v276_v7 }
 0x12b   :  { %456 = vst.msk [vmem:[%s1058_s3 + $0x58] sm:$0xff] %vm444_vm1, %v421_v55 }

// kernel: _lambda_.29
= control target key start
LH: loop header
LB: loop body
LE: loop exit
PB: predicated region body
PF: predicated region fallthrough
CT: control target
= control target key end

     0   :  { %s752_s15 = smov 0   ;;  %s910_s0 = inlined_call_operand.vmem [shape: f32[2,64,64], index: 0, kind: input, shape index: {}]   ;;  %s911_s1 = inlined_call_operand.vmem [shape: f32[1,64], index: 1, kind: input, shape index: {}]   ;;  %s912_s2 = inlined_call_operand.vmem [shape: f32[1,64], index: 2, kind: input, shape index: {}]   ;;  %s913_s3 = inlined_call_operand.vmem [shape: f32[64,64], index: 3, kind: input, shape index: {}]   ;;  %s914_s4 = inlined_call_operand.vmem [shape: f32[2,64,64], index: 4, kind: output, shape index: {}]  }
   0x1 LB: > { %s575_s16 = sadd.s32 4294967295, %s722_s15   ;;  %p579_p0 = scmp.ge.s32.totalorder %s722_s15, 1  ;;  %s722_s15 = sphi %s752_s15, %s14_s15  }
   0x2   : > { %p162_p1 = scmp.lt.s32.totalorder %s722_s15, 3 }
   0x4   : > { %p163_p2 = pnand %p579_p0, %p162_p1 }
   0x5   : > { %v257_v0 = vld [vmem:[%s913_s3] sm:$0xff] (!%p163_p2)  ;;  %v258_v1 = vld [vmem:[%s913_s3 + $0x8] sm:$0xff] (!%p163_p2)  ;;  %v259_v2 = vld [vmem:[%s913_s3 + $0x10] sm:$0xff] (!%p163_p2)  ;;  %v724_v3 = vmov (!%p163_p2), 0.0|0.0   ;;  %p188_p3 = scmp.lt.s32.totalorder (!%p163_p2), %s575_s16, 1  ;;  %vm725_vm0 = vmmov (!%p163_p2), 0  }
   0x6   : > { %166 = sbr.rel (%p163_p2) target bundleno = 320 (0x140), region = 36  ;;  %647 = vmatprep.subr.bf16.mxu0 (!%p163_p2), %v724_v3  ;;  %v648_v4 = vpack.c.bf16 (!%p163_p2), %v258_v1, %v257_v0  ;;  %659 = vmatprep.subr.bf16.mxu1 (!%p163_p2), %v724_v3  ;;  %v260_v5 = vld [vmem:[%s913_s3 + $0x18] sm:$0xff] (!%p163_p2)  ;;  %v726_v6 = vmov (!%p163_p2), 0.0   ;;  %v261_v8 = vld [vmem:[%s913_s3 + $0x20] sm:$0xff] (!%p163_p2)  ;;  %v262_v9 = vld [vmem:[%s913_s3 + $0x28] sm:$0xff] (!%p163_p2)  ;;  %vm206_vm1 = vcmask (!%p163_p2), 523264  }
   0x7   : > { %625 = vmatprep.mubr.msk.f32.mxu0 (!%p163_p2), %vm725_vm0, %v726_v6  ;;  %644 = vmatprep.mubr.msk.f32.mxu1 (!%p163_p2), %vm725_vm0, %v726_v6  ;;  %v651_v7 = vpack.c.bf16 (!%p163_p2), %v260_v5, %v259_v2  ;;  %v654_v10 = vpack.c.bf16 (!%p163_p2), %v262_v9, %v261_v8  ;;  %v263_v14 = vld [vmem:[%s913_s3 + $0x30] sm:$0xff] (!%p163_p2)  ;;  %v264_v15 = vld [vmem:[%s913_s3 + $0x38] sm:$0xff] (!%p163_p2) }
   0x8   : > { %649 = vmatpush3.bf16.msra.mxu0 (!%p163_p2), %v648_v4  ;;  %661 = vmatpush3.bf16.msra.mxu1 (!%p163_p2), %v648_v4  ;;  %v657_v26 = vpack.c.bf16 (!%p163_p2), %v264_v15, %v263_v14  ;;  %v417_v15 = vlaneseq (!%p163_p2) }
   0x9   : > { %650 = vmatprep.subr.bf16.mxu0 (!%p163_p2), %v724_v3  ;;  %662 = vmatprep.subr.bf16.mxu1 (!%p163_p2), %v724_v3 }
   0xc   : > { %652 = vmatpush3.bf16.msra.mxu0 (!%p163_p2), %v651_v7  ;;  %664 = vmatpush3.bf16.msra.mxu1 (!%p163_p2), %v651_v7 }
   0xd   : > { %s916_s16 = smov (!%p188_p3, %s575_s16), 1  ;;  %653 = vmatprep.subr.bf16.mxu0 %v724_v3  ;;  %665 = vmatprep.subr.bf16.mxu1 %v724_v3 }
   0xe   : > { %s589_s29 = sshll.u32 %s916_s16, 6 }
   0xf   : > { %s786_s6 = scalar_lea.vmem %s910_s0, %s589_s29  ;;  %s197_s19 = scalar_lea.vmem %s914_s4, %s589_s29 }
  0x10   : > { %v789_v11 = vld [vmem:[%s786_s6] sm:$0xff]  ;;  %v792_v12 = vld [vmem:[%s786_s6 + $0x8] sm:$0xff]  ;;  %v795_v13 = vld [vmem:[%s786_s6 + $0x10] sm:$0xff]  ;;  %655 = vmatpush3.bf16.msra.mxu0 %v654_v10  ;;  %667 = vmatpush3.bf16.msra.mxu1 %v654_v10 }
  0x11   : > { %v804_v16 = vld [vmem:[%s786_s6 + $0x18] sm:$0xff]  ;;  %v207_v17 = vsel %vm206_vm1, %v789_v11, 0.0  ;;  %v208_v18 = vsel %vm206_vm1, %v792_v12, 0.0  ;;  %v210_v19 = vsel %vm206_vm1, %v795_v13, 0.0  ;;  %v228_v20 = vmul.f32 %v789_v11, %v789_v11  ;;  %v815_v21 = vld [vmem:[%s786_s6 + $0x20] sm:$0xff]  ;;  %v824_v27 = vld [vmem:[%s786_s6 + $0x28] sm:$0xff]  ;;  %656 = vmatprep.subr.bf16.mxu0 %v724_v3  ;;  %668 = vmatprep.subr.bf16.mxu1 %v724_v3 }
  0x12   : > { %v209_v22 = vadd.f32 %v208_v18, %v207_v17  ;;  %v212_v23 = vsel %vm206_vm1, %v804_v16, 0.0  ;;  %v229_v24 = vmul.f32 %v792_v12, %v792_v12  ;;  %v230_v25 = vmul.f32 %v795_v13, %v795_v13  ;;  %v835_v34 = vld [vmem:[%s786_s6 + $0x30] sm:$0xff]  ;;  %v844_v41 = vld [vmem:[%s786_s6 + $0x38] sm:$0xff] }
  0x13   : > { %v231_v29 = vmul.f32 %v804_v16, %v804_v16  ;;  %v236_v30 = vsel %vm206_vm1, %v228_v20, 0.0  ;;  %v214_v31 = vsel %vm206_vm1, %v815_v21, 0.0  ;;  %v232_v32 = vmul.f32 %v815_v21, %v815_v21 }
  0x14   : > { %v211_v28 = vadd.f32 %v210_v19, %v209_v22  ;;  %v237_v33 = vsel %vm206_vm1, %v229_v24, 0.0  ;;  %v239_v37 = vsel %vm206_vm1, %v230_v25, 0.0  ;;  %v216_v38 = vsel %vm206_vm1, %v824_v27, 0.0  ;;  %658 = vmatpush3.bf16.msra.mxu0 %v657_v26  ;;  %670 = vmatpush3.bf16.msra.mxu1 %v657_v26  ;;  %v415_v24 = vld [vmem:[%s911_s1] sm:$0x1] }
  0x15   : > { %v238_v36 = vadd.f32 %v237_v33, %v236_v30  ;;  %v233_v39 = vmul.f32 %v824_v27, %v824_v27  ;;  %v241_v40 = vsel %vm206_vm1, %v231_v29, 0.0  ;;  %v218_v44 = vsel %vm206_vm1, %v835_v34, 0.0 }
  0x16   : > { %v213_v35 = vadd.f32 %v212_v23, %v211_v28  ;;  %v234_v45 = vmul.f32 %v835_v34, %v835_v34  ;;  %v243_v46 = vsel %vm206_vm1, %v232_v32, 0.0  ;;  %v220_v49 = vsel %vm206_vm1, %v844_v41, 0.0 }
  0x17   : > { %v240_v43 = vadd.f32 %v239_v37, %v238_v36  ;;  %v235_v50 = vmul.f32 %v844_v41, %v844_v41  ;;  %v245_v51 = vsel %vm206_vm1, %v233_v39, 0.0  ;;  %v418_v20 = vshrl.u32 %v417_v15, 7 }
  0x18   : > { %v215_v42 = vadd.f32 %v214_v31, %v213_v35  ;;  %v247_v54 = vsel %vm206_vm1, %v234_v45, 0.0 }
  0x19   : > { %v242_v48 = vadd.f32 %v241_v40, %v240_v43  ;;  %v249_v57 = vsel %vm206_vm1, %v235_v50, 0.0  ;;  %v419_v22 = vsub.s32 0, %v418_v20 }
  0x1a   : > { %v217_v47 = vadd.f32 %v216_v38, %v215_v42  ;;  %v586_v38 = vld [vmem:[%s912_s2] ss:$0 sm:$0xff] }
  0x1b   : > { %v244_v53 = vadd.f32 %v243_v46, %v242_v48 }
  0x1c   : > { %v219_v52 = vadd.f32 %v218_v44, %v217_v47 }
  0x1d   : > { %v246_v56 = vadd.f32 %v245_v51, %v244_v53 }
  0x1e   : > { %v221_v55 = vadd.f32 %v220_v49, %v219_v52 }
  0x1f   : > { %v248_v59 = vadd.f32 %v247_v54, %v246_v56 }
  0x20   : > { %v222_v58 = vrot.slane %v221_v55, 4 }
  0x21   : > { %v250_v61 = vadd.f32 %v249_v57, %v248_v59 }
  0x22   : > { %v223_v60 = vadd.f32 %v222_v58, %v221_v55 }
  0x23   : > { %v251_v63 = vrot.slane %v250_v61, 4 }
  0x24   : > { %v224_v62 = vrot.slane %v223_v60, 2 }
  0x25   : > { %v252_v1 = vadd.f32 %v251_v63, %v250_v61 }
  0x26   : > { %v225_v0 = vadd.f32 %v224_v62, %v223_v60 }
  0x27   : > { %v253_v3 = vrot.slane %v252_v1, 2 }
  0x28   : > { %v226_v2 = vrot.slane %v225_v0, 1 }
  0x29   : > { %v254_v5 = vadd.f32 %v253_v3, %v252_v1 }
  0x2a   : > { %v227_v4 = vadd.f32 %v226_v2, %v225_v0 }
  0x2b   : > { %v255_v6 = vrot.slane %v254_v5, 1 }
  0x2c   : > { %626 = vmatmul.mubr.msk.f32.vlgmr.msra.gmra.mrb[0].mxu0 %vm206_vm1, %v227_v4 }
  0x2d   : > { %v256_v7 = vadd.f32 %v255_v6, %v254_v5 }
  0x2f   : > { %645 = vmatmul.mubr.msk.f32.vlgmr.msra.gmra.mrb[0].mxu1 %vm206_vm1, %v256_v7 }
  0xff   : > { %v334_v8 = vpop.f32.mrb[0].mxu0 }
 0x100   : > { %v411_v9 = vmul.f32 %v334_v8, %v334_v8  ;;  %v627_v10 = vpop.f32.mrb[1].mxu0  ;;  %v420_v23 = vrot.slane %v334_v8, %v419_v22 }
 0x102   : > { %v407_v14 = vpop.f32.mrb[0].mxu1  ;;  %v421_v28 = vsub.f32 %v789_v11, %v420_v23  ;;  %v422_v29 = vsub.f32 %v792_v12, %v420_v23  ;;  %v423_v30 = vsub.f32 %v795_v13, %v420_v23  ;;  %v424_v31 = vsub.f32 %v804_v16, %v420_v23 }
 0x103   : > { %v412_v17 = vsub.f32 %v407_v14, %v411_v9  ;;  %v646_v18 = vpop.f32.mrb[1].mxu1  ;;  %v425_v33 = vsub.f32 %v815_v21, %v420_v23  ;;  %v426_v35 = vsub.f32 %v824_v27, %v420_v23  ;;  %v427_v36 = vsub.f32 %v835_v34, %v420_v23 }
 0x104   : > { %v428_v37 = vsub.f32 %v844_v41, %v420_v23 }
 0x105   : > { %v413_v19 = vadd.f32 1e-06, %v412_v17 }
 0x107   : > { %682 = vrsqrt.f32 %v413_v19 }
 0x111   : > { %v683_v25 = vpop.eup %682 }
 0x112   : > { %v416_v26 = vmul.f32 %v683_v25, %v415_v24 }
 0x114   : > { %v432_v32 = vrot.slane %v416_v26, %v419_v22 }
 0x116   : > { %v433_v11 = vmul.f32 %v432_v32, %v421_v28  ;;  %v434_v39 = vmul.f32 %v432_v32, %v422_v29  ;;  %v435_v12 = vmul.f32 %v432_v32, %v423_v30  ;;  %v436_v40 = vmul.f32 %v432_v32, %v424_v31 }
 0x117   : > { %v437_v13 = vmul.f32 %v432_v32, %v425_v33  ;;  %v438_v42 = vmul.f32 %v432_v32, %v426_v35  ;;  %v439_v16 = vmul.f32 %v432_v32, %v427_v36  ;;  %v440_v43 = vmul.f32 %v432_v32, %v428_v37 }
 0x118   : > { %v448_v44 = vadd.f32 %v586_v38, %v433_v11  ;;  %v449_v21 = vadd.f32 %v586_v38, %v434_v39  ;;  %v450_v45 = vadd.f32 %v586_v38, %v435_v12  ;;  %v874_v27 = vadd.f32 %v586_v38, %v436_v40 }
 0x119   : > { %v876_v34 = vadd.f32 %v586_v38, %v437_v13  ;;  %v878_v41 = vadd.f32 %v586_v38, %v438_v42  ;;  %v880_v46 = vadd.f32 %v586_v38, %v439_v16  ;;  %v882_v47 = vadd.f32 %v586_v38, %v440_v43 }
 0x11a   : > { %v456_v48 = vsub.f32 0.0, %v448_v44  ;;  %v457_v49 = vsub.f32 0.0, %v449_v21  ;;  %v458_v50 = vsub.f32 0.0, %v450_v45  ;;  %v459_v51 = vsub.f32 0.0, %v874_v27 }
 0x11b   : > { %v460_v52 = vsub.f32 0.0, %v876_v34  ;;  %v461_v53 = vsub.f32 0.0, %v878_v41  ;;  %v462_v54 = vsub.f32 0.0, %v880_v46  ;;  %v463_v58 = vsub.f32 0.0, %v882_v47 }
 0x11c   : > { %v464_v55 = vmul.f32 1.442695, %v456_v48  ;;  %v466_v56 = vmul.f32 1.442695, %v457_v49  ;;  %v468_v57 = vmul.f32 1.442695, %v458_v50 }
 0x11d   : > { %v470_v59 = vmul.f32 1.442695, %v459_v51  ;;  %v472_v60 = vmul.f32 1.442695, %v460_v52  ;;  %v474_v61 = vmul.f32 1.442695, %v461_v53 }
 0x11e   : > { %684 = vpow2.f32 %v464_v55  ;;  %v476_v62 = vmul.f32 1.442695, %v462_v54  ;;  %v478_v63 = vmul.f32 1.442695, %v463_v58 }
 0x11f   : > { %686 = vpow2.f32 %v466_v56 }
 0x120   : > { %688 = vpow2.f32 %v468_v57 }
 0x121   : > { %690 = vpow2.f32 %v470_v59 }
 0x122   : > { %692 = vpow2.f32 %v472_v60 }
 0x123   : > { %694 = vpow2.f32 %v474_v61 }
 0x124   : > { %696 = vpow2.f32 %v476_v62 }
 0x125   : > { %698 = vpow2.f32 %v478_v63 }
 0x128   : > { %v685_v0 = vpop.eup %684 }
 0x129   : > { %v687_v1 = vpop.eup %686  ;;  %v480_v2 = vadd.f32 1.0, %v685_v0 }
 0x12a   : > { %v689_v3 = vpop.eup %688  ;;  %v481_v4 = vadd.f32 1.0, %v687_v1 }
 0x12b   : > { %v691_v5 = vpop.eup %690  ;;  %v482_v6 = vadd.f32 1.0, %v689_v3  ;;  %700 = vrcp.f32 %v480_v2 }
 0x12c   : > { %v693_v7 = vpop.eup %692  ;;  %v483_v8 = vadd.f32 1.0, %v691_v5  ;;  %702 = vrcp.f32 %v481_v4 }
 0x12d   : > { %v695_v9 = vpop.eup %694  ;;  %v484_v10 = vadd.f32 1.0, %v693_v7  ;;  %704 = vrcp.f32 %v482_v6 }
 0x12e   : > { %v697_v14 = vpop.eup %696  ;;  %v485_v15 = vadd.f32 1.0, %v695_v9  ;;  %706 = vrcp.f32 %v483_v8 }
 0x12f   : > { %v699_v17 = vpop.eup %698  ;;  %v486_v18 = vadd.f32 1.0, %v697_v14  ;;  %708 = vrcp.f32 %v484_v10 }
 0x130   : > { %v487_v19 = vadd.f32 1.0, %v699_v17  ;;  %710 = vrcp.f32 %v485_v15 }
 0x131   : > { %712 = vrcp.f32 %v486_v18 }
 0x132   : > { %714 = vrcp.f32 %v487_v19 }
 0x135   : > { %v701_v20 = vpop.eup %700 }
 0x136   : > { %v703_v22 = vpop.eup %702  ;;  %v504_v23 = vmul.f32 %v701_v20, %v448_v44 }
 0x137   : > { %v705_v24 = vpop.eup %704  ;;  %v505_v25 = vmul.f32 %v703_v22, %v449_v21 }
 0x138   : > { %v707_v26 = vpop.eup %706  ;;  %v506_v28 = vmul.f32 %v705_v24, %v450_v45  ;;  %512 = vst.msk [vmem:[%s197_s19] sm:$0xff] %vm206_vm1, %v504_v23 }
 0x139   : > { %v709_v29 = vpop.eup %708  ;;  %v507_v30 = vmul.f32 %v707_v26, %v874_v27  ;;  %513 = vst.msk [vmem:[%s197_s19 + $0x8] sm:$0xff] %vm206_vm1, %v505_v25 }
 0x13a   : > { %v711_v31 = vpop.eup %710  ;;  %v508_v32 = vmul.f32 %v709_v29, %v876_v34  ;;  %514 = vst.msk [vmem:[%s197_s19 + $0x10] sm:$0xff] %vm206_vm1, %v506_v28 }
 0x13b   : > { %v713_v33 = vpop.eup %712  ;;  %v509_v35 = vmul.f32 %v711_v31, %v878_v41  ;;  %515 = vst.msk [vmem:[%s197_s19 + $0x18] sm:$0xff] %vm206_vm1, %v507_v30 }
 0x13c   : > { %v715_v36 = vpop.eup %714  ;;  %v510_v37 = vmul.f32 %v713_v33, %v880_v46  ;;  %516 = vst.msk [vmem:[%s197_s19 + $0x20] sm:$0xff] %vm206_vm1, %v508_v32 }
 0x13d   : > { %v511_v38 = vmul.f32 %v715_v36, %v882_v47  ;;  %517 = vst.msk [vmem:[%s197_s19 + $0x28] sm:$0xff] %vm206_vm1, %v509_v35 }
 0x13e   : > { %518 = vst.msk [vmem:[%s197_s19 + $0x30] sm:$0xff] %vm206_vm1, %v510_v37 }
 0x13f   : > { %519 = vst.msk [vmem:[%s197_s19 + $0x38] sm:$0xff] %vm206_vm1, %v511_v38 }
 0x140 PF: > { %s14_s15 = sadd.s32 1, %s722_s15  }
 0x141   : > { %p11_p4 = scmp.ge.s32.totalorder %s14_s15, 4  }
 0x143   :  { %13 = sbr.rel (!%p11_p4) target bundleno = 1 (0x1), region = 66 }

// kernel: _lambda_.30
= control target key start
LH: loop header
LB: loop body
LE: loop exit
PB: predicated region body
PF: predicated region fallthrough
CT: control target
= control target key end

     0   :  { %vm41_vm0 = vcmask 261120   ;;  %vm235_vm1 = vcmask 523264   ;;  %s500_s1 = inlined_call_operand.vmem [shape: f32[32,64], index: 1, kind: input, shape index: {}]   ;;  %s501_s0 = inlined_call_operand.vmem [shape: f32[128,32], index: 0, kind: input, shape index: {}]   ;;  %s502_s2 = inlined_call_operand.vmem [shape: f32[1,64], index: 2, kind: input, shape index: {}]   ;;  %s503_s3 = inlined_call_operand.vmem [shape: f32[128,64], index: 3, kind: output, shape index: {}]  }
   0x1   :  { %v30_v0 = vld [vmem:[%s500_s1] sm:$0xff]  ;;  %v31_v1 = vld [vmem:[%s500_s1 + $0x8] sm:$0xff]  ;;  %v32_v2 = vld [vmem:[%s500_s1 + $0x10] sm:$0xff] }
   0x2   :  { %v325_v3 = vpack.c.bf16 %v31_v1, %v30_v0  ;;  %v33_v4 = vld [vmem:[%s500_s1 + $0x18] sm:$0xff]  ;;  %v14_v5 = vld [vmem:[%s501_s0] sm:$0xff]  ;;  %v15_v8 = vld [vmem:[%s501_s0 + $0x8] sm:$0xff] }
   0x3   :  { %v22_v6 = vld [vmem:[%s501_s0 + $0x40] sm:$0xff]  ;;  %v329_v7 = vpack.c.bf16 %v33_v4, %v32_v2  ;;  %301 = vmatprep.mubr.msk.f32.mxu0 %vm41_vm0, %v14_v5  ;;  %v23_v9 = vld [vmem:[%s501_s0 + $0x48] sm:$0xff]  ;;  %v16_v10 = vld [vmem:[%s501_s0 + $0x10] sm:$0xff] }
   0x4   :  { %313 = vmatprep.mubr.msk.f32.mxu1 %vm41_vm0, %v22_v6  ;;  %326 = vmatprep.subr.bf16.mxu0 %v325_v3  ;;  %v24_v11 = vld [vmem:[%s501_s0 + $0x50] sm:$0xff]  ;;  %v17_v12 = vld [vmem:[%s501_s0 + $0x18] sm:$0xff]  ;;  %v18_v14 = vld [vmem:[%s501_s0 + $0x20] sm:$0xff] }
   0x5   :  { %333 = vmatprep.subr.bf16.mxu1 %v325_v3  ;;  %328 = vmatpush3.bf16.msra.mxu0 %v325_v3  ;;  %v25_v13 = vld [vmem:[%s501_s0 + $0x58] sm:$0xff]  ;;  %v26_v15 = vld [vmem:[%s501_s0 + $0x60] sm:$0xff]  ;;  %v19_v16 = vld [vmem:[%s501_s0 + $0x28] sm:$0xff] }
   0x6   :  { %335 = vmatpush3.bf16.msra.mxu1 %v325_v3  ;;  %330 = vmatprep.subr.bf16.mxu0 %v329_v7  ;;  %v27_v17 = vld [vmem:[%s501_s0 + $0x68] sm:$0xff]  ;;  %v20_v18 = vld [vmem:[%s501_s0 + $0x30] sm:$0xff]  ;;  %v21_v20 = vld [vmem:[%s501_s0 + $0x38] sm:$0xff] }
   0x7   :  { %334 = vmatprep.subr.bf16.mxu1 %v329_v7  ;;  %v28_v19 = vld [vmem:[%s501_s0 + $0x70] sm:$0xff]  ;;  %v29_v21 = vld [vmem:[%s501_s0 + $0x78] sm:$0xff]  ;;  %v256_v22 = vld [vmem:[%s502_s2] ss:$0 sm:$0xff] }
   0x9   :  { %332 = vmatpush3.bf16.msra.mxu0 %v329_v7 }
   0xa   :  { %336 = vmatpush3.bf16.msra.mxu1 %v329_v7 }
   0xc   :  { %302 = vmatmul.mubr.msk.f32.vlgmr.msra.gmra.mrb[0].mxu0 %vm41_vm0, %v15_v8 }
   0xd   :  { %314 = vmatmul.mubr.msk.f32.vlgmr.msra.gmra.mrb[0].mxu1 %vm41_vm0, %v23_v9  ;;  %304 = vmatprep.mubr.msk.f32.mxu0 %vm41_vm0, %v16_v10 }
   0xe   :  { %316 = vmatprep.mubr.msk.f32.mxu1 %vm41_vm0, %v24_v11 }
  0x10   :  { %305 = vmatmul.mubr.msk.f32.gmra.mrb[2].mxu0 %vm41_vm0, %v17_v12 }
  0x11   :  { %317 = vmatmul.mubr.msk.f32.gmra.mrb[2].mxu1 %vm41_vm0, %v25_v13  ;;  %307 = vmatprep.mubr.msk.f32.mxu0 %vm41_vm0, %v18_v14 }
  0x12   :  { %319 = vmatprep.mubr.msk.f32.mxu1 %vm41_vm0, %v26_v15 }
  0x14   :  { %308 = vmatmul.mubr.msk.f32.gmra.mrb[4].mxu0 %vm41_vm0, %v19_v16 }
  0x15   :  { %320 = vmatmul.mubr.msk.f32.gmra.mrb[4].mxu1 %vm41_vm0, %v27_v17  ;;  %310 = vmatprep.mubr.msk.f32.mxu0 %vm41_vm0, %v20_v18 }
  0x16   :  { %322 = vmatprep.mubr.msk.f32.mxu1 %vm41_vm0, %v28_v19 }
  0x18   :  { %311 = vmatmul.mubr.msk.f32.gmra.mrb[6].mxu0 %vm41_vm0, %v21_v20 }
  0x19   :  { %323 = vmatmul.mubr.msk.f32.gmra.mrb[6].mxu1 %vm41_vm0, %v29_v21 }
  0xdf   :  { %v303_v23 = vpop.f32.mrb[0].mxu0 }
  0xe0   :  { %v315_v24 = vpop.f32.mrb[0].mxu1  ;;  %v162_v25 = vadd.f32 %v303_v23, %v256_v22  ;;  %v156_v27 = vpop.f32.mrb[1].mxu0 }
  0xe1   :  { %v202_v26 = vadd.f32 %v315_v24, %v256_v22  ;;  %v196_v28 = vpop.f32.mrb[1].mxu1  ;;  %v157_v29 = vadd.f32 %v256_v22, %v156_v27 }
  0xe2   :  { %v197_v30 = vadd.f32 %v256_v22, %v196_v28  ;;  %237 = vst.msk [vmem:[%s503_s3 + $0x8] sm:$0xff] %vm235_vm1, %v162_v25 }
  0xe3   :  { %245 = vst.msk [vmem:[%s503_s3 + $0x48] sm:$0xff] %vm235_vm1, %v202_v26  ;;  %236 = vst.msk [vmem:[%s503_s3] sm:$0xff] %vm235_vm1, %v157_v29  ;;  %v306_v31 = vpop.f32.mrb[2].mxu0 }
  0xe4   :  { %244 = vst.msk [vmem:[%s503_s3 + $0x40] sm:$0xff] %vm235_vm1, %v197_v30  ;;  %v318_v32 = vpop.f32.mrb[2].mxu1  ;;  %v172_v33 = vadd.f32 %v306_v31, %v256_v22  ;;  %v166_v35 = vpop.f32.mrb[3].mxu0 }
  0xe5   :  { %v212_v34 = vadd.f32 %v318_v32, %v256_v22  ;;  %v206_v36 = vpop.f32.mrb[3].mxu1  ;;  %v167_v37 = vadd.f32 %v256_v22, %v166_v35 }
  0xe6   :  { %v207_v38 = vadd.f32 %v256_v22, %v206_v36  ;;  %239 = vst.msk [vmem:[%s503_s3 + $0x18] sm:$0xff] %vm235_vm1, %v172_v33 }
  0xe7   :  { %247 = vst.msk [vmem:[%s503_s3 + $0x58] sm:$0xff] %vm235_vm1, %v212_v34  ;;  %238 = vst.msk [vmem:[%s503_s3 + $0x10] sm:$0xff] %vm235_vm1, %v167_v37  ;;  %v309_v39 = vpop.f32.mrb[4].mxu0 }
  0xe8   :  { %246 = vst.msk [vmem:[%s503_s3 + $0x50] sm:$0xff] %vm235_vm1, %v207_v38  ;;  %v321_v40 = vpop.f32.mrb[4].mxu1  ;;  %v182_v41 = vadd.f32 %v309_v39, %v256_v22  ;;  %v176_v43 = vpop.f32.mrb[5].mxu0 }
  0xe9   :  { %v222_v42 = vadd.f32 %v321_v40, %v256_v22  ;;  %v216_v44 = vpop.f32.mrb[5].mxu1  ;;  %v177_v45 = vadd.f32 %v256_v22, %v176_v43 }
  0xea   :  { %v217_v46 = vadd.f32 %v256_v22, %v216_v44  ;;  %241 = vst.msk [vmem:[%s503_s3 + $0x28] sm:$0xff] %vm235_vm1, %v182_v41 }
  0xeb   :  { %249 = vst.msk [vmem:[%s503_s3 + $0x68] sm:$0xff] %vm235_vm1, %v222_v42  ;;  %240 = vst.msk [vmem:[%s503_s3 + $0x20] sm:$0xff] %vm235_vm1, %v177_v45  ;;  %v312_v47 = vpop.f32.mrb[6].mxu0 }
  0xec   :  { %248 = vst.msk [vmem:[%s503_s3 + $0x60] sm:$0xff] %vm235_vm1, %v217_v46  ;;  %v324_v48 = vpop.f32.mrb[6].mxu1  ;;  %v192_v49 = vadd.f32 %v312_v47, %v256_v22  ;;  %v186_v51 = vpop.f32.mrb[7].mxu0 }
  0xed   :  { %v232_v50 = vadd.f32 %v324_v48, %v256_v22  ;;  %v226_v52 = vpop.f32.mrb[7].mxu1  ;;  %v187_v53 = vadd.f32 %v256_v22, %v186_v51 }
  0xee   :  { %v227_v54 = vadd.f32 %v256_v22, %v226_v52  ;;  %243 = vst.msk [vmem:[%s503_s3 + $0x38] sm:$0xff] %vm235_vm1, %v192_v49 }
  0xef   :  { %251 = vst.msk [vmem:[%s503_s3 + $0x78] sm:$0xff] %vm235_vm1, %v232_v50  ;;  %242 = vst.msk [vmem:[%s503_s3 + $0x30] sm:$0xff] %vm235_vm1, %v187_v53 }
  0xf0   :  { %250 = vst.msk [vmem:[%s503_s3 + $0x70] sm:$0xff] %vm235_vm1, %v227_v54 }

// kernel: _lambda_.31
= control target key start
LH: loop header
LB: loop body
LE: loop exit
PB: predicated region body
PF: predicated region fallthrough
CT: control target
= control target key end

     0   :  { %vm176_vm0 = vcmask 523264   ;;  %s1707_s1 = inlined_call_operand.vmem [shape: f32[576,64], index: 1, kind: input, shape index: {}]   ;;  %s1708_s0 = inlined_call_operand.vmem [shape: f32[128,576], index: 0, kind: input, shape index: {}]   ;;  %s1709_s2 = inlined_call_operand.vmem [shape: f32[1,64], index: 2, kind: input, shape index: {}]   ;;  %s1710_s3 = inlined_call_operand.vmem [shape: f32[128,64], index: 3, kind: input, shape index: {}]   ;;  %s1711_s4 = inlined_call_operand.vmem [shape: f32[128,64], index: 4, kind: output, shape index: {}]  }
   0x1   :  { %v113_v0 = vld [vmem:[%s1707_s1 + $0x80] sm:$0xff]  ;;  %v114_v1 = vld [vmem:[%s1707_s1 + $0x88] sm:$0xff]  ;;  %v115_v11 = vld [vmem:[%s1707_s1 + $0x90] sm:$0xff] }
   0x2   :  { %v145_v2 = vld [vmem:[%s1707_s1 + $0x180] sm:$0xff]  ;;  %v953_v3 = vpack.c.bf16 %v114_v1, %v113_v0  ;;  %v146_v4 = vld [vmem:[%s1707_s1 + $0x188] sm:$0xff]  ;;  %v116_v13 = vld [vmem:[%s1707_s1 + $0x98] sm:$0xff] }
   0x3   :  { %v97_v5 = vld [vmem:[%s1707_s1] sm:$0xff]  ;;  %v98_v6 = vld [vmem:[%s1707_s1 + $0x8] sm:$0xff]  ;;  %v985_v7 = vpack.c.bf16 %v146_v4, %v145_v2  ;;  %v147_v14 = vld [vmem:[%s1707_s1 + $0x190] sm:$0xff]  ;;  %v957_v16 = vpack.c.bf16 %v116_v13, %v115_v11 }
   0x4   :  { %v955_v8 = vpack.c.bf16 %v98_v6, %v97_v5  ;;  %v129_v9 = vld [vmem:[%s1707_s1 + $0x100] sm:$0xff]  ;;  %v130_v10 = vld [vmem:[%s1707_s1 + $0x108] sm:$0xff]  ;;  %954 = vmatprep.subr.bf16.mxu0 %v953_v3  ;;  %v148_v15 = vld [vmem:[%s1707_s1 + $0x198] sm:$0xff] }
   0x5   :  { %v987_v12 = vpack.c.bf16 %v130_v10, %v129_v9  ;;  %986 = vmatprep.subr.bf16.mxu1 %v985_v7  ;;  %v989_v17 = vpack.c.bf16 %v148_v15, %v147_v14  ;;  %v99_v18 = vld [vmem:[%s1707_s1 + $0x10] sm:$0xff]  ;;  %v100_v19 = vld [vmem:[%s1707_s1 + $0x18] sm:$0xff]  ;;  %v117_v23 = vld [vmem:[%s1707_s1 + $0xa0] sm:$0xff] }
   0x6   :  { %956 = vmatpush3.bf16.msra.mxu0 %v955_v8  ;;  %v131_v20 = vld [vmem:[%s1707_s1 + $0x110] sm:$0xff]  ;;  %v959_v21 = vpack.c.bf16 %v100_v19, %v99_v18  ;;  %v132_v22 = vld [vmem:[%s1707_s1 + $0x118] sm:$0xff]  ;;  %v118_v24 = vld [vmem:[%s1707_s1 + $0xa8] sm:$0xff] }
   0x7   :  { %988 = vmatpush3.bf16.msra.mxu1 %v987_v12  ;;  %958 = vmatprep.subr.bf16.mxu0 %v957_v16  ;;  %v991_v25 = vpack.c.bf16 %v132_v22, %v131_v20  ;;  %v961_v26 = vpack.c.bf16 %v118_v24, %v117_v23  ;;  %v149_v27 = vld [vmem:[%s1707_s1 + $0x1a0] sm:$0xff]  ;;  %v150_v28 = vld [vmem:[%s1707_s1 + $0x1a8] sm:$0xff]  ;;  %v119_v35 = vld [vmem:[%s1707_s1 + $0xb0] sm:$0xff] }
   0x8   :  { %990 = vmatprep.subr.bf16.mxu1 %v989_v17  ;;  %v101_v29 = vld [vmem:[%s1707_s1 + $0x20] sm:$0xff]  ;;  %v993_v30 = vpack.c.bf16 %v150_v28, %v149_v27  ;;  %v102_v31 = vld [vmem:[%s1707_s1 + $0x28] sm:$0xff]  ;;  %v120_v36 = vld [vmem:[%s1707_s1 + $0xb8] sm:$0xff] }
   0x9   :  { %v133_v32 = vld [vmem:[%s1707_s1 + $0x120] sm:$0xff]  ;;  %v134_v33 = vld [vmem:[%s1707_s1 + $0x128] sm:$0xff]  ;;  %v963_v34 = vpack.c.bf16 %v102_v31, %v101_v29  ;;  %v151_v37 = vld [vmem:[%s1707_s1 + $0x1b0] sm:$0xff]  ;;  %v965_v39 = vpack.c.bf16 %v120_v36, %v119_v35 }
   0xa   :  { %960 = vmatpush3.bf16.msra.mxu0 %v959_v21  ;;  %v995_v38 = vpack.c.bf16 %v134_v33, %v133_v32  ;;  %v152_v40 = vld [vmem:[%s1707_s1 + $0x1b8] sm:$0xff]  ;;  %v103_v41 = vld [vmem:[%s1707_s1 + $0x30] sm:$0xff]  ;;  %v121_v46 = vld [vmem:[%s1707_s1 + $0xc0] sm:$0xff] }
   0xb   :  { %992 = vmatpush3.bf16.msra.mxu1 %v991_v25  ;;  %962 = vmatprep.subr.bf16.mxu0 %v961_v26  ;;  %v104_v42 = vld [vmem:[%s1707_s1 + $0x38] sm:$0xff]  ;;  %v997_v43 = vpack.c.bf16 %v152_v40, %v151_v37  ;;  %v135_v44 = vld [vmem:[%s1707_s1 + $0x130] sm:$0xff]  ;;  %v122_v47 = vld [vmem:[%s1707_s1 + $0xc8] sm:$0xff] }
   0xc   :  { %994 = vmatprep.subr.bf16.mxu1 %v993_v30  ;;  %v136_v45 = vld [vmem:[%s1707_s1 + $0x138] sm:$0xff]  ;;  %v153_v48 = vld [vmem:[%s1707_s1 + $0x1c0] sm:$0xff]  ;;  %v154_v49 = vld [vmem:[%s1707_s1 + $0x1c8] sm:$0xff]  ;;  %v967_v50 = vpack.c.bf16 %v104_v42, %v103_v41  ;;  %v969_v52 = vpack.c.bf16 %v122_v47, %v121_v46 }
   0xd   :  { %v999_v51 = vpack.c.bf16 %v136_v45, %v135_v44  ;;  %v105_v53 = vld [vmem:[%s1707_s1 + $0x40] sm:$0xff]  ;;  %v106_v54 = vld [vmem:[%s1707_s1 + $0x48] sm:$0xff]  ;;  %v1001_v56 = vpack.c.bf16 %v154_v49, %v153_v48  ;;  %v123_v58 = vld [vmem:[%s1707_s1 + $0xd0] sm:$0xff] }
   0xe   :  { %964 = vmatpush3.bf16.msra.mxu0 %v963_v34  ;;  %v137_v55 = vld [vmem:[%s1707_s1 + $0x140] sm:$0xff]  ;;  %v138_v57 = vld [vmem:[%s1707_s1 + $0x148] sm:$0xff]  ;;  %v124_v59 = vld [vmem:[%s1707_s1 + $0xd8] sm:$0xff]  ;;  %v971_v62 = vpack.c.bf16 %v106_v54, %v105_v53 }
   0xf   :  { %996 = vmatpush3.bf16.msra.mxu1 %v995_v38  ;;  %966 = vmatprep.subr.bf16.mxu0 %v965_v39  ;;  %v155_v60 = vld [vmem:[%s1707_s1 + $0x1d0] sm:$0xff]  ;;  %v156_v61 = vld [vmem:[%s1707_s1 + $0x1d8] sm:$0xff]  ;;  %v1003_v63 = vpack.c.bf16 %v138_v57, %v137_v55  ;;  %v973_v0 = vpack.c.bf16 %v124_v59, %v123_v58  ;;  %v125_v6 = vld [vmem:[%s1707_s1 + $0xe0] sm:$0xff] }
  0x10   :  { %998 = vmatprep.subr.bf16.mxu1 %v997_v43  ;;  %v107_v1 = vld [vmem:[%s1707_s1 + $0x50] sm:$0xff]  ;;  %v108_v2 = vld [vmem:[%s1707_s1 + $0x58] sm:$0xff]  ;;  %v1005_v4 = vpack.c.bf16 %v156_v61, %v155_v60  ;;  %v126_v7 = vld [vmem:[%s1707_s1 + $0xe8] sm:$0xff] }
  0x11   :  { %v139_v3 = vld [vmem:[%s1707_s1 + $0x150] sm:$0xff]  ;;  %v140_v5 = vld [vmem:[%s1707_s1 + $0x158] sm:$0xff]  ;;  %v157_v8 = vld [vmem:[%s1707_s1 + $0x1e0] sm:$0xff]  ;;  %v975_v10 = vpack.c.bf16 %v108_v2, %v107_v1  ;;  %v977_v14 = vpack.c.bf16 %v126_v7, %v125_v6 }
  0x12   :  { %968 = vmatpush3.bf16.msra.mxu0 %v967_v50  ;;  %v158_v9 = vld [vmem:[%s1707_s1 + $0x1e8] sm:$0xff]  ;;  %v109_v11 = vld [vmem:[%s1707_s1 + $0x60] sm:$0xff]  ;;  %v1007_v13 = vpack.c.bf16 %v140_v5, %v139_v3  ;;  %v20_v17 = vld [vmem:[%s1708_s0 + $0x18] sm:$0xff] }
  0x13   :  { %1000 = vmatpush3.bf16.msra.mxu1 %v999_v51  ;;  %970 = vmatprep.subr.bf16.mxu0 %v969_v52  ;;  %v110_v12 = vld [vmem:[%s1707_s1 + $0x68] sm:$0xff]  ;;  %v141_v15 = vld [vmem:[%s1707_s1 + $0x160] sm:$0xff]  ;;  %v1009_v18 = vpack.c.bf16 %v158_v9, %v157_v8  ;;  %v127_v20 = vld [vmem:[%s1707_s1 + $0xf0] sm:$0xff] }
  0x14   :  { %1002 = vmatprep.subr.bf16.mxu1 %v1001_v56  ;;  %v18_v16 = vld [vmem:[%s1708_s0 + $0x8] sm:$0xff]  ;;  %v128_v21 = vld [vmem:[%s1707_s1 + $0xf8] sm:$0xff]  ;;  %v159_v22 = vld [vmem:[%s1707_s1 + $0x1f0] sm:$0xff]  ;;  %434 = vmatprep.mubr.f32.mxu1 %v20_v17  ;;  %v979_v24 = vpack.c.bf16 %v110_v12, %v109_v11 }
  0x15   :  { %v142_v19 = vld [vmem:[%s1707_s1 + $0x168] sm:$0xff]  ;;  %289 = vmatprep.mubr.f32.mxu0 %v18_v16  ;;  %v160_v23 = vld [vmem:[%s1707_s1 + $0x1f8] sm:$0xff]  ;;  %v981_v26 = vpack.c.bf16 %v128_v21, %v127_v20  ;;  %v111_v27 = vld [vmem:[%s1707_s1 + $0x70] sm:$0xff] }
  0x16   :  { %972 = vmatpush3.bf16.msra.mxu0 %v971_v62  ;;  %v1011_v25 = vpack.c.bf16 %v142_v19, %v141_v15  ;;  %v112_v28 = vld [vmem:[%s1707_s1 + $0x78] sm:$0xff]  ;;  %v143_v29 = vld [vmem:[%s1707_s1 + $0x170] sm:$0xff]  ;;  %v1013_v30 = vpack.c.bf16 %v160_v23, %v159_v22  ;;  %v161_v32 = vld [vmem:[%s1707_s1 + $0x200] sm:$0xff] }
  0x17   :  { %1004 = vmatpush3.bf16.msra.mxu1 %v1003_v63  ;;  %974 = vmatprep.subr.bf16.mxu0 %v973_v0  ;;  %v144_v31 = vld [vmem:[%s1707_s1 + $0x178] sm:$0xff]  ;;  %v162_v33 = vld [vmem:[%s1707_s1 + $0x208] sm:$0xff]  ;;  %v983_v34 = vpack.c.bf16 %v112_v28, %v111_v27  ;;  %v163_v37 = vld [vmem:[%s1707_s1 + $0x210] sm:$0xff] }
  0x18   :  { %1006 = vmatprep.subr.bf16.mxu1 %v1005_v4  ;;  %v1015_v35 = vpack.c.bf16 %v144_v31, %v143_v29  ;;  %v1017_v36 = vpack.c.bf16 %v162_v33, %v161_v32  ;;  %v164_v38 = vld [vmem:[%s1707_s1 + $0x218] sm:$0xff]  ;;  %v17_v39 = vld [vmem:[%s1708_s0] sm:$0xff]  ;;  %v19_v40 = vld [vmem:[%s1708_s0 + $0x10] sm:$0xff] }
  0x19   :  { %v23_v41 = vld [vmem:[%s1708_s0 + $0x30] sm:$0xff]  ;;  %v1021_v42 = vpack.c.bf16 %v164_v38, %v163_v37  ;;  %v25_v43 = vld [vmem:[%s1708_s0 + $0x40] sm:$0xff]  ;;  %v166_v45 = vld [vmem:[%s1707_s1 + $0x228] sm:$0xff] }
  0x1a   :  { %976 = vmatpush3.bf16.msra.mxu0 %v975_v10  ;;  %v165_v44 = vld [vmem:[%s1707_s1 + $0x220] sm:$0xff]  ;;  %v22_v46 = vld [vmem:[%s1708_s0 + $0x28] sm:$0xff]  ;;  %v24_v47 = vld [vmem:[%s1708_s0 + $0x38] sm:$0xff] }
  0x1b   :  { %1008 = vmatpush3.bf16.msra.mxu1 %v1007_v13  ;;  %978 = vmatprep.subr.bf16.mxu0 %v977_v14  ;;  %v28_v48 = vld [vmem:[%s1708_s0 + $0x58] sm:$0xff]  ;;  %v30_v49 = vld [vmem:[%s1708_s0 + $0x68] sm:$0xff]  ;;  %v1025_v50 = vpack.c.bf16 %v166_v45, %v165_v44  ;;  %v27_v51 = vld [vmem:[%s1708_s0 + $0x50] sm:$0xff] }
  0x1c   :  { %1010 = vmatprep.subr.bf16.mxu1 %v1009_v18  ;;  %v167_v52 = vld [vmem:[%s1707_s1 + $0x230] sm:$0xff]  ;;  %v29_v53 = vld [vmem:[%s1708_s0 + $0x60] sm:$0xff]  ;;  %v168_v55 = vld [vmem:[%s1707_s1 + $0x238] sm:$0xff] }
  0x1d   :  { %v33_v54 = vld [vmem:[%s1708_s0 + $0x80] sm:$0xff]  ;;  %v35_v56 = vld [vmem:[%s1708_s0 + $0x90] sm:$0xff]  ;;  %v1029_v57 = vpack.c.bf16 %v168_v55, %v167_v52  ;;  %v32_v58 = vld [vmem:[%s1708_s0 + $0x78] sm:$0xff] }
  0x1e   :  { %980 = vmatpush3.bf16.msra.mxu0 %v979_v24  ;;  %v34_v59 = vld [vmem:[%s1708_s0 + $0x88] sm:$0xff]  ;;  %v40_v61 = vld [vmem:[%s1708_s0 + $0xb8] sm:$0xff]  ;;  %v37_v62 = vld [vmem:[%s1708_s0 + $0xa0] sm:$0xff] }
  0x1f   :  { %1012 = vmatpush3.bf16.msra.mxu1 %v1011_v25  ;;  %982 = vmatprep.subr.bf16.mxu0 %v981_v26  ;;  %v38_v60 = vld [vmem:[%s1708_s0 + $0xa8] sm:$0xff]  ;;  %v39_v63 = vld [vmem:[%s1708_s0 + $0xb0] sm:$0xff]  ;;  %v45_v1 = vld [vmem:[%s1708_s0 + $0xe0] sm:$0xff] }
  0x20   :  { %1014 = vmatprep.subr.bf16.mxu1 %v1013_v30  ;;  %v43_v0 = vld [vmem:[%s1708_s0 + $0xd0] sm:$0xff]  ;;  %v42_v2 = vld [vmem:[%s1708_s0 + $0xc8] sm:$0xff]  ;;  %v44_v3 = vld [vmem:[%s1708_s0 + $0xd8] sm:$0xff] }
  0x21   :  { %v48_v4 = vld [vmem:[%s1708_s0 + $0xf8] sm:$0xff]  ;;  %v50_v5 = vld [vmem:[%s1708_s0 + $0x108] sm:$0xff]  ;;  %v47_v6 = vld [vmem:[%s1708_s0 + $0xf0] sm:$0xff] }
  0x22   :  { %984 = vmatpush3.bf16.msra.mxu0 %v983_v34  ;;  %v49_v7 = vld [vmem:[%s1708_s0 + $0x100] sm:$0xff]  ;;  %v55_v9 = vld [vmem:[%s1708_s0 + $0x130] sm:$0xff]  ;;  %v52_v10 = vld [vmem:[%s1708_s0 + $0x118] sm:$0xff] }
  0x23   :  { %1016 = vmatpush3.bf16.msra.mxu1 %v1015_v35  ;;  %1018 = vmatprep.subr.bf16.mxu0 %v1017_v36  ;;  %v53_v8 = vld [vmem:[%s1708_s0 + $0x120] sm:$0xff]  ;;  %v54_v11 = vld [vmem:[%s1708_s0 + $0x128] sm:$0xff]  ;;  %v60_v13 = vld [vmem:[%s1708_s0 + $0x158] sm:$0xff] }
  0x24   :  { %1033 = vmatprep.subr.bf16.mxu1 %v1017_v36  ;;  %v58_v12 = vld [vmem:[%s1708_s0 + $0x148] sm:$0xff]  ;;  %v57_v14 = vld [vmem:[%s1708_s0 + $0x140] sm:$0xff]  ;;  %v59_v15 = vld [vmem:[%s1708_s0 + $0x150] sm:$0xff] }
  0x25   :  { %290 = vmatmul.mubr.f32.vlgmr.msra.gmra.mrb[0].mxu0 %v17_v39  ;;  %v63_v16 = vld [vmem:[%s1708_s0 + $0x170] sm:$0xff]  ;;  %v65_v17 = vld [vmem:[%s1708_s0 + $0x180] sm:$0xff]  ;;  %v62_v18 = vld [vmem:[%s1708_s0 + $0x168] sm:$0xff] }
  0x26   :  { %435 = vmatmul.mubr.f32.vlgmr.msra.gmra.mrb[0].mxu1 %v19_v40  ;;  %1020 = vmatpush3.bf16.msra.mxu0 %v1017_v36  ;;  %v64_v19 = vld [vmem:[%s1708_s0 + $0x178] sm:$0xff]  ;;  %v70_v21 = vld [vmem:[%s1708_s0 + $0x1a8] sm:$0xff]  ;;  %v67_v22 = vld [vmem:[%s1708_s0 + $0x190] sm:$0xff] }
  0x27   :  { %1037 = vmatpush3.bf16.msra.mxu1 %v1017_v36  ;;  %294 = vmatprep.mubr.f32.mxu0 %v23_v41  ;;  %v68_v20 = vld [vmem:[%s1708_s0 + $0x198] sm:$0xff]  ;;  %v69_v23 = vld [vmem:[%s1708_s0 + $0x1a0] sm:$0xff]  ;;  %v75_v25 = vld [vmem:[%s1708_s0 + $0x1d0] sm:$0xff] }
  0x28   :  { %439 = vmatprep.mubr.f32.mxu1 %v25_v43  ;;  %1022 = vmatprep.subr.bf16.mxu0 %v1021_v42  ;;  %v73_v24 = vld [vmem:[%s1708_s0 + $0x1c0] sm:$0xff]  ;;  %v72_v26 = vld [vmem:[%s1708_s0 + $0x1b8] sm:$0xff]  ;;  %v74_v27 = vld [vmem:[%s1708_s0 + $0x1c8] sm:$0xff] }
  0x29   :  { %295 = vmatmul.mubr.f32.gmra.mrb[2].mxu0 %v22_v46  ;;  %1034 = vmatprep.subr.bf16.mxu1 %v1021_v42  ;;  %v78_v28 = vld [vmem:[%s1708_s0 + $0x1e8] sm:$0xff]  ;;  %v80_v29 = vld [vmem:[%s1708_s0 + $0x1f8] sm:$0xff]  ;;  %v77_v30 = vld [vmem:[%s1708_s0 + $0x1e0] sm:$0xff] }
  0x2a   :  { %440 = vmatmul.mubr.f32.gmra.mrb[2].mxu1 %v24_v47  ;;  %299 = vmatprep.mubr.f32.mxu0 %v28_v48  ;;  %v79_v31 = vld [vmem:[%s1708_s0 + $0x1f0] sm:$0xff]  ;;  %v85_v33 = vld [vmem:[%s1708_s0 + $0x220] sm:$0xff]  ;;  %v82_v34 = vld [vmem:[%s1708_s0 + $0x208] sm:$0xff] }
  0x2b   :  { %444 = vmatprep.mubr.f32.mxu1 %v30_v49  ;;  %1024 = vmatpush3.bf16.msra.mxu0 %v1021_v42  ;;  %v83_v32 = vld [vmem:[%s1708_s0 + $0x210] sm:$0xff]  ;;  %v84_v35 = vld [vmem:[%s1708_s0 + $0x218] sm:$0xff]  ;;  %v90_v37 = vld [vmem:[%s1708_s0 + $0x248] sm:$0xff] }
  0x2c   :  { %1038 = vmatpush3.bf16.msra.mxu1 %v1021_v42  ;;  %1026 = vmatprep.subr.bf16.mxu0 %v1025_v50  ;;  %v88_v36 = vld [vmem:[%s1708_s0 + $0x238] sm:$0xff]  ;;  %v87_v38 = vld [vmem:[%s1708_s0 + $0x230] sm:$0xff]  ;;  %v89_v39 = vld [vmem:[%s1708_s0 + $0x240] sm:$0xff] }
  0x2d   :  { %300 = vmatmul.mubr.f32.gmra.mrb[4].mxu0 %v27_v51  ;;  %1035 = vmatprep.subr.bf16.mxu1 %v1025_v50  ;;  %v93_v40 = vld [vmem:[%s1708_s0 + $0x260] sm:$0xff]  ;;  %v95_v41 = vld [vmem:[%s1708_s0 + $0x270] sm:$0xff]  ;;  %v92_v42 = vld [vmem:[%s1708_s0 + $0x258] sm:$0xff] }
  0x2e   :  { %445 = vmatmul.mubr.f32.gmra.mrb[4].mxu1 %v29_v53  ;;  %304 = vmatprep.mubr.f32.mxu0 %v33_v54  ;;  %v94_v43 = vld [vmem:[%s1708_s0 + $0x268] sm:$0xff]  ;;  %v21_v44 = vld [vmem:[%s1708_s0 + $0x20] sm:$0xff]  ;;  %v31_v48 = vld [vmem:[%s1708_s0 + $0x70] sm:$0xff] }
  0x2f   :  { %449 = vmatprep.mubr.f32.mxu1 %v35_v56  ;;  %1028 = vmatpush3.bf16.msra.mxu0 %v1025_v50  ;;  %v61_v45 = vld [vmem:[%s1708_s0 + $0x160] sm:$0xff]  ;;  %v26_v46 = vld [vmem:[%s1708_s0 + $0x48] sm:$0xff]  ;;  %v71_v49 = vld [vmem:[%s1708_s0 + $0x1b0] sm:$0xff] }
  0x30   :  { %1039 = vmatpush3.bf16.msra.mxu1 %v1025_v50  ;;  %1030 = vmatprep.subr.bf16.mxu0 %v1029_v57  ;;  %v66_v47 = vld [vmem:[%s1708_s0 + $0x188] sm:$0xff]  ;;  %v36_v50 = vld [vmem:[%s1708_s0 + $0x98] sm:$0xff]  ;;  %v41_v52 = vld [vmem:[%s1708_s0 + $0xc0] sm:$0xff] }
  0x31   :  { %305 = vmatmul.mubr.f32.gmra.mrb[6].mxu0 %v32_v58  ;;  %1036 = vmatprep.subr.bf16.mxu1 %v1029_v57  ;;  %v76_v51 = vld [vmem:[%s1708_s0 + $0x1d8] sm:$0xff]  ;;  %v81_v53 = vld [vmem:[%s1708_s0 + $0x200] sm:$0xff]  ;;  %v46_v54 = vld [vmem:[%s1708_s0 + $0xe8] sm:$0xff] }
  0x32   :  { %450 = vmatmul.mubr.f32.gmra.mrb[6].mxu1 %v34_v59  ;;  %309 = vmatprep.mubr.f32.mxu0 %v38_v60  ;;  %v86_v55 = vld [vmem:[%s1708_s0 + $0x228] sm:$0xff]  ;;  %v51_v56 = vld [vmem:[%s1708_s0 + $0x110] sm:$0xff]  ;;  %v56_v58 = vld [vmem:[%s1708_s0 + $0x138] sm:$0xff] }
  0x33   :  { %454 = vmatprep.mubr.f32.mxu1 %v40_v61  ;;  %1032 = vmatpush3.bf16.msra.mxu0 %v1029_v57  ;;  %v96_v59 = vld [vmem:[%s1708_s0 + $0x278] sm:$0xff] }
  0x34   :  { %1040 = vmatpush3.bf16.msra.mxu1 %v1029_v57  ;;  %v91_v57 = vld [vmem:[%s1708_s0 + $0x250] sm:$0xff] }
  0x35   :  { %310 = vmatmul.mubr.f32.gmra.mrb[8].mxu0 %v37_v62  ;;  %v1541_v62 = vld [vmem:[%s1709_s2] ss:$0 sm:$0xff] }
  0x36   :  { %455 = vmatmul.mubr.f32.gmra.mrb[8].mxu1 %v39_v63  ;;  %314 = vmatprep.mubr.f32.mxu0 %v43_v0 }
  0x37   :  { %459 = vmatprep.mubr.f32.mxu1 %v45_v1 }
  0x39   :  { %315 = vmatmul.mubr.f32.gmra.mrb[10].mxu0 %v42_v2 }
  0x3a   :  { %460 = vmatmul.mubr.f32.gmra.mrb[10].mxu1 %v44_v3  ;;  %319 = vmatprep.mubr.f32.mxu0 %v48_v4 }
  0x3b   :  { %464 = vmatprep.mubr.f32.mxu1 %v50_v5 }
  0x3d   :  { %320 = vmatmul.mubr.f32.gmra.mrb[12].mxu0 %v47_v6 }
  0x3e   :  { %465 = vmatmul.mubr.f32.gmra.mrb[12].mxu1 %v49_v7  ;;  %324 = vmatprep.mubr.f32.mxu0 %v53_v8 }
  0x3f   :  { %469 = vmatprep.mubr.f32.mxu1 %v55_v9 }
  0x41   :  { %325 = vmatmul.mubr.f32.gmra.mrb[14].mxu0 %v52_v10 }
  0x42   :  { %470 = vmatmul.mubr.f32.gmra.mrb[14].mxu1 %v54_v11  ;;  %329 = vmatprep.mubr.f32.mxu0 %v58_v12 }
  0x43   :  { %474 = vmatprep.mubr.f32.mxu1 %v60_v13 }
  0x45   :  { %330 = vmatmul.mubr.f32.gmra.mrb[16].mxu0 %v57_v14 }
  0x46   :  { %475 = vmatmul.mubr.f32.gmra.mrb[16].mxu1 %v59_v15  ;;  %334 = vmatprep.mubr.f32.mxu0 %v63_v16 }
  0x47   :  { %479 = vmatprep.mubr.f32.mxu1 %v65_v17 }
  0x49   :  { %335 = vmatmul.mubr.f32.gmra.mrb[18].mxu0 %v62_v18 }
  0x4a   :  { %480 = vmatmul.mubr.f32.gmra.mrb[18].mxu1 %v64_v19  ;;  %339 = vmatprep.mubr.f32.mxu0 %v68_v20 }
  0x4b   :  { %484 = vmatprep.mubr.f32.mxu1 %v70_v21 }
  0x4d   :  { %340 = vmatmul.mubr.f32.gmra.mrb[20].mxu0 %v67_v22 }
  0x4e   :  { %485 = vmatmul.mubr.f32.gmra.mrb[20].mxu1 %v69_v23  ;;  %344 = vmatprep.mubr.f32.mxu0 %v73_v24 }
  0x4f   :  { %489 = vmatprep.mubr.f32.mxu1 %v75_v25 }
  0x51   :  { %345 = vmatmul.mubr.f32.gmra.mrb[22].mxu0 %v72_v26 }
  0x52   :  { %490 = vmatmul.mubr.f32.gmra.mrb[22].mxu1 %v74_v27  ;;  %349 = vmatprep.mubr.f32.mxu0 %v78_v28 }
  0x53   :  { %494 = vmatprep.mubr.f32.mxu1 %v80_v29 }
  0x55   :  { %350 = vmatmul.mubr.f32.gmra.mrb[24].mxu0 %v77_v30 }
  0x56   :  { %495 = vmatmul.mubr.f32.gmra.mrb[24].mxu1 %v79_v31  ;;  %354 = vmatprep.mubr.f32.mxu0 %v83_v32 }
  0x57   :  { %499 = vmatprep.mubr.f32.mxu1 %v85_v33 }
  0x59   :  { %355 = vmatmul.mubr.f32.gmra.mrb[26].mxu0 %v82_v34 }
  0x5a   :  { %500 = vmatmul.mubr.f32.gmra.mrb[26].mxu1 %v84_v35  ;;  %359 = vmatprep.mubr.f32.mxu0 %v88_v36 }
  0x5b   :  { %504 = vmatprep.mubr.f32.mxu1 %v90_v37 }
  0x5d   :  { %360 = vmatmul.mubr.f32.gmra.mrb[28].mxu0 %v87_v38 }
  0x5e   :  { %505 = vmatmul.mubr.f32.gmra.mrb[28].mxu1 %v89_v39  ;;  %364 = vmatprep.mubr.f32.mxu0 %v93_v40 }
  0x5f   :  { %509 = vmatprep.mubr.f32.mxu1 %v95_v41 }
  0x61   :  { %365 = vmatmul.mubr.f32.gmra.mrb[30].mxu0 %v92_v42 }
  0x62   :  { %510 = vmatmul.mubr.f32.gmra.mrb[30].mxu1 %v94_v43  ;;  %929 = vmatprep.mubr.msk.f32.mxu0 %vm176_vm0, %v21_v44 }
  0x63   :  { %941 = vmatprep.mubr.msk.f32.mxu1 %vm176_vm0, %v61_v45 }
  0x65   :  { %930 = vmatmul.mubr.msk.f32.vlgmr.msra.gmra.mrb[32].mxu0 %vm176_vm0, %v26_v46 }
  0x66   :  { %942 = vmatmul.mubr.msk.f32.vlgmr.msra.gmra.mrb[32].mxu1 %vm176_vm0, %v66_v47  ;;  %932 = vmatprep.mubr.msk.f32.mxu0 %vm176_vm0, %v31_v48 }
  0x67   :  { %944 = vmatprep.mubr.msk.f32.mxu1 %vm176_vm0, %v71_v49 }
  0x69   :  { %933 = vmatmul.mubr.msk.f32.gmra.mrb[34].mxu0 %vm176_vm0, %v36_v50 }
  0x6a   :  { %945 = vmatmul.mubr.msk.f32.gmra.mrb[34].mxu1 %vm176_vm0, %v76_v51  ;;  %935 = vmatprep.mubr.msk.f32.mxu0 %vm176_vm0, %v41_v52 }
  0x6b   :  { %947 = vmatprep.mubr.msk.f32.mxu1 %vm176_vm0, %v81_v53 }
  0x6d   :  { %936 = vmatmul.mubr.msk.f32.gmra.mrb[36].mxu0 %vm176_vm0, %v46_v54 }
  0x6e   :  { %948 = vmatmul.mubr.msk.f32.gmra.mrb[36].mxu1 %vm176_vm0, %v86_v55  ;;  %938 = vmatprep.mubr.msk.f32.mxu0 %vm176_vm0, %v51_v56 }
  0x6f   :  { %950 = vmatprep.mubr.msk.f32.mxu1 %vm176_vm0, %v91_v57 }
  0x71   :  { %939 = vmatmul.mubr.msk.f32.gmra.mrb[38].mxu0 %vm176_vm0, %v56_v58 }
  0x72   :  { %951 = vmatmul.mubr.msk.f32.gmra.mrb[38].mxu1 %vm176_vm0, %v96_v59 }
  0xf8   :  { %v761_v60 = vpop.f32.mrb[0].mxu0 }
  0xf9   :  { %v841_v61 = vpop.f32.mrb[0].mxu1  ;;  %v762_v63 = vpop.f32.mrb[1].mxu0 }
  0xfa   :  { %v763_v0 = vadd.f32 %v762_v63, %v761_v60  ;;  %v842_v1 = vpop.f32.mrb[1].mxu1 }
  0xfb   :  { %v843_v2 = vadd.f32 %v842_v1, %v841_v61 }
  0xfc   :  { %v292_v3 = vadd.f32 %v763_v0, %v1541_v62  ;;  %v764_v4 = vpop.f32.mrb[2].mxu0 }
  0xfd   :  { %v844_v5 = vpop.f32.mrb[2].mxu1  ;;  %v765_v6 = vpop.f32.mrb[3].mxu0 }
  0xfe   :  { %v766_v7 = vadd.f32 %v765_v6, %v764_v4  ;;  %v845_v8 = vpop.f32.mrb[3].mxu1  ;;  %v1544_v9 = vadd.f32 %v843_v2, %v292_v3 }
  0xff   :  { %v846_v10 = vadd.f32 %v845_v8, %v844_v5 }
 0x100   :  { %v297_v11 = vadd.f32 %v766_v7, %v1541_v62  ;;  %v767_v12 = vpop.f32.mrb[4].mxu0 }
 0x101   :  { %v847_v13 = vpop.f32.mrb[4].mxu1  ;;  %v768_v14 = vpop.f32.mrb[5].mxu0 }
 0x102   :  { %v769_v15 = vadd.f32 %v768_v14, %v767_v12  ;;  %v848_v16 = vpop.f32.mrb[5].mxu1  ;;  %v1547_v17 = vadd.f32 %v846_v10, %v297_v11 }
 0x103   :  { %v849_v18 = vadd.f32 %v848_v16, %v847_v13 }
 0x104   :  { %v302_v19 = vadd.f32 %v769_v15, %v1541_v62  ;;  %v770_v20 = vpop.f32.mrb[6].mxu0 }
 0x105   :  { %v850_v21 = vpop.f32.mrb[6].mxu1  ;;  %v771_v22 = vpop.f32.mrb[7].mxu0 }
 0x106   :  { %v772_v23 = vadd.f32 %v771_v22, %v770_v20  ;;  %v851_v24 = vpop.f32.mrb[7].mxu1  ;;  %v1550_v25 = vadd.f32 %v849_v18, %v302_v19 }
 0x107   :  { %v852_v26 = vadd.f32 %v851_v24, %v850_v21 }
 0x108   :  { %v307_v27 = vadd.f32 %v772_v23, %v1541_v62  ;;  %v773_v28 = vpop.f32.mrb[8].mxu0 }
 0x109   :  { %v853_v29 = vpop.f32.mrb[8].mxu1  ;;  %v774_v30 = vpop.f32.mrb[9].mxu0 }
 0x10a   :  { %v775_v31 = vadd.f32 %v774_v30, %v773_v28  ;;  %v854_v32 = vpop.f32.mrb[9].mxu1  ;;  %v1553_v33 = vadd.f32 %v852_v26, %v307_v27 }
 0x10b   :  { %v855_v34 = vadd.f32 %v854_v32, %v853_v29 }
 0x10c   :  { %v312_v35 = vadd.f32 %v775_v31, %v1541_v62  ;;  %v776_v36 = vpop.f32.mrb[10].mxu0 }
 0x10d   :  { %v856_v37 = vpop.f32.mrb[10].mxu1  ;;  %v777_v38 = vpop.f32.mrb[11].mxu0 }
 0x10e   :  { %v778_v39 = vadd.f32 %v777_v38, %v776_v36  ;;  %v857_v40 = vpop.f32.mrb[11].mxu1  ;;  %v1556_v41 = vadd.f32 %v855_v34, %v312_v35 }
 0x10f   :  { %v858_v42 = vadd.f32 %v857_v40, %v856_v37 }
 0x110   :  { %v317_v43 = vadd.f32 %v778_v39, %v1541_v62  ;;  %v779_v44 = vpop.f32.mrb[12].mxu0 }
 0x111   :  { %v859_v45 = vpop.f32.mrb[12].mxu1  ;;  %v780_v46 = vpop.f32.mrb[13].mxu0 }
 0x112   :  { %v781_v47 = vadd.f32 %v780_v46, %v779_v44  ;;  %v860_v48 = vpop.f32.mrb[13].mxu1  ;;  %v1559_v49 = vadd.f32 %v858_v42, %v317_v43 }
 0x113   :  { %v861_v50 = vadd.f32 %v860_v48, %v859_v45 }
 0x114   :  { %v322_v51 = vadd.f32 %v781_v47, %v1541_v62  ;;  %v782_v52 = vpop.f32.mrb[14].mxu0 }
 0x115   :  { %v862_v53 = vpop.f32.mrb[14].mxu1  ;;  %v783_v54 = vpop.f32.mrb[15].mxu0 }
 0x116   :  { %v784_v55 = vadd.f32 %v783_v54, %v782_v52  ;;  %v863_v56 = vpop.f32.mrb[15].mxu1  ;;  %v1562_v57 = vadd.f32 %v861_v50, %v322_v51 }
 0x117   :  { %v864_v58 = vadd.f32 %v863_v56, %v862_v53 }
 0x118   :  { %v327_v59 = vadd.f32 %v784_v55, %v1541_v62  ;;  %v785_v60 = vpop.f32.mrb[16].mxu0 }
 0x119   :  { %v865_v61 = vpop.f32.mrb[16].mxu1  ;;  %v786_v63 = vpop.f32.mrb[17].mxu0 }
 0x11a   :  { %v787_v0 = vadd.f32 %v786_v63, %v785_v60  ;;  %v866_v1 = vpop.f32.mrb[17].mxu1  ;;  %v1565_v2 = vadd.f32 %v864_v58, %v327_v59 }
 0x11b   :  { %v867_v3 = vadd.f32 %v866_v1, %v865_v61 }
 0x11c   :  { %v332_v4 = vadd.f32 %v787_v0, %v1541_v62  ;;  %v788_v5 = vpop.f32.mrb[18].mxu0 }
 0x11d   :  { %v868_v6 = vpop.f32.mrb[18].mxu1  ;;  %v789_v7 = vpop.f32.mrb[19].mxu0 }
 0x11e   :  { %v790_v8 = vadd.f32 %v789_v7, %v788_v5  ;;  %v869_v10 = vpop.f32.mrb[19].mxu1  ;;  %v1568_v11 = vadd.f32 %v867_v3, %v332_v4  ;;  %v661_v7 = vld [vmem:[%s1710_s3 + $0x8] sm:$0xff] }
 0x11f   :  { %v870_v12 = vadd.f32 %v869_v10, %v868_v6 }
 0x120   :  { %v337_v13 = vadd.f32 %v790_v8, %v1541_v62  ;;  %v791_v14 = vpop.f32.mrb[20].mxu0 }
 0x121   :  { %v871_v15 = vpop.f32.mrb[20].mxu1  ;;  %v792_v16 = vpop.f32.mrb[21].mxu0 }
 0x122   :  { %v793_v18 = vadd.f32 %v792_v16, %v791_v14  ;;  %v872_v19 = vpop.f32.mrb[21].mxu1  ;;  %v482_v20 = vadd.f32 %v870_v12, %v337_v13  ;;  %v669_v12 = vld [vmem:[%s1710_s3 + $0x48] sm:$0xff]  ;;  %v660_v14 = vld [vmem:[%s1710_s3] sm:$0xff] }
 0x123   :  { %v873_v21 = vadd.f32 %v872_v19, %v871_v15 }
 0x124   :  { %v342_v22 = vadd.f32 %v793_v18, %v1541_v62  ;;  %v794_v23 = vpop.f32.mrb[22].mxu0  ;;  %v668_v18 = vld [vmem:[%s1710_s3 + $0x40] sm:$0xff] }
 0x125   :  { %v874_v24 = vpop.f32.mrb[22].mxu1  ;;  %v795_v26 = vpop.f32.mrb[23].mxu0 }
 0x126   :  { %v796_v27 = vadd.f32 %v795_v26, %v794_v23  ;;  %v875_v28 = vpop.f32.mrb[23].mxu1  ;;  %v1572_v29 = vadd.f32 %v873_v21, %v342_v22  ;;  %v663_v26 = vld [vmem:[%s1710_s3 + $0x18] sm:$0xff] }
 0x127   :  { %v876_v30 = vadd.f32 %v875_v28, %v874_v24 }
 0x128   :  { %v347_v31 = vadd.f32 %v796_v27, %v1541_v62  ;;  %v797_v32 = vpop.f32.mrb[24].mxu0 }
 0x129   :  { %v877_v34 = vpop.f32.mrb[24].mxu1  ;;  %v798_v35 = vpop.f32.mrb[25].mxu0 }
 0x12a   :  { %v799_v36 = vadd.f32 %v798_v35, %v797_v32  ;;  %v878_v37 = vpop.f32.mrb[25].mxu1  ;;  %v492_v38 = vadd.f32 %v876_v30, %v347_v31  ;;  %v662_v30 = vld [vmem:[%s1710_s3 + $0x10] sm:$0xff] }
 0x12b   :  { %v879_v39 = vadd.f32 %v878_v37, %v877_v34  ;;  %v670_v34 = vld [vmem:[%s1710_s3 + $0x50] sm:$0xff] }
 0x12c   :  { %v352_v40 = vadd.f32 %v799_v36, %v1541_v62  ;;  %v800_v42 = vpop.f32.mrb[26].mxu0 }
 0x12d   :  { %v880_v43 = vpop.f32.mrb[26].mxu1  ;;  %v801_v44 = vpop.f32.mrb[27].mxu0 }
 0x12e   :  { %v802_v45 = vadd.f32 %v801_v44, %v800_v42  ;;  %v881_v46 = vpop.f32.mrb[27].mxu1  ;;  %v1576_v47 = vadd.f32 %v879_v39, %v352_v40 }
 0x12f   :  { %v882_v48 = vadd.f32 %v881_v46, %v880_v43 }
 0x130   :  { %v357_v50 = vadd.f32 %v802_v45, %v1541_v62  ;;  %v803_v51 = vpop.f32.mrb[28].mxu0  ;;  %v664_v45 = vld [vmem:[%s1710_s3 + $0x20] sm:$0xff] }
 0x131   :  { %v883_v52 = vpop.f32.mrb[28].mxu1  ;;  %v804_v53 = vpop.f32.mrb[29].mxu0 }
 0x132   :  { %v805_v54 = vadd.f32 %v804_v53, %v803_v51  ;;  %v884_v55 = vpop.f32.mrb[29].mxu1  ;;  %v502_v56 = vadd.f32 %v882_v48, %v357_v50  ;;  %v672_v50 = vld [vmem:[%s1710_s3 + $0x60] sm:$0xff] }
 0x133   :  { %v885_v58 = vadd.f32 %v884_v55, %v883_v52 }
 0x134   :  { %v362_v59 = vadd.f32 %v805_v54, %v1541_v62  ;;  %v806_v60 = vpop.f32.mrb[30].mxu0 }
 0x135   :  { %v886_v61 = vpop.f32.mrb[30].mxu1  ;;  %v807_v63 = vpop.f32.mrb[31].mxu0 }
 0x136   :  { %v808_v0 = vadd.f32 %v807_v63, %v806_v60  ;;  %v887_v1 = vpop.f32.mrb[31].mxu1  ;;  %v1580_v3 = vadd.f32 %v885_v58, %v362_v59 }
 0x137   :  { %v888_v4 = vadd.f32 %v887_v1, %v886_v61  ;;  %v666_v61 = vld [vmem:[%s1710_s3 + $0x30] sm:$0xff] }
 0x138   :  { %v367_v5 = vadd.f32 %v808_v0, %v1541_v62  ;;  %v931_v6 = vpop.f32.mrb[32].mxu0  ;;  %v674_v1 = vld [vmem:[%s1710_s3 + $0x70] sm:$0xff] }
 0x139   :  { %v587_v8 = vadd.f32 %v931_v6, %v1547_v17  ;;  %v943_v10 = vpop.f32.mrb[32].mxu1  ;;  %v581_v13 = vpop.f32.mrb[33].mxu0 }
 0x13a   :  { %v627_v15 = vadd.f32 %v943_v10, %v482_v20  ;;  %v582_v62 = vadd.f32 %v581_v13, %v1544_v9  ;;  %v621_v16 = vpop.f32.mrb[33].mxu1  ;;  %v512_v19 = vadd.f32 %v888_v4, %v367_v5 }
 0x13b   :  { %v677_v17 = vadd.f32 %v661_v7, %v587_v8  ;;  %v622_v21 = vadd.f32 %v621_v16, %v1568_v11  ;;  %v671_v11 = vld [vmem:[%s1710_s3 + $0x58] sm:$0xff] }
 0x13c   :  { %v685_v22 = vadd.f32 %v669_v12, %v627_v15  ;;  %v676_v23 = vadd.f32 %v660_v14, %v582_v62  ;;  %v934_v24 = vpop.f32.mrb[34].mxu0 }
 0x13d   :  { %693 = vst.msk [vmem:[%s1711_s4 + $0x8] sm:$0xff] %vm176_vm0, %v677_v17  ;;  %v684_v9 = vadd.f32 %v668_v18, %v622_v21  ;;  %v597_v20 = vadd.f32 %v934_v24, %v1553_v33  ;;  %v946_v27 = vpop.f32.mrb[34].mxu1  ;;  %v591_v28 = vpop.f32.mrb[35].mxu0 }
 0x13e   :  { %701 = vst.msk [vmem:[%s1711_s4 + $0x48] sm:$0xff] %vm176_vm0, %v685_v22  ;;  %692 = vst.msk [vmem:[%s1711_s4] sm:$0xff] %vm176_vm0, %v676_v23  ;;  %v637_v33 = vadd.f32 %v946_v27, %v492_v38  ;;  %v592_v31 = vadd.f32 %v591_v28, %v1550_v25  ;;  %v631_v32 = vpop.f32.mrb[35].mxu1  ;;  %v665_v25 = vld [vmem:[%s1710_s3 + $0x28] sm:$0xff] }
 0x13f   :  { %700 = vst.msk [vmem:[%s1711_s4 + $0x40] sm:$0xff] %vm176_vm0, %v684_v9  ;;  %v679_v35 = vadd.f32 %v663_v26, %v597_v20  ;;  %v632_v36 = vadd.f32 %v631_v32, %v1572_v29  ;;  %v673_v29 = vld [vmem:[%s1710_s3 + $0x68] sm:$0xff] }
 0x140   :  { %v687_v37 = vadd.f32 %v671_v11, %v637_v33  ;;  %v678_v39 = vadd.f32 %v662_v30, %v592_v31  ;;  %v937_v40 = vpop.f32.mrb[36].mxu0 }
 0x141   :  { %695 = vst.msk [vmem:[%s1711_s4 + $0x18] sm:$0xff] %vm176_vm0, %v679_v35  ;;  %v686_v38 = vadd.f32 %v670_v34, %v632_v36  ;;  %v607_v42 = vadd.f32 %v937_v40, %v1559_v49  ;;  %v949_v43 = vpop.f32.mrb[36].mxu1  ;;  %v601_v44 = vpop.f32.mrb[37].mxu0 }
 0x142   :  { %703 = vst.msk [vmem:[%s1711_s4 + $0x58] sm:$0xff] %vm176_vm0, %v687_v37  ;;  %694 = vst.msk [vmem:[%s1711_s4 + $0x10] sm:$0xff] %vm176_vm0, %v678_v39  ;;  %v647_v49 = vadd.f32 %v949_v43, %v502_v56  ;;  %v602_v46 = vadd.f32 %v601_v44, %v1556_v41  ;;  %v641_v48 = vpop.f32.mrb[37].mxu1  ;;  %v667_v41 = vld [vmem:[%s1710_s3 + $0x38] sm:$0xff] }
 0x143   :  { %702 = vst.msk [vmem:[%s1711_s4 + $0x50] sm:$0xff] %vm176_vm0, %v686_v38  ;;  %v681_v51 = vadd.f32 %v665_v25, %v607_v42  ;;  %v642_v52 = vadd.f32 %v641_v48, %v1576_v47  ;;  %v675_v47 = vld [vmem:[%s1710_s3 + $0x78] sm:$0xff] }
 0x144   :  { %v689_v53 = vadd.f32 %v673_v29, %v647_v49  ;;  %v680_v54 = vadd.f32 %v664_v45, %v602_v46  ;;  %v940_v55 = vpop.f32.mrb[38].mxu0 }
 0x145   :  { %697 = vst.msk [vmem:[%s1711_s4 + $0x28] sm:$0xff] %vm176_vm0, %v681_v51  ;;  %v688_v56 = vadd.f32 %v672_v50, %v642_v52  ;;  %v617_v58 = vadd.f32 %v940_v55, %v1565_v2  ;;  %v952_v59 = vpop.f32.mrb[38].mxu1  ;;  %v611_v60 = vpop.f32.mrb[39].mxu0 }
 0x146   :  { %705 = vst.msk [vmem:[%s1711_s4 + $0x68] sm:$0xff] %vm176_vm0, %v689_v53  ;;  %696 = vst.msk [vmem:[%s1711_s4 + $0x20] sm:$0xff] %vm176_vm0, %v680_v54  ;;  %v657_v2 = vadd.f32 %v952_v59, %v512_v19  ;;  %v612_v63 = vadd.f32 %v611_v60, %v1562_v57  ;;  %v651_v0 = vpop.f32.mrb[39].mxu1 }
 0x147   :  { %704 = vst.msk [vmem:[%s1711_s4 + $0x60] sm:$0xff] %vm176_vm0, %v688_v56  ;;  %v683_v4 = vadd.f32 %v667_v41, %v617_v58  ;;  %v652_v5 = vadd.f32 %v651_v0, %v1580_v3 }
 0x148   :  { %v691_v6 = vadd.f32 %v675_v47, %v657_v2  ;;  %v682_v7 = vadd.f32 %v666_v61, %v612_v63 }
 0x149   :  { %699 = vst.msk [vmem:[%s1711_s4 + $0x38] sm:$0xff] %vm176_vm0, %v683_v4  ;;  %v690_v57 = vadd.f32 %v674_v1, %v652_v5 }
 0x14a   :  { %707 = vst.msk [vmem:[%s1711_s4 + $0x78] sm:$0xff] %vm176_vm0, %v691_v6  ;;  %698 = vst.msk [vmem:[%s1711_s4 + $0x30] sm:$0xff] %vm176_vm0, %v682_v7 }
 0x14b   :  { %706 = vst.msk [vmem:[%s1711_s4 + $0x70] sm:$0xff] %vm176_vm0, %v690_v57 }

// kernel: _lambda_.33
= control target key start
LH: loop header
LB: loop body
LE: loop exit
PB: predicated region body
PF: predicated region fallthrough
CT: control target
= control target key end

     0   :  { %vm173_vm0 = vcmask 523264   ;;  %s1607_s1 = inlined_call_operand.vmem [shape: f32[576,64], index: 1, kind: input, shape index: {}]   ;;  %s1608_s0 = inlined_call_operand.vmem [shape: f32[128,576], index: 0, kind: input, shape index: {}]   ;;  %s1609_s2 = inlined_call_operand.vmem [shape: f32[1,64], index: 2, kind: input, shape index: {}]   ;;  %s1610_s3 = inlined_call_operand.vmem [shape: f32[128,64], index: 3, kind: output, shape index: {}]  }
   0x1   :  { %v110_v0 = vld [vmem:[%s1607_s1 + $0x80] sm:$0xff]  ;;  %v111_v1 = vld [vmem:[%s1607_s1 + $0x88] sm:$0xff]  ;;  %v112_v11 = vld [vmem:[%s1607_s1 + $0x90] sm:$0xff] }
   0x2   :  { %v142_v2 = vld [vmem:[%s1607_s1 + $0x180] sm:$0xff]  ;;  %v918_v3 = vpack.c.bf16 %v111_v1, %v110_v0  ;;  %v143_v4 = vld [vmem:[%s1607_s1 + $0x188] sm:$0xff]  ;;  %v113_v13 = vld [vmem:[%s1607_s1 + $0x98] sm:$0xff] }
   0x3   :  { %v94_v5 = vld [vmem:[%s1607_s1] sm:$0xff]  ;;  %v95_v6 = vld [vmem:[%s1607_s1 + $0x8] sm:$0xff]  ;;  %v950_v7 = vpack.c.bf16 %v143_v4, %v142_v2  ;;  %v144_v14 = vld [vmem:[%s1607_s1 + $0x190] sm:$0xff]  ;;  %v922_v16 = vpack.c.bf16 %v113_v13, %v112_v11 }
   0x4   :  { %v920_v8 = vpack.c.bf16 %v95_v6, %v94_v5  ;;  %v126_v9 = vld [vmem:[%s1607_s1 + $0x100] sm:$0xff]  ;;  %v127_v10 = vld [vmem:[%s1607_s1 + $0x108] sm:$0xff]  ;;  %919 = vmatprep.subr.bf16.mxu0 %v918_v3  ;;  %v145_v15 = vld [vmem:[%s1607_s1 + $0x198] sm:$0xff] }
   0x5   :  { %v952_v12 = vpack.c.bf16 %v127_v10, %v126_v9  ;;  %951 = vmatprep.subr.bf16.mxu1 %v950_v7  ;;  %v954_v17 = vpack.c.bf16 %v145_v15, %v144_v14  ;;  %v96_v18 = vld [vmem:[%s1607_s1 + $0x10] sm:$0xff]  ;;  %v97_v19 = vld [vmem:[%s1607_s1 + $0x18] sm:$0xff]  ;;  %v114_v23 = vld [vmem:[%s1607_s1 + $0xa0] sm:$0xff] }
   0x6   :  { %921 = vmatpush3.bf16.msra.mxu0 %v920_v8  ;;  %v128_v20 = vld [vmem:[%s1607_s1 + $0x110] sm:$0xff]  ;;  %v924_v21 = vpack.c.bf16 %v97_v19, %v96_v18  ;;  %v129_v22 = vld [vmem:[%s1607_s1 + $0x118] sm:$0xff]  ;;  %v115_v24 = vld [vmem:[%s1607_s1 + $0xa8] sm:$0xff] }
   0x7   :  { %953 = vmatpush3.bf16.msra.mxu1 %v952_v12  ;;  %923 = vmatprep.subr.bf16.mxu0 %v922_v16  ;;  %v956_v25 = vpack.c.bf16 %v129_v22, %v128_v20  ;;  %v926_v26 = vpack.c.bf16 %v115_v24, %v114_v23  ;;  %v146_v27 = vld [vmem:[%s1607_s1 + $0x1a0] sm:$0xff]  ;;  %v147_v28 = vld [vmem:[%s1607_s1 + $0x1a8] sm:$0xff]  ;;  %v116_v35 = vld [vmem:[%s1607_s1 + $0xb0] sm:$0xff] }
   0x8   :  { %955 = vmatprep.subr.bf16.mxu1 %v954_v17  ;;  %v98_v29 = vld [vmem:[%s1607_s1 + $0x20] sm:$0xff]  ;;  %v958_v30 = vpack.c.bf16 %v147_v28, %v146_v27  ;;  %v99_v31 = vld [vmem:[%s1607_s1 + $0x28] sm:$0xff]  ;;  %v117_v36 = vld [vmem:[%s1607_s1 + $0xb8] sm:$0xff] }
   0x9   :  { %v130_v32 = vld [vmem:[%s1607_s1 + $0x120] sm:$0xff]  ;;  %v131_v33 = vld [vmem:[%s1607_s1 + $0x128] sm:$0xff]  ;;  %v928_v34 = vpack.c.bf16 %v99_v31, %v98_v29  ;;  %v148_v37 = vld [vmem:[%s1607_s1 + $0x1b0] sm:$0xff]  ;;  %v930_v39 = vpack.c.bf16 %v117_v36, %v116_v35 }
   0xa   :  { %925 = vmatpush3.bf16.msra.mxu0 %v924_v21  ;;  %v960_v38 = vpack.c.bf16 %v131_v33, %v130_v32  ;;  %v149_v40 = vld [vmem:[%s1607_s1 + $0x1b8] sm:$0xff]  ;;  %v100_v41 = vld [vmem:[%s1607_s1 + $0x30] sm:$0xff]  ;;  %v118_v46 = vld [vmem:[%s1607_s1 + $0xc0] sm:$0xff] }
   0xb   :  { %957 = vmatpush3.bf16.msra.mxu1 %v956_v25  ;;  %927 = vmatprep.subr.bf16.mxu0 %v926_v26  ;;  %v101_v42 = vld [vmem:[%s1607_s1 + $0x38] sm:$0xff]  ;;  %v962_v43 = vpack.c.bf16 %v149_v40, %v148_v37  ;;  %v132_v44 = vld [vmem:[%s1607_s1 + $0x130] sm:$0xff]  ;;  %v119_v47 = vld [vmem:[%s1607_s1 + $0xc8] sm:$0xff] }
   0xc   :  { %959 = vmatprep.subr.bf16.mxu1 %v958_v30  ;;  %v133_v45 = vld [vmem:[%s1607_s1 + $0x138] sm:$0xff]  ;;  %v150_v48 = vld [vmem:[%s1607_s1 + $0x1c0] sm:$0xff]  ;;  %v151_v49 = vld [vmem:[%s1607_s1 + $0x1c8] sm:$0xff]  ;;  %v932_v50 = vpack.c.bf16 %v101_v42, %v100_v41  ;;  %v934_v52 = vpack.c.bf16 %v119_v47, %v118_v46 }
   0xd   :  { %v964_v51 = vpack.c.bf16 %v133_v45, %v132_v44  ;;  %v102_v53 = vld [vmem:[%s1607_s1 + $0x40] sm:$0xff]  ;;  %v103_v54 = vld [vmem:[%s1607_s1 + $0x48] sm:$0xff]  ;;  %v966_v56 = vpack.c.bf16 %v151_v49, %v150_v48  ;;  %v120_v58 = vld [vmem:[%s1607_s1 + $0xd0] sm:$0xff] }
   0xe   :  { %929 = vmatpush3.bf16.msra.mxu0 %v928_v34  ;;  %v134_v55 = vld [vmem:[%s1607_s1 + $0x140] sm:$0xff]  ;;  %v135_v57 = vld [vmem:[%s1607_s1 + $0x148] sm:$0xff]  ;;  %v121_v59 = vld [vmem:[%s1607_s1 + $0xd8] sm:$0xff]  ;;  %v936_v62 = vpack.c.bf16 %v103_v54, %v102_v53 }
   0xf   :  { %961 = vmatpush3.bf16.msra.mxu1 %v960_v38  ;;  %931 = vmatprep.subr.bf16.mxu0 %v930_v39  ;;  %v152_v60 = vld [vmem:[%s1607_s1 + $0x1d0] sm:$0xff]  ;;  %v153_v61 = vld [vmem:[%s1607_s1 + $0x1d8] sm:$0xff]  ;;  %v968_v63 = vpack.c.bf16 %v135_v57, %v134_v55  ;;  %v938_v0 = vpack.c.bf16 %v121_v59, %v120_v58  ;;  %v122_v6 = vld [vmem:[%s1607_s1 + $0xe0] sm:$0xff] }
  0x10   :  { %963 = vmatprep.subr.bf16.mxu1 %v962_v43  ;;  %v104_v1 = vld [vmem:[%s1607_s1 + $0x50] sm:$0xff]  ;;  %v105_v2 = vld [vmem:[%s1607_s1 + $0x58] sm:$0xff]  ;;  %v970_v4 = vpack.c.bf16 %v153_v61, %v152_v60  ;;  %v123_v7 = vld [vmem:[%s1607_s1 + $0xe8] sm:$0xff] }
  0x11   :  { %v136_v3 = vld [vmem:[%s1607_s1 + $0x150] sm:$0xff]  ;;  %v137_v5 = vld [vmem:[%s1607_s1 + $0x158] sm:$0xff]  ;;  %v154_v8 = vld [vmem:[%s1607_s1 + $0x1e0] sm:$0xff]  ;;  %v940_v10 = vpack.c.bf16 %v105_v2, %v104_v1  ;;  %v942_v14 = vpack.c.bf16 %v123_v7, %v122_v6 }
  0x12   :  { %933 = vmatpush3.bf16.msra.mxu0 %v932_v50  ;;  %v155_v9 = vld [vmem:[%s1607_s1 + $0x1e8] sm:$0xff]  ;;  %v106_v11 = vld [vmem:[%s1607_s1 + $0x60] sm:$0xff]  ;;  %v972_v13 = vpack.c.bf16 %v137_v5, %v136_v3  ;;  %v17_v17 = vld [vmem:[%s1608_s0 + $0x18] sm:$0xff] }
  0x13   :  { %965 = vmatpush3.bf16.msra.mxu1 %v964_v51  ;;  %935 = vmatprep.subr.bf16.mxu0 %v934_v52  ;;  %v107_v12 = vld [vmem:[%s1607_s1 + $0x68] sm:$0xff]  ;;  %v138_v15 = vld [vmem:[%s1607_s1 + $0x160] sm:$0xff]  ;;  %v974_v18 = vpack.c.bf16 %v155_v9, %v154_v8  ;;  %v124_v20 = vld [vmem:[%s1607_s1 + $0xf0] sm:$0xff] }
  0x14   :  { %967 = vmatprep.subr.bf16.mxu1 %v966_v56  ;;  %v15_v16 = vld [vmem:[%s1608_s0 + $0x8] sm:$0xff]  ;;  %v125_v21 = vld [vmem:[%s1607_s1 + $0xf8] sm:$0xff]  ;;  %v156_v22 = vld [vmem:[%s1607_s1 + $0x1f0] sm:$0xff]  ;;  %431 = vmatprep.mubr.f32.mxu1 %v17_v17  ;;  %v944_v24 = vpack.c.bf16 %v107_v12, %v106_v11 }
  0x15   :  { %v139_v19 = vld [vmem:[%s1607_s1 + $0x168] sm:$0xff]  ;;  %286 = vmatprep.mubr.f32.mxu0 %v15_v16  ;;  %v157_v23 = vld [vmem:[%s1607_s1 + $0x1f8] sm:$0xff]  ;;  %v946_v26 = vpack.c.bf16 %v125_v21, %v124_v20  ;;  %v108_v27 = vld [vmem:[%s1607_s1 + $0x70] sm:$0xff] }
  0x16   :  { %937 = vmatpush3.bf16.msra.mxu0 %v936_v62  ;;  %v976_v25 = vpack.c.bf16 %v139_v19, %v138_v15  ;;  %v109_v28 = vld [vmem:[%s1607_s1 + $0x78] sm:$0xff]  ;;  %v140_v29 = vld [vmem:[%s1607_s1 + $0x170] sm:$0xff]  ;;  %v978_v30 = vpack.c.bf16 %v157_v23, %v156_v22  ;;  %v158_v32 = vld [vmem:[%s1607_s1 + $0x200] sm:$0xff] }
  0x17   :  { %969 = vmatpush3.bf16.msra.mxu1 %v968_v63  ;;  %939 = vmatprep.subr.bf16.mxu0 %v938_v0  ;;  %v141_v31 = vld [vmem:[%s1607_s1 + $0x178] sm:$0xff]  ;;  %v159_v33 = vld [vmem:[%s1607_s1 + $0x208] sm:$0xff]  ;;  %v948_v34 = vpack.c.bf16 %v109_v28, %v108_v27  ;;  %v160_v37 = vld [vmem:[%s1607_s1 + $0x210] sm:$0xff] }
  0x18   :  { %971 = vmatprep.subr.bf16.mxu1 %v970_v4  ;;  %v980_v35 = vpack.c.bf16 %v141_v31, %v140_v29  ;;  %v982_v36 = vpack.c.bf16 %v159_v33, %v158_v32  ;;  %v161_v38 = vld [vmem:[%s1607_s1 + $0x218] sm:$0xff]  ;;  %v14_v39 = vld [vmem:[%s1608_s0] sm:$0xff]  ;;  %v16_v40 = vld [vmem:[%s1608_s0 + $0x10] sm:$0xff] }
  0x19   :  { %v20_v41 = vld [vmem:[%s1608_s0 + $0x30] sm:$0xff]  ;;  %v986_v42 = vpack.c.bf16 %v161_v38, %v160_v37  ;;  %v22_v43 = vld [vmem:[%s1608_s0 + $0x40] sm:$0xff]  ;;  %v163_v45 = vld [vmem:[%s1607_s1 + $0x228] sm:$0xff] }
  0x1a   :  { %941 = vmatpush3.bf16.msra.mxu0 %v940_v10  ;;  %v162_v44 = vld [vmem:[%s1607_s1 + $0x220] sm:$0xff]  ;;  %v19_v46 = vld [vmem:[%s1608_s0 + $0x28] sm:$0xff]  ;;  %v21_v47 = vld [vmem:[%s1608_s0 + $0x38] sm:$0xff] }
  0x1b   :  { %973 = vmatpush3.bf16.msra.mxu1 %v972_v13  ;;  %943 = vmatprep.subr.bf16.mxu0 %v942_v14  ;;  %v25_v48 = vld [vmem:[%s1608_s0 + $0x58] sm:$0xff]  ;;  %v27_v49 = vld [vmem:[%s1608_s0 + $0x68] sm:$0xff]  ;;  %v990_v50 = vpack.c.bf16 %v163_v45, %v162_v44  ;;  %v24_v51 = vld [vmem:[%s1608_s0 + $0x50] sm:$0xff] }
  0x1c   :  { %975 = vmatprep.subr.bf16.mxu1 %v974_v18  ;;  %v164_v52 = vld [vmem:[%s1607_s1 + $0x230] sm:$0xff]  ;;  %v26_v53 = vld [vmem:[%s1608_s0 + $0x60] sm:$0xff]  ;;  %v165_v55 = vld [vmem:[%s1607_s1 + $0x238] sm:$0xff] }
  0x1d   :  { %v30_v54 = vld [vmem:[%s1608_s0 + $0x80] sm:$0xff]  ;;  %v32_v56 = vld [vmem:[%s1608_s0 + $0x90] sm:$0xff]  ;;  %v994_v57 = vpack.c.bf16 %v165_v55, %v164_v52  ;;  %v29_v58 = vld [vmem:[%s1608_s0 + $0x78] sm:$0xff] }
  0x1e   :  { %945 = vmatpush3.bf16.msra.mxu0 %v944_v24  ;;  %v31_v59 = vld [vmem:[%s1608_s0 + $0x88] sm:$0xff]  ;;  %v37_v61 = vld [vmem:[%s1608_s0 + $0xb8] sm:$0xff]  ;;  %v34_v62 = vld [vmem:[%s1608_s0 + $0xa0] sm:$0xff] }
  0x1f   :  { %977 = vmatpush3.bf16.msra.mxu1 %v976_v25  ;;  %947 = vmatprep.subr.bf16.mxu0 %v946_v26  ;;  %v35_v60 = vld [vmem:[%s1608_s0 + $0xa8] sm:$0xff]  ;;  %v36_v63 = vld [vmem:[%s1608_s0 + $0xb0] sm:$0xff]  ;;  %v42_v1 = vld [vmem:[%s1608_s0 + $0xe0] sm:$0xff] }
  0x20   :  { %979 = vmatprep.subr.bf16.mxu1 %v978_v30  ;;  %v40_v0 = vld [vmem:[%s1608_s0 + $0xd0] sm:$0xff]  ;;  %v39_v2 = vld [vmem:[%s1608_s0 + $0xc8] sm:$0xff]  ;;  %v41_v3 = vld [vmem:[%s1608_s0 + $0xd8] sm:$0xff] }
  0x21   :  { %v45_v4 = vld [vmem:[%s1608_s0 + $0xf8] sm:$0xff]  ;;  %v47_v5 = vld [vmem:[%s1608_s0 + $0x108] sm:$0xff]  ;;  %v44_v6 = vld [vmem:[%s1608_s0 + $0xf0] sm:$0xff] }
  0x22   :  { %949 = vmatpush3.bf16.msra.mxu0 %v948_v34  ;;  %v46_v7 = vld [vmem:[%s1608_s0 + $0x100] sm:$0xff]  ;;  %v52_v9 = vld [vmem:[%s1608_s0 + $0x130] sm:$0xff]  ;;  %v49_v10 = vld [vmem:[%s1608_s0 + $0x118] sm:$0xff] }
  0x23   :  { %981 = vmatpush3.bf16.msra.mxu1 %v980_v35  ;;  %983 = vmatprep.subr.bf16.mxu0 %v982_v36  ;;  %v50_v8 = vld [vmem:[%s1608_s0 + $0x120] sm:$0xff]  ;;  %v51_v11 = vld [vmem:[%s1608_s0 + $0x128] sm:$0xff]  ;;  %v57_v13 = vld [vmem:[%s1608_s0 + $0x158] sm:$0xff] }
  0x24   :  { %998 = vmatprep.subr.bf16.mxu1 %v982_v36  ;;  %v55_v12 = vld [vmem:[%s1608_s0 + $0x148] sm:$0xff]  ;;  %v54_v14 = vld [vmem:[%s1608_s0 + $0x140] sm:$0xff]  ;;  %v56_v15 = vld [vmem:[%s1608_s0 + $0x150] sm:$0xff] }
  0x25   :  { %287 = vmatmul.mubr.f32.vlgmr.msra.gmra.mrb[0].mxu0 %v14_v39  ;;  %v60_v16 = vld [vmem:[%s1608_s0 + $0x170] sm:$0xff]  ;;  %v62_v17 = vld [vmem:[%s1608_s0 + $0x180] sm:$0xff]  ;;  %v59_v18 = vld [vmem:[%s1608_s0 + $0x168] sm:$0xff] }
  0x26   :  { %432 = vmatmul.mubr.f32.vlgmr.msra.gmra.mrb[0].mxu1 %v16_v40  ;;  %985 = vmatpush3.bf16.msra.mxu0 %v982_v36  ;;  %v61_v19 = vld [vmem:[%s1608_s0 + $0x178] sm:$0xff]  ;;  %v67_v21 = vld [vmem:[%s1608_s0 + $0x1a8] sm:$0xff]  ;;  %v64_v22 = vld [vmem:[%s1608_s0 + $0x190] sm:$0xff] }
  0x27   :  { %1002 = vmatpush3.bf16.msra.mxu1 %v982_v36  ;;  %291 = vmatprep.mubr.f32.mxu0 %v20_v41  ;;  %v65_v20 = vld [vmem:[%s1608_s0 + $0x198] sm:$0xff]  ;;  %v66_v23 = vld [vmem:[%s1608_s0 + $0x1a0] sm:$0xff]  ;;  %v72_v25 = vld [vmem:[%s1608_s0 + $0x1d0] sm:$0xff] }
  0x28   :  { %436 = vmatprep.mubr.f32.mxu1 %v22_v43  ;;  %987 = vmatprep.subr.bf16.mxu0 %v986_v42  ;;  %v70_v24 = vld [vmem:[%s1608_s0 + $0x1c0] sm:$0xff]  ;;  %v69_v26 = vld [vmem:[%s1608_s0 + $0x1b8] sm:$0xff]  ;;  %v71_v27 = vld [vmem:[%s1608_s0 + $0x1c8] sm:$0xff] }
  0x29   :  { %292 = vmatmul.mubr.f32.gmra.mrb[2].mxu0 %v19_v46  ;;  %999 = vmatprep.subr.bf16.mxu1 %v986_v42  ;;  %v75_v28 = vld [vmem:[%s1608_s0 + $0x1e8] sm:$0xff]  ;;  %v77_v29 = vld [vmem:[%s1608_s0 + $0x1f8] sm:$0xff]  ;;  %v74_v30 = vld [vmem:[%s1608_s0 + $0x1e0] sm:$0xff] }
  0x2a   :  { %437 = vmatmul.mubr.f32.gmra.mrb[2].mxu1 %v21_v47  ;;  %296 = vmatprep.mubr.f32.mxu0 %v25_v48  ;;  %v76_v31 = vld [vmem:[%s1608_s0 + $0x1f0] sm:$0xff]  ;;  %v82_v33 = vld [vmem:[%s1608_s0 + $0x220] sm:$0xff]  ;;  %v79_v34 = vld [vmem:[%s1608_s0 + $0x208] sm:$0xff] }
  0x2b   :  { %441 = vmatprep.mubr.f32.mxu1 %v27_v49  ;;  %989 = vmatpush3.bf16.msra.mxu0 %v986_v42  ;;  %v80_v32 = vld [vmem:[%s1608_s0 + $0x210] sm:$0xff]  ;;  %v81_v35 = vld [vmem:[%s1608_s0 + $0x218] sm:$0xff]  ;;  %v87_v37 = vld [vmem:[%s1608_s0 + $0x248] sm:$0xff] }
  0x2c   :  { %1003 = vmatpush3.bf16.msra.mxu1 %v986_v42  ;;  %991 = vmatprep.subr.bf16.mxu0 %v990_v50  ;;  %v85_v36 = vld [vmem:[%s1608_s0 + $0x238] sm:$0xff]  ;;  %v84_v38 = vld [vmem:[%s1608_s0 + $0x230] sm:$0xff]  ;;  %v86_v39 = vld [vmem:[%s1608_s0 + $0x240] sm:$0xff] }
  0x2d   :  { %297 = vmatmul.mubr.f32.gmra.mrb[4].mxu0 %v24_v51  ;;  %1000 = vmatprep.subr.bf16.mxu1 %v990_v50  ;;  %v90_v40 = vld [vmem:[%s1608_s0 + $0x260] sm:$0xff]  ;;  %v92_v41 = vld [vmem:[%s1608_s0 + $0x270] sm:$0xff]  ;;  %v89_v42 = vld [vmem:[%s1608_s0 + $0x258] sm:$0xff] }
  0x2e   :  { %442 = vmatmul.mubr.f32.gmra.mrb[4].mxu1 %v26_v53  ;;  %301 = vmatprep.mubr.f32.mxu0 %v30_v54  ;;  %v91_v43 = vld [vmem:[%s1608_s0 + $0x268] sm:$0xff]  ;;  %v18_v44 = vld [vmem:[%s1608_s0 + $0x20] sm:$0xff]  ;;  %v28_v48 = vld [vmem:[%s1608_s0 + $0x70] sm:$0xff] }
  0x2f   :  { %446 = vmatprep.mubr.f32.mxu1 %v32_v56  ;;  %993 = vmatpush3.bf16.msra.mxu0 %v990_v50  ;;  %v58_v45 = vld [vmem:[%s1608_s0 + $0x160] sm:$0xff]  ;;  %v23_v46 = vld [vmem:[%s1608_s0 + $0x48] sm:$0xff]  ;;  %v68_v49 = vld [vmem:[%s1608_s0 + $0x1b0] sm:$0xff] }
  0x30   :  { %1004 = vmatpush3.bf16.msra.mxu1 %v990_v50  ;;  %995 = vmatprep.subr.bf16.mxu0 %v994_v57  ;;  %v63_v47 = vld [vmem:[%s1608_s0 + $0x188] sm:$0xff]  ;;  %v33_v50 = vld [vmem:[%s1608_s0 + $0x98] sm:$0xff]  ;;  %v38_v52 = vld [vmem:[%s1608_s0 + $0xc0] sm:$0xff] }
  0x31   :  { %302 = vmatmul.mubr.f32.gmra.mrb[6].mxu0 %v29_v58  ;;  %1001 = vmatprep.subr.bf16.mxu1 %v994_v57  ;;  %v73_v51 = vld [vmem:[%s1608_s0 + $0x1d8] sm:$0xff]  ;;  %v78_v53 = vld [vmem:[%s1608_s0 + $0x200] sm:$0xff]  ;;  %v43_v54 = vld [vmem:[%s1608_s0 + $0xe8] sm:$0xff] }
  0x32   :  { %447 = vmatmul.mubr.f32.gmra.mrb[6].mxu1 %v31_v59  ;;  %306 = vmatprep.mubr.f32.mxu0 %v35_v60  ;;  %v83_v55 = vld [vmem:[%s1608_s0 + $0x228] sm:$0xff]  ;;  %v48_v56 = vld [vmem:[%s1608_s0 + $0x110] sm:$0xff]  ;;  %v53_v58 = vld [vmem:[%s1608_s0 + $0x138] sm:$0xff] }
  0x33   :  { %451 = vmatprep.mubr.f32.mxu1 %v37_v61  ;;  %997 = vmatpush3.bf16.msra.mxu0 %v994_v57  ;;  %v93_v59 = vld [vmem:[%s1608_s0 + $0x278] sm:$0xff] }
  0x34   :  { %1005 = vmatpush3.bf16.msra.mxu1 %v994_v57  ;;  %v88_v57 = vld [vmem:[%s1608_s0 + $0x250] sm:$0xff] }
  0x35   :  { %307 = vmatmul.mubr.f32.gmra.mrb[8].mxu0 %v34_v62  ;;  %v1501_v62 = vld [vmem:[%s1609_s2] ss:$0 sm:$0xff] }
  0x36   :  { %452 = vmatmul.mubr.f32.gmra.mrb[8].mxu1 %v36_v63  ;;  %311 = vmatprep.mubr.f32.mxu0 %v40_v0 }
  0x37   :  { %456 = vmatprep.mubr.f32.mxu1 %v42_v1 }
  0x39   :  { %312 = vmatmul.mubr.f32.gmra.mrb[10].mxu0 %v39_v2 }
  0x3a   :  { %457 = vmatmul.mubr.f32.gmra.mrb[10].mxu1 %v41_v3  ;;  %316 = vmatprep.mubr.f32.mxu0 %v45_v4 }
  0x3b   :  { %461 = vmatprep.mubr.f32.mxu1 %v47_v5 }
  0x3d   :  { %317 = vmatmul.mubr.f32.gmra.mrb[12].mxu0 %v44_v6 }
  0x3e   :  { %462 = vmatmul.mubr.f32.gmra.mrb[12].mxu1 %v46_v7  ;;  %321 = vmatprep.mubr.f32.mxu0 %v50_v8 }
  0x3f   :  { %466 = vmatprep.mubr.f32.mxu1 %v52_v9 }
  0x41   :  { %322 = vmatmul.mubr.f32.gmra.mrb[14].mxu0 %v49_v10 }
  0x42   :  { %467 = vmatmul.mubr.f32.gmra.mrb[14].mxu1 %v51_v11  ;;  %326 = vmatprep.mubr.f32.mxu0 %v55_v12 }
  0x43   :  { %471 = vmatprep.mubr.f32.mxu1 %v57_v13 }
  0x45   :  { %327 = vmatmul.mubr.f32.gmra.mrb[16].mxu0 %v54_v14 }
  0x46   :  { %472 = vmatmul.mubr.f32.gmra.mrb[16].mxu1 %v56_v15  ;;  %331 = vmatprep.mubr.f32.mxu0 %v60_v16 }
  0x47   :  { %476 = vmatprep.mubr.f32.mxu1 %v62_v17 }
  0x49   :  { %332 = vmatmul.mubr.f32.gmra.mrb[18].mxu0 %v59_v18 }
  0x4a   :  { %477 = vmatmul.mubr.f32.gmra.mrb[18].mxu1 %v61_v19  ;;  %336 = vmatprep.mubr.f32.mxu0 %v65_v20 }
  0x4b   :  { %481 = vmatprep.mubr.f32.mxu1 %v67_v21 }
  0x4d   :  { %337 = vmatmul.mubr.f32.gmra.mrb[20].mxu0 %v64_v22 }
  0x4e   :  { %482 = vmatmul.mubr.f32.gmra.mrb[20].mxu1 %v66_v23  ;;  %341 = vmatprep.mubr.f32.mxu0 %v70_v24 }
  0x4f   :  { %486 = vmatprep.mubr.f32.mxu1 %v72_v25 }
  0x51   :  { %342 = vmatmul.mubr.f32.gmra.mrb[22].mxu0 %v69_v26 }
  0x52   :  { %487 = vmatmul.mubr.f32.gmra.mrb[22].mxu1 %v71_v27  ;;  %346 = vmatprep.mubr.f32.mxu0 %v75_v28 }
  0x53   :  { %491 = vmatprep.mubr.f32.mxu1 %v77_v29 }
  0x55   :  { %347 = vmatmul.mubr.f32.gmra.mrb[24].mxu0 %v74_v30 }
  0x56   :  { %492 = vmatmul.mubr.f32.gmra.mrb[24].mxu1 %v76_v31  ;;  %351 = vmatprep.mubr.f32.mxu0 %v80_v32 }
  0x57   :  { %496 = vmatprep.mubr.f32.mxu1 %v82_v33 }
  0x59   :  { %352 = vmatmul.mubr.f32.gmra.mrb[26].mxu0 %v79_v34 }
  0x5a   :  { %497 = vmatmul.mubr.f32.gmra.mrb[26].mxu1 %v81_v35  ;;  %356 = vmatprep.mubr.f32.mxu0 %v85_v36 }
  0x5b   :  { %501 = vmatprep.mubr.f32.mxu1 %v87_v37 }
  0x5d   :  { %357 = vmatmul.mubr.f32.gmra.mrb[28].mxu0 %v84_v38 }
  0x5e   :  { %502 = vmatmul.mubr.f32.gmra.mrb[28].mxu1 %v86_v39  ;;  %361 = vmatprep.mubr.f32.mxu0 %v90_v40 }
  0x5f   :  { %506 = vmatprep.mubr.f32.mxu1 %v92_v41 }
  0x61   :  { %362 = vmatmul.mubr.f32.gmra.mrb[30].mxu0 %v89_v42 }
  0x62   :  { %507 = vmatmul.mubr.f32.gmra.mrb[30].mxu1 %v91_v43  ;;  %894 = vmatprep.mubr.msk.f32.mxu0 %vm173_vm0, %v18_v44 }
  0x63   :  { %906 = vmatprep.mubr.msk.f32.mxu1 %vm173_vm0, %v58_v45 }
  0x65   :  { %895 = vmatmul.mubr.msk.f32.vlgmr.msra.gmra.mrb[32].mxu0 %vm173_vm0, %v23_v46 }
  0x66   :  { %907 = vmatmul.mubr.msk.f32.vlgmr.msra.gmra.mrb[32].mxu1 %vm173_vm0, %v63_v47  ;;  %897 = vmatprep.mubr.msk.f32.mxu0 %vm173_vm0, %v28_v48 }
  0x67   :  { %909 = vmatprep.mubr.msk.f32.mxu1 %vm173_vm0, %v68_v49 }
  0x69   :  { %898 = vmatmul.mubr.msk.f32.gmra.mrb[34].mxu0 %vm173_vm0, %v33_v50 }
  0x6a   :  { %910 = vmatmul.mubr.msk.f32.gmra.mrb[34].mxu1 %vm173_vm0, %v73_v51  ;;  %900 = vmatprep.mubr.msk.f32.mxu0 %vm173_vm0, %v38_v52 }
  0x6b   :  { %912 = vmatprep.mubr.msk.f32.mxu1 %vm173_vm0, %v78_v53 }
  0x6d   :  { %901 = vmatmul.mubr.msk.f32.gmra.mrb[36].mxu0 %vm173_vm0, %v43_v54 }
  0x6e   :  { %913 = vmatmul.mubr.msk.f32.gmra.mrb[36].mxu1 %vm173_vm0, %v83_v55  ;;  %903 = vmatprep.mubr.msk.f32.mxu0 %vm173_vm0, %v48_v56 }
  0x6f   :  { %915 = vmatprep.mubr.msk.f32.mxu1 %vm173_vm0, %v88_v57 }
  0x71   :  { %904 = vmatmul.mubr.msk.f32.gmra.mrb[38].mxu0 %vm173_vm0, %v53_v58 }
  0x72   :  { %916 = vmatmul.mubr.msk.f32.gmra.mrb[38].mxu1 %vm173_vm0, %v93_v59 }
  0xf8   :  { %v726_v60 = vpop.f32.mrb[0].mxu0 }
  0xf9   :  { %v806_v61 = vpop.f32.mrb[0].mxu1  ;;  %v727_v63 = vpop.f32.mrb[1].mxu0 }
  0xfa   :  { %v728_v0 = vadd.f32 %v727_v63, %v726_v60  ;;  %v807_v1 = vpop.f32.mrb[1].mxu1 }
  0xfb   :  { %v808_v2 = vadd.f32 %v807_v1, %v806_v61 }
  0xfc   :  { %v289_v3 = vadd.f32 %v728_v0, %v1501_v62  ;;  %v729_v4 = vpop.f32.mrb[2].mxu0 }
  0xfd   :  { %v809_v5 = vpop.f32.mrb[2].mxu1  ;;  %v730_v6 = vpop.f32.mrb[3].mxu0 }
  0xfe   :  { %v731_v7 = vadd.f32 %v730_v6, %v729_v4  ;;  %v810_v8 = vpop.f32.mrb[3].mxu1  ;;  %v1504_v9 = vadd.f32 %v808_v2, %v289_v3 }
  0xff   :  { %v811_v10 = vadd.f32 %v810_v8, %v809_v5 }
 0x100   :  { %v294_v11 = vadd.f32 %v731_v7, %v1501_v62  ;;  %v732_v12 = vpop.f32.mrb[4].mxu0 }
 0x101   :  { %v812_v13 = vpop.f32.mrb[4].mxu1  ;;  %v733_v14 = vpop.f32.mrb[5].mxu0 }
 0x102   :  { %v734_v15 = vadd.f32 %v733_v14, %v732_v12  ;;  %v813_v16 = vpop.f32.mrb[5].mxu1  ;;  %v1507_v17 = vadd.f32 %v811_v10, %v294_v11 }
 0x103   :  { %v814_v18 = vadd.f32 %v813_v16, %v812_v13 }
 0x104   :  { %v299_v19 = vadd.f32 %v734_v15, %v1501_v62  ;;  %v735_v20 = vpop.f32.mrb[6].mxu0 }
 0x105   :  { %v815_v21 = vpop.f32.mrb[6].mxu1  ;;  %v736_v22 = vpop.f32.mrb[7].mxu0 }
 0x106   :  { %v737_v23 = vadd.f32 %v736_v22, %v735_v20  ;;  %v816_v24 = vpop.f32.mrb[7].mxu1  ;;  %v1510_v25 = vadd.f32 %v814_v18, %v299_v19 }
 0x107   :  { %v817_v26 = vadd.f32 %v816_v24, %v815_v21 }
 0x108   :  { %v304_v27 = vadd.f32 %v737_v23, %v1501_v62  ;;  %v738_v28 = vpop.f32.mrb[8].mxu0 }
 0x109   :  { %v818_v29 = vpop.f32.mrb[8].mxu1  ;;  %v739_v30 = vpop.f32.mrb[9].mxu0 }
 0x10a   :  { %v740_v31 = vadd.f32 %v739_v30, %v738_v28  ;;  %v819_v32 = vpop.f32.mrb[9].mxu1  ;;  %v1513_v33 = vadd.f32 %v817_v26, %v304_v27 }
 0x10b   :  { %v820_v34 = vadd.f32 %v819_v32, %v818_v29 }
 0x10c   :  { %v309_v35 = vadd.f32 %v740_v31, %v1501_v62  ;;  %v741_v36 = vpop.f32.mrb[10].mxu0 }
 0x10d   :  { %v821_v37 = vpop.f32.mrb[10].mxu1  ;;  %v742_v38 = vpop.f32.mrb[11].mxu0 }
 0x10e   :  { %v743_v39 = vadd.f32 %v742_v38, %v741_v36  ;;  %v822_v40 = vpop.f32.mrb[11].mxu1  ;;  %v1516_v41 = vadd.f32 %v820_v34, %v309_v35 }
 0x10f   :  { %v823_v42 = vadd.f32 %v822_v40, %v821_v37 }
 0x110   :  { %v314_v43 = vadd.f32 %v743_v39, %v1501_v62  ;;  %v744_v44 = vpop.f32.mrb[12].mxu0 }
 0x111   :  { %v824_v45 = vpop.f32.mrb[12].mxu1  ;;  %v745_v46 = vpop.f32.mrb[13].mxu0 }
 0x112   :  { %v746_v47 = vadd.f32 %v745_v46, %v744_v44  ;;  %v825_v48 = vpop.f32.mrb[13].mxu1  ;;  %v1519_v49 = vadd.f32 %v823_v42, %v314_v43 }
 0x113   :  { %v826_v50 = vadd.f32 %v825_v48, %v824_v45 }
 0x114   :  { %v319_v51 = vadd.f32 %v746_v47, %v1501_v62  ;;  %v747_v52 = vpop.f32.mrb[14].mxu0 }
 0x115   :  { %v827_v53 = vpop.f32.mrb[14].mxu1  ;;  %v748_v54 = vpop.f32.mrb[15].mxu0 }
 0x116   :  { %v749_v55 = vadd.f32 %v748_v54, %v747_v52  ;;  %v828_v56 = vpop.f32.mrb[15].mxu1  ;;  %v1522_v57 = vadd.f32 %v826_v50, %v319_v51 }
 0x117   :  { %v829_v58 = vadd.f32 %v828_v56, %v827_v53 }
 0x118   :  { %v324_v59 = vadd.f32 %v749_v55, %v1501_v62  ;;  %v750_v60 = vpop.f32.mrb[16].mxu0 }
 0x119   :  { %v830_v61 = vpop.f32.mrb[16].mxu1  ;;  %v751_v63 = vpop.f32.mrb[17].mxu0 }
 0x11a   :  { %v752_v0 = vadd.f32 %v751_v63, %v750_v60  ;;  %v831_v1 = vpop.f32.mrb[17].mxu1  ;;  %v1525_v2 = vadd.f32 %v829_v58, %v324_v59 }
 0x11b   :  { %v832_v3 = vadd.f32 %v831_v1, %v830_v61 }
 0x11c   :  { %v329_v4 = vadd.f32 %v752_v0, %v1501_v62  ;;  %v753_v5 = vpop.f32.mrb[18].mxu0 }
 0x11d   :  { %v833_v6 = vpop.f32.mrb[18].mxu1  ;;  %v754_v7 = vpop.f32.mrb[19].mxu0 }
 0x11e   :  { %v755_v8 = vadd.f32 %v754_v7, %v753_v5  ;;  %v834_v10 = vpop.f32.mrb[19].mxu1  ;;  %v474_v11 = vadd.f32 %v832_v3, %v329_v4 }
 0x11f   :  { %v835_v12 = vadd.f32 %v834_v10, %v833_v6 }
 0x120   :  { %v334_v13 = vadd.f32 %v755_v8, %v1501_v62  ;;  %v756_v14 = vpop.f32.mrb[20].mxu0 }
 0x121   :  { %v836_v15 = vpop.f32.mrb[20].mxu1  ;;  %v757_v16 = vpop.f32.mrb[21].mxu0 }
 0x122   :  { %v758_v18 = vadd.f32 %v757_v16, %v756_v14  ;;  %v837_v19 = vpop.f32.mrb[21].mxu1  ;;  %v479_v20 = vadd.f32 %v835_v12, %v334_v13 }
 0x123   :  { %v838_v21 = vadd.f32 %v837_v19, %v836_v15 }
 0x124   :  { %v339_v22 = vadd.f32 %v758_v18, %v1501_v62  ;;  %v759_v23 = vpop.f32.mrb[22].mxu0 }
 0x125   :  { %v839_v24 = vpop.f32.mrb[22].mxu1  ;;  %v760_v26 = vpop.f32.mrb[23].mxu0 }
 0x126   :  { %v761_v27 = vadd.f32 %v760_v26, %v759_v23  ;;  %v840_v28 = vpop.f32.mrb[23].mxu1  ;;  %v484_v29 = vadd.f32 %v838_v21, %v339_v22 }
 0x127   :  { %v841_v30 = vadd.f32 %v840_v28, %v839_v24 }
 0x128   :  { %v344_v31 = vadd.f32 %v761_v27, %v1501_v62  ;;  %v762_v32 = vpop.f32.mrb[24].mxu0 }
 0x129   :  { %v842_v34 = vpop.f32.mrb[24].mxu1  ;;  %v763_v35 = vpop.f32.mrb[25].mxu0 }
 0x12a   :  { %v764_v36 = vadd.f32 %v763_v35, %v762_v32  ;;  %v843_v37 = vpop.f32.mrb[25].mxu1  ;;  %v489_v38 = vadd.f32 %v841_v30, %v344_v31 }
 0x12b   :  { %v844_v39 = vadd.f32 %v843_v37, %v842_v34 }
 0x12c   :  { %v349_v40 = vadd.f32 %v764_v36, %v1501_v62  ;;  %v765_v42 = vpop.f32.mrb[26].mxu0 }
 0x12d   :  { %v845_v43 = vpop.f32.mrb[26].mxu1  ;;  %v766_v44 = vpop.f32.mrb[27].mxu0 }
 0x12e   :  { %v767_v45 = vadd.f32 %v766_v44, %v765_v42  ;;  %v846_v46 = vpop.f32.mrb[27].mxu1  ;;  %v494_v47 = vadd.f32 %v844_v39, %v349_v40 }
 0x12f   :  { %v847_v48 = vadd.f32 %v846_v46, %v845_v43 }
 0x130   :  { %v354_v50 = vadd.f32 %v767_v45, %v1501_v62  ;;  %v768_v51 = vpop.f32.mrb[28].mxu0 }
 0x131   :  { %v848_v52 = vpop.f32.mrb[28].mxu1  ;;  %v769_v53 = vpop.f32.mrb[29].mxu0 }
 0x132   :  { %v770_v54 = vadd.f32 %v769_v53, %v768_v51  ;;  %v849_v55 = vpop.f32.mrb[29].mxu1  ;;  %v499_v56 = vadd.f32 %v847_v48, %v354_v50 }
 0x133   :  { %v850_v58 = vadd.f32 %v849_v55, %v848_v52 }
 0x134   :  { %v359_v59 = vadd.f32 %v770_v54, %v1501_v62  ;;  %v771_v60 = vpop.f32.mrb[30].mxu0 }
 0x135   :  { %v851_v61 = vpop.f32.mrb[30].mxu1  ;;  %v772_v63 = vpop.f32.mrb[31].mxu0 }
 0x136   :  { %v773_v0 = vadd.f32 %v772_v63, %v771_v60  ;;  %v852_v1 = vpop.f32.mrb[31].mxu1  ;;  %v504_v3 = vadd.f32 %v850_v58, %v359_v59 }
 0x137   :  { %v853_v4 = vadd.f32 %v852_v1, %v851_v61 }
 0x138   :  { %v364_v5 = vadd.f32 %v773_v0, %v1501_v62  ;;  %v896_v6 = vpop.f32.mrb[32].mxu0 }
 0x139   :  { %v584_v7 = vadd.f32 %v896_v6, %v1507_v17  ;;  %v908_v8 = vpop.f32.mrb[32].mxu1  ;;  %v578_v10 = vpop.f32.mrb[33].mxu0 }
 0x13a   :  { %v624_v12 = vadd.f32 %v908_v8, %v479_v20  ;;  %v579_v13 = vadd.f32 %v578_v10, %v1504_v9  ;;  %v618_v14 = vpop.f32.mrb[33].mxu1  ;;  %v509_v15 = vadd.f32 %v853_v4, %v364_v5 }
 0x13b   :  { %658 = vst.msk [vmem:[%s1610_s3 + $0x8] sm:$0xff] %vm173_vm0, %v584_v7  ;;  %v619_v16 = vadd.f32 %v618_v14, %v474_v11 }
 0x13c   :  { %666 = vst.msk [vmem:[%s1610_s3 + $0x48] sm:$0xff] %vm173_vm0, %v624_v12  ;;  %657 = vst.msk [vmem:[%s1610_s3] sm:$0xff] %vm173_vm0, %v579_v13  ;;  %v899_v62 = vpop.f32.mrb[34].mxu0 }
 0x13d   :  { %665 = vst.msk [vmem:[%s1610_s3 + $0x40] sm:$0xff] %vm173_vm0, %v619_v16  ;;  %v594_v9 = vadd.f32 %v899_v62, %v1513_v33  ;;  %v911_v17 = vpop.f32.mrb[34].mxu1  ;;  %v588_v11 = vpop.f32.mrb[35].mxu0 }
 0x13e   :  { %v634_v18 = vadd.f32 %v911_v17, %v489_v38  ;;  %v589_v19 = vadd.f32 %v588_v11, %v1510_v25  ;;  %v628_v20 = vpop.f32.mrb[35].mxu1 }
 0x13f   :  { %660 = vst.msk [vmem:[%s1610_s3 + $0x18] sm:$0xff] %vm173_vm0, %v594_v9  ;;  %v629_v21 = vadd.f32 %v628_v20, %v484_v29 }
 0x140   :  { %668 = vst.msk [vmem:[%s1610_s3 + $0x58] sm:$0xff] %vm173_vm0, %v634_v18  ;;  %659 = vst.msk [vmem:[%s1610_s3 + $0x10] sm:$0xff] %vm173_vm0, %v589_v19  ;;  %v902_v33 = vpop.f32.mrb[36].mxu0 }
 0x141   :  { %667 = vst.msk [vmem:[%s1610_s3 + $0x50] sm:$0xff] %vm173_vm0, %v629_v21  ;;  %v604_v25 = vadd.f32 %v902_v33, %v1519_v49  ;;  %v914_v22 = vpop.f32.mrb[36].mxu1  ;;  %v598_v23 = vpop.f32.mrb[37].mxu0 }
 0x142   :  { %v644_v24 = vadd.f32 %v914_v22, %v499_v56  ;;  %v599_v26 = vadd.f32 %v598_v23, %v1516_v41  ;;  %v638_v27 = vpop.f32.mrb[37].mxu1 }
 0x143   :  { %662 = vst.msk [vmem:[%s1610_s3 + $0x28] sm:$0xff] %vm173_vm0, %v604_v25  ;;  %v639_v28 = vadd.f32 %v638_v27, %v494_v47 }
 0x144   :  { %670 = vst.msk [vmem:[%s1610_s3 + $0x68] sm:$0xff] %vm173_vm0, %v644_v24  ;;  %661 = vst.msk [vmem:[%s1610_s3 + $0x20] sm:$0xff] %vm173_vm0, %v599_v26  ;;  %v905_v49 = vpop.f32.mrb[38].mxu0 }
 0x145   :  { %669 = vst.msk [vmem:[%s1610_s3 + $0x60] sm:$0xff] %vm173_vm0, %v639_v28  ;;  %v614_v41 = vadd.f32 %v905_v49, %v1525_v2  ;;  %v917_v29 = vpop.f32.mrb[38].mxu1  ;;  %v608_v30 = vpop.f32.mrb[39].mxu0 }
 0x146   :  { %v654_v31 = vadd.f32 %v917_v29, %v509_v15  ;;  %v609_v32 = vadd.f32 %v608_v30, %v1522_v57  ;;  %v648_v34 = vpop.f32.mrb[39].mxu1 }
 0x147   :  { %664 = vst.msk [vmem:[%s1610_s3 + $0x38] sm:$0xff] %vm173_vm0, %v614_v41  ;;  %v649_v35 = vadd.f32 %v648_v34, %v504_v3 }
 0x148   :  { %672 = vst.msk [vmem:[%s1610_s3 + $0x78] sm:$0xff] %vm173_vm0, %v654_v31  ;;  %663 = vst.msk [vmem:[%s1610_s3 + $0x30] sm:$0xff] %vm173_vm0, %v609_v32 }
 0x149   :  { %671 = vst.msk [vmem:[%s1610_s3 + $0x70] sm:$0xff] %vm173_vm0, %v649_v35 }

// kernel: _lambda_.41
= control target key start
LH: loop header
LB: loop body
LE: loop exit
PB: predicated region body
PF: predicated region fallthrough
CT: control target
= control target key end

     0   :  { %s1615_s0 = inlined_call_operand.vmem [shape: f32[128,576], index: 0, kind: input, shape index: {}]   ;;  %s1616_s1 = inlined_call_operand.vmem [shape: f32[576,16], index: 1, kind: input, shape index: {}]   ;;  %s1617_s2 = inlined_call_operand.vmem [shape: f32[1,16], index: 2, kind: input, shape index: {}]   ;;  %s1618_s3 = inlined_call_operand.hbm [shape: f32[128,16], index: 3, kind: output, shape index: {}]  }
   0x1   :  { %v111_v0 = vld [vmem:[%s1616_s1 + $0x80] sm:$0xff]  ;;  %v112_v1 = vld [vmem:[%s1616_s1 + $0x88] sm:$0xff]  ;;  %v113_v11 = vld [vmem:[%s1616_s1 + $0x90] sm:$0xff] }
   0x2   :  { %v143_v2 = vld [vmem:[%s1616_s1 + $0x180] sm:$0xff]  ;;  %v932_v3 = vpack.c.bf16 %v112_v1, %v111_v0  ;;  %v144_v4 = vld [vmem:[%s1616_s1 + $0x188] sm:$0xff]  ;;  %v114_v13 = vld [vmem:[%s1616_s1 + $0x98] sm:$0xff] }
   0x3   :  { %v95_v5 = vld [vmem:[%s1616_s1] sm:$0xff]  ;;  %v96_v6 = vld [vmem:[%s1616_s1 + $0x8] sm:$0xff]  ;;  %v964_v7 = vpack.c.bf16 %v144_v4, %v143_v2  ;;  %v145_v14 = vld [vmem:[%s1616_s1 + $0x190] sm:$0xff]  ;;  %v936_v16 = vpack.c.bf16 %v114_v13, %v113_v11 }
   0x4   :  { %v934_v8 = vpack.c.bf16 %v96_v6, %v95_v5  ;;  %v127_v9 = vld [vmem:[%s1616_s1 + $0x100] sm:$0xff]  ;;  %v128_v10 = vld [vmem:[%s1616_s1 + $0x108] sm:$0xff]  ;;  %933 = vmatprep.subr.bf16.mxu0 %v932_v3  ;;  %v146_v15 = vld [vmem:[%s1616_s1 + $0x198] sm:$0xff] }
   0x5   :  { %v966_v12 = vpack.c.bf16 %v128_v10, %v127_v9  ;;  %965 = vmatprep.subr.bf16.mxu1 %v964_v7  ;;  %v968_v17 = vpack.c.bf16 %v146_v15, %v145_v14  ;;  %v97_v18 = vld [vmem:[%s1616_s1 + $0x10] sm:$0xff]  ;;  %v98_v19 = vld [vmem:[%s1616_s1 + $0x18] sm:$0xff]  ;;  %v115_v23 = vld [vmem:[%s1616_s1 + $0xa0] sm:$0xff] }
   0x6   :  { %935 = vmatpush3.bf16.msra.mxu0 %v934_v8  ;;  %v129_v20 = vld [vmem:[%s1616_s1 + $0x110] sm:$0xff]  ;;  %v938_v21 = vpack.c.bf16 %v98_v19, %v97_v18  ;;  %v130_v22 = vld [vmem:[%s1616_s1 + $0x118] sm:$0xff]  ;;  %v116_v24 = vld [vmem:[%s1616_s1 + $0xa8] sm:$0xff] }
   0x7   :  { %967 = vmatpush3.bf16.msra.mxu1 %v966_v12  ;;  %937 = vmatprep.subr.bf16.mxu0 %v936_v16  ;;  %v970_v25 = vpack.c.bf16 %v130_v22, %v129_v20  ;;  %v940_v26 = vpack.c.bf16 %v116_v24, %v115_v23  ;;  %v147_v27 = vld [vmem:[%s1616_s1 + $0x1a0] sm:$0xff]  ;;  %v148_v28 = vld [vmem:[%s1616_s1 + $0x1a8] sm:$0xff]  ;;  %v117_v35 = vld [vmem:[%s1616_s1 + $0xb0] sm:$0xff] }
   0x8   :  { %969 = vmatprep.subr.bf16.mxu1 %v968_v17  ;;  %v99_v29 = vld [vmem:[%s1616_s1 + $0x20] sm:$0xff]  ;;  %v972_v30 = vpack.c.bf16 %v148_v28, %v147_v27  ;;  %v100_v31 = vld [vmem:[%s1616_s1 + $0x28] sm:$0xff]  ;;  %v118_v36 = vld [vmem:[%s1616_s1 + $0xb8] sm:$0xff] }
   0x9   :  { %v131_v32 = vld [vmem:[%s1616_s1 + $0x120] sm:$0xff]  ;;  %v132_v33 = vld [vmem:[%s1616_s1 + $0x128] sm:$0xff]  ;;  %v942_v34 = vpack.c.bf16 %v100_v31, %v99_v29  ;;  %v149_v37 = vld [vmem:[%s1616_s1 + $0x1b0] sm:$0xff]  ;;  %v944_v39 = vpack.c.bf16 %v118_v36, %v117_v35 }
   0xa   :  { %939 = vmatpush3.bf16.msra.mxu0 %v938_v21  ;;  %v974_v38 = vpack.c.bf16 %v132_v33, %v131_v32  ;;  %v150_v40 = vld [vmem:[%s1616_s1 + $0x1b8] sm:$0xff]  ;;  %v101_v41 = vld [vmem:[%s1616_s1 + $0x30] sm:$0xff]  ;;  %v119_v46 = vld [vmem:[%s1616_s1 + $0xc0] sm:$0xff] }
   0xb   :  { %971 = vmatpush3.bf16.msra.mxu1 %v970_v25  ;;  %941 = vmatprep.subr.bf16.mxu0 %v940_v26  ;;  %v102_v42 = vld [vmem:[%s1616_s1 + $0x38] sm:$0xff]  ;;  %v976_v43 = vpack.c.bf16 %v150_v40, %v149_v37  ;;  %v133_v44 = vld [vmem:[%s1616_s1 + $0x130] sm:$0xff]  ;;  %v120_v47 = vld [vmem:[%s1616_s1 + $0xc8] sm:$0xff] }
   0xc   :  { %973 = vmatprep.subr.bf16.mxu1 %v972_v30  ;;  %v134_v45 = vld [vmem:[%s1616_s1 + $0x138] sm:$0xff]  ;;  %v151_v48 = vld [vmem:[%s1616_s1 + $0x1c0] sm:$0xff]  ;;  %v152_v49 = vld [vmem:[%s1616_s1 + $0x1c8] sm:$0xff]  ;;  %v946_v50 = vpack.c.bf16 %v102_v42, %v101_v41  ;;  %v948_v52 = vpack.c.bf16 %v120_v47, %v119_v46 }
   0xd   :  { %v978_v51 = vpack.c.bf16 %v134_v45, %v133_v44  ;;  %v103_v53 = vld [vmem:[%s1616_s1 + $0x40] sm:$0xff]  ;;  %v104_v54 = vld [vmem:[%s1616_s1 + $0x48] sm:$0xff]  ;;  %v980_v56 = vpack.c.bf16 %v152_v49, %v151_v48  ;;  %v121_v58 = vld [vmem:[%s1616_s1 + $0xd0] sm:$0xff] }
   0xe   :  { %943 = vmatpush3.bf16.msra.mxu0 %v942_v34  ;;  %v135_v55 = vld [vmem:[%s1616_s1 + $0x140] sm:$0xff]  ;;  %v136_v57 = vld [vmem:[%s1616_s1 + $0x148] sm:$0xff]  ;;  %v122_v59 = vld [vmem:[%s1616_s1 + $0xd8] sm:$0xff]  ;;  %v950_v62 = vpack.c.bf16 %v104_v54, %v103_v53 }
   0xf   :  { %975 = vmatpush3.bf16.msra.mxu1 %v974_v38  ;;  %945 = vmatprep.subr.bf16.mxu0 %v944_v39  ;;  %v153_v60 = vld [vmem:[%s1616_s1 + $0x1d0] sm:$0xff]  ;;  %v154_v61 = vld [vmem:[%s1616_s1 + $0x1d8] sm:$0xff]  ;;  %v982_v63 = vpack.c.bf16 %v136_v57, %v135_v55  ;;  %v952_v0 = vpack.c.bf16 %v122_v59, %v121_v58  ;;  %v123_v6 = vld [vmem:[%s1616_s1 + $0xe0] sm:$0xff] }
  0x10   :  { %977 = vmatprep.subr.bf16.mxu1 %v976_v43  ;;  %v105_v1 = vld [vmem:[%s1616_s1 + $0x50] sm:$0xff]  ;;  %v106_v2 = vld [vmem:[%s1616_s1 + $0x58] sm:$0xff]  ;;  %v984_v4 = vpack.c.bf16 %v154_v61, %v153_v60  ;;  %v124_v7 = vld [vmem:[%s1616_s1 + $0xe8] sm:$0xff] }
  0x11   :  { %v137_v3 = vld [vmem:[%s1616_s1 + $0x150] sm:$0xff]  ;;  %v138_v5 = vld [vmem:[%s1616_s1 + $0x158] sm:$0xff]  ;;  %v155_v8 = vld [vmem:[%s1616_s1 + $0x1e0] sm:$0xff]  ;;  %v954_v10 = vpack.c.bf16 %v106_v2, %v105_v1  ;;  %v956_v14 = vpack.c.bf16 %v124_v7, %v123_v6 }
  0x12   :  { %947 = vmatpush3.bf16.msra.mxu0 %v946_v50  ;;  %v156_v9 = vld [vmem:[%s1616_s1 + $0x1e8] sm:$0xff]  ;;  %v107_v11 = vld [vmem:[%s1616_s1 + $0x60] sm:$0xff]  ;;  %v986_v13 = vpack.c.bf16 %v138_v5, %v137_v3  ;;  %v18_v17 = vld [vmem:[%s1615_s0 + $0x18] sm:$0xff] }
  0x13   :  { %979 = vmatpush3.bf16.msra.mxu1 %v978_v51  ;;  %949 = vmatprep.subr.bf16.mxu0 %v948_v52  ;;  %v108_v12 = vld [vmem:[%s1616_s1 + $0x68] sm:$0xff]  ;;  %v139_v15 = vld [vmem:[%s1616_s1 + $0x160] sm:$0xff]  ;;  %v988_v18 = vpack.c.bf16 %v156_v9, %v155_v8  ;;  %v125_v20 = vld [vmem:[%s1616_s1 + $0xf0] sm:$0xff] }
  0x14   :  { %981 = vmatprep.subr.bf16.mxu1 %v980_v56  ;;  %v16_v16 = vld [vmem:[%s1615_s0 + $0x8] sm:$0xff]  ;;  %v126_v21 = vld [vmem:[%s1616_s1 + $0xf8] sm:$0xff]  ;;  %v157_v22 = vld [vmem:[%s1616_s1 + $0x1f0] sm:$0xff]  ;;  %432 = vmatprep.mubr.f32.mxu1 %v18_v17  ;;  %v958_v24 = vpack.c.bf16 %v108_v12, %v107_v11 }
  0x15   :  { %v140_v19 = vld [vmem:[%s1616_s1 + $0x168] sm:$0xff]  ;;  %287 = vmatprep.mubr.f32.mxu0 %v16_v16  ;;  %v158_v23 = vld [vmem:[%s1616_s1 + $0x1f8] sm:$0xff]  ;;  %v960_v26 = vpack.c.bf16 %v126_v21, %v125_v20  ;;  %v109_v27 = vld [vmem:[%s1616_s1 + $0x70] sm:$0xff] }
  0x16   :  { %951 = vmatpush3.bf16.msra.mxu0 %v950_v62  ;;  %v990_v25 = vpack.c.bf16 %v140_v19, %v139_v15  ;;  %v110_v28 = vld [vmem:[%s1616_s1 + $0x78] sm:$0xff]  ;;  %v141_v29 = vld [vmem:[%s1616_s1 + $0x170] sm:$0xff]  ;;  %v992_v30 = vpack.c.bf16 %v158_v23, %v157_v22  ;;  %v159_v32 = vld [vmem:[%s1616_s1 + $0x200] sm:$0xff] }
  0x17   :  { %983 = vmatpush3.bf16.msra.mxu1 %v982_v63  ;;  %953 = vmatprep.subr.bf16.mxu0 %v952_v0  ;;  %v142_v31 = vld [vmem:[%s1616_s1 + $0x178] sm:$0xff]  ;;  %v160_v33 = vld [vmem:[%s1616_s1 + $0x208] sm:$0xff]  ;;  %v962_v34 = vpack.c.bf16 %v110_v28, %v109_v27  ;;  %v161_v37 = vld [vmem:[%s1616_s1 + $0x210] sm:$0xff] }
  0x18   :  { %985 = vmatprep.subr.bf16.mxu1 %v984_v4  ;;  %v994_v35 = vpack.c.bf16 %v142_v31, %v141_v29  ;;  %v996_v36 = vpack.c.bf16 %v160_v33, %v159_v32  ;;  %v162_v38 = vld [vmem:[%s1616_s1 + $0x218] sm:$0xff]  ;;  %v15_v39 = vld [vmem:[%s1615_s0] sm:$0xff]  ;;  %v17_v40 = vld [vmem:[%s1615_s0 + $0x10] sm:$0xff] }
  0x19   :  { %v21_v41 = vld [vmem:[%s1615_s0 + $0x30] sm:$0xff]  ;;  %v1000_v42 = vpack.c.bf16 %v162_v38, %v161_v37  ;;  %v23_v43 = vld [vmem:[%s1615_s0 + $0x40] sm:$0xff]  ;;  %v164_v45 = vld [vmem:[%s1616_s1 + $0x228] sm:$0xff] }
  0x1a   :  { %955 = vmatpush3.bf16.msra.mxu0 %v954_v10  ;;  %v163_v44 = vld [vmem:[%s1616_s1 + $0x220] sm:$0xff]  ;;  %v20_v46 = vld [vmem:[%s1615_s0 + $0x28] sm:$0xff]  ;;  %v22_v47 = vld [vmem:[%s1615_s0 + $0x38] sm:$0xff] }
  0x1b   :  { %987 = vmatpush3.bf16.msra.mxu1 %v986_v13  ;;  %957 = vmatprep.subr.bf16.mxu0 %v956_v14  ;;  %v26_v48 = vld [vmem:[%s1615_s0 + $0x58] sm:$0xff]  ;;  %v28_v49 = vld [vmem:[%s1615_s0 + $0x68] sm:$0xff]  ;;  %v1004_v50 = vpack.c.bf16 %v164_v45, %v163_v44  ;;  %v25_v51 = vld [vmem:[%s1615_s0 + $0x50] sm:$0xff] }
  0x1c   :  { %989 = vmatprep.subr.bf16.mxu1 %v988_v18  ;;  %v165_v52 = vld [vmem:[%s1616_s1 + $0x230] sm:$0xff]  ;;  %v27_v53 = vld [vmem:[%s1615_s0 + $0x60] sm:$0xff]  ;;  %v166_v55 = vld [vmem:[%s1616_s1 + $0x238] sm:$0xff] }
  0x1d   :  { %v31_v54 = vld [vmem:[%s1615_s0 + $0x80] sm:$0xff]  ;;  %v33_v56 = vld [vmem:[%s1615_s0 + $0x90] sm:$0xff]  ;;  %v1008_v57 = vpack.c.bf16 %v166_v55, %v165_v52  ;;  %v30_v58 = vld [vmem:[%s1615_s0 + $0x78] sm:$0xff] }
  0x1e   :  { %959 = vmatpush3.bf16.msra.mxu0 %v958_v24  ;;  %v32_v59 = vld [vmem:[%s1615_s0 + $0x88] sm:$0xff]  ;;  %v38_v61 = vld [vmem:[%s1615_s0 + $0xb8] sm:$0xff]  ;;  %v35_v62 = vld [vmem:[%s1615_s0 + $0xa0] sm:$0xff] }
  0x1f   :  { %991 = vmatpush3.bf16.msra.mxu1 %v990_v25  ;;  %961 = vmatprep.subr.bf16.mxu0 %v960_v26  ;;  %v36_v60 = vld [vmem:[%s1615_s0 + $0xa8] sm:$0xff]  ;;  %v37_v63 = vld [vmem:[%s1615_s0 + $0xb0] sm:$0xff]  ;;  %v43_v1 = vld [vmem:[%s1615_s0 + $0xe0] sm:$0xff] }
  0x20   :  { %993 = vmatprep.subr.bf16.mxu1 %v992_v30  ;;  %v41_v0 = vld [vmem:[%s1615_s0 + $0xd0] sm:$0xff] }
  0x22   :  { %963 = vmatpush3.bf16.msra.mxu0 %v962_v34 }
  0x23   :  { %995 = vmatpush3.bf16.msra.mxu1 %v994_v35  ;;  %997 = vmatprep.subr.bf16.mxu0 %v996_v36 }
  0x24   :  { %1012 = vmatprep.subr.bf16.mxu1 %v996_v36 }
  0x25   :  { %288 = vmatmul.mubr.f32.vlgmr.msra.gmra.mrb[0].mxu0 %v15_v39 }
  0x26   :  { %433 = vmatmul.mubr.f32.vlgmr.msra.gmra.mrb[0].mxu1 %v17_v40  ;;  %999 = vmatpush3.bf16.msra.mxu0 %v996_v36 }
  0x27   :  { %1016 = vmatpush3.bf16.msra.mxu1 %v996_v36  ;;  %292 = vmatprep.mubr.f32.mxu0 %v21_v41 }
  0x28   :  { %437 = vmatprep.mubr.f32.mxu1 %v23_v43  ;;  %1001 = vmatprep.subr.bf16.mxu0 %v1000_v42 }
  0x29   :  { %293 = vmatmul.mubr.f32.gmra.mrb[2].mxu0 %v20_v46  ;;  %1013 = vmatprep.subr.bf16.mxu1 %v1000_v42 }
  0x2a   :  { %438 = vmatmul.mubr.f32.gmra.mrb[2].mxu1 %v22_v47  ;;  %297 = vmatprep.mubr.f32.mxu0 %v26_v48 }
  0x2b   :  { %442 = vmatprep.mubr.f32.mxu1 %v28_v49  ;;  %1003 = vmatpush3.bf16.msra.mxu0 %v1000_v42 }
  0x2c   :  { %1017 = vmatpush3.bf16.msra.mxu1 %v1000_v42  ;;  %1005 = vmatprep.subr.bf16.mxu0 %v1004_v50 }
  0x2d   :  { %298 = vmatmul.mubr.f32.gmra.mrb[4].mxu0 %v25_v51  ;;  %1014 = vmatprep.subr.bf16.mxu1 %v1004_v50 }
  0x2e   :  { %443 = vmatmul.mubr.f32.gmra.mrb[4].mxu1 %v27_v53  ;;  %302 = vmatprep.mubr.f32.mxu0 %v31_v54 }
  0x2f   :  { %447 = vmatprep.mubr.f32.mxu1 %v33_v56  ;;  %1007 = vmatpush3.bf16.msra.mxu0 %v1004_v50 }
  0x30   :  { %1018 = vmatpush3.bf16.msra.mxu1 %v1004_v50  ;;  %1009 = vmatprep.subr.bf16.mxu0 %v1008_v57 }
  0x31   :  { %303 = vmatmul.mubr.f32.gmra.mrb[6].mxu0 %v30_v58  ;;  %1015 = vmatprep.subr.bf16.mxu1 %v1008_v57 }
  0x32   :  { %448 = vmatmul.mubr.f32.gmra.mrb[6].mxu1 %v32_v59  ;;  %307 = vmatprep.mubr.f32.mxu0 %v36_v60 }
  0x33   :  { %452 = vmatprep.mubr.f32.mxu1 %v38_v61  ;;  %1011 = vmatpush3.bf16.msra.mxu0 %v1008_v57 }
  0x34   :  { %1019 = vmatpush3.bf16.msra.mxu1 %v1008_v57 }
  0x35   :  { %8 = vsyncpa [#allocation3], 0  ;;  %308 = vmatmul.mubr.f32.gmra.mrb[8].mxu0 %v35_v62  ;;  %v40_v2 = vld [vmem:[%s1615_s0 + $0xc8] sm:$0xff]  ;;  %v42_v3 = vld [vmem:[%s1615_s0 + $0xd8] sm:$0xff]  ;;  %vm174_vm0 = vcmask 523264   ;;  %vm658_vm1 = vcmask 130048  }
  0x36   :  { %453 = vmatmul.mubr.f32.gmra.mrb[8].mxu1 %v37_v63  ;;  %312 = vmatprep.mubr.f32.mxu0 %v41_v0  ;;  %v46_v4 = vld [vmem:[%s1615_s0 + $0xf8] sm:$0xff]  ;;  %v48_v5 = vld [vmem:[%s1615_s0 + $0x108] sm:$0xff]  ;;  %v45_v6 = vld [vmem:[%s1615_s0 + $0xf0] sm:$0xff] }
  0x37   :  { %457 = vmatprep.mubr.f32.mxu1 %v43_v1  ;;  %v47_v7 = vld [vmem:[%s1615_s0 + $0x100] sm:$0xff]  ;;  %v53_v9 = vld [vmem:[%s1615_s0 + $0x130] sm:$0xff]  ;;  %v50_v10 = vld [vmem:[%s1615_s0 + $0x118] sm:$0xff] }
  0x38   :  { %v51_v8 = vld [vmem:[%s1615_s0 + $0x120] sm:$0xff]  ;;  %v52_v11 = vld [vmem:[%s1615_s0 + $0x128] sm:$0xff]  ;;  %v58_v13 = vld [vmem:[%s1615_s0 + $0x158] sm:$0xff] }
  0x39   :  { %313 = vmatmul.mubr.f32.gmra.mrb[10].mxu0 %v40_v2  ;;  %v56_v12 = vld [vmem:[%s1615_s0 + $0x148] sm:$0xff]  ;;  %v55_v14 = vld [vmem:[%s1615_s0 + $0x140] sm:$0xff]  ;;  %v57_v15 = vld [vmem:[%s1615_s0 + $0x150] sm:$0xff] }
  0x3a   :  { %458 = vmatmul.mubr.f32.gmra.mrb[10].mxu1 %v42_v3  ;;  %317 = vmatprep.mubr.f32.mxu0 %v46_v4  ;;  %v61_v16 = vld [vmem:[%s1615_s0 + $0x170] sm:$0xff]  ;;  %v63_v17 = vld [vmem:[%s1615_s0 + $0x180] sm:$0xff]  ;;  %v60_v18 = vld [vmem:[%s1615_s0 + $0x168] sm:$0xff] }
  0x3b   :  { %462 = vmatprep.mubr.f32.mxu1 %v48_v5  ;;  %v62_v19 = vld [vmem:[%s1615_s0 + $0x178] sm:$0xff]  ;;  %v68_v21 = vld [vmem:[%s1615_s0 + $0x1a8] sm:$0xff]  ;;  %v65_v22 = vld [vmem:[%s1615_s0 + $0x190] sm:$0xff] }
  0x3c   :  { %v66_v20 = vld [vmem:[%s1615_s0 + $0x198] sm:$0xff]  ;;  %v67_v23 = vld [vmem:[%s1615_s0 + $0x1a0] sm:$0xff]  ;;  %v73_v25 = vld [vmem:[%s1615_s0 + $0x1d0] sm:$0xff] }
  0x3d   :  { %318 = vmatmul.mubr.f32.gmra.mrb[12].mxu0 %v45_v6  ;;  %v71_v24 = vld [vmem:[%s1615_s0 + $0x1c0] sm:$0xff]  ;;  %v70_v26 = vld [vmem:[%s1615_s0 + $0x1b8] sm:$0xff]  ;;  %v72_v27 = vld [vmem:[%s1615_s0 + $0x1c8] sm:$0xff] }
  0x3e   :  { %463 = vmatmul.mubr.f32.gmra.mrb[12].mxu1 %v47_v7  ;;  %322 = vmatprep.mubr.f32.mxu0 %v51_v8  ;;  %v76_v28 = vld [vmem:[%s1615_s0 + $0x1e8] sm:$0xff]  ;;  %v78_v29 = vld [vmem:[%s1615_s0 + $0x1f8] sm:$0xff]  ;;  %v75_v30 = vld [vmem:[%s1615_s0 + $0x1e0] sm:$0xff] }
  0x3f   :  { %467 = vmatprep.mubr.f32.mxu1 %v53_v9  ;;  %v77_v31 = vld [vmem:[%s1615_s0 + $0x1f0] sm:$0xff]  ;;  %v83_v33 = vld [vmem:[%s1615_s0 + $0x220] sm:$0xff]  ;;  %v80_v34 = vld [vmem:[%s1615_s0 + $0x208] sm:$0xff] }
  0x40   :  { %v81_v32 = vld [vmem:[%s1615_s0 + $0x210] sm:$0xff]  ;;  %v82_v35 = vld [vmem:[%s1615_s0 + $0x218] sm:$0xff]  ;;  %v88_v37 = vld [vmem:[%s1615_s0 + $0x248] sm:$0xff] }
  0x41   :  { %323 = vmatmul.mubr.f32.gmra.mrb[14].mxu0 %v50_v10  ;;  %v86_v36 = vld [vmem:[%s1615_s0 + $0x238] sm:$0xff]  ;;  %v85_v38 = vld [vmem:[%s1615_s0 + $0x230] sm:$0xff]  ;;  %v87_v39 = vld [vmem:[%s1615_s0 + $0x240] sm:$0xff] }
  0x42   :  { %468 = vmatmul.mubr.f32.gmra.mrb[14].mxu1 %v52_v11  ;;  %327 = vmatprep.mubr.f32.mxu0 %v56_v12  ;;  %v91_v40 = vld [vmem:[%s1615_s0 + $0x260] sm:$0xff]  ;;  %v93_v41 = vld [vmem:[%s1615_s0 + $0x270] sm:$0xff]  ;;  %v90_v42 = vld [vmem:[%s1615_s0 + $0x258] sm:$0xff] }
  0x43   :  { %472 = vmatprep.mubr.f32.mxu1 %v58_v13  ;;  %v92_v43 = vld [vmem:[%s1615_s0 + $0x268] sm:$0xff]  ;;  %v19_v44 = vld [vmem:[%s1615_s0 + $0x20] sm:$0xff]  ;;  %v29_v48 = vld [vmem:[%s1615_s0 + $0x70] sm:$0xff] }
  0x44   :  { %v59_v45 = vld [vmem:[%s1615_s0 + $0x160] sm:$0xff]  ;;  %v24_v46 = vld [vmem:[%s1615_s0 + $0x48] sm:$0xff]  ;;  %v69_v49 = vld [vmem:[%s1615_s0 + $0x1b0] sm:$0xff] }
  0x45   :  { %328 = vmatmul.mubr.f32.gmra.mrb[16].mxu0 %v55_v14  ;;  %v64_v47 = vld [vmem:[%s1615_s0 + $0x188] sm:$0xff]  ;;  %v34_v50 = vld [vmem:[%s1615_s0 + $0x98] sm:$0xff]  ;;  %v39_v52 = vld [vmem:[%s1615_s0 + $0xc0] sm:$0xff] }
  0x46   :  { %473 = vmatmul.mubr.f32.gmra.mrb[16].mxu1 %v57_v15  ;;  %332 = vmatprep.mubr.f32.mxu0 %v61_v16  ;;  %v74_v51 = vld [vmem:[%s1615_s0 + $0x1d8] sm:$0xff]  ;;  %v79_v53 = vld [vmem:[%s1615_s0 + $0x200] sm:$0xff]  ;;  %v44_v54 = vld [vmem:[%s1615_s0 + $0xe8] sm:$0xff] }
  0x47   :  { %477 = vmatprep.mubr.f32.mxu1 %v63_v17  ;;  %v84_v55 = vld [vmem:[%s1615_s0 + $0x228] sm:$0xff]  ;;  %v49_v56 = vld [vmem:[%s1615_s0 + $0x110] sm:$0xff]  ;;  %v54_v58 = vld [vmem:[%s1615_s0 + $0x138] sm:$0xff] }
  0x48   :  { %v89_v57 = vld [vmem:[%s1615_s0 + $0x250] sm:$0xff]  ;;  %v94_v59 = vld [vmem:[%s1615_s0 + $0x278] sm:$0xff]  ;;  %v1545_v62 = vld [vmem:[%s1617_s2] ss:$0 sm:$0xff]  ;;  %s1047_s0 = smov [#allocation2]  }
  0x49   :  { %333 = vmatmul.mubr.f32.gmra.mrb[18].mxu0 %v60_v18  ;;  %s680_s2 = sshll.u32 %s1047_s0, 4  ;;  %s681_s2 = int_to_ptr.vmem [resolvable:$true] %s680_s2 }
  0x4a   :  { %478 = vmatmul.mubr.f32.gmra.mrb[18].mxu1 %v62_v19  ;;  %337 = vmatprep.mubr.f32.mxu0 %v66_v20  ;;  %s1023_s16 = scalar_lea.vmem %s681_s2, 2048  ;;  %p1028_p1 = scmp.lt.s32.totalorder %s681_s2, %s681_s2 }
  0x4b   :  { %482 = vmatprep.mubr.f32.mxu1 %v68_v21  ;;  %p1024_p0 = scmp.ne.s32.totalorder %s681_s2, %s1023_s16  ;;  %p1029_p2 = scmp.lt.s32.totalorder %s1023_s16, %s1023_s16 }
  0x4d   :  { %338 = vmatmul.mubr.f32.gmra.mrb[20].mxu0 %v65_v22  ;;  %p1030_p3 = por %p1029_p2, %p1028_p1 }
  0x4e   :  { %483 = vmatmul.mubr.f32.gmra.mrb[20].mxu1 %v67_v23  ;;  %342 = vmatprep.mubr.f32.mxu0 %v71_v24 }
  0x4f   :  { %487 = vmatprep.mubr.f32.mxu1 %v73_v25  ;;  %p1031_p4 = pnand %p1030_p3, %p1024_p0 }
  0x51   :  { %343 = vmatmul.mubr.f32.gmra.mrb[22].mxu0 %v70_v26 }
  0x52   :  { %488 = vmatmul.mubr.f32.gmra.mrb[22].mxu1 %v72_v27  ;;  %347 = vmatprep.mubr.f32.mxu0 %v76_v28 }
  0x53   :  { %492 = vmatprep.mubr.f32.mxu1 %v78_v29 }
  0x55   :  { %348 = vmatmul.mubr.f32.gmra.mrb[24].mxu0 %v75_v30 }
  0x56   :  { %493 = vmatmul.mubr.f32.gmra.mrb[24].mxu1 %v77_v31  ;;  %352 = vmatprep.mubr.f32.mxu0 %v81_v32 }
  0x57   :  { %497 = vmatprep.mubr.f32.mxu1 %v83_v33 }
  0x59   :  { %353 = vmatmul.mubr.f32.gmra.mrb[26].mxu0 %v80_v34 }
  0x5a   :  { %498 = vmatmul.mubr.f32.gmra.mrb[26].mxu1 %v82_v35  ;;  %357 = vmatprep.mubr.f32.mxu0 %v86_v36 }
  0x5b   :  { %502 = vmatprep.mubr.f32.mxu1 %v88_v37 }
  0x5d   :  { %358 = vmatmul.mubr.f32.gmra.mrb[28].mxu0 %v85_v38 }
  0x5e   :  { %503 = vmatmul.mubr.f32.gmra.mrb[28].mxu1 %v87_v39  ;;  %362 = vmatprep.mubr.f32.mxu0 %v91_v40 }
  0x5f   :  { %507 = vmatprep.mubr.f32.mxu1 %v93_v41 }
  0x61   :  { %363 = vmatmul.mubr.f32.gmra.mrb[30].mxu0 %v90_v42 }
  0x62   :  { %508 = vmatmul.mubr.f32.gmra.mrb[30].mxu1 %v92_v43  ;;  %908 = vmatprep.mubr.msk.f32.mxu0 %vm174_vm0, %v19_v44 }
  0x63   :  { %920 = vmatprep.mubr.msk.f32.mxu1 %vm174_vm0, %v59_v45 }
  0x65   :  { %909 = vmatmul.mubr.msk.f32.vlgmr.msra.gmra.mrb[32].mxu0 %vm174_vm0, %v24_v46 }
  0x66   :  { %921 = vmatmul.mubr.msk.f32.vlgmr.msra.gmra.mrb[32].mxu1 %vm174_vm0, %v64_v47  ;;  %911 = vmatprep.mubr.msk.f32.mxu0 %vm174_vm0, %v29_v48 }
  0x67   :  { %923 = vmatprep.mubr.msk.f32.mxu1 %vm174_vm0, %v69_v49 }
  0x69   :  { %912 = vmatmul.mubr.msk.f32.gmra.mrb[34].mxu0 %vm174_vm0, %v34_v50 }
  0x6a   :  { %924 = vmatmul.mubr.msk.f32.gmra.mrb[34].mxu1 %vm174_vm0, %v74_v51  ;;  %914 = vmatprep.mubr.msk.f32.mxu0 %vm174_vm0, %v39_v52 }
  0x6b   :  { %926 = vmatprep.mubr.msk.f32.mxu1 %vm174_vm0, %v79_v53 }
  0x6d   :  { %915 = vmatmul.mubr.msk.f32.gmra.mrb[36].mxu0 %vm174_vm0, %v44_v54 }
  0x6e   :  { %927 = vmatmul.mubr.msk.f32.gmra.mrb[36].mxu1 %vm174_vm0, %v84_v55  ;;  %917 = vmatprep.mubr.msk.f32.mxu0 %vm174_vm0, %v49_v56 }
  0x6f   :  { %929 = vmatprep.mubr.msk.f32.mxu1 %vm174_vm0, %v89_v57 }
  0x71   :  { %918 = vmatmul.mubr.msk.f32.gmra.mrb[38].mxu0 %vm174_vm0, %v54_v58 }
  0x72   :  { %930 = vmatmul.mubr.msk.f32.gmra.mrb[38].mxu1 %vm174_vm0, %v94_v59 }
  0xf8   :  { %v740_v60 = vpop.f32.mrb[0].mxu0 }
  0xf9   :  { %v820_v61 = vpop.f32.mrb[0].mxu1  ;;  %v741_v63 = vpop.f32.mrb[1].mxu0 }
  0xfa   :  { %v742_v0 = vadd.f32 %v741_v63, %v740_v60  ;;  %v821_v1 = vpop.f32.mrb[1].mxu1 }
  0xfb   :  { %v822_v2 = vadd.f32 %v821_v1, %v820_v61 }
  0xfc   :  { %v290_v3 = vadd.f32 %v742_v0, %v1545_v62  ;;  %v743_v4 = vpop.f32.mrb[2].mxu0 }
  0xfd   :  { %v823_v5 = vpop.f32.mrb[2].mxu1  ;;  %v744_v6 = vpop.f32.mrb[3].mxu0 }
  0xfe   :  { %v745_v7 = vadd.f32 %v744_v6, %v743_v4  ;;  %v824_v8 = vpop.f32.mrb[3].mxu1  ;;  %v1548_v9 = vadd.f32 %v822_v2, %v290_v3 }
  0xff   :  { %v825_v10 = vadd.f32 %v824_v8, %v823_v5 }
 0x100   :  { %v295_v11 = vadd.f32 %v745_v7, %v1545_v62  ;;  %v746_v12 = vpop.f32.mrb[4].mxu0 }
 0x101   :  { %v826_v13 = vpop.f32.mrb[4].mxu1  ;;  %v747_v14 = vpop.f32.mrb[5].mxu0 }
 0x102   :  { %v748_v15 = vadd.f32 %v747_v14, %v746_v12  ;;  %v827_v16 = vpop.f32.mrb[5].mxu1  ;;  %v1551_v17 = vadd.f32 %v825_v10, %v295_v11 }
 0x103   :  { %v828_v18 = vadd.f32 %v827_v16, %v826_v13 }
 0x104   :  { %v300_v19 = vadd.f32 %v748_v15, %v1545_v62  ;;  %v749_v20 = vpop.f32.mrb[6].mxu0 }
 0x105   :  { %v829_v21 = vpop.f32.mrb[6].mxu1  ;;  %v750_v22 = vpop.f32.mrb[7].mxu0 }
 0x106   :  { %v751_v23 = vadd.f32 %v750_v22, %v749_v20  ;;  %v830_v24 = vpop.f32.mrb[7].mxu1  ;;  %v1554_v25 = vadd.f32 %v828_v18, %v300_v19 }
 0x107   :  { %v831_v26 = vadd.f32 %v830_v24, %v829_v21 }
 0x108   :  { %v305_v27 = vadd.f32 %v751_v23, %v1545_v62  ;;  %v752_v28 = vpop.f32.mrb[8].mxu0 }
 0x109   :  { %v832_v29 = vpop.f32.mrb[8].mxu1  ;;  %v753_v30 = vpop.f32.mrb[9].mxu0 }
 0x10a   :  { %v754_v31 = vadd.f32 %v753_v30, %v752_v28  ;;  %v833_v32 = vpop.f32.mrb[9].mxu1  ;;  %v1557_v33 = vadd.f32 %v831_v26, %v305_v27 }
 0x10b   :  { %v834_v34 = vadd.f32 %v833_v32, %v832_v29 }
 0x10c   :  { %v310_v35 = vadd.f32 %v754_v31, %v1545_v62  ;;  %v755_v36 = vpop.f32.mrb[10].mxu0 }
 0x10d   :  { %v835_v37 = vpop.f32.mrb[10].mxu1  ;;  %v756_v38 = vpop.f32.mrb[11].mxu0 }
 0x10e   :  { %v757_v39 = vadd.f32 %v756_v38, %v755_v36  ;;  %v836_v40 = vpop.f32.mrb[11].mxu1  ;;  %v1560_v41 = vadd.f32 %v834_v34, %v310_v35 }
 0x10f   :  { %v837_v42 = vadd.f32 %v836_v40, %v835_v37 }
 0x110   :  { %v315_v43 = vadd.f32 %v757_v39, %v1545_v62  ;;  %v758_v44 = vpop.f32.mrb[12].mxu0 }
 0x111   :  { %v838_v45 = vpop.f32.mrb[12].mxu1  ;;  %v759_v46 = vpop.f32.mrb[13].mxu0 }
 0x112   :  { %v760_v47 = vadd.f32 %v759_v46, %v758_v44  ;;  %v839_v48 = vpop.f32.mrb[13].mxu1  ;;  %v1563_v49 = vadd.f32 %v837_v42, %v315_v43 }
 0x113   :  { %v840_v50 = vadd.f32 %v839_v48, %v838_v45 }
 0x114   :  { %v320_v51 = vadd.f32 %v760_v47, %v1545_v62  ;;  %v761_v52 = vpop.f32.mrb[14].mxu0 }
 0x115   :  { %v841_v53 = vpop.f32.mrb[14].mxu1  ;;  %v762_v54 = vpop.f32.mrb[15].mxu0 }
 0x116   :  { %v763_v55 = vadd.f32 %v762_v54, %v761_v52  ;;  %v842_v56 = vpop.f32.mrb[15].mxu1  ;;  %v1566_v57 = vadd.f32 %v840_v50, %v320_v51 }
 0x117   :  { %v843_v58 = vadd.f32 %v842_v56, %v841_v53 }
 0x118   :  { %v325_v59 = vadd.f32 %v763_v55, %v1545_v62  ;;  %v764_v60 = vpop.f32.mrb[16].mxu0 }
 0x119   :  { %v844_v61 = vpop.f32.mrb[16].mxu1  ;;  %v765_v63 = vpop.f32.mrb[17].mxu0 }
 0x11a   :  { %v766_v0 = vadd.f32 %v765_v63, %v764_v60  ;;  %v845_v1 = vpop.f32.mrb[17].mxu1  ;;  %v1569_v2 = vadd.f32 %v843_v58, %v325_v59 }
 0x11b   :  { %v846_v3 = vadd.f32 %v845_v1, %v844_v61 }
 0x11c   :  { %v330_v4 = vadd.f32 %v766_v0, %v1545_v62  ;;  %v767_v5 = vpop.f32.mrb[18].mxu0 }
 0x11d   :  { %v847_v6 = vpop.f32.mrb[18].mxu1  ;;  %v768_v7 = vpop.f32.mrb[19].mxu0 }
 0x11e   :  { %v769_v8 = vadd.f32 %v768_v7, %v767_v5  ;;  %v848_v10 = vpop.f32.mrb[19].mxu1  ;;  %v475_v11 = vadd.f32 %v846_v3, %v330_v4 }
 0x11f   :  { %v849_v12 = vadd.f32 %v848_v10, %v847_v6 }
 0x120   :  { %v335_v13 = vadd.f32 %v769_v8, %v1545_v62  ;;  %v770_v14 = vpop.f32.mrb[20].mxu0 }
 0x121   :  { %v850_v15 = vpop.f32.mrb[20].mxu1  ;;  %v771_v16 = vpop.f32.mrb[21].mxu0 }
 0x122   :  { %v772_v18 = vadd.f32 %v771_v16, %v770_v14  ;;  %v851_v19 = vpop.f32.mrb[21].mxu1  ;;  %v480_v20 = vadd.f32 %v849_v12, %v335_v13 }
 0x123   :  { %v852_v21 = vadd.f32 %v851_v19, %v850_v15 }
 0x124   :  { %v340_v22 = vadd.f32 %v772_v18, %v1545_v62  ;;  %v773_v23 = vpop.f32.mrb[22].mxu0 }
 0x125   :  { %v853_v24 = vpop.f32.mrb[22].mxu1  ;;  %v774_v26 = vpop.f32.mrb[23].mxu0 }
 0x126   :  { %v775_v27 = vadd.f32 %v774_v26, %v773_v23  ;;  %v854_v28 = vpop.f32.mrb[23].mxu1  ;;  %v485_v29 = vadd.f32 %v852_v21, %v340_v22 }
 0x127   :  { %v855_v30 = vadd.f32 %v854_v28, %v853_v24 }
 0x128   :  { %v345_v31 = vadd.f32 %v775_v27, %v1545_v62  ;;  %v776_v32 = vpop.f32.mrb[24].mxu0 }
 0x129   :  { %v856_v34 = vpop.f32.mrb[24].mxu1  ;;  %v777_v35 = vpop.f32.mrb[25].mxu0 }
 0x12a   :  { %v778_v36 = vadd.f32 %v777_v35, %v776_v32  ;;  %v857_v37 = vpop.f32.mrb[25].mxu1  ;;  %v490_v38 = vadd.f32 %v855_v30, %v345_v31 }
 0x12b   :  { %v858_v39 = vadd.f32 %v857_v37, %v856_v34 }
 0x12c   :  { %v350_v40 = vadd.f32 %v778_v36, %v1545_v62  ;;  %v779_v42 = vpop.f32.mrb[26].mxu0 }
 0x12d   :  { %v859_v43 = vpop.f32.mrb[26].mxu1  ;;  %v780_v44 = vpop.f32.mrb[27].mxu0 }
 0x12e   :  { %v781_v45 = vadd.f32 %v780_v44, %v779_v42  ;;  %v860_v46 = vpop.f32.mrb[27].mxu1  ;;  %v495_v47 = vadd.f32 %v858_v39, %v350_v40 }
 0x12f   :  { %v861_v48 = vadd.f32 %v860_v46, %v859_v43 }
 0x130   :  { %v355_v50 = vadd.f32 %v781_v45, %v1545_v62  ;;  %v782_v51 = vpop.f32.mrb[28].mxu0 }
 0x131   :  { %v862_v52 = vpop.f32.mrb[28].mxu1  ;;  %v783_v53 = vpop.f32.mrb[29].mxu0 }
 0x132   :  { %v784_v54 = vadd.f32 %v783_v53, %v782_v51  ;;  %v863_v55 = vpop.f32.mrb[29].mxu1  ;;  %v500_v56 = vadd.f32 %v861_v48, %v355_v50 }
 0x133   :  { %v864_v58 = vadd.f32 %v863_v55, %v862_v52 }
 0x134   :  { %v360_v59 = vadd.f32 %v784_v54, %v1545_v62  ;;  %v785_v60 = vpop.f32.mrb[30].mxu0 }
 0x135   :  { %v865_v61 = vpop.f32.mrb[30].mxu1  ;;  %v786_v63 = vpop.f32.mrb[31].mxu0 }
 0x136   :  { %v787_v0 = vadd.f32 %v786_v63, %v785_v60  ;;  %v866_v1 = vpop.f32.mrb[31].mxu1  ;;  %v505_v3 = vadd.f32 %v864_v58, %v360_v59 }
 0x137   :  { %v867_v4 = vadd.f32 %v866_v1, %v865_v61 }
 0x138   :  { %v365_v5 = vadd.f32 %v787_v0, %v1545_v62  ;;  %v910_v6 = vpop.f32.mrb[32].mxu0 }
 0x139   :  { %v585_v7 = vadd.f32 %v910_v6, %v1551_v17  ;;  %v922_v8 = vpop.f32.mrb[32].mxu1  ;;  %v579_v10 = vpop.f32.mrb[33].mxu0 }
 0x13a   :  { %v625_v12 = vadd.f32 %v922_v8, %v480_v20  ;;  %v580_v13 = vadd.f32 %v579_v10, %v1548_v9  ;;  %v619_v14 = vpop.f32.mrb[33].mxu1  ;;  %v510_v15 = vadd.f32 %v867_v4, %v365_v5 }
 0x13b   :  { %660 = vst.msk [vmem:[#allocation2 + $0x8] sm:$0xff] %vm658_vm1, %v585_v7  ;;  %v620_v16 = vadd.f32 %v619_v14, %v475_v11 }
 0x13c   :  { %668 = vst.msk [vmem:[#allocation2 + $0x48] sm:$0xff] %vm658_vm1, %v625_v12  ;;  %659 = vst.msk [vmem:[#allocation2] sm:$0xff] %vm658_vm1, %v580_v13  ;;  %v913_v18 = vpop.f32.mrb[34].mxu0 }
 0x13d   :  { %667 = vst.msk [vmem:[#allocation2 + $0x40] sm:$0xff] %vm658_vm1, %v620_v16  ;;  %v595_v62 = vadd.f32 %v913_v18, %v1557_v33  ;;  %v925_v17 = vpop.f32.mrb[34].mxu1  ;;  %v589_v19 = vpop.f32.mrb[35].mxu0 }
 0x13e   :  { %v635_v21 = vadd.f32 %v925_v17, %v490_v38  ;;  %v590_v20 = vadd.f32 %v589_v19, %v1554_v25  ;;  %v629_v9 = vpop.f32.mrb[35].mxu1 }
 0x13f   :  { %662 = vst.msk [vmem:[#allocation2 + $0x18] sm:$0xff] %vm658_vm1, %v595_v62  ;;  %v630_v22 = vadd.f32 %v629_v9, %v485_v29 }
 0x140   :  { %670 = vst.msk [vmem:[#allocation2 + $0x58] sm:$0xff] %vm658_vm1, %v635_v21  ;;  %661 = vst.msk [vmem:[#allocation2 + $0x10] sm:$0xff] %vm658_vm1, %v590_v20  ;;  %v916_v11 = vpop.f32.mrb[36].mxu0 }
 0x141   :  { %669 = vst.msk [vmem:[#allocation2 + $0x50] sm:$0xff] %vm658_vm1, %v630_v22  ;;  %v605_v23 = vadd.f32 %v916_v11, %v1563_v49  ;;  %v928_v24 = vpop.f32.mrb[36].mxu1  ;;  %v599_v33 = vpop.f32.mrb[37].mxu0 }
 0x142   :  { %v645_v26 = vadd.f32 %v928_v24, %v500_v56  ;;  %v600_v27 = vadd.f32 %v599_v33, %v1560_v41  ;;  %v639_v28 = vpop.f32.mrb[37].mxu1 }
 0x143   :  { %664 = vst.msk [vmem:[#allocation2 + $0x28] sm:$0xff] %vm658_vm1, %v605_v23  ;;  %v640_v25 = vadd.f32 %v639_v28, %v495_v47 }
 0x144   :  { %672 = vst.msk [vmem:[#allocation2 + $0x68] sm:$0xff] %vm658_vm1, %v645_v26  ;;  %663 = vst.msk [vmem:[#allocation2 + $0x20] sm:$0xff] %vm658_vm1, %v600_v27  ;;  %v919_v29 = vpop.f32.mrb[38].mxu0 }
 0x145   :  { %671 = vst.msk [vmem:[#allocation2 + $0x60] sm:$0xff] %vm658_vm1, %v640_v25  ;;  %v615_v49 = vadd.f32 %v919_v29, %v1569_v2  ;;  %v931_v30 = vpop.f32.mrb[38].mxu1  ;;  %v609_v31 = vpop.f32.mrb[39].mxu0 }
 0x146   :  { %v655_v32 = vadd.f32 %v931_v30, %v510_v15  ;;  %v610_v41 = vadd.f32 %v609_v31, %v1566_v57  ;;  %v649_v34 = vpop.f32.mrb[39].mxu1 }
 0x147   :  { %666 = vst.msk [vmem:[#allocation2 + $0x38] sm:$0xff] %vm658_vm1, %v615_v49  ;;  %v650_v35 = vadd.f32 %v649_v34, %v505_v3 }
 0x148   :  { %674 = vst.msk [vmem:[#allocation2 + $0x78] sm:$0xff] %vm658_vm1, %v655_v32  ;;  %665 = vst.msk [vmem:[#allocation2 + $0x30] sm:$0xff] %vm658_vm1, %v610_v41 }
 0x149   :  { %673 = vst.msk [vmem:[#allocation2 + $0x70] sm:$0xff] %vm658_vm1, %v650_v35 }
 0x14a   :  { %1034 = shalt.err (!%p1031_p4)
}
 0x14b   :  { %s1035_s19 = scalar_lea.hbm %s1618_s3, 2048 }
 0x14c   :  { %p1036_p5 = scmp.ne.s32.totalorder %s1618_s3, %s1035_s19  ;;  %p1039_p6 = scmp.lt.u32.totalorder %s1035_s19, %s1618_s3 }
 0x14e   :  { %p1041_p7 = pnand %p1039_p6, %p1036_p5 }
 0x150   :  { %1044 = shalt.err (!%p1041_p7)
}
 0x151   :  { %s1048_s24 = smov 128   ;;  %s1049_s25 = smov 8  }
 0x152   :  { %686 = dma.vmem_to_hbm [thread:$0]  %s681_s2, 2048, %s1618_s3, [#allocation3], %s1048_s24, %s1048_s24, %s1049_s25  }
 0x153   :  { %1045 = dma.done.wait [#allocation3], 2048  }
 0x154   :  { %1046 = vsyncadd [#allocation3], 4294965248 }
 0x155   :  { %690 = vsyncpa [#allocation3], 1 }

</bundles_post_ra>
